<compile_context>
chip_gen: v7x
topology: tpu7x:2x2x1
jax: 0.10.0
libtpu: 0.0.40
codegen_flags: <defaults>
</compile_context>

<pallas_src>
import jax
import jax.numpy as jnp
from jax.experimental import pallas as pl
from jax.experimental.pallas import tpu as pltpu


# ----------------------------------------------------------------------------
# Fused kernel: one batch element per grid step, everything in VMEM.
# ----------------------------------------------------------------------------
def _fused_kernel(x_ref,                       # (1, T1, 5*input_dim) bf16
                  w1_ref, b1_ref,              # tdnn1 (pre-unfolded K)
                  w2_ref, b2_ref,              # tdnn2 (3, 512, 512)
                  w3_ref, b3_ref,              # tdnn3 (2, 512, 512)
                  w4_ref, b4_ref,              # tdnn4
                  w5_ref, b5_ref,              # tdnn5
                  w6_ref, b6_ref,              # segment6 (1024, 512)
                  w7_ref, b7_ref,              # segment7
                  wo_ref, bo_ref,              # output
                  w1a_ref, b1a_ref,            # layer1[0]
                  prelu_ref,                   # (1, 1) PReLU slope
                  w1b_ref, b1b_ref,            # layer1[2]
                  wcls_ref, bcls_ref,          # layer2[0]
                  out_ref, xvec_ref):          # (1, 1, C), (1, 1, 512)
    f32 = jnp.float32

    def dense(x_bf16, w_ref_, b_ref_):
        # (M, K) bf16 @ (K, N) bf16 -> (M, N) f32 on the MXU, + bias (1, N) f32.
        return (jnp.dot(x_bf16, w_ref_[...], preferred_element_type=f32)
                + b_ref_[...])

    # ---- tdnn1: context pre-unfolded in the wrapper -> single K=200 matmul ----
    h = jnp.maximum(dense(x_ref[0], w1_ref, b1_ref), 0.0)          # (T1, 512) f32

    # ---- tdnn2 / tdnn3: accumulate context taps as matmuls (K=512 each) ----
    def tdnn_ctx(h_in, w_ref_, b_ref_, ctx, dil):
        t_out = h_in.shape[0] - dil * (ctx - 1)
        hb = h_in.astype(jnp.bfloat16)
        acc = jnp.zeros((t_out, w_ref_.shape[-1]), f32)
        for c in range(ctx):                     # static unroll over taps
            lo = c * dil
            acc = acc + jnp.dot(hb[lo:lo + t_out, :], w_ref_[c],
                                preferred_element_type=f32)
        return jnp.maximum(acc + b_ref_[...], 0.0)

    h = tdnn_ctx(h, w2_ref, b2_ref, ctx=3, dil=1)                   # (T2, 512)
    h = tdnn_ctx(h, w3_ref, b3_ref, ctx=2, dil=2)                   # (T3, 512)
    h = jnp.maximum(dense(h.astype(jnp.bfloat16), w4_ref, b4_ref), 0.0)
    h = jnp.maximum(dense(h.astype(jnp.bfloat16), w5_ref, b5_ref), 0.0)  # (T5, 512)

    # ---- statistics pooling in f32 (torch.var default: unbiased, /(T-1)) ----
    t5 = h.shape[0]
    mean = jnp.mean(h, axis=0, keepdims=True)                       # (1, 512)
    var = jnp.sum((h - mean) ** 2, axis=0, keepdims=True) / (t5 - 1)

    # stat_pooling = cat(mean, var) @ W6  ==  mean @ W6[:D] + var @ W6[D:]
    # (split into two K=512 matmuls so we never build the 1024-lane concat)
    d = mean.shape[1]
    seg6 = (jnp.dot(mean.astype(jnp.bfloat16), w6_ref[0:d, :],
                    preferred_element_type=f32)
            + jnp.dot(var.astype(jnp.bfloat16), w6_ref[d:2 * d, :],
                      preferred_element_type=f32)
            + b6_ref[...])
    x_vec = dense(seg6.astype(jnp.bfloat16), w7_ref, b7_ref)        # segment7
    x = jax.nn.sigmoid(dense(x_vec.astype(jnp.bfloat16), wo_ref, bo_ref))

    # layer1: Linear -> PReLU -> Linear -> Sigmoid, residual add with x
    h1 = dense(x.astype(jnp.bfloat16), w1a_ref, b1a_ref)
    a = prelu_ref[0, 0]
    h1 = jnp.where(h1 >= 0.0, h1, a * h1)
    o1 = jax.nn.sigmoid(dense(h1.astype(jnp.bfloat16), w1b_ref, b1b_ref))
    o1 = o1 + x

    # layer2: Linear -> Sigmoid
    out = jax.nn.sigmoid(dense(o1.astype(jnp.bfloat16), wcls_ref, bcls_ref))

    out_ref[0] = out.astype(out_ref.dtype)
    xvec_ref[0] = x_vec.astype(xvec_ref.dtype)


def _const_index_map(ndim):
    def imap(b):
        return (0,) * ndim
    return imap


# ----------------------------------------------------------------------------
# Forward pass: one fused pallas_call gridded over batch ("parallel" for v7x).
# ----------------------------------------------------------------------------
def x_vector_forward(inputs, p):
    B, T, d_in = inputs.shape
    ctx1 = 5
    T1 = T - (ctx1 - 1)
    # Time shrinkage: tdnn1 (-4), tdnn2 (-2), tdnn3 (-2); need >=2 frames for var.
    assert T >= 10, "X_vector needs T >= 10 frames"
    hidden = p["w7"].shape[1]
    num_classes = p["w2"].shape[1]

    # Pre-unfold tdnn1 context (context-major, matching F.unfold on (B,1,T,D)):
    # x_unf[b, t, c*D : (c+1)*D] = x[b, t + c, :]
    x_unf = jnp.concatenate([inputs[:, c:c + T1, :] for c in range(ctx1)],
                            axis=-1).astype(jnp.bfloat16)

    bf = lambda w: w.astype(jnp.bfloat16)
    row = lambda b: b.reshape(1, -1).astype(jnp.float32)

    args = (
        x_unf,
        bf(p["tdnn1_w"]), row(p["tdnn1_b"]),
        bf(p["tdnn2_w"].reshape(3, hidden, hidden)), row(p["tdnn2_b"]),
        bf(p["tdnn3_w"].reshape(2, hidden, hidden)), row(p["tdnn3_b"]),
        bf(p["tdnn4_w"]), row(p["tdnn4_b"]),
        bf(p["tdnn5_w"]), row(p["tdnn5_b"]),
        bf(p["w6"]), row(p["b6"]),
        bf(p["w7"]), row(p["b7"]),
        bf(p["wo"]), row(p["bo"]),
        bf(p["w1a"]), row(p["b1a"]),
        p["prelu_a"].reshape(1, 1).astype(jnp.float32),
        bf(p["w1b"]), row(p["b1b"]),
        bf(p["w2"]), row(p["b2"]),
    )

    # Input: one batch element per grid step.  Weights: full-array blocks with a
    # constant index_map -> DMA'd once, resident in VMEM for all grid steps.
    in_specs = [pl.BlockSpec((1, T1, ctx1 * d_in), lambda b: (b, 0, 0))]
    in_specs += [pl.BlockSpec(a.shape, _const_index_map(a.ndim))
                 for a in args[1:]]

    out, x_vec = pl.pallas_call(
        _fused_kernel,
        out_shape=(jax.ShapeDtypeStruct((B, 1, num_classes), jnp.float32),
                   jax.ShapeDtypeStruct((B, 1, hidden), jnp.float32)),
        grid=(B,),
        in_specs=in_specs,
        out_specs=[pl.BlockSpec((1, 1, num_classes), lambda b: (b, 0, 0)),
                   pl.BlockSpec((1, 1, hidden), lambda b: (b, 0, 0))],
        compiler_params=pltpu.CompilerParams(
            dimension_semantics=("parallel",),
            vmem_limit_bytes=32 * 1024 * 1024),
    )(*args)
    return out[:, 0, :], x_vec[:, 0, :]


# ----------------------------------------------------------------------------
# Pure-JAX f32 reference (same unfold/weight conventions) for validation.
# ----------------------------------------------------------------------------
def x_vector_reference(inputs, p):
    def tdnn_ref(x, w, b, ctx, dil):
        T = x.shape[1]
        t_out = T - dil * (ctx - 1)
        xu = jnp.concatenate([x[:, c * dil:c * dil + t_out, :]
                              for c in range(ctx)], axis=-1)
        return jnp.maximum(jnp.einsum('btk,ko->bto', xu, w) + b, 0.0)

    h = tdnn_ref(inputs, p["tdnn1_w"], p["tdnn1_b"], 5, 1)
    h = tdnn_ref(h, p["tdnn2_w"], p["tdnn2_b"], 3, 1)
    h = tdnn_ref(h, p["tdnn3_w"], p["tdnn3_b"], 2, 2)
    h = tdnn_ref(h, p["tdnn4_w"], p["tdnn4_b"], 1, 1)
    h = tdnn_ref(h, p["tdnn5_w"], p["tdnn5_b"], 1, 3)
    t5 = h.shape[1]
    mean = jnp.mean(h, axis=1)
    var = jnp.sum((h - mean[:, None, :]) ** 2, axis=1) / (t5 - 1)
    sp = jnp.concatenate([mean, var], axis=-1)
    seg6 = sp @ p["w6"] + p["b6"]
    x_vec = seg6 @ p["w7"] + p["b7"]
    x = jax.nn.sigmoid(x_vec @ p["wo"] + p["bo"])
    h1 = x @ p["w1a"] + p["b1a"]
    a = p["prelu_a"][0]
    h1 = jnp.where(h1 >= 0.0, h1, a * h1)
    o1 = jax.nn.sigmoid(h1 @ p["w1b"] + p["b1b"]) + x
    out = jax.nn.sigmoid(o1 @ p["w2"] + p["b2"])
    return out, x_vec


# ----------------------------------------------------------------------------
# Deterministic synthetic parameter init (shapes from X_vector.__init__).
# ----------------------------------------------------------------------------
def init_params(key, input_dim=40, num_classes=8, hidden=512):
    keys = list(jax.random.split(key, 40))
    it = iter(keys)

    def lin(fan_in, fan_out):
        scale = 1.0 / jnp.sqrt(jnp.float32(fan_in))
        w = jax.random.normal(next(it), (fan_in, fan_out), jnp.float32) * scale
        b = jax.random.normal(next(it), (fan_out,), jnp.float32) * 0.01
        return w, b

    p = {}
    p["tdnn1_w"], p["tdnn1_b"] = lin(5 * input_dim, hidden)
    p["tdnn2_w"], p["tdnn2_b"] = lin(3 * hidden, hidden)
    p["tdnn3_w"], p["tdnn3_b"] = lin(2 * hidden, hidden)
    p["tdnn4_w"], p["tdnn4_b"] = lin(1 * hidden, hidden)
    p["tdnn5_w"], p["tdnn5_b"] = lin(1 * hidden, hidden)
    p["w6"], p["b6"] = lin(2 * hidden, hidden)     # segment6: Linear(1024, 512)
    p["w7"], p["b7"] = lin(hidden, hidden)         # segment7
    p["wo"], p["bo"] = lin(hidden, hidden)         # output
    p["w1a"], p["b1a"] = lin(hidden, hidden)       # layer1[0]
    p["prelu_a"] = jnp.array([0.25], jnp.float32)  # nn.PReLU default init
    p["w1b"], p["b1b"] = lin(hidden, hidden)       # layer1[2]
    p["w2"], p["b2"] = lin(hidden, num_classes)    # layer2[0]
    return p


if __name__ == "__main__":
    B, T, input_dim, num_classes = 2, 16, 40, 8

    key = jax.random.PRNGKey(0)
    k_params, k_x = jax.random.split(key)
    params = init_params(k_params, input_dim=input_dim, num_classes=num_classes)
    inputs = jax.random.normal(k_x, (B, T, input_dim), jnp.float32)

    out, x_vec = jax.jit(x_vector_forward)(inputs, params)
    jax.block_until_ready((out, x_vec))

    assert out.shape == (B, num_classes), out.shape
    assert x_vec.shape == (B, 512), x_vec.shape
    assert bool(jnp.all(jnp.isfinite(out))) and bool(jnp.all(jnp.isfinite(x_vec)))

    # Loose tolerance vs f32 reference (kernel matmuls run in bf16 on the MXU).
    out_ref, xvec_ref = jax.jit(x_vector_reference)(inputs, params)
    assert bool(jnp.allclose(out, out_ref, atol=1e-1, rtol=1e-1)), (
        float(jnp.max(jnp.abs(out - out_ref))))
    assert bool(jnp.allclose(x_vec, xvec_ref, atol=1e-1, rtol=1e-1)), (
        float(jnp.max(jnp.abs(x_vec - xvec_ref))))

    print("KERNEL_OK")
</pallas_src>

<mosaic_0001>
module attributes {stable_mosaic.version = 11 : i64} {
  func.func @_fused_kernel(%arg0: i32, %arg1: memref<1x12x200xbf16, #tpu.memory_space<vmem>>, %arg2: memref<200x512xbf16, #tpu.memory_space<vmem>>, %arg3: memref<1x512xf32, #tpu.memory_space<vmem>>, %arg4: memref<3x512x512xbf16, #tpu.memory_space<vmem>>, %arg5: memref<1x512xf32, #tpu.memory_space<vmem>>, %arg6: memref<2x512x512xbf16, #tpu.memory_space<vmem>>, %arg7: memref<1x512xf32, #tpu.memory_space<vmem>>, %arg8: memref<512x512xbf16, #tpu.memory_space<vmem>>, %arg9: memref<1x512xf32, #tpu.memory_space<vmem>>, %arg10: memref<512x512xbf16, #tpu.memory_space<vmem>>, %arg11: memref<1x512xf32, #tpu.memory_space<vmem>>, %arg12: memref<1024x512xbf16, #tpu.memory_space<vmem>>, %arg13: memref<1x512xf32, #tpu.memory_space<vmem>>, %arg14: memref<512x512xbf16, #tpu.memory_space<vmem>>, %arg15: memref<1x512xf32, #tpu.memory_space<vmem>>, %arg16: memref<512x512xbf16, #tpu.memory_space<vmem>>, %arg17: memref<1x512xf32, #tpu.memory_space<vmem>>, %arg18: memref<512x512xbf16, #tpu.memory_space<vmem>>, %arg19: memref<1x512xf32, #tpu.memory_space<vmem>>, %arg20: memref<1x1xf32, #tpu.memory_space<vmem>>, %arg21: memref<512x512xbf16, #tpu.memory_space<vmem>>, %arg22: memref<1x512xf32, #tpu.memory_space<vmem>>, %arg23: memref<512x8xbf16, #tpu.memory_space<vmem>>, %arg24: memref<1x8xf32, #tpu.memory_space<vmem>>, %arg25: memref<1x1x8xf32, #tpu.memory_space<vmem>>, %arg26: memref<1x1x512xf32, #tpu.memory_space<vmem>>) attributes {dimension_semantics = [#tpu.dimension_semantics<parallel>], iteration_bounds = array<i64: 2>, scalar_prefetch = 0 : i64, scratch_operands = 0 : i64, tpu.core_type = #tpu.core_type<tc>, window_params = [{transform_indices = @transform_0, window_bounds = array<i64: 1, 12, 200>}, {pipeline_mode = #tpu.pipeline_mode<synchronous>, transform_indices = @transform_1, window_bounds = array<i64: 200, 512>}, {pipeline_mode = #tpu.pipeline_mode<synchronous>, transform_indices = @transform_2, window_bounds = array<i64: 1, 512>}, {pipeline_mode = #tpu.pipeline_mode<synchronous>, transform_indices = @transform_3, window_bounds = array<i64: 3, 512, 512>}, {pipeline_mode = #tpu.pipeline_mode<synchronous>, transform_indices = @transform_4, window_bounds = array<i64: 1, 512>}, {pipeline_mode = #tpu.pipeline_mode<synchronous>, transform_indices = @transform_5, window_bounds = array<i64: 2, 512, 512>}, {pipeline_mode = #tpu.pipeline_mode<synchronous>, transform_indices = @transform_6, window_bounds = array<i64: 1, 512>}, {pipeline_mode = #tpu.pipeline_mode<synchronous>, transform_indices = @transform_7, window_bounds = array<i64: 512, 512>}, {pipeline_mode = #tpu.pipeline_mode<synchronous>, transform_indices = @transform_8, window_bounds = array<i64: 1, 512>}, {pipeline_mode = #tpu.pipeline_mode<synchronous>, transform_indices = @transform_9, window_bounds = array<i64: 512, 512>}, {pipeline_mode = #tpu.pipeline_mode<synchronous>, transform_indices = @transform_10, window_bounds = array<i64: 1, 512>}, {pipeline_mode = #tpu.pipeline_mode<synchronous>, transform_indices = @transform_11, window_bounds = array<i64: 1024, 512>}, {pipeline_mode = #tpu.pipeline_mode<synchronous>, transform_indices = @transform_12, window_bounds = array<i64: 1, 512>}, {pipeline_mode = #tpu.pipeline_mode<synchronous>, transform_indices = @transform_13, window_bounds = array<i64: 512, 512>}, {pipeline_mode = #tpu.pipeline_mode<synchronous>, transform_indices = @transform_14, window_bounds = array<i64: 1, 512>}, {pipeline_mode = #tpu.pipeline_mode<synchronous>, transform_indices = @transform_15, window_bounds = array<i64: 512, 512>}, {pipeline_mode = #tpu.pipeline_mode<synchronous>, transform_indices = @transform_16, window_bounds = array<i64: 1, 512>}, {pipeline_mode = #tpu.pipeline_mode<synchronous>, transform_indices = @transform_17, window_bounds = array<i64: 512, 512>}, {pipeline_mode = #tpu.pipeline_mode<synchronous>, transform_indices = @transform_18, window_bounds = array<i64: 1, 512>}, {pipeline_mode = #tpu.pipeline_mode<synchronous>, transform_indices = @transform_19, window_bounds = array<i64: 1, 1>}, {pipeline_mode = #tpu.pipeline_mode<synchronous>, transform_indices = @transform_20, window_bounds = array<i64: 512, 512>}, {pipeline_mode = #tpu.pipeline_mode<synchronous>, transform_indices = @transform_21, window_bounds = array<i64: 1, 512>}, {pipeline_mode = #tpu.pipeline_mode<synchronous>, transform_indices = @transform_22, window_bounds = array<i64: 512, 8>}, {pipeline_mode = #tpu.pipeline_mode<synchronous>, transform_indices = @transform_23, window_bounds = array<i64: 1, 8>}, {transform_indices = @transform_24, window_bounds = array<i64: 1, 1, 8>}, {transform_indices = @transform_25, window_bounds = array<i64: 1, 1, 512>}]} {
    %c0 = arith.constant 0 : index
    %c0_0 = arith.constant 0 : index
    %c0_1 = arith.constant 0 : index
    %0 = vector.load %arg1[%c0, %c0_0, %c0_1] : memref<1x12x200xbf16, #tpu.memory_space<vmem>>, vector<1x12x200xbf16>
    %1 = vector.shape_cast %0 : vector<1x12x200xbf16> to vector<12x200xbf16>
    %c0_2 = arith.constant 0 : index
    %c0_3 = arith.constant 0 : index
    %2 = vector.load %arg2[%c0_2, %c0_3] : memref<200x512xbf16, #tpu.memory_space<vmem>>, vector<200x512xbf16>
    %cst = arith.constant dense<0.000000e+00> : vector<12x512xf32>
    %3 = tpu.matmul %1, %2, %cst {dimension_numbers = #tpu.dot_dimension_numbers<[1], [0], [0], [1], [0, 0, 1, 1], [], []>} : vector<12x200xbf16>, vector<200x512xbf16>, vector<12x512xf32> -> vector<12x512xf32>
    %c0_4 = arith.constant 0 : index
    %c0_5 = arith.constant 0 : index
    %4 = vector.load %arg3[%c0_4, %c0_5] : memref<1x512xf32, #tpu.memory_space<vmem>>, vector<1x512xf32>
    %5 = vector.broadcast %4 : vector<1x512xf32> to vector<12x512xf32>
    %6 = arith.addf %3, %5 : vector<12x512xf32>
    %cst_6 = arith.constant 0.000000e+00 : f32
    %7 = vector.broadcast %cst_6 : f32 to vector<12x512xf32>
    %8 = arith.maximumf %6, %7 : vector<12x512xf32>
    %9 = arith.truncf %8 : vector<12x512xf32> to vector<12x512xbf16>
    %cst_7 = arith.constant 0.000000e+00 : f32
    %10 = vector.broadcast %cst_7 : f32 to vector<10x512xf32>
    %11 = vector.extract_strided_slice %9 {offsets = [0, 0], sizes = [10, 512], strides = [1, 1]} : vector<12x512xbf16> to vector<10x512xbf16>
    %c0_8 = arith.constant 0 : index
    %c0_9 = arith.constant 0 : index
    %c0_10 = arith.constant 0 : index
    %12 = vector.load %arg4[%c0_8, %c0_9, %c0_10] : memref<3x512x512xbf16, #tpu.memory_space<vmem>>, vector<1x512x512xbf16>
    %13 = vector.shape_cast %12 : vector<1x512x512xbf16> to vector<512x512xbf16>
    %cst_11 = arith.constant dense<0.000000e+00> : vector<10x512xf32>
    %14 = tpu.matmul %11, %13, %cst_11 {dimension_numbers = #tpu.dot_dimension_numbers<[1], [0], [0], [1], [0, 0, 1, 1], [], []>} : vector<10x512xbf16>, vector<512x512xbf16>, vector<10x512xf32> -> vector<10x512xf32>
    %15 = arith.addf %10, %14 : vector<10x512xf32>
    %16 = vector.extract_strided_slice %9 {offsets = [1, 0], sizes = [10, 512], strides = [1, 1]} : vector<12x512xbf16> to vector<10x512xbf16>
    %c1 = arith.constant 1 : index
    %c0_12 = arith.constant 0 : index
    %c0_13 = arith.constant 0 : index
    %17 = vector.load %arg4[%c1, %c0_12, %c0_13] : memref<3x512x512xbf16, #tpu.memory_space<vmem>>, vector<1x512x512xbf16>
    %18 = vector.shape_cast %17 : vector<1x512x512xbf16> to vector<512x512xbf16>
    %cst_14 = arith.constant dense<0.000000e+00> : vector<10x512xf32>
    %19 = tpu.matmul %16, %18, %cst_14 {dimension_numbers = #tpu.dot_dimension_numbers<[1], [0], [0], [1], [0, 0, 1, 1], [], []>} : vector<10x512xbf16>, vector<512x512xbf16>, vector<10x512xf32> -> vector<10x512xf32>
    %20 = arith.addf %15, %19 : vector<10x512xf32>
    %21 = vector.extract_strided_slice %9 {offsets = [2, 0], sizes = [10, 512], strides = [1, 1]} : vector<12x512xbf16> to vector<10x512xbf16>
    %c2 = arith.constant 2 : index
    %c0_15 = arith.constant 0 : index
    %c0_16 = arith.constant 0 : index
    %22 = vector.load %arg4[%c2, %c0_15, %c0_16] : memref<3x512x512xbf16, #tpu.memory_space<vmem>>, vector<1x512x512xbf16>
    %23 = vector.shape_cast %22 : vector<1x512x512xbf16> to vector<512x512xbf16>
    %cst_17 = arith.constant dense<0.000000e+00> : vector<10x512xf32>
    %24 = tpu.matmul %21, %23, %cst_17 {dimension_numbers = #tpu.dot_dimension_numbers<[1], [0], [0], [1], [0, 0, 1, 1], [], []>} : vector<10x512xbf16>, vector<512x512xbf16>, vector<10x512xf32> -> vector<10x512xf32>
    %25 = arith.addf %20, %24 : vector<10x512xf32>
    %c0_18 = arith.constant 0 : index
    %c0_19 = arith.constant 0 : index
    %26 = vector.load %arg5[%c0_18, %c0_19] : memref<1x512xf32, #tpu.memory_space<vmem>>, vector<1x512xf32>
    %27 = vector.broadcast %26 : vector<1x512xf32> to vector<10x512xf32>
    %28 = arith.addf %25, %27 : vector<10x512xf32>
    %cst_20 = arith.constant 0.000000e+00 : f32
    %29 = vector.broadcast %cst_20 : f32 to vector<10x512xf32>
    %30 = arith.maximumf %28, %29 : vector<10x512xf32>
    %31 = arith.truncf %30 : vector<10x512xf32> to vector<10x512xbf16>
    %cst_21 = arith.constant 0.000000e+00 : f32
    %32 = vector.broadcast %cst_21 : f32 to vector<8x512xf32>
    %33 = vector.extract_strided_slice %31 {offsets = [0, 0], sizes = [8, 512], strides = [1, 1]} : vector<10x512xbf16> to vector<8x512xbf16>
    %c0_22 = arith.constant 0 : index
    %c0_23 = arith.constant 0 : index
    %c0_24 = arith.constant 0 : index
    %34 = vector.load %arg6[%c0_22, %c0_23, %c0_24] : memref<2x512x512xbf16, #tpu.memory_space<vmem>>, vector<1x512x512xbf16>
    %35 = vector.shape_cast %34 : vector<1x512x512xbf16> to vector<512x512xbf16>
    %cst_25 = arith.constant dense<0.000000e+00> : vector<8x512xf32>
    %36 = tpu.matmul %33, %35, %cst_25 {dimension_numbers = #tpu.dot_dimension_numbers<[1], [0], [0], [1], [0, 0, 1, 1], [], []>} : vector<8x512xbf16>, vector<512x512xbf16>, vector<8x512xf32> -> vector<8x512xf32>
    %37 = arith.addf %32, %36 : vector<8x512xf32>
    %38 = vector.extract_strided_slice %31 {offsets = [2, 0], sizes = [8, 512], strides = [1, 1]} : vector<10x512xbf16> to vector<8x512xbf16>
    %c1_26 = arith.constant 1 : index
    %c0_27 = arith.constant 0 : index
    %c0_28 = arith.constant 0 : index
    %39 = vector.load %arg6[%c1_26, %c0_27, %c0_28] : memref<2x512x512xbf16, #tpu.memory_space<vmem>>, vector<1x512x512xbf16>
    %40 = vector.shape_cast %39 : vector<1x512x512xbf16> to vector<512x512xbf16>
    %cst_29 = arith.constant dense<0.000000e+00> : vector<8x512xf32>
    %41 = tpu.matmul %38, %40, %cst_29 {dimension_numbers = #tpu.dot_dimension_numbers<[1], [0], [0], [1], [0, 0, 1, 1], [], []>} : vector<8x512xbf16>, vector<512x512xbf16>, vector<8x512xf32> -> vector<8x512xf32>
    %42 = arith.addf %37, %41 : vector<8x512xf32>
    %c0_30 = arith.constant 0 : index
    %c0_31 = arith.constant 0 : index
    %43 = vector.load %arg7[%c0_30, %c0_31] : memref<1x512xf32, #tpu.memory_space<vmem>>, vector<1x512xf32>
    %44 = vector.broadcast %43 : vector<1x512xf32> to vector<8x512xf32>
    %45 = arith.addf %42, %44 : vector<8x512xf32>
    %cst_32 = arith.constant 0.000000e+00 : f32
    %46 = vector.broadcast %cst_32 : f32 to vector<8x512xf32>
    %47 = arith.maximumf %45, %46 : vector<8x512xf32>
    %48 = arith.truncf %47 : vector<8x512xf32> to vector<8x512xbf16>
    %c0_33 = arith.constant 0 : index
    %c0_34 = arith.constant 0 : index
    %49 = vector.load %arg8[%c0_33, %c0_34] : memref<512x512xbf16, #tpu.memory_space<vmem>>, vector<512x512xbf16>
    %cst_35 = arith.constant dense<0.000000e+00> : vector<8x512xf32>
    %50 = tpu.matmul %48, %49, %cst_35 {dimension_numbers = #tpu.dot_dimension_numbers<[1], [0], [0], [1], [0, 0, 1, 1], [], []>} : vector<8x512xbf16>, vector<512x512xbf16>, vector<8x512xf32> -> vector<8x512xf32>
    %c0_36 = arith.constant 0 : index
    %c0_37 = arith.constant 0 : index
    %51 = vector.load %arg9[%c0_36, %c0_37] : memref<1x512xf32, #tpu.memory_space<vmem>>, vector<1x512xf32>
    %52 = vector.broadcast %51 : vector<1x512xf32> to vector<8x512xf32>
    %53 = arith.addf %50, %52 : vector<8x512xf32>
    %cst_38 = arith.constant 0.000000e+00 : f32
    %54 = vector.broadcast %cst_38 : f32 to vector<8x512xf32>
    %55 = arith.maximumf %53, %54 : vector<8x512xf32>
    %56 = arith.truncf %55 : vector<8x512xf32> to vector<8x512xbf16>
    %c0_39 = arith.constant 0 : index
    %c0_40 = arith.constant 0 : index
    %57 = vector.load %arg10[%c0_39, %c0_40] : memref<512x512xbf16, #tpu.memory_space<vmem>>, vector<512x512xbf16>
    %cst_41 = arith.constant dense<0.000000e+00> : vector<8x512xf32>
    %58 = tpu.matmul %56, %57, %cst_41 {dimension_numbers = #tpu.dot_dimension_numbers<[1], [0], [0], [1], [0, 0, 1, 1], [], []>} : vector<8x512xbf16>, vector<512x512xbf16>, vector<8x512xf32> -> vector<8x512xf32>
    %c0_42 = arith.constant 0 : index
    %c0_43 = arith.constant 0 : index
    %59 = vector.load %arg11[%c0_42, %c0_43] : memref<1x512xf32, #tpu.memory_space<vmem>>, vector<1x512xf32>
    %60 = vector.broadcast %59 : vector<1x512xf32> to vector<8x512xf32>
    %61 = arith.addf %58, %60 : vector<8x512xf32>
    %cst_44 = arith.constant 0.000000e+00 : f32
    %62 = vector.broadcast %cst_44 : f32 to vector<8x512xf32>
    %63 = arith.maximumf %61, %62 : vector<8x512xf32>
    %cst_45 = arith.constant dense<0.000000e+00> : vector<512xf32>
    %64 = vector.multi_reduction <add>, %63, %cst_45 [0] : vector<8x512xf32> to vector<512xf32>
    %65 = vector.shape_cast %64 : vector<512xf32> to vector<1x512xf32>
    %cst_46 = arith.constant 8.000000e+00 : f32
    %66 = vector.broadcast %cst_46 : f32 to vector<1x512xf32>
    %67 = arith.divf %65, %66 : vector<1x512xf32>
    %68 = vector.broadcast %67 : vector<1x512xf32> to vector<8x512xf32>
    %69 = arith.subf %63, %68 : vector<8x512xf32>
    %70 = arith.mulf %69, %69 : vector<8x512xf32>
    %cst_47 = arith.constant dense<0.000000e+00> : vector<512xf32>
    %71 = vector.multi_reduction <add>, %70, %cst_47 [0] : vector<8x512xf32> to vector<512xf32>
    %72 = vector.shape_cast %71 : vector<512xf32> to vector<1x512xf32>
    %cst_48 = arith.constant 7.000000e+00 : f32
    %73 = vector.broadcast %cst_48 : f32 to vector<1x512xf32>
    %74 = arith.divf %72, %73 : vector<1x512xf32>
    %75 = arith.truncf %67 : vector<1x512xf32> to vector<1x512xbf16>
    %c0_49 = arith.constant 0 : index
    %c0_50 = arith.constant 0 : index
    %76 = vector.load %arg12[%c0_49, %c0_50] : memref<1024x512xbf16, #tpu.memory_space<vmem>>, vector<512x512xbf16>
    %cst_51 = arith.constant dense<0.000000e+00> : vector<1x512xf32>
    %77 = tpu.matmul %75, %76, %cst_51 {dimension_numbers = #tpu.dot_dimension_numbers<[1], [0], [0], [1], [0, 0, 1, 1], [], []>} : vector<1x512xbf16>, vector<512x512xbf16>, vector<1x512xf32> -> vector<1x512xf32>
    %78 = arith.truncf %74 : vector<1x512xf32> to vector<1x512xbf16>
    %c512 = arith.constant 512 : index
    %c0_52 = arith.constant 0 : index
    %79 = vector.load %arg12[%c512, %c0_52] : memref<1024x512xbf16, #tpu.memory_space<vmem>>, vector<512x512xbf16>
    %cst_53 = arith.constant dense<0.000000e+00> : vector<1x512xf32>
    %80 = tpu.matmul %78, %79, %cst_53 {dimension_numbers = #tpu.dot_dimension_numbers<[1], [0], [0], [1], [0, 0, 1, 1], [], []>} : vector<1x512xbf16>, vector<512x512xbf16>, vector<1x512xf32> -> vector<1x512xf32>
    %81 = arith.addf %77, %80 : vector<1x512xf32>
    %c0_54 = arith.constant 0 : index
    %c0_55 = arith.constant 0 : index
    %82 = vector.load %arg13[%c0_54, %c0_55] : memref<1x512xf32, #tpu.memory_space<vmem>>, vector<1x512xf32>
    %83 = arith.addf %81, %82 : vector<1x512xf32>
    %84 = arith.truncf %83 : vector<1x512xf32> to vector<1x512xbf16>
    %c0_56 = arith.constant 0 : index
    %c0_57 = arith.constant 0 : index
    %85 = vector.load %arg14[%c0_56, %c0_57] : memref<512x512xbf16, #tpu.memory_space<vmem>>, vector<512x512xbf16>
    %cst_58 = arith.constant dense<0.000000e+00> : vector<1x512xf32>
    %86 = tpu.matmul %84, %85, %cst_58 {dimension_numbers = #tpu.dot_dimension_numbers<[1], [0], [0], [1], [0, 0, 1, 1], [], []>} : vector<1x512xbf16>, vector<512x512xbf16>, vector<1x512xf32> -> vector<1x512xf32>
    %c0_59 = arith.constant 0 : index
    %c0_60 = arith.constant 0 : index
    %87 = vector.load %arg15[%c0_59, %c0_60] : memref<1x512xf32, #tpu.memory_space<vmem>>, vector<1x512xf32>
    %88 = arith.addf %86, %87 : vector<1x512xf32>
    %89 = arith.truncf %88 : vector<1x512xf32> to vector<1x512xbf16>
    %c0_61 = arith.constant 0 : index
    %c0_62 = arith.constant 0 : index
    %90 = vector.load %arg16[%c0_61, %c0_62] : memref<512x512xbf16, #tpu.memory_space<vmem>>, vector<512x512xbf16>
    %cst_63 = arith.constant dense<0.000000e+00> : vector<1x512xf32>
    %91 = tpu.matmul %89, %90, %cst_63 {dimension_numbers = #tpu.dot_dimension_numbers<[1], [0], [0], [1], [0, 0, 1, 1], [], []>} : vector<1x512xbf16>, vector<512x512xbf16>, vector<1x512xf32> -> vector<1x512xf32>
    %c0_64 = arith.constant 0 : index
    %c0_65 = arith.constant 0 : index
    %92 = vector.load %arg17[%c0_64, %c0_65] : memref<1x512xf32, #tpu.memory_space<vmem>>, vector<1x512xf32>
    %93 = arith.addf %91, %92 : vector<1x512xf32>
    %94 = arith.negf %93 : vector<1x512xf32>
    %95 = math.exp %94 : vector<1x512xf32>
    %cst_66 = arith.constant 1.000000e+00 : f32
    %96 = vector.broadcast %cst_66 : f32 to vector<1x512xf32>
    %97 = arith.addf %96, %95 : vector<1x512xf32>
    %98 = arith.divf %96, %97 : vector<1x512xf32>
    %99 = arith.truncf %98 : vector<1x512xf32> to vector<1x512xbf16>
    %c0_67 = arith.constant 0 : index
    %c0_68 = arith.constant 0 : index
    %100 = vector.load %arg18[%c0_67, %c0_68] : memref<512x512xbf16, #tpu.memory_space<vmem>>, vector<512x512xbf16>
    %cst_69 = arith.constant dense<0.000000e+00> : vector<1x512xf32>
    %101 = tpu.matmul %99, %100, %cst_69 {dimension_numbers = #tpu.dot_dimension_numbers<[1], [0], [0], [1], [0, 0, 1, 1], [], []>} : vector<1x512xbf16>, vector<512x512xbf16>, vector<1x512xf32> -> vector<1x512xf32>
    %c0_70 = arith.constant 0 : index
    %c0_71 = arith.constant 0 : index
    %102 = vector.load %arg19[%c0_70, %c0_71] : memref<1x512xf32, #tpu.memory_space<vmem>>, vector<1x512xf32>
    %103 = arith.addf %101, %102 : vector<1x512xf32>
    %c0_72 = arith.constant 0 : index
    %c0_73 = arith.constant 0 : index
    %104 = vector.load %arg20[%c0_72, %c0_73] : memref<1x1xf32, #tpu.memory_space<vmem>>, vector<1x1xf32>
    %105 = vector.extract %104[0, 0] : f32 from vector<1x1xf32>
    %cst_74 = arith.constant 0.000000e+00 : f32
    %106 = vector.broadcast %cst_74 : f32 to vector<1x512xf32>
    %107 = arith.cmpf oge, %103, %106 : vector<1x512xf32>
    %108 = vector.broadcast %105 : f32 to vector<1x512xf32>
    %109 = arith.mulf %108, %103 : vector<1x512xf32>
    %110 = arith.select %107, %103, %109 : vector<1x512xi1>, vector<1x512xf32>
    %111 = arith.truncf %110 : vector<1x512xf32> to vector<1x512xbf16>
    %c0_75 = arith.constant 0 : index
    %c0_76 = arith.constant 0 : index
    %112 = vector.load %arg21[%c0_75, %c0_76] : memref<512x512xbf16, #tpu.memory_space<vmem>>, vector<512x512xbf16>
    %cst_77 = arith.constant dense<0.000000e+00> : vector<1x512xf32>
    %113 = tpu.matmul %111, %112, %cst_77 {dimension_numbers = #tpu.dot_dimension_numbers<[1], [0], [0], [1], [0, 0, 1, 1], [], []>} : vector<1x512xbf16>, vector<512x512xbf16>, vector<1x512xf32> -> vector<1x512xf32>
    %c0_78 = arith.constant 0 : index
    %c0_79 = arith.constant 0 : index
    %114 = vector.load %arg22[%c0_78, %c0_79] : memref<1x512xf32, #tpu.memory_space<vmem>>, vector<1x512xf32>
    %115 = arith.addf %113, %114 : vector<1x512xf32>
    %116 = arith.negf %115 : vector<1x512xf32>
    %117 = math.exp %116 : vector<1x512xf32>
    %cst_80 = arith.constant 1.000000e+00 : f32
    %118 = vector.broadcast %cst_80 : f32 to vector<1x512xf32>
    %119 = arith.addf %118, %117 : vector<1x512xf32>
    %120 = arith.divf %118, %119 : vector<1x512xf32>
    %121 = arith.addf %120, %98 : vector<1x512xf32>
    %122 = arith.truncf %121 : vector<1x512xf32> to vector<1x512xbf16>
    %c0_81 = arith.constant 0 : index
    %c0_82 = arith.constant 0 : index
    %123 = vector.load %arg23[%c0_81, %c0_82] : memref<512x8xbf16, #tpu.memory_space<vmem>>, vector<512x8xbf16>
    %cst_83 = arith.constant dense<0.000000e+00> : vector<1x8xf32>
    %124 = tpu.matmul %122, %123, %cst_83 {dimension_numbers = #tpu.dot_dimension_numbers<[1], [0], [0], [1], [0, 0, 1, 1], [], []>} : vector<1x512xbf16>, vector<512x8xbf16>, vector<1x8xf32> -> vector<1x8xf32>
    %c0_84 = arith.constant 0 : index
    %c0_85 = arith.constant 0 : index
    %125 = vector.load %arg24[%c0_84, %c0_85] : memref<1x8xf32, #tpu.memory_space<vmem>>, vector<1x8xf32>
    %126 = arith.addf %124, %125 : vector<1x8xf32>
    %127 = arith.negf %126 : vector<1x8xf32>
    %128 = math.exp %127 : vector<1x8xf32>
    %cst_86 = arith.constant 1.000000e+00 : f32
    %129 = vector.broadcast %cst_86 : f32 to vector<1x8xf32>
    %130 = arith.addf %129, %128 : vector<1x8xf32>
    %131 = arith.divf %129, %130 : vector<1x8xf32>
    %c0_87 = arith.constant 0 : index
    %c0_88 = arith.constant 0 : index
    %c0_89 = arith.constant 0 : index
    %132 = vector.load %arg25[%c0_87, %c0_88, %c0_89] : memref<1x1x8xf32, #tpu.memory_space<vmem>>, vector<1x1x8xf32>
    %133 = vector.shape_cast %132 : vector<1x1x8xf32> to vector<1x8xf32>
    %134 = vector.shape_cast %131 : vector<1x8xf32> to vector<1x1x8xf32>
    tpu.vector_store %arg25[%c0_87, %c0_88, %c0_89], %134 {strides = array<i32>} : memref<1x1x8xf32, #tpu.memory_space<vmem>>, vector<1x1x8xf32>,
    %c0_90 = arith.constant 0 : index
    %c0_91 = arith.constant 0 : index
    %c0_92 = arith.constant 0 : index
    %135 = vector.load %arg26[%c0_90, %c0_91, %c0_92] : memref<1x1x512xf32, #tpu.memory_space<vmem>>, vector<1x1x512xf32>
    %136 = vector.shape_cast %135 : vector<1x1x512xf32> to vector<1x512xf32>
    %137 = vector.shape_cast %88 : vector<1x512xf32> to vector<1x1x512xf32>
    tpu.vector_store %arg26[%c0_90, %c0_91, %c0_92], %137 {strides = array<i32>} : memref<1x1x512xf32, #tpu.memory_space<vmem>>, vector<1x1x512xf32>,
    return
  }
  func.func @transform_0(%arg0: i32) -> (i32, i32, i32) {
    %c0_i32 = arith.constant 0 : i32
    %c0_i32_0 = arith.constant 0 : i32
    %c0_i32_1 = arith.constant 0 : i32
    return %arg0, %c0_i32, %c0_i32_0 : i32, i32, i32
  }
  func.func @transform_1(%arg0: i32) -> (i32, i32) {
    %c0_i32 = arith.constant 0 : i32
    %c0_i32_0 = arith.constant 0 : i32
    %c0_i32_1 = arith.constant 0 : i32
    return %c0_i32, %c0_i32_0 : i32, i32
  }
  func.func @transform_2(%arg0: i32) -> (i32, i32) {
    %c0_i32 = arith.constant 0 : i32
    %c0_i32_0 = arith.constant 0 : i32
    %c0_i32_1 = arith.constant 0 : i32
    return %c0_i32, %c0_i32_0 : i32, i32
  }
  func.func @transform_3(%arg0: i32) -> (i32, i32, i32) {
    %c0_i32 = arith.constant 0 : i32
    %c0_i32_0 = arith.constant 0 : i32
    %c0_i32_1 = arith.constant 0 : i32
    %c0_i32_2 = arith.constant 0 : i32
    return %c0_i32, %c0_i32_0, %c0_i32_1 : i32, i32, i32
  }
  func.func @transform_4(%arg0: i32) -> (i32, i32) {
    %c0_i32 = arith.constant 0 : i32
    %c0_i32_0 = arith.constant 0 : i32
    %c0_i32_1 = arith.constant 0 : i32
    return %c0_i32, %c0_i32_0 : i32, i32
  }
  func.func @transform_5(%arg0: i32) -> (i32, i32, i32) {
    %c0_i32 = arith.constant 0 : i32
    %c0_i32_0 = arith.constant 0 : i32
    %c0_i32_1 = arith.constant 0 : i32
    %c0_i32_2 = arith.constant 0 : i32
    return %c0_i32, %c0_i32_0, %c0_i32_1 : i32, i32, i32
  }
  func.func @transform_6(%arg0: i32) -> (i32, i32) {
    %c0_i32 = arith.constant 0 : i32
    %c0_i32_0 = arith.constant 0 : i32
    %c0_i32_1 = arith.constant 0 : i32
    return %c0_i32, %c0_i32_0 : i32, i32
  }
  func.func @transform_7(%arg0: i32) -> (i32, i32) {
    %c0_i32 = arith.constant 0 : i32
    %c0_i32_0 = arith.constant 0 : i32
    %c0_i32_1 = arith.constant 0 : i32
    return %c0_i32, %c0_i32_0 : i32, i32
  }
  func.func @transform_8(%arg0: i32) -> (i32, i32) {
    %c0_i32 = arith.constant 0 : i32
    %c0_i32_0 = arith.constant 0 : i32
    %c0_i32_1 = arith.constant 0 : i32
    return %c0_i32, %c0_i32_0 : i32, i32
  }
  func.func @transform_9(%arg0: i32) -> (i32, i32) {
    %c0_i32 = arith.constant 0 : i32
    %c0_i32_0 = arith.constant 0 : i32
    %c0_i32_1 = arith.constant 0 : i32
    return %c0_i32, %c0_i32_0 : i32, i32
  }
  func.func @transform_10(%arg0: i32) -> (i32, i32) {
    %c0_i32 = arith.constant 0 : i32
    %c0_i32_0 = arith.constant 0 : i32
    %c0_i32_1 = arith.constant 0 : i32
    return %c0_i32, %c0_i32_0 : i32, i32
  }
  func.func @transform_11(%arg0: i32) -> (i32, i32) {
    %c0_i32 = arith.constant 0 : i32
    %c0_i32_0 = arith.constant 0 : i32
    %c0_i32_1 = arith.constant 0 : i32
    return %c0_i32, %c0_i32_0 : i32, i32
  }
  func.func @transform_12(%arg0: i32) -> (i32, i32) {
    %c0_i32 = arith.constant 0 : i32
    %c0_i32_0 = arith.constant 0 : i32
    %c0_i32_1 = arith.constant 0 : i32
    return %c0_i32, %c0_i32_0 : i32, i32
  }
  func.func @transform_13(%arg0: i32) -> (i32, i32) {
    %c0_i32 = arith.constant 0 : i32
    %c0_i32_0 = arith.constant 0 : i32
    %c0_i32_1 = arith.constant 0 : i32
    return %c0_i32, %c0_i32_0 : i32, i32
  }
  func.func @transform_14(%arg0: i32) -> (i32, i32) {
    %c0_i32 = arith.constant 0 : i32
    %c0_i32_0 = arith.constant 0 : i32
    %c0_i32_1 = arith.constant 0 : i32
    return %c0_i32, %c0_i32_0 : i32, i32
  }
  func.func @transform_15(%arg0: i32) -> (i32, i32) {
    %c0_i32 = arith.constant 0 : i32
    %c0_i32_0 = arith.constant 0 : i32
    %c0_i32_1 = arith.constant 0 : i32
    return %c0_i32, %c0_i32_0 : i32, i32
  }
  func.func @transform_16(%arg0: i32) -> (i32, i32) {
    %c0_i32 = arith.constant 0 : i32
    %c0_i32_0 = arith.constant 0 : i32
    %c0_i32_1 = arith.constant 0 : i32
    return %c0_i32, %c0_i32_0 : i32, i32
  }
  func.func @transform_17(%arg0: i32) -> (i32, i32) {
    %c0_i32 = arith.constant 0 : i32
    %c0_i32_0 = arith.constant 0 : i32
    %c0_i32_1 = arith.constant 0 : i32
    return %c0_i32, %c0_i32_0 : i32, i32
  }
  func.func @transform_18(%arg0: i32) -> (i32, i32) {
    %c0_i32 = arith.constant 0 : i32
    %c0_i32_0 = arith.constant 0 : i32
    %c0_i32_1 = arith.constant 0 : i32
    return %c0_i32, %c0_i32_0 : i32, i32
  }
  func.func @transform_19(%arg0: i32) -> (i32, i32) {
    %c0_i32 = arith.constant 0 : i32
    %c0_i32_0 = arith.constant 0 : i32
    %c0_i32_1 = arith.constant 0 : i32
    return %c0_i32, %c0_i32_0 : i32, i32
  }
  func.func @transform_20(%arg0: i32) -> (i32, i32) {
    %c0_i32 = arith.constant 0 : i32
    %c0_i32_0 = arith.constant 0 : i32
    %c0_i32_1 = arith.constant 0 : i32
    return %c0_i32, %c0_i32_0 : i32, i32
  }
  func.func @transform_21(%arg0: i32) -> (i32, i32) {
    %c0_i32 = arith.constant 0 : i32
    %c0_i32_0 = arith.constant 0 : i32
    %c0_i32_1 = arith.constant 0 : i32
    return %c0_i32, %c0_i32_0 : i32, i32
  }
  func.func @transform_22(%arg0: i32) -> (i32, i32) {
    %c0_i32 = arith.constant 0 : i32
    %c0_i32_0 = arith.constant 0 : i32
    %c0_i32_1 = arith.constant 0 : i32
    return %c0_i32, %c0_i32_0 : i32, i32
  }
  func.func @transform_23(%arg0: i32) -> (i32, i32) {
    %c0_i32 = arith.constant 0 : i32
    %c0_i32_0 = arith.constant 0 : i32
    %c0_i32_1 = arith.constant 0 : i32
    return %c0_i32, %c0_i32_0 : i32, i32
  }
  func.func @transform_24(%arg0: i32) -> (i32, i32, i32) {
    %c0_i32 = arith.constant 0 : i32
    %c0_i32_0 = arith.constant 0 : i32
    %c0_i32_1 = arith.constant 0 : i32
    return %arg0, %c0_i32, %c0_i32_0 : i32, i32, i32
  }
  func.func @transform_25(%arg0: i32) -> (i32, i32, i32) {
    %c0_i32 = arith.constant 0 : i32
    %c0_i32_0 = arith.constant 0 : i32
    %c0_i32_1 = arith.constant 0 : i32
    return %arg0, %c0_i32, %c0_i32_0 : i32, i32, i32
  }
}

</mosaic_0001>

<bundles_post_ra>
// kernel: x_vector_forward.1
= control target key start
LH: loop header
LB: loop body
LE: loop exit
PB: predicated region body
PF: predicated region fallthrough
CT: control target
= control target key end

     0   :  { %s25140_s0 = inlined_call_operand.vmem [shape: bf16[2,12,200], index: 0, kind: input, shape index: {}]   ;;  %s25141_s1 = inlined_call_operand.vmem [shape: bf16[200,512], index: 1, kind: input, shape index: {}]   ;;  %s25142_s2 = inlined_call_operand.vmem [shape: f32[1,512], index: 2, kind: input, shape index: {}]   ;;  %s25143_s3 = inlined_call_operand.vmem [shape: bf16[3,512,512], index: 3, kind: input, shape index: {}]   ;;  %s25144_s4 = inlined_call_operand.vmem [shape: f32[1,512], index: 4, kind: input, shape index: {}]   ;;  %s25145_s5 = inlined_call_operand.vmem [shape: bf16[2,512,512], index: 5, kind: input, shape index: {}]   ;;  %s25146_s6 = inlined_call_operand.vmem [shape: f32[1,512], index: 6, kind: input, shape index: {}]   ;;  %s25147_s7 = inlined_call_operand.vmem [shape: bf16[512,512], index: 7, kind: input, shape index: {}]   ;;  %s25148_s8 = inlined_call_operand.vmem [shape: f32[1,512], index: 8, kind: input, shape index: {}]   ;;  %s25149_s9 = inlined_call_operand.vmem [shape: bf16[512,512], index: 9, kind: input, shape index: {}]   ;;  %s25150_s10 = inlined_call_operand.vmem [shape: f32[1,512], index: 10, kind: input, shape index: {}]   ;;  %s25151_s11 = inlined_call_operand.vmem [shape: bf16[1024,512], index: 11, kind: input, shape index: {}]   ;;  %s25152_s12 = inlined_call_operand.vmem [shape: f32[1,512], index: 12, kind: input, shape index: {}]   ;;  %s25153_s13 = inlined_call_operand.vmem [shape: bf16[512,512], index: 13, kind: input, shape index: {}]   ;;  %s25154_s14 = inlined_call_operand.vmem [shape: f32[1,512], index: 14, kind: input, shape index: {}]   ;;  %s25155_s15 = inlined_call_operand.vmem [shape: bf16[512,512], index: 15, kind: input, shape index: {}]   ;;  %s25156_s16 = inlined_call_operand.vmem [shape: f32[1,512], index: 16, kind: input, shape index: {}]   ;;  %s25157_s17 = inlined_call_operand.vmem [shape: bf16[512,512], index: 17, kind: input, shape index: {}]   ;;  %s25158_s18 = inlined_call_operand.vmem [shape: f32[1,512], index: 18, kind: input, shape index: {}]   ;;  %s25159_s19 = inlined_call_operand.<no memory space> [shape: f32[1,1], index: 19, kind: input, shape index: {}]   ;;  %s25160_s20 = inlined_call_operand.vmem [shape: bf16[512,512], index: 20, kind: input, shape index: {}]   ;;  %s25161_s21 = inlined_call_operand.vmem [shape: f32[1,512], index: 21, kind: input, shape index: {}]   ;;  %s25162_s22 = inlined_call_operand.vmem [shape: bf16[512,8], index: 22, kind: input, shape index: {}]   ;;  %s25163_s23 = inlined_call_operand.vmem [shape: f32[1,8], index: 23, kind: input, shape index: {}]   ;;  %s25164_s24 = inlined_call_operand.hbm [shape: f32[2,1,8], index: 24, kind: output, shape index: {0}]   ;;  %s25165_s25 = inlined_call_operand.vmem [shape: f32[2,1,512], index: 25, kind: output, shape index: {1}]  }
   0x1   :  { %25181 = sst [smem:[#allocation12_spill]] %s25140_s0  ;;  %v31_v0 = vstv %s25159_s19 }
   0x2   :  { %25182 = sst [smem:[#allocation13_spill]] %s25141_s1  ;;  %32 = vst [vmem:[#allocation2] sm:$0x1] %v31_v0 }
   0x3   :  { %25183 = sst [smem:[#allocation14_spill]] %s25142_s2 }
   0x4   :  { %25184 = sst [smem:[#allocation15_spill]] %s25143_s3 }
   0x5   :  { %25185 = sst [smem:[#allocation16_spill]] %s25144_s4 }
   0x6   :  { %25186 = sst [smem:[#allocation17_spill]] %s25145_s5 }
   0x7   :  { %25187 = sst [smem:[#allocation18_spill]] %s25146_s6 }
   0x8   :  { %25188 = sst [smem:[#allocation19_spill]] %s25147_s7 }
   0x9   :  { %25189 = sst [smem:[#allocation20_spill]] %s25148_s8 }
   0xa   :  { %25190 = sst [smem:[#allocation21_spill]] %s25149_s9 }
   0xb   :  { %25191 = sst [smem:[#allocation22_spill]] %s25150_s10 }
   0xc   :  { %25192 = sst [smem:[#allocation23_spill]] %s25164_s24 }
   0xd   :  { %33 = vsyncpa [#allocation4], 0 }
   0xe   :  { %35 = vsyncpa [#allocation4 + $0x1], 0  ;;  %s19514_s6 = smov 0   ;;  %s19516_s30 = smov 0  }
   0xf   :  { %s19518_s7 = smov 0   ;;  %s19520_s3 = smov 0  }
  0x10 LB: > { %25193 = sst [smem:[#allocation6_spill]] %s19365_s6  ;;  %s19535_s19 = sadd.s32 4294967295, %s19377_s3   ;;  %s19377_s3 = sphi %s19520_s3, %s25219_s3   ;;  %s19373_s7 = sphi %s19518_s7, %s25221_s7   ;;  %s19369_s30 = sphi %s19516_s30, %s25223_s30   ;;  %s19365_s6 = sphi %s19514_s6, %s25222_s6  }
  0x11   : > { %25194 = sst [smem:[#allocation7_spill]] %s19373_s7  ;;  %s14316_s26 = sadd.s32 4294967294, %s19377_s3  }
  0x12   : > { %25195 = sst [smem:[#allocation8_spill]] %s19377_s3  ;;  %s19539_s1 = sadd.s32 1, %s19377_s3  }
  0x13   : > { %25196 = sst [smem:[#allocation9_spill]] %s19539_s1  ;;  %s557_s8 = sadd.s32 1, %s19373_s7 }
  0x14   : > { %s554_s27 = ssub.s32 %s19377_s3, %s19539_s1  ;;  %p567_p0 = scmp.ne.s32.totalorder %s19373_s7, %s19369_s30 }
  0x15   : > { %p555_p1 = scmp.eq.s32.totalorder %s554_s27, 0  ;;  %p568_p2 = scmp.eq.s32.totalorder %s19535_s19, 1 }
  0x16   : > { %p573_p3 = scmp.ne.s32.totalorder %s19369_s30, %s19365_s6  ;;  %p574_p4 = scmp.eq.s32.totalorder %s14316_s26, 1 }
  0x17   : > { %s19550_s4 = scalar_select %p555_p1, %s19373_s7, %s557_s8  }
  0x18   : > { %p19552_p5 = por %p568_p2, %p567_p0  ;;  %p19556_p6 = por %p574_p4, %p573_p3 }
  0x19   : > { %25197 = sst [smem:[#allocation10_spill]] %s19550_s4  ;;  %p14319_p7 = scmp.ge.s32.totalorder %s19377_s3, 1 }
  0x1a   : > { %s25199_s9 = scalar_select %p19556_p6, 1, 0 }
  0x1b   : > { %p695_p8 = scmp.lt.s32.totalorder %s19377_s3, 3 }
  0x1c   : > { %25200 = sst [smem:[#allocation11_spill]] %s25199_s9 }
  0x1d   : > { %p696_p9 = pnand %p14319_p7, %p695_p8 }
  0x1e   : > { %s25201_s29 = sld [smem:[#allocation13_spill]] (!%p696_p9)  ;;  %p766_p10 = scmp.lt.s32.totalorder (!%p696_p9), %s19535_s19, 1  ;;  %vm1109_vm0 = vcmask (!%p696_p9), 588800   ;;  %vm1113_vm1 = vcmask (!%p696_p9), 1043456   ;;  %vm14181_vm7 = vcmask (!%p696_p9), 57344  }
  0x1f   : > { %699 = sbr.rel (%p696_p9) target bundleno = 3608 (0xe18), region = 116  ;;  %s25202_s6 = sld [smem:[#allocation12_spill]] (!%p696_p9) }
  0x20   : > { %s25203_s24 = sld [smem:[#allocation15_spill]] (!%p696_p9)  ;;  %s25209_s2 = sld [smem:[#allocation18_spill]] (!%p696_p9) }
  0x21   : > { %s25212_s27 = sld [smem:[#allocation20_spill]] (!%p696_p9)  ;;  %s25213_s10 = sld [smem:[#allocation22_spill]] (!%p696_p9) }
  0x22   : > { %s25214_s7 = sld [smem:[#allocation23_spill]] (!%p696_p9) }
  0x24   : > { %v16672_v1 = vld [vmem:[%s25201_s29 + $0x4] ss:$16 sps:$4 sm:$0xff] (!%p696_p9)   ;;  %v16674_v2 = vld [vmem:[%s25201_s29] ss:$16 sps:$4 sm:$0xff] (!%p696_p9)   ;;  %v16713_v14 = vld [vmem:[%s25201_s29 + $0xc] ss:$16 sps:$4 sm:$0xff] (!%p696_p9)  }
  0x25   : > { %1126 = vmatprep.subr.bf16.mxu0 (!%p696_p9), %v16672_v1  ;;  %v16675_v3 = vld [vmem:[%s25201_s29 + $0x24] ss:$16 sps:$4 sm:$0xff] (!%p696_p9)   ;;  %v16677_v4 = vld [vmem:[%s25201_s29 + $0x20] ss:$16 sps:$4 sm:$0xff] (!%p696_p9)   ;;  %v16715_v15 = vld [vmem:[%s25201_s29 + $0x8] ss:$16 sps:$4 sm:$0xff] (!%p696_p9)   ;;  %1169 = vmatprep.subr.bf16.mxu1 (!%p696_p9), %v16713_v14 }
  0x26   : > { %1127 = vmatpush1.bf16.msra.mxu0 %v16674_v2  ;;  %v16678_v5 = vld [vmem:[%s25201_s29 + $0x44] ss:$16 sps:$4 sm:$0xff]   ;;  %v16680_v6 = vld [vmem:[%s25201_s29 + $0x40] ss:$16 sps:$4 sm:$0xff]   ;;  %s19582_s26 = scalar_select %p766_p10, %s19535_s19, 1  ;;  %1170 = vmatpush1.bf16.msra.mxu1 %v16715_v15  ;;  %v827_v59 = vld [vmem:[%s25201_s29 + $0x188] sm:$0xff] }
  0x27   : > { %1128 = vmatprep.subr.bf16.mxu0 %v16675_v3  ;;  %v16681_v7 = vld [vmem:[%s25201_s29 + $0x64] ss:$16 sps:$4 sm:$0xff]   ;;  %v16683_v8 = vld [vmem:[%s25201_s29 + $0x60] ss:$16 sps:$4 sm:$0xff]   ;;  %v16716_v17 = vld [vmem:[%s25201_s29 + $0x2c] ss:$16 sps:$4 sm:$0xff]   ;;  %v14376_v63 = vcombine.high %v827_v59, %v827_v59  ;;  %v14375_v0 = vcombine.low %v827_v59, %v827_v59 }
  0x28   : > { %s16473_s5 = sshll.u32 %s19582_s26, 4  ;;  %v16684_v9 = vld [vmem:[%s25201_s29 + $0x84] ss:$16 sps:$4 sm:$0xff]   ;;  %v16686_v10 = vld [vmem:[%s25201_s29 + $0x80] ss:$16 sps:$4 sm:$0xff]   ;;  %1171 = vmatprep.subr.bf16.mxu1 %v16716_v17  ;;  %s25215_s4 = smov %s25214_s7 }
  0x29   : > { %s19597_s3 = scalar_lea.vmem %s25202_s6, %s16473_s5  ;;  %v16687_v11 = vld [vmem:[%s25201_s29 + $0xa4] ss:$16 sps:$4 sm:$0xff]   ;;  %v16689_v12 = vld [vmem:[%s25201_s29 + $0xa0] ss:$16 sps:$4 sm:$0xff]   ;;  %v16718_v18 = vld [vmem:[%s25201_s29 + $0x28] ss:$16 sps:$4 sm:$0xff]  }
  0x2a   : > { %1129 = vmatpush1.bf16.msra.mxu0 %v16677_v4  ;;  %v16712_v13 = vld [vmem:[%s19597_s3 + $0x4] ss:$8 sps:$4 sm:$0x3f]   ;;  %v16692_v20 = vld [vmem:[%s25201_s29 + $0xc0] ss:$16 sps:$4 sm:$0xff]   ;;  %1172 = vmatpush1.bf16.msra.mxu1 %v16718_v18  ;;  %v1121_v4 = vsel %vm1113_vm1, %v14375_v0, 0 }
  0x2b   : > { %1130 = vmatprep.subr.bf16.mxu0 %v16678_v5  ;;  %14378 = vmatprep.mubr.msk.bf16.mxu0 %vm1109_vm0, %v16712_v13  ;;  %v16690_v16 = vld [vmem:[%s25201_s29 + $0xc4] ss:$16 sps:$4 sm:$0xff]   ;;  %v16719_v19 = vld [vmem:[%s25201_s29 + $0x4c] ss:$16 sps:$4 sm:$0xff]   ;;  %v16721_v22 = vld [vmem:[%s25201_s29 + $0x48] ss:$16 sps:$4 sm:$0xff]  }
  0x2c   : > { %14380 = vmatprep.mubr.msk.bf16.mxu1 %vm1109_vm0, %v16712_v13  ;;  %v16693_v21 = vld [vmem:[%s25201_s29 + $0xe4] ss:$16 sps:$4 sm:$0xff]   ;;  %1173 = vmatprep.subr.bf16.mxu1 %v16719_v19  ;;  %v16722_v23 = vld [vmem:[%s25201_s29 + $0x6c] ss:$16 sps:$4 sm:$0xff]   ;;  %v16695_v24 = vld [vmem:[%s25201_s29 + $0xe0] ss:$16 sps:$4 sm:$0xff]  }
  0x2d   : > { %v16696_v25 = vld [vmem:[%s25201_s29 + $0x104] ss:$16 sps:$4 sm:$0xff]   ;;  %v16724_v26 = vld [vmem:[%s25201_s29 + $0x68] ss:$16 sps:$4 sm:$0xff]   ;;  %v16725_v27 = vld [vmem:[%s25201_s29 + $0x8c] ss:$16 sps:$4 sm:$0xff]  }
  0x2e   : > { %1131 = vmatpush1.bf16.msra.mxu0 %v16680_v6  ;;  %1174 = vmatpush1.bf16.msra.mxu1 %v16721_v22  ;;  %v16698_v28 = vld [vmem:[%s25201_s29 + $0x100] ss:$16 sps:$4 sm:$0xff]   ;;  %v16699_v29 = vld [vmem:[%s25201_s29 + $0x124] ss:$16 sps:$4 sm:$0xff]   ;;  %v16727_v30 = vld [vmem:[%s25201_s29 + $0x88] ss:$16 sps:$4 sm:$0xff]  }
  0x2f   : > { %1132 = vmatprep.subr.bf16.mxu0 %v16681_v7  ;;  %1175 = vmatprep.subr.bf16.mxu1 %v16722_v23  ;;  %v16728_v31 = vld [vmem:[%s25201_s29 + $0xac] ss:$16 sps:$4 sm:$0xff]   ;;  %v16701_v32 = vld [vmem:[%s25201_s29 + $0x120] ss:$16 sps:$4 sm:$0xff]   ;;  %v16702_v33 = vld [vmem:[%s25201_s29 + $0x144] ss:$16 sps:$4 sm:$0xff]  }
  0x30   : > { %v16730_v34 = vld [vmem:[%s25201_s29 + $0xa8] ss:$16 sps:$4 sm:$0xff]   ;;  %v16731_v35 = vld [vmem:[%s25201_s29 + $0xcc] ss:$16 sps:$4 sm:$0xff]   ;;  %v16704_v36 = vld [vmem:[%s25201_s29 + $0x140] ss:$16 sps:$4 sm:$0xff]  }
  0x31   : > { %v16705_v37 = vld [vmem:[%s25201_s29 + $0x164] ss:$16 sps:$4 sm:$0xff]   ;;  %v16733_v39 = vld [vmem:[%s25201_s29 + $0xc8] ss:$16 sps:$4 sm:$0xff]   ;;  %v16734_v40 = vld [vmem:[%s25201_s29 + $0xec] ss:$16 sps:$4 sm:$0xff]  }
  0x32   : > { %1133 = vmatpush1.bf16.msra.mxu0 %v16683_v8  ;;  %1176 = vmatpush1.bf16.msra.mxu1 %v16724_v26  ;;  %v826_v38 = vld [vmem:[%s25201_s29 + $0x180] sm:$0xff]  ;;  %v16736_v44 = vld [vmem:[%s25201_s29 + $0xe8] ss:$16 sps:$4 sm:$0xff]   ;;  %v16737_v45 = vld [vmem:[%s25201_s29 + $0x10c] ss:$16 sps:$4 sm:$0xff]   ;;  %s25204_s5 = sld [smem:[#allocation14_spill]] }
  0x33   : > { %1134 = vmatprep.subr.bf16.mxu0 %v16684_v9  ;;  %1177 = vmatprep.subr.bf16.mxu1 %v16725_v27  ;;  %v16707_v41 = vld [vmem:[%s25201_s29 + $0x160] ss:$16 sps:$4 sm:$0xff]   ;;  %v14374_v42 = vcombine.high %v826_v38, %v826_v38  ;;  %v14373_v43 = vcombine.low %v826_v38, %v826_v38  ;;  %v16753_v48 = vld [vmem:[%s25203_s24 + $0x404] ss:$16 sps:$4 sm:$0xff]   ;;  %v16739_v49 = vld [vmem:[%s25201_s29 + $0x108] ss:$16 sps:$4 sm:$0xff]  }
  0x34   : > { %v16710_v47 = vld [vmem:[%s19597_s3] ss:$8 sps:$4 sm:$0x3f]   ;;  %v16740_v50 = vld [vmem:[%s25201_s29 + $0x12c] ss:$16 sps:$4 sm:$0xff]   ;;  %s25205_s3 = sld [smem:[#allocation17_spill]] }
  0x35   : > { %v1115_v46 = vsel %vm1113_vm1, %v14373_v43, 0  ;;  %v16751_v51 = vld [vmem:[%s25203_s24 + $0x400] ss:$16 sps:$4 sm:$0xff]   ;;  %v16759_v52 = vld [vmem:[%s25203_s24 + $0x424] ss:$16 sps:$4 sm:$0xff]   ;;  %s25210_s6 = sld [smem:[#allocation21_spill]] }
  0x36   : > { %1135 = vmatpush1.bf16.msra.mxu0 %v16686_v10  ;;  %1178 = vmatpush1.bf16.msra.mxu1 %v16727_v30  ;;  %v16742_v53 = vld [vmem:[%s25201_s29 + $0x128] ss:$16 sps:$4 sm:$0xff]   ;;  %v16743_v54 = vld [vmem:[%s25201_s29 + $0x14c] ss:$16 sps:$4 sm:$0xff]   ;;  %v16757_v55 = vld [vmem:[%s25203_s24 + $0x420] ss:$16 sps:$4 sm:$0xff]  }
  0x37   : > { %1136 = vmatprep.subr.bf16.mxu0 %v16687_v11  ;;  %1179 = vmatprep.subr.bf16.mxu1 %v16728_v31  ;;  %v16765_v56 = vld [vmem:[%s25203_s24 + $0x444] ss:$16 sps:$4 sm:$0xff]   ;;  %v16745_v57 = vld [vmem:[%s25201_s29 + $0x148] ss:$16 sps:$4 sm:$0xff]   ;;  %v16746_v58 = vld [vmem:[%s25201_s29 + $0x16c] ss:$16 sps:$4 sm:$0xff]  }
  0x38   : > { %v16763_v60 = vld [vmem:[%s25203_s24 + $0x440] ss:$16 sps:$4 sm:$0xff]   ;;  %v16771_v61 = vld [vmem:[%s25203_s24 + $0x464] ss:$16 sps:$4 sm:$0xff]   ;;  %v16748_v62 = vld [vmem:[%s25201_s29 + $0x168] ss:$16 sps:$4 sm:$0xff]  }
  0x39   : > { %v16769_v1 = vld [vmem:[%s25203_s24 + $0x460] ss:$16 sps:$4 sm:$0xff]   ;;  %v16777_v2 = vld [vmem:[%s25203_s24 + $0x484] ss:$16 sps:$4 sm:$0xff]   ;;  %v16756_v3 = vld [vmem:[%s25203_s24 + $0x40c] ss:$16 sps:$4 sm:$0xff]  }
  0x3a   : > { %1137 = vmatpush1.bf16.msra.mxu0 %v16689_v12  ;;  %1180 = vmatpush1.bf16.msra.mxu1 %v16730_v34  ;;  %v16775_v5 = vld [vmem:[%s25203_s24 + $0x480] ss:$16 sps:$4 sm:$0xff]   ;;  %v16783_v6 = vld [vmem:[%s25203_s24 + $0x4a4] ss:$16 sps:$4 sm:$0xff]   ;;  %v16754_v7 = vld [vmem:[%s25203_s24 + $0x408] ss:$16 sps:$4 sm:$0xff]   ;;  %s25206_s1 = smov %s25205_s3 }
  0x3b   : > { %1138 = vmatprep.subr.bf16.mxu0 %v16690_v16  ;;  %1181 = vmatprep.subr.bf16.mxu1 %v16731_v35  ;;  %v16762_v8 = vld [vmem:[%s25203_s24 + $0x42c] ss:$16 sps:$4 sm:$0xff]   ;;  %v16781_v9 = vld [vmem:[%s25203_s24 + $0x4a0] ss:$16 sps:$4 sm:$0xff]   ;;  %v16789_v10 = vld [vmem:[%s25203_s24 + $0x4c4] ss:$16 sps:$4 sm:$0xff]   ;;  %s25211_s29 = smov %s25210_s6 }
  0x3c   : > { %v16760_v11 = vld [vmem:[%s25203_s24 + $0x428] ss:$16 sps:$4 sm:$0xff]   ;;  %v16768_v12 = vld [vmem:[%s25203_s24 + $0x44c] ss:$16 sps:$4 sm:$0xff]   ;;  %v16787_v13 = vld [vmem:[%s25203_s24 + $0x4c0] ss:$16 sps:$4 sm:$0xff]  }
  0x3d   : > { %v16795_v14 = vld [vmem:[%s25203_s24 + $0x4e4] ss:$16 sps:$4 sm:$0xff]   ;;  %v16766_v15 = vld [vmem:[%s25203_s24 + $0x448] ss:$16 sps:$4 sm:$0xff]   ;;  %v16774_v16 = vld [vmem:[%s25203_s24 + $0x46c] ss:$16 sps:$4 sm:$0xff]  }
  0x3e   : > { %1139 = vmatpush1.bf16.msra.mxu0 %v16692_v20  ;;  %1182 = vmatpush1.bf16.msra.mxu1 %v16733_v39  ;;  %v16793_v17 = vld [vmem:[%s25203_s24 + $0x4e0] ss:$16 sps:$4 sm:$0xff]   ;;  %v16801_v18 = vld [vmem:[%s25203_s24 + $0x504] ss:$16 sps:$4 sm:$0xff]   ;;  %v16772_v19 = vld [vmem:[%s25203_s24 + $0x468] ss:$16 sps:$4 sm:$0xff]  }
  0x3f   : > { %1140 = vmatprep.subr.bf16.mxu0 %v16693_v21  ;;  %1183 = vmatprep.subr.bf16.mxu1 %v16734_v40  ;;  %v16780_v20 = vld [vmem:[%s25203_s24 + $0x48c] ss:$16 sps:$4 sm:$0xff]   ;;  %v16799_v21 = vld [vmem:[%s25203_s24 + $0x500] ss:$16 sps:$4 sm:$0xff]   ;;  %v16807_v22 = vld [vmem:[%s25203_s24 + $0x524] ss:$16 sps:$4 sm:$0xff]  }
  0x40   : > { %v16778_v23 = vld [vmem:[%s25203_s24 + $0x488] ss:$16 sps:$4 sm:$0xff]   ;;  %v16813_v26 = vld [vmem:[%s25203_s24 + $0x544] ss:$16 sps:$4 sm:$0xff]   ;;  %v16804_v35 = vld [vmem:[%s25203_s24 + $0x50c] ss:$16 sps:$4 sm:$0xff]  }
  0x41   : > { %v16784_v27 = vld [vmem:[%s25203_s24 + $0x4a8] ss:$16 sps:$4 sm:$0xff]   ;;  %v16819_v30 = vld [vmem:[%s25203_s24 + $0x564] ss:$16 sps:$4 sm:$0xff]   ;;  %v16816_v39 = vld [vmem:[%s25203_s24 + $0x54c] ss:$16 sps:$4 sm:$0xff]  }
  0x42   : > { %1141 = vmatpush1.bf16.msra.mxu0 %v16695_v24  ;;  %1184 = vmatpush1.bf16.msra.mxu1 %v16736_v44  ;;  %v16786_v24 = vld [vmem:[%s25203_s24 + $0x4ac] ss:$16 sps:$4 sm:$0xff]   ;;  %v16790_v31 = vld [vmem:[%s25203_s24 + $0x4c8] ss:$16 sps:$4 sm:$0xff]   ;;  %v16825_v43 = vld [vmem:[%s25203_s24 + $0x584] ss:$16 sps:$4 sm:$0xff]  }
  0x43   : > { %1142 = vmatprep.subr.bf16.mxu0 %v16696_v25  ;;  %1185 = vmatprep.subr.bf16.mxu1 %v16737_v45  ;;  %v16805_v25 = vld [vmem:[%s25203_s24 + $0x520] ss:$16 sps:$4 sm:$0xff]   ;;  %v16796_v34 = vld [vmem:[%s25203_s24 + $0x4e8] ss:$16 sps:$4 sm:$0xff]   ;;  %v16828_v44 = vld [vmem:[%s25203_s24 + $0x58c] ss:$16 sps:$4 sm:$0xff]  }
  0x44   : > { %v16808_v38 = vld [vmem:[%s25203_s24 + $0x528] ss:$16 sps:$4 sm:$0xff]   ;;  %v16823_v45 = vld [vmem:[%s25203_s24 + $0x580] ss:$16 sps:$4 sm:$0xff]   ;;  %v16849_v59 = vld [vmem:[%s25203_s24 + $0x604] ss:$16 sps:$4 sm:$0xff]  }
  0x45   : > { %v16814_v40 = vld [vmem:[%s25203_s24 + $0x548] ss:$16 sps:$4 sm:$0xff]  }
  0x46   : > { %1143 = vmatpush1.bf16.msra.mxu0 %v16698_v28  ;;  %1186 = vmatpush1.bf16.msra.mxu1 %v16739_v49  ;;  %v16792_v28 = vld [vmem:[%s25203_s24 + $0x4cc] ss:$16 sps:$4 sm:$0xff]   ;;  %v16829_v49 = vld [vmem:[%s25203_s24 + $0x5a0] ss:$16 sps:$4 sm:$0xff]  }
  0x47   : > { %1144 = vmatprep.subr.bf16.mxu0 %v16699_v29  ;;  %1187 = vmatprep.subr.bf16.mxu1 %v16740_v50  ;;  %v16811_v29 = vld [vmem:[%s25203_s24 + $0x540] ss:$16 sps:$4 sm:$0xff]   ;;  %v16832_v50 = vld [vmem:[%s25203_s24 + $0x5a8] ss:$16 sps:$4 sm:$0xff]  }
  0x4a   : > { %1145 = vmatpush1.bf16.msra.mxu0 %v16701_v32  ;;  %1188 = vmatpush1.bf16.msra.mxu1 %v16742_v53  ;;  %v16798_v32 = vld [vmem:[%s25203_s24 + $0x4ec] ss:$16 sps:$4 sm:$0xff]   ;;  %v16835_v53 = vld [vmem:[%s25203_s24 + $0x5c0] ss:$16 sps:$4 sm:$0xff]  }
  0x4b   : > { %1146 = vmatprep.subr.bf16.mxu0 %v16702_v33  ;;  %1189 = vmatprep.subr.bf16.mxu1 %v16743_v54  ;;  %v16817_v33 = vld [vmem:[%s25203_s24 + $0x560] ss:$16 sps:$4 sm:$0xff]   ;;  %v16838_v54 = vld [vmem:[%s25203_s24 + $0x5c8] ss:$16 sps:$4 sm:$0xff]  }
  0x4e   : > { %1147 = vmatpush1.bf16.msra.mxu0 %v16704_v36  ;;  %1190 = vmatpush1.bf16.msra.mxu1 %v16745_v57  ;;  %v16802_v36 = vld [vmem:[%s25203_s24 + $0x508] ss:$16 sps:$4 sm:$0xff]  }
  0x4f   : > { %1148 = vmatprep.subr.bf16.mxu0 %v16705_v37  ;;  %1191 = vmatprep.subr.bf16.mxu1 %v16746_v58  ;;  %v16810_v37 = vld [vmem:[%s25203_s24 + $0x52c] ss:$16 sps:$4 sm:$0xff]   ;;  %v16844_v57 = vld [vmem:[%s25203_s24 + $0x5e8] ss:$16 sps:$4 sm:$0xff]  }
  0x50   : > { %v16846_v58 = vld [vmem:[%s25203_s24 + $0x5ec] ss:$16 sps:$4 sm:$0xff]  }
  0x52   : > { %1149 = vmatpush1.bf16.msra.mxu0 %v16707_v41  ;;  %1192 = vmatpush1.bf16.msra.mxu1 %v16748_v62  ;;  %v16822_v41 = vld [vmem:[%s25203_s24 + $0x56c] ss:$16 sps:$4 sm:$0xff]  }
  0x53   : > { %14377 = vmatprep.subr.msk.bf16.mxu0 %vm1113_vm1, %v14374_v42  ;;  %14379 = vmatprep.subr.msk.bf16.mxu1 %vm1113_vm1, %v14376_v63  ;;  %v16820_v42 = vld [vmem:[%s25203_s24 + $0x568] ss:$16 sps:$4 sm:$0xff]   ;;  %v828_v63 = vld [vmem:[%s25204_s5] sm:$0xf]  ;;  %s25208_s5 = sld [smem:[#allocation19_spill]] }
  0x56   : > { %1151 = vmatpush1.bf16.msra.mxu0 %v1115_v46  ;;  %1194 = vmatpush1.bf16.msra.mxu1 %v1121_v4  ;;  %v16826_v46 = vld [vmem:[%s25203_s24 + $0x588] ss:$16 sps:$4 sm:$0xff]  }
  0x57   : > { %2153 = vmatprep.subr.bf16.mxu0 %v16753_v48  ;;  %2239 = vmatprep.subr.bf16.mxu1 %v16756_v3  ;;  %v16834_v48 = vld [vmem:[%s25203_s24 + $0x5ac] ss:$16 sps:$4 sm:$0xff]  }
  0x59   : > { %1159 = vmatmul.mubr.bf16.vlgmr.msra.gmra.mrb[0].mxu0 %v16710_v47  ;;  %1202 = vmatmul.mubr.bf16.vlgmr.msra.gmra.mrb[0].mxu1 %v16710_v47  ;;  %v16831_v47 = vld [vmem:[%s25203_s24 + $0x5a4] ss:$16 sps:$4 sm:$0xff]  }
  0x5a   : > { %2154 = vmatpush1.bf16.msra.mxu0 %v16751_v51  ;;  %2240 = vmatpush1.bf16.msra.mxu1 %v16754_v7  ;;  %v16837_v51 = vld [vmem:[%s25203_s24 + $0x5c4] ss:$16 sps:$4 sm:$0xff]  }
  0x5b   : > { %2155 = vmatprep.subr.bf16.mxu0 %v16759_v52  ;;  %2241 = vmatprep.subr.bf16.mxu1 %v16762_v8  ;;  %v16840_v52 = vld [vmem:[%s25203_s24 + $0x5cc] ss:$16 sps:$4 sm:$0xff]  }
  0x5e   : > { %2156 = vmatpush1.bf16.msra.mxu0 %v16757_v55  ;;  %2242 = vmatpush1.bf16.msra.mxu1 %v16760_v11  ;;  %v16841_v55 = vld [vmem:[%s25203_s24 + $0x5e0] ss:$16 sps:$4 sm:$0xff]  }
  0x5f   : > { %2157 = vmatprep.subr.bf16.mxu0 %v16765_v56  ;;  %2243 = vmatprep.subr.bf16.mxu1 %v16768_v12  ;;  %v16843_v56 = vld [vmem:[%s25203_s24 + $0x5e4] ss:$16 sps:$4 sm:$0xff]  }
  0x62   : > { %2158 = vmatpush1.bf16.msra.mxu0 %v16763_v60  ;;  %2244 = vmatpush1.bf16.msra.mxu1 %v16766_v15  ;;  %v16852_v60 = vld [vmem:[%s25203_s24 + $0x60c] ss:$16 sps:$4 sm:$0xff]  }
  0x63   : > { %2159 = vmatprep.subr.bf16.mxu0 %v16771_v61  ;;  %2245 = vmatprep.subr.bf16.mxu1 %v16774_v16  ;;  %v830_v61 = vlaneseq }
  0x65   : > { %v19927_v62 = vshrl.u32 %v830_v61, 7  ;;  %vm14214_vm2 = vcmp.lt.s32.totalorder %v830_v61, 512  ;;  %v18779_v61 = vld [vmem:[%s25155_s15 + $0x240] ss:$16 sps:$4 sm:$0xff]  }
  0x66   : > { %2160 = vmatpush1.bf16.msra.mxu0 %v16769_v1  ;;  %2246 = vmatpush1.bf16.msra.mxu1 %v16772_v19 }
  0x67   : > { %2161 = vmatprep.subr.bf16.mxu0 %v16777_v2  ;;  %2247 = vmatprep.subr.bf16.mxu1 %v16780_v20  ;;  %v19933_v0 = vsub.s32 0, %v19927_v62  ;;  %v19936_v1 = vsub.s32 1, %v19927_v62 }
  0x69   : > { %v833_v2 = vrot.slane %v828_v63, %v19933_v0  ;;  %v837_v3 = vrot.slane %v828_v63, %v19936_v1 }
  0x6a   : > { %2162 = vmatpush1.bf16.msra.mxu0 %v16775_v5  ;;  %2248 = vmatpush1.bf16.msra.mxu1 %v16778_v23 }
  0x6b   : > { %2163 = vmatprep.subr.bf16.mxu0 %v16783_v6  ;;  %2249 = vmatprep.subr.bf16.mxu1 %v16786_v24  ;;  %v16847_v24 = vld [vmem:[%s25203_s24 + $0x600] ss:$16 sps:$4 sm:$0xff]  }
  0x6e   : > { %2164 = vmatpush1.bf16.msra.mxu0 %v16781_v9  ;;  %2250 = vmatpush1.bf16.msra.mxu1 %v16784_v27 }
  0x6f   : > { %2165 = vmatprep.subr.bf16.mxu0 %v16789_v10  ;;  %2251 = vmatprep.subr.bf16.mxu1 %v16792_v28  ;;  %v16855_v28 = vld [vmem:[%s25203_s24 + $0x624] ss:$16 sps:$4 sm:$0xff]  }
  0x72   : > { %2166 = vmatpush1.bf16.msra.mxu0 %v16787_v13  ;;  %2252 = vmatpush1.bf16.msra.mxu1 %v16790_v31 }
  0x73   : > { %2167 = vmatprep.subr.bf16.mxu0 %v16795_v14  ;;  %2253 = vmatprep.subr.bf16.mxu1 %v16798_v32 }
  0x76   : > { %2168 = vmatpush1.bf16.msra.mxu0 %v16793_v17  ;;  %2254 = vmatpush1.bf16.msra.mxu1 %v16796_v34  ;;  %v16856_v34 = vld [vmem:[%s25203_s24 + $0x628] ss:$16 sps:$4 sm:$0xff]  }
  0x77   : > { %2169 = vmatprep.subr.bf16.mxu0 %v16801_v18  ;;  %2255 = vmatprep.subr.bf16.mxu1 %v16804_v35 }
  0x7a   : > { %2170 = vmatpush1.bf16.msra.mxu0 %v16799_v21  ;;  %2256 = vmatpush1.bf16.msra.mxu1 %v16802_v36  ;;  %v19947_v21 = vsub.s32 2, %v19927_v62  ;;  %v16861_v36 = vld [vmem:[%s25203_s24 + $0x644] ss:$16 sps:$4 sm:$0xff]  }
  0x7b   : > { %2171 = vmatprep.subr.bf16.mxu0 %v16807_v22  ;;  %2257 = vmatprep.subr.bf16.mxu1 %v16810_v37  ;;  %v16864_v37 = vld [vmem:[%s25203_s24 + $0x64c] ss:$16 sps:$4 sm:$0xff]  }
  0x7c   : > { %v841_v32 = vrot.slane %v828_v63, %v19947_v21 }
  0x7e   : > { %2172 = vmatpush1.bf16.msra.mxu0 %v16805_v25  ;;  %2258 = vmatpush1.bf16.msra.mxu1 %v16808_v38  ;;  %v16850_v25 = vld [vmem:[%s25203_s24 + $0x608] ss:$16 sps:$4 sm:$0xff]  }
  0x7f   : > { %2173 = vmatprep.subr.bf16.mxu0 %v16813_v26  ;;  %2259 = vmatprep.subr.bf16.mxu1 %v16816_v39  ;;  %v19957_v26 = vsub.s32 3, %v19927_v62 }
  0x81   : > { %v845_v35 = vrot.slane %v828_v63, %v19957_v26  ;;  %v16874_v63 = vld [vmem:[%s25203_s24 + $0x688] ss:$16 sps:$4 sm:$0xff]  }
  0x82   : > { %2174 = vmatpush1.bf16.msra.mxu0 %v16811_v29  ;;  %2260 = vmatpush1.bf16.msra.mxu1 %v16814_v40  ;;  %v16858_v29 = vld [vmem:[%s25203_s24 + $0x62c] ss:$16 sps:$4 sm:$0xff]  }
  0x83   : > { %2175 = vmatprep.subr.bf16.mxu0 %v16819_v30  ;;  %2261 = vmatprep.subr.bf16.mxu1 %v16822_v41 }
  0x86   : > { %2176 = vmatpush1.bf16.msra.mxu0 %v16817_v33  ;;  %2262 = vmatpush1.bf16.msra.mxu1 %v16820_v42  ;;  %v16853_v33 = vld [vmem:[%s25203_s24 + $0x620] ss:$16 sps:$4 sm:$0xff]  }
  0x87   : > { %2177 = vmatprep.subr.bf16.mxu0 %v16825_v43  ;;  %2263 = vmatprep.subr.bf16.mxu1 %v16828_v44  ;;  %v16859_v43 = vld [vmem:[%s25203_s24 + $0x640] ss:$16 sps:$4 sm:$0xff]   ;;  %v16862_v44 = vld [vmem:[%s25203_s24 + $0x648] ss:$16 sps:$4 sm:$0xff]  }
  0x8a   : > { %2178 = vmatpush1.bf16.msra.mxu0 %v16823_v45  ;;  %2264 = vmatpush1.bf16.msra.mxu1 %v16826_v46 }
  0x8b   : > { %2179 = vmatprep.subr.bf16.mxu0 %v16831_v47  ;;  %2265 = vmatprep.subr.bf16.mxu1 %v16834_v48 }
  0x8e   : > { %2180 = vmatpush1.bf16.msra.mxu0 %v16829_v49  ;;  %2266 = vmatpush1.bf16.msra.mxu1 %v16832_v50  ;;  %v16867_v50 = vld [vmem:[%s25203_s24 + $0x664] ss:$16 sps:$4 sm:$0xff]  }
  0x8f   : > { %2181 = vmatprep.subr.bf16.mxu0 %v16837_v51  ;;  %2267 = vmatprep.subr.bf16.mxu1 %v16840_v52  ;;  %v16870_v51 = vld [vmem:[%s25203_s24 + $0x66c] ss:$16 sps:$4 sm:$0xff]  }
  0x92   : > { %2182 = vmatpush1.bf16.msra.mxu0 %v16835_v53  ;;  %2268 = vmatpush1.bf16.msra.mxu1 %v16838_v54  ;;  %v16865_v53 = vld [vmem:[%s25203_s24 + $0x660] ss:$16 sps:$4 sm:$0xff]   ;;  %v16868_v54 = vld [vmem:[%s25203_s24 + $0x668] ss:$16 sps:$4 sm:$0xff]  }
  0x93   : > { %2183 = vmatprep.subr.bf16.mxu0 %v16843_v56  ;;  %2269 = vmatprep.subr.bf16.mxu1 %v16846_v58  ;;  %v16873_v58 = vld [vmem:[%s25203_s24 + $0x684] ss:$16 sps:$4 sm:$0xff]  }
  0x96   : > { %2184 = vmatpush1.bf16.msra.mxu0 %v16841_v55  ;;  %2270 = vmatpush1.bf16.msra.mxu1 %v16844_v57 }
  0x97   : > { %2196 = vmatprep.subr.bf16.mxu0 %v16849_v59  ;;  %2282 = vmatprep.subr.bf16.mxu1 %v16852_v60  ;;  %v16876_v59 = vld [vmem:[%s25203_s24 + $0x68c] ss:$16 sps:$4 sm:$0xff]   ;;  %v16871_v60 = vld [vmem:[%s25203_s24 + $0x680] ss:$16 sps:$4 sm:$0xff]  }
 0x12c   : > { %v1160_v4 = vpop.f32.mrb[0].mxu0  ;;  %v1203_v38 = vpop.f32.mrb[0].mxu1 }
 0x12d   : > { %v1161_v5 = vadd.f32 %v1160_v4, %v833_v2  ;;  %v1162_v6 = vpop.f32.mrb[1].mxu0  ;;  %v1204_v39 = vadd.f32 %v1203_v38, %v841_v32  ;;  %v1205_v40 = vpop.f32.mrb[1].mxu1  ;;  %v16921_v38 = vld [vmem:[%s25203_s24 + $0x784] ss:$16 sps:$4 sm:$0xff]  }
 0x12e   : > { %v1163_v7 = vadd.f32 %v1162_v6, %v837_v3  ;;  %v1164_v8 = vpop.f32.mrb[2].mxu0  ;;  %v1206_v41 = vadd.f32 %v1205_v40, %v845_v35  ;;  %v1207_v42 = vpop.f32.mrb[2].mxu1  ;;  %v16882_v6 = vld [vmem:[%s25203_s24 + $0x6ac] ss:$16 sps:$4 sm:$0xff]   ;;  %v16919_v40 = vld [vmem:[%s25203_s24 + $0x780] ss:$16 sps:$4 sm:$0xff]  }
 0x12f   : > { %v1165_v9 = vadd.f32 %v1164_v8, %v833_v2  ;;  %v1166_v10 = vpop.f32.mrb[3].mxu0  ;;  %v1212_v12 = vmax.f32 %v1161_v5, 0.0  ;;  %v1214_v45 = vmax.f32 %v1204_v39, 0.0  ;;  %v1208_v46 = vadd.f32 %v1207_v42, %v841_v32  ;;  %v1209_v47 = vpop.f32.mrb[3].mxu1  ;;  %v16879_v5 = vld [vmem:[%s25203_s24 + $0x6a4] ss:$16 sps:$4 sm:$0xff]  }
 0x130   : > { %v1167_v11 = vadd.f32 %v1166_v10, %v837_v3  ;;  %v1213_v14 = vmax.f32 %v1163_v7, 0.0  ;;  %v1215_v48 = vmax.f32 %v1206_v41, 0.0  ;;  %v1210_v49 = vadd.f32 %v1209_v47, %v845_v35  ;;  %v16877_v7 = vld [vmem:[%s25203_s24 + $0x6a0] ss:$16 sps:$4 sm:$0xff]   ;;  %v16880_v8 = vld [vmem:[%s25203_s24 + $0x6a8] ss:$16 sps:$4 sm:$0xff]  }
 0x131   : > { %v1216_v13 = vmax.f32 %v1165_v9, 0.0  ;;  %v1218_v52 = vmax.f32 %v1208_v46, 0.0  ;;  %v16885_v10 = vld [vmem:[%s25203_s24 + $0x6c4] ss:$16 sps:$4 sm:$0xff]   ;;  %v16907_v32 = vld [vmem:[%s25203_s24 + $0x740] ss:$16 sps:$4 sm:$0xff]  }
 0x132   : > { %v1217_v15 = vmax.f32 %v1167_v11, 0.0  ;;  %v1219_v55 = vmax.f32 %v1210_v49, 0.0  ;;  %v16888_v11 = vld [vmem:[%s25203_s24 + $0x6cc] ss:$16 sps:$4 sm:$0xff]   ;;  %v16922_v41 = vld [vmem:[%s25203_s24 + $0x788] ss:$16 sps:$4 sm:$0xff]  }
 0x133   : > { %v19940_v16 = vpack.c.bf16 %v1216_v13, %v1212_v12  ;;  %v19998_v56 = vpack.c.bf16 %v1218_v52, %v1214_v45  ;;  %v16883_v12 = vld [vmem:[%s25203_s24 + $0x6c0] ss:$16 sps:$4 sm:$0xff]   ;;  %v16886_v13 = vld [vmem:[%s25203_s24 + $0x6c8] ss:$16 sps:$4 sm:$0xff]   ;;  %v16918_v35 = vld [vmem:[%s25203_s24 + $0x76c] ss:$16 sps:$4 sm:$0xff]  }
 0x134   : > { %v19942_v17 = vpack.c.bf16 %v1217_v15, %v1213_v14  ;;  %v20000_v57 = vpack.c.bf16 %v1219_v55, %v1215_v48  ;;  %v16891_v14 = vld [vmem:[%s25203_s24 + $0x6e4] ss:$16 sps:$4 sm:$0xff]   ;;  %v16894_v15 = vld [vmem:[%s25203_s24 + $0x6ec] ss:$16 sps:$4 sm:$0xff]   ;;  %v16928_v45 = vld [vmem:[%s25203_s24 + $0x7a8] ss:$16 sps:$4 sm:$0xff]  }
 0x135   : > { %v1484_v18 = vshll.u32 %v19940_v16, 16  ;;  %v1482_v27 = vshrl.u32 %v19940_v16, 16  ;;  %v16924_v39 = vld [vmem:[%s25203_s24 + $0x78c] ss:$16 sps:$4 sm:$0xff]   ;;  %v16927_v42 = vld [vmem:[%s25203_s24 + $0x7a4] ss:$16 sps:$4 sm:$0xff]  }
 0x136   : > { %v1491_v19 = vshll.u32 %v19942_v17, 16  ;;  %v1489_v22 = vshrl.u32 %v19942_v17, 16  ;;  %v1503_v2 = vshrl.u32 %v20000_v57, 16  ;;  %v1505_v3 = vshll.u32 %v20000_v57, 16  ;;  %v16933_v46 = vld [vmem:[%s25203_s24 + $0x7c4] ss:$16 sps:$4 sm:$0xff]  }
 0x137   : > { %v1486_v20 = vrot.slane %v1484_v18, 1  ;;  %v16889_v18 = vld [vmem:[%s25203_s24 + $0x6e0] ss:$16 sps:$4 sm:$0xff]   ;;  %v16936_v47 = vld [vmem:[%s25203_s24 + $0x7cc] ss:$16 sps:$4 sm:$0xff]   ;;  %v1498_v52 = vshll.u32 %v19998_v56, 16 }
 0x138   : > { %v1493_v23 = vrot.slane %v1491_v19, 1  ;;  %v1507_v4 = vrot.slane %v1505_v3, 1  ;;  %v16892_v19 = vld [vmem:[%s25203_s24 + $0x6e8] ss:$16 sps:$4 sm:$0xff]   ;;  %v16931_v48 = vld [vmem:[%s25203_s24 + $0x7c0] ss:$16 sps:$4 sm:$0xff]  }
 0x139   : > { %v1487_v31 = vor.u32 %v1486_v20, %v1482_v27  ;;  %v16897_v20 = vld [vmem:[%s25203_s24 + $0x704] ss:$16 sps:$4 sm:$0xff]   ;;  %v16906_v27 = vld [vmem:[%s25203_s24 + $0x72c] ss:$16 sps:$4 sm:$0xff]   ;;  %v16934_v49 = vld [vmem:[%s25203_s24 + $0x7c8] ss:$16 sps:$4 sm:$0xff]  }
 0x13a   : > { %v1494_v30 = vor.u32 %v1493_v23, %v1489_v22  ;;  %v1508_v9 = vor.u32 %v1507_v4, %v1503_v2  ;;  %v16900_v22 = vld [vmem:[%s25203_s24 + $0x70c] ss:$16 sps:$4 sm:$0xff]   ;;  %v16895_v23 = vld [vmem:[%s25203_s24 + $0x700] ss:$16 sps:$4 sm:$0xff]   ;;  %v1496_v55 = vshrl.u32 %v19998_v56, 16 }
 0x13b   : > { %v16946_v2 = vld [vmem:[%s25203_s24 + $0x8] ss:$16 sps:$4 sm:$0xff]   ;;  %v16951_v3 = vld [vmem:[%s25203_s24 + $0x24] ss:$16 sps:$4 sm:$0xff]   ;;  %v16954_v4 = vld [vmem:[%s25203_s24 + $0x2c] ss:$16 sps:$4 sm:$0xff]  }
 0x13c   : > { %2185 = vmatprep.mubr.bf16.mxu0 %v1494_v30  ;;  %2271 = vmatprep.mubr.bf16.mxu1 %v1494_v30  ;;  %v16909_v30 = vld [vmem:[%s25203_s24 + $0x744] ss:$16 sps:$4 sm:$0xff]  }
 0x13d   : > { %2186 = vmatmul.mubr.bf16.vlgmr.msra.gmra.mrb[4].mxu0 %v1487_v31  ;;  %2272 = vmatmul.mubr.bf16.vlgmr.msra.gmra.mrb[4].mxu1 %v1487_v31  ;;  %v16912_v31 = vld [vmem:[%s25203_s24 + $0x74c] ss:$16 sps:$4 sm:$0xff]  }
 0x13e   : > { %2197 = vmatpush1.bf16.msra.mxu0 %v16847_v24  ;;  %2283 = vmatpush1.bf16.msra.mxu1 %v16850_v25  ;;  %v16898_v24 = vld [vmem:[%s25203_s24 + $0x708] ss:$16 sps:$4 sm:$0xff]   ;;  %v16903_v25 = vld [vmem:[%s25203_s24 + $0x724] ss:$16 sps:$4 sm:$0xff]  }
 0x13f   : > { %2198 = vmatprep.subr.bf16.mxu0 %v16855_v28  ;;  %2284 = vmatprep.subr.bf16.mxu1 %v16858_v29  ;;  %v16901_v28 = vld [vmem:[%s25203_s24 + $0x720] ss:$16 sps:$4 sm:$0xff]   ;;  %v16904_v29 = vld [vmem:[%s25203_s24 + $0x728] ss:$16 sps:$4 sm:$0xff]  }
 0x140   : > { %2228 = vmatprep.mubr.bf16.mxu0 %v1508_v9  ;;  %2314 = vmatprep.mubr.bf16.mxu1 %v1508_v9  ;;  %v16960_v9 = vld [vmem:[%s25203_s24 + $0x4c] ss:$16 sps:$4 sm:$0xff]  }
 0x142   : > { %2199 = vmatpush1.bf16.msra.mxu0 %v16853_v33  ;;  %2285 = vmatpush1.bf16.msra.mxu1 %v16856_v34  ;;  %v16910_v33 = vld [vmem:[%s25203_s24 + $0x748] ss:$16 sps:$4 sm:$0xff]   ;;  %v16915_v34 = vld [vmem:[%s25203_s24 + $0x764] ss:$16 sps:$4 sm:$0xff]  }
 0x143   : > { %2200 = vmatprep.subr.bf16.mxu0 %v16861_v36  ;;  %2286 = vmatprep.subr.bf16.mxu1 %v16864_v37  ;;  %v16913_v36 = vld [vmem:[%s25203_s24 + $0x760] ss:$16 sps:$4 sm:$0xff]   ;;  %v16916_v37 = vld [vmem:[%s25203_s24 + $0x768] ss:$16 sps:$4 sm:$0xff]  }
 0x146   : > { %2201 = vmatpush1.bf16.msra.mxu0 %v16859_v43  ;;  %2287 = vmatpush1.bf16.msra.mxu1 %v16862_v44  ;;  %v16930_v43 = vld [vmem:[%s25203_s24 + $0x7ac] ss:$16 sps:$4 sm:$0xff]   ;;  %v16925_v44 = vld [vmem:[%s25203_s24 + $0x7a0] ss:$16 sps:$4 sm:$0xff]  }
 0x147   : > { %2202 = vmatprep.subr.bf16.mxu0 %v16867_v50  ;;  %2288 = vmatprep.subr.bf16.mxu1 %v16870_v51  ;;  %v16939_v50 = vld [vmem:[%s25203_s24 + $0x7e4] ss:$16 sps:$4 sm:$0xff]   ;;  %v16942_v51 = vld [vmem:[%s25203_s24 + $0x7ec] ss:$16 sps:$4 sm:$0xff]  }
 0x14a   : > { %2203 = vmatpush1.bf16.msra.mxu0 %v16865_v53  ;;  %2289 = vmatpush1.bf16.msra.mxu1 %v16868_v54  ;;  %v16937_v53 = vld [vmem:[%s25203_s24 + $0x7e0] ss:$16 sps:$4 sm:$0xff]   ;;  %v16940_v54 = vld [vmem:[%s25203_s24 + $0x7e8] ss:$16 sps:$4 sm:$0xff]  }
 0x14b   : > { %2204 = vmatprep.subr.bf16.mxu0 %v16873_v58  ;;  %2290 = vmatprep.subr.bf16.mxu1 %v16876_v59  ;;  %v1500_v58 = vrot.slane %v1498_v52, 1  ;;  %v16945_v59 = vld [vmem:[%s25203_s24 + $0x4] ss:$16 sps:$4 sm:$0xff]  }
 0x14c   : > { %v17017_v52 = vld [vmem:[%s25203_s24 + $0x184] ss:$16 sps:$4 sm:$0xff]  }
 0x14e   : > { %2205 = vmatpush1.bf16.msra.mxu0 %v16871_v60  ;;  %2291 = vmatpush1.bf16.msra.mxu1 %v16874_v63  ;;  %v16948_v60 = vld [vmem:[%s25203_s24 + $0xc] ss:$16 sps:$4 sm:$0xff]   ;;  %v16943_v63 = vld [vmem:[%s25203_s24] ss:$16 sps:$4 sm:$0xff]  }
 0x14f   : > { %2206 = vmatprep.subr.bf16.mxu0 %v16879_v5  ;;  %2292 = vmatprep.subr.bf16.mxu1 %v16882_v6  ;;  %v1501_v5 = vor.u32 %v1500_v58, %v1496_v55  ;;  %v16949_v6 = vld [vmem:[%s25203_s24 + $0x20] ss:$16 sps:$4 sm:$0xff]   ;;  %v17018_v55 = vld [vmem:[%s25203_s24 + $0x188] ss:$16 sps:$4 sm:$0xff]   ;;  %v17023_v58 = vld [vmem:[%s25203_s24 + $0x1a4] ss:$16 sps:$4 sm:$0xff]  }
 0x152   : > { %2207 = vmatpush1.bf16.msra.mxu0 %v16877_v7  ;;  %2293 = vmatpush1.bf16.msra.mxu1 %v16880_v8  ;;  %v16952_v7 = vld [vmem:[%s25203_s24 + $0x28] ss:$16 sps:$4 sm:$0xff]   ;;  %v16957_v8 = vld [vmem:[%s25203_s24 + $0x44] ss:$16 sps:$4 sm:$0xff]  }
 0x153   : > { %2208 = vmatprep.subr.bf16.mxu0 %v16885_v10  ;;  %2294 = vmatprep.subr.bf16.mxu1 %v16888_v11  ;;  %v16955_v10 = vld [vmem:[%s25203_s24 + $0x40] ss:$16 sps:$4 sm:$0xff]   ;;  %v16958_v11 = vld [vmem:[%s25203_s24 + $0x48] ss:$16 sps:$4 sm:$0xff]  }
 0x156   : > { %2209 = vmatpush1.bf16.msra.mxu0 %v16883_v12  ;;  %2295 = vmatpush1.bf16.msra.mxu1 %v16886_v13  ;;  %v16963_v12 = vld [vmem:[%s25203_s24 + $0x64] ss:$16 sps:$4 sm:$0xff]   ;;  %v16961_v13 = vld [vmem:[%s25203_s24 + $0x60] ss:$16 sps:$4 sm:$0xff]  }
 0x157   : > { %2210 = vmatprep.subr.bf16.mxu0 %v16891_v14  ;;  %2296 = vmatprep.subr.bf16.mxu1 %v16894_v15  ;;  %v16966_v14 = vld [vmem:[%s25203_s24 + $0x6c] ss:$16 sps:$4 sm:$0xff]   ;;  %v16964_v15 = vld [vmem:[%s25203_s24 + $0x68] ss:$16 sps:$4 sm:$0xff]  }
 0x15a   : > { %2211 = vmatpush1.bf16.msra.mxu0 %v16889_v18  ;;  %2297 = vmatpush1.bf16.msra.mxu1 %v16892_v19  ;;  %v16969_v18 = vld [vmem:[%s25203_s24 + $0x84] ss:$16 sps:$4 sm:$0xff]   ;;  %v16967_v19 = vld [vmem:[%s25203_s24 + $0x80] ss:$16 sps:$4 sm:$0xff]  }
 0x15b   : > { %2212 = vmatprep.subr.bf16.mxu0 %v16897_v20  ;;  %2298 = vmatprep.subr.bf16.mxu1 %v16900_v22  ;;  %v16972_v20 = vld [vmem:[%s25203_s24 + $0x8c] ss:$16 sps:$4 sm:$0xff]   ;;  %v16970_v22 = vld [vmem:[%s25203_s24 + $0x88] ss:$16 sps:$4 sm:$0xff]  }
 0x15e   : > { %2213 = vmatpush1.bf16.msra.mxu0 %v16895_v23  ;;  %2299 = vmatpush1.bf16.msra.mxu1 %v16898_v24  ;;  %v16975_v23 = vld [vmem:[%s25203_s24 + $0xa4] ss:$16 sps:$4 sm:$0xff]   ;;  %v16973_v24 = vld [vmem:[%s25203_s24 + $0xa0] ss:$16 sps:$4 sm:$0xff]  }
 0x15f   : > { %2214 = vmatprep.subr.bf16.mxu0 %v16903_v25  ;;  %2300 = vmatprep.subr.bf16.mxu1 %v16906_v27  ;;  %v16978_v25 = vld [vmem:[%s25203_s24 + $0xac] ss:$16 sps:$4 sm:$0xff]   ;;  %v16976_v27 = vld [vmem:[%s25203_s24 + $0xa8] ss:$16 sps:$4 sm:$0xff]  }
 0x162   : > { %2215 = vmatpush1.bf16.msra.mxu0 %v16901_v28  ;;  %2301 = vmatpush1.bf16.msra.mxu1 %v16904_v29  ;;  %v16981_v28 = vld [vmem:[%s25203_s24 + $0xc4] ss:$16 sps:$4 sm:$0xff]   ;;  %v16979_v29 = vld [vmem:[%s25203_s24 + $0xc0] ss:$16 sps:$4 sm:$0xff]  }
 0x163   : > { %2216 = vmatprep.subr.bf16.mxu0 %v16909_v30  ;;  %2302 = vmatprep.subr.bf16.mxu1 %v16912_v31  ;;  %v16984_v30 = vld [vmem:[%s25203_s24 + $0xcc] ss:$16 sps:$4 sm:$0xff]   ;;  %v16982_v31 = vld [vmem:[%s25203_s24 + $0xc8] ss:$16 sps:$4 sm:$0xff]  }
 0x166   : > { %2217 = vmatpush1.bf16.msra.mxu0 %v16907_v32  ;;  %2303 = vmatpush1.bf16.msra.mxu1 %v16910_v33  ;;  %v16987_v32 = vld [vmem:[%s25203_s24 + $0xe4] ss:$16 sps:$4 sm:$0xff]   ;;  %v16985_v33 = vld [vmem:[%s25203_s24 + $0xe0] ss:$16 sps:$4 sm:$0xff]  }
 0x167   : > { %2218 = vmatprep.subr.bf16.mxu0 %v16915_v34  ;;  %2304 = vmatprep.subr.bf16.mxu1 %v16918_v35  ;;  %v16990_v34 = vld [vmem:[%s25203_s24 + $0xec] ss:$16 sps:$4 sm:$0xff]   ;;  %v16988_v35 = vld [vmem:[%s25203_s24 + $0xe8] ss:$16 sps:$4 sm:$0xff]  }
 0x16a   : > { %2219 = vmatpush1.bf16.msra.mxu0 %v16913_v36  ;;  %2305 = vmatpush1.bf16.msra.mxu1 %v16916_v37  ;;  %v16993_v36 = vld [vmem:[%s25203_s24 + $0x104] ss:$16 sps:$4 sm:$0xff]   ;;  %v16991_v37 = vld [vmem:[%s25203_s24 + $0x100] ss:$16 sps:$4 sm:$0xff]  }
 0x16b   : > { %2220 = vmatprep.subr.bf16.mxu0 %v16921_v38  ;;  %2306 = vmatprep.subr.bf16.mxu1 %v16924_v39  ;;  %v16996_v38 = vld [vmem:[%s25203_s24 + $0x10c] ss:$16 sps:$4 sm:$0xff]   ;;  %v16994_v39 = vld [vmem:[%s25203_s24 + $0x108] ss:$16 sps:$4 sm:$0xff]  }
 0x16e   : > { %2221 = vmatpush1.bf16.msra.mxu0 %v16919_v40  ;;  %2307 = vmatpush1.bf16.msra.mxu1 %v16922_v41  ;;  %v16999_v40 = vld [vmem:[%s25203_s24 + $0x124] ss:$16 sps:$4 sm:$0xff]   ;;  %v16997_v41 = vld [vmem:[%s25203_s24 + $0x120] ss:$16 sps:$4 sm:$0xff]  }
 0x16f   : > { %2222 = vmatprep.subr.bf16.mxu0 %v16927_v42  ;;  %2308 = vmatprep.subr.bf16.mxu1 %v16930_v43  ;;  %v17002_v42 = vld [vmem:[%s25203_s24 + $0x12c] ss:$16 sps:$4 sm:$0xff]   ;;  %v17000_v43 = vld [vmem:[%s25203_s24 + $0x128] ss:$16 sps:$4 sm:$0xff]  }
 0x172   : > { %2223 = vmatpush1.bf16.msra.mxu0 %v16925_v44  ;;  %2309 = vmatpush1.bf16.msra.mxu1 %v16928_v45  ;;  %v17005_v44 = vld [vmem:[%s25203_s24 + $0x144] ss:$16 sps:$4 sm:$0xff]   ;;  %v17003_v45 = vld [vmem:[%s25203_s24 + $0x140] ss:$16 sps:$4 sm:$0xff]  }
 0x173   : > { %2224 = vmatprep.subr.bf16.mxu0 %v16933_v46  ;;  %2310 = vmatprep.subr.bf16.mxu1 %v16936_v47  ;;  %v17008_v46 = vld [vmem:[%s25203_s24 + $0x14c] ss:$16 sps:$4 sm:$0xff]   ;;  %v17006_v47 = vld [vmem:[%s25203_s24 + $0x148] ss:$16 sps:$4 sm:$0xff]  }
 0x176   : > { %2225 = vmatpush1.bf16.msra.mxu0 %v16931_v48  ;;  %2311 = vmatpush1.bf16.msra.mxu1 %v16934_v49  ;;  %v17011_v48 = vld [vmem:[%s25203_s24 + $0x164] ss:$16 sps:$4 sm:$0xff]   ;;  %v17009_v49 = vld [vmem:[%s25203_s24 + $0x160] ss:$16 sps:$4 sm:$0xff]  }
 0x177   : > { %2226 = vmatprep.subr.bf16.mxu0 %v16939_v50  ;;  %2312 = vmatprep.subr.bf16.mxu1 %v16942_v51  ;;  %v17014_v50 = vld [vmem:[%s25203_s24 + $0x16c] ss:$16 sps:$4 sm:$0xff]   ;;  %v17012_v51 = vld [vmem:[%s25203_s24 + $0x168] ss:$16 sps:$4 sm:$0xff]  }
 0x17a   : > { %2227 = vmatpush1.bf16.msra.mxu0 %v16937_v53  ;;  %2313 = vmatpush1.bf16.msra.mxu1 %v16940_v54  ;;  %v17015_v53 = vld [vmem:[%s25203_s24 + $0x180] ss:$16 sps:$4 sm:$0xff]   ;;  %v17020_v54 = vld [vmem:[%s25203_s24 + $0x18c] ss:$16 sps:$4 sm:$0xff]  }
 0x17b   : > { %2965 = vmatprep.subr.bf16.mxu0 %v16945_v59  ;;  %3051 = vmatprep.subr.bf16.mxu1 %v16948_v60  ;;  %v17021_v59 = vld [vmem:[%s25203_s24 + $0x1a0] ss:$16 sps:$4 sm:$0xff]   ;;  %v17026_v60 = vld [vmem:[%s25203_s24 + $0x1ac] ss:$16 sps:$4 sm:$0xff]  }
 0x17d   : > { %2229 = vmatmul.mubr.bf16.vlgmr.msra.gmra.mrb[4].mxu0 %v1501_v5  ;;  %2315 = vmatmul.mubr.bf16.vlgmr.msra.gmra.mrb[4].mxu1 %v1501_v5  ;;  %v17030_v5 = vld [vmem:[%s25203_s24 + $0x1c8] ss:$16 sps:$4 sm:$0xff]  }
 0x17e   : > { %2966 = vmatpush1.bf16.msra.mxu0 %v16943_v63  ;;  %2997 = vmatprep.mubr.bf16.mxu0 %v19942_v17  ;;  %v17024_v63 = vld [vmem:[%s25203_s24 + $0x1a8] ss:$16 sps:$4 sm:$0xff]  }
 0x17f   : > { %3052 = vmatpush1.bf16.msra.mxu1 %v16946_v2  ;;  %3083 = vmatprep.mubr.bf16.mxu1 %v19942_v17  ;;  %v17029_v2 = vld [vmem:[%s25203_s24 + $0x1c4] ss:$16 sps:$4 sm:$0xff]  }
 0x180   : > { %2967 = vmatprep.subr.bf16.mxu0 %v16951_v3  ;;  %3053 = vmatprep.subr.bf16.mxu1 %v16954_v4  ;;  %v17027_v3 = vld [vmem:[%s25203_s24 + $0x1c0] ss:$16 sps:$4 sm:$0xff]   ;;  %v17032_v4 = vld [vmem:[%s25203_s24 + $0x1cc] ss:$16 sps:$4 sm:$0xff]  }
 0x182   : > { %2968 = vmatpush1.bf16.msra.mxu0 %v16949_v6  ;;  %v17035_v6 = vld [vmem:[%s25203_s24 + $0x1e4] ss:$16 sps:$4 sm:$0xff]  }
 0x183   : > { %3054 = vmatpush1.bf16.msra.mxu1 %v16952_v7  ;;  %2969 = vmatprep.subr.bf16.mxu0 %v16957_v8  ;;  %v17033_v7 = vld [vmem:[%s25203_s24 + $0x1e0] ss:$16 sps:$4 sm:$0xff]   ;;  %v17038_v8 = vld [vmem:[%s25203_s24 + $0x1ec] ss:$16 sps:$4 sm:$0xff]  }
 0x184   : > { %3055 = vmatprep.subr.bf16.mxu1 %v16960_v9  ;;  %v17036_v9 = vld [vmem:[%s25203_s24 + $0x1e8] ss:$16 sps:$4 sm:$0xff]  }
 0x186   : > { %2970 = vmatpush1.bf16.msra.mxu0 %v16955_v10  ;;  %v17041_v10 = vld [vmem:[%s25203_s24 + $0x204] ss:$16 sps:$4 sm:$0xff]  }
 0x187   : > { %3056 = vmatpush1.bf16.msra.mxu1 %v16958_v11  ;;  %2971 = vmatprep.subr.bf16.mxu0 %v16963_v12  ;;  %v17044_v11 = vld [vmem:[%s25203_s24 + $0x20c] ss:$16 sps:$4 sm:$0xff]   ;;  %v17039_v12 = vld [vmem:[%s25203_s24 + $0x200] ss:$16 sps:$4 sm:$0xff]  }
 0x188   : > { %3057 = vmatprep.subr.bf16.mxu1 %v16966_v14  ;;  %v17047_v14 = vld [vmem:[%s25203_s24 + $0x224] ss:$16 sps:$4 sm:$0xff]  }
 0x18a   : > { %2972 = vmatpush1.bf16.msra.mxu0 %v16961_v13  ;;  %v17042_v13 = vld [vmem:[%s25203_s24 + $0x208] ss:$16 sps:$4 sm:$0xff]  }
 0x18b   : > { %3058 = vmatpush1.bf16.msra.mxu1 %v16964_v15  ;;  %2973 = vmatprep.subr.bf16.mxu0 %v16969_v18  ;;  %v17045_v15 = vld [vmem:[%s25203_s24 + $0x220] ss:$16 sps:$4 sm:$0xff]   ;;  %v17048_v18 = vld [vmem:[%s25203_s24 + $0x228] ss:$16 sps:$4 sm:$0xff]  }
 0x18c   : > { %3059 = vmatprep.subr.bf16.mxu1 %v16972_v20  ;;  %v17053_v20 = vld [vmem:[%s25203_s24 + $0x244] ss:$16 sps:$4 sm:$0xff]  }
 0x18e   : > { %2974 = vmatpush1.bf16.msra.mxu0 %v16967_v19  ;;  %v17050_v19 = vld [vmem:[%s25203_s24 + $0x22c] ss:$16 sps:$4 sm:$0xff]  }
 0x18f   : > { %3060 = vmatpush1.bf16.msra.mxu1 %v16970_v22  ;;  %2975 = vmatprep.subr.bf16.mxu0 %v16975_v23  ;;  %v17056_v22 = vld [vmem:[%s25203_s24 + $0x24c] ss:$16 sps:$4 sm:$0xff]   ;;  %v17051_v23 = vld [vmem:[%s25203_s24 + $0x240] ss:$16 sps:$4 sm:$0xff]  }
 0x190   : > { %3061 = vmatprep.subr.bf16.mxu1 %v16978_v25  ;;  %v17059_v25 = vld [vmem:[%s25203_s24 + $0x264] ss:$16 sps:$4 sm:$0xff]  }
 0x192   : > { %2976 = vmatpush1.bf16.msra.mxu0 %v16973_v24  ;;  %v17054_v24 = vld [vmem:[%s25203_s24 + $0x248] ss:$16 sps:$4 sm:$0xff]  }
 0x193   : > { %3062 = vmatpush1.bf16.msra.mxu1 %v16976_v27  ;;  %2977 = vmatprep.subr.bf16.mxu0 %v16981_v28  ;;  %v17057_v27 = vld [vmem:[%s25203_s24 + $0x260] ss:$16 sps:$4 sm:$0xff]   ;;  %v17062_v28 = vld [vmem:[%s25203_s24 + $0x26c] ss:$16 sps:$4 sm:$0xff]  }
 0x194   : > { %3063 = vmatprep.subr.bf16.mxu1 %v16984_v30  ;;  %v17065_v30 = vld [vmem:[%s25203_s24 + $0x284] ss:$16 sps:$4 sm:$0xff]  }
 0x196   : > { %2978 = vmatpush1.bf16.msra.mxu0 %v16979_v29  ;;  %v17060_v29 = vld [vmem:[%s25203_s24 + $0x268] ss:$16 sps:$4 sm:$0xff]  }
 0x197   : > { %3064 = vmatpush1.bf16.msra.mxu1 %v16982_v31  ;;  %2979 = vmatprep.subr.bf16.mxu0 %v16987_v32  ;;  %v17063_v31 = vld [vmem:[%s25203_s24 + $0x280] ss:$16 sps:$4 sm:$0xff]   ;;  %v17068_v32 = vld [vmem:[%s25203_s24 + $0x28c] ss:$16 sps:$4 sm:$0xff]  }
 0x198   : > { %3065 = vmatprep.subr.bf16.mxu1 %v16990_v34  ;;  %v17071_v34 = vld [vmem:[%s25203_s24 + $0x2a4] ss:$16 sps:$4 sm:$0xff]  }
 0x19a   : > { %2980 = vmatpush1.bf16.msra.mxu0 %v16985_v33  ;;  %v17066_v33 = vld [vmem:[%s25203_s24 + $0x288] ss:$16 sps:$4 sm:$0xff]  }
 0x19b   : > { %3066 = vmatpush1.bf16.msra.mxu1 %v16988_v35  ;;  %2981 = vmatprep.subr.bf16.mxu0 %v16993_v36  ;;  %v17069_v35 = vld [vmem:[%s25203_s24 + $0x2a0] ss:$16 sps:$4 sm:$0xff]   ;;  %v17074_v36 = vld [vmem:[%s25203_s24 + $0x2ac] ss:$16 sps:$4 sm:$0xff]  }
 0x19c   : > { %3067 = vmatprep.subr.bf16.mxu1 %v16996_v38  ;;  %v17077_v38 = vld [vmem:[%s25203_s24 + $0x2c4] ss:$16 sps:$4 sm:$0xff]  }
 0x19e   : > { %2982 = vmatpush1.bf16.msra.mxu0 %v16991_v37  ;;  %v17072_v37 = vld [vmem:[%s25203_s24 + $0x2a8] ss:$16 sps:$4 sm:$0xff]  }
 0x19f   : > { %3068 = vmatpush1.bf16.msra.mxu1 %v16994_v39  ;;  %2983 = vmatprep.subr.bf16.mxu0 %v16999_v40  ;;  %v17075_v39 = vld [vmem:[%s25203_s24 + $0x2c0] ss:$16 sps:$4 sm:$0xff]   ;;  %v17080_v40 = vld [vmem:[%s25203_s24 + $0x2cc] ss:$16 sps:$4 sm:$0xff]  }
 0x1a0   : > { %3069 = vmatprep.subr.bf16.mxu1 %v17002_v42  ;;  %v17083_v42 = vld [vmem:[%s25203_s24 + $0x2e4] ss:$16 sps:$4 sm:$0xff]  }
 0x1a2   : > { %2984 = vmatpush1.bf16.msra.mxu0 %v16997_v41  ;;  %v17078_v41 = vld [vmem:[%s25203_s24 + $0x2c8] ss:$16 sps:$4 sm:$0xff]  }
 0x1a3   : > { %3070 = vmatpush1.bf16.msra.mxu1 %v17000_v43  ;;  %2985 = vmatprep.subr.bf16.mxu0 %v17005_v44  ;;  %v17081_v43 = vld [vmem:[%s25203_s24 + $0x2e0] ss:$16 sps:$4 sm:$0xff]   ;;  %v17086_v44 = vld [vmem:[%s25203_s24 + $0x2ec] ss:$16 sps:$4 sm:$0xff]  }
 0x1a4   : > { %3071 = vmatprep.subr.bf16.mxu1 %v17008_v46  ;;  %v17089_v46 = vld [vmem:[%s25203_s24 + $0x304] ss:$16 sps:$4 sm:$0xff]  }
 0x1a6   : > { %2986 = vmatpush1.bf16.msra.mxu0 %v17003_v45  ;;  %v17084_v45 = vld [vmem:[%s25203_s24 + $0x2e8] ss:$16 sps:$4 sm:$0xff]  }
 0x1a7   : > { %3072 = vmatpush1.bf16.msra.mxu1 %v17006_v47  ;;  %2987 = vmatprep.subr.bf16.mxu0 %v17011_v48  ;;  %v17087_v47 = vld [vmem:[%s25203_s24 + $0x300] ss:$16 sps:$4 sm:$0xff]   ;;  %v17092_v48 = vld [vmem:[%s25203_s24 + $0x30c] ss:$16 sps:$4 sm:$0xff]  }
 0x1a8   : > { %3073 = vmatprep.subr.bf16.mxu1 %v17014_v50  ;;  %v17095_v50 = vld [vmem:[%s25203_s24 + $0x324] ss:$16 sps:$4 sm:$0xff]  }
 0x1aa   : > { %2988 = vmatpush1.bf16.msra.mxu0 %v17009_v49  ;;  %v17090_v49 = vld [vmem:[%s25203_s24 + $0x308] ss:$16 sps:$4 sm:$0xff]  }
 0x1ab   : > { %3074 = vmatpush1.bf16.msra.mxu1 %v17012_v51  ;;  %2989 = vmatprep.subr.bf16.mxu0 %v17017_v52  ;;  %v17093_v51 = vld [vmem:[%s25203_s24 + $0x320] ss:$16 sps:$4 sm:$0xff]   ;;  %v17098_v52 = vld [vmem:[%s25203_s24 + $0x32c] ss:$16 sps:$4 sm:$0xff]  }
 0x1ac   : > { %3075 = vmatprep.subr.bf16.mxu1 %v17020_v54  ;;  %v17101_v54 = vld [vmem:[%s25203_s24 + $0x344] ss:$16 sps:$4 sm:$0xff]  }
 0x1ae   : > { %2990 = vmatpush1.bf16.msra.mxu0 %v17015_v53  ;;  %v17096_v53 = vld [vmem:[%s25203_s24 + $0x328] ss:$16 sps:$4 sm:$0xff]  }
 0x1af   : > { %3076 = vmatpush1.bf16.msra.mxu1 %v17018_v55  ;;  %2991 = vmatprep.subr.bf16.mxu0 %v17023_v58  ;;  %v17099_v55 = vld [vmem:[%s25203_s24 + $0x340] ss:$16 sps:$4 sm:$0xff]   ;;  %v17104_v58 = vld [vmem:[%s25203_s24 + $0x34c] ss:$16 sps:$4 sm:$0xff]  }
 0x1b0   : > { %3077 = vmatprep.subr.bf16.mxu1 %v17026_v60  ;;  %v17107_v60 = vld [vmem:[%s25203_s24 + $0x364] ss:$16 sps:$4 sm:$0xff]  }
 0x1b2   : > { %2992 = vmatpush1.bf16.msra.mxu0 %v17021_v59  ;;  %v17102_v59 = vld [vmem:[%s25203_s24 + $0x348] ss:$16 sps:$4 sm:$0xff]  }
 0x1b3   : > { %3078 = vmatpush1.bf16.msra.mxu1 %v17024_v63  ;;  %2993 = vmatprep.subr.bf16.mxu0 %v17029_v2  ;;  %v17105_v63 = vld [vmem:[%s25203_s24 + $0x360] ss:$16 sps:$4 sm:$0xff]   ;;  %v17110_v2 = vld [vmem:[%s25203_s24 + $0x36c] ss:$16 sps:$4 sm:$0xff]  }
 0x1b4   : > { %3079 = vmatprep.subr.bf16.mxu1 %v17032_v4  ;;  %v17113_v4 = vld [vmem:[%s25203_s24 + $0x384] ss:$16 sps:$4 sm:$0xff]  }
 0x1b6   : > { %2994 = vmatpush1.bf16.msra.mxu0 %v17027_v3  ;;  %v17108_v3 = vld [vmem:[%s25203_s24 + $0x368] ss:$16 sps:$4 sm:$0xff]  }
 0x1b7   : > { %3080 = vmatpush1.bf16.msra.mxu1 %v17030_v5  ;;  %2995 = vmatprep.subr.bf16.mxu0 %v17035_v6  ;;  %v17111_v5 = vld [vmem:[%s25203_s24 + $0x380] ss:$16 sps:$4 sm:$0xff]   ;;  %v17116_v6 = vld [vmem:[%s25203_s24 + $0x38c] ss:$16 sps:$4 sm:$0xff]  }
 0x1b8   : > { %3081 = vmatprep.subr.bf16.mxu1 %v17038_v8  ;;  %v17119_v8 = vld [vmem:[%s25203_s24 + $0x3a4] ss:$16 sps:$4 sm:$0xff]  }
 0x1ba   : > { %2996 = vmatpush1.bf16.msra.mxu0 %v17033_v7  ;;  %v17114_v7 = vld [vmem:[%s25203_s24 + $0x388] ss:$16 sps:$4 sm:$0xff]  }
 0x1bb   : > { %3082 = vmatpush1.bf16.msra.mxu1 %v17036_v9  ;;  %3008 = vmatprep.subr.bf16.mxu0 %v17041_v10  ;;  %v17117_v9 = vld [vmem:[%s25203_s24 + $0x3a0] ss:$16 sps:$4 sm:$0xff]   ;;  %v17122_v10 = vld [vmem:[%s25203_s24 + $0x3ac] ss:$16 sps:$4 sm:$0xff]  }
 0x1bc   : > { %3094 = vmatprep.subr.bf16.mxu1 %v17044_v11  ;;  %v17120_v11 = vld [vmem:[%s25203_s24 + $0x3a8] ss:$16 sps:$4 sm:$0xff]  }
 0x1bd   : > { %2998 = vmatmul.mubr.bf16.vlgmr.msra.gmra.mrb[4].mxu0 %v19940_v16 }
 0x1be   : > { %3084 = vmatmul.mubr.bf16.vlgmr.msra.gmra.mrb[4].mxu1 %v19940_v16  ;;  %3009 = vmatpush1.bf16.msra.mxu0 %v17039_v12  ;;  %v17125_v12 = vld [vmem:[%s25203_s24 + $0x3c4] ss:$16 sps:$4 sm:$0xff]  }
 0x1bf   : > { %3040 = vmatprep.mubr.bf16.mxu0 %v20000_v57  ;;  %3095 = vmatpush1.bf16.msra.mxu1 %v17042_v13  ;;  %v17123_v13 = vld [vmem:[%s25203_s24 + $0x3c0] ss:$16 sps:$4 sm:$0xff]  }
 0x1c0   : > { %3126 = vmatprep.mubr.bf16.mxu1 %v20000_v57  ;;  %3010 = vmatprep.subr.bf16.mxu0 %v17047_v14  ;;  %v17128_v14 = vld [vmem:[%s25203_s24 + $0x3cc] ss:$16 sps:$4 sm:$0xff]  }
 0x1c1   : > { %3096 = vmatprep.subr.bf16.mxu1 %v17050_v19  ;;  %v17129_v19 = vld [vmem:[%s25203_s24 + $0x3e0] ss:$16 sps:$4 sm:$0xff]  }
 0x1c2   : > { %3011 = vmatpush1.bf16.msra.mxu0 %v17045_v15  ;;  %v17126_v15 = vld [vmem:[%s25203_s24 + $0x3c8] ss:$16 sps:$4 sm:$0xff]  }
 0x1c3   : > { %3097 = vmatpush1.bf16.msra.mxu1 %v17048_v18  ;;  %3012 = vmatprep.subr.bf16.mxu0 %v17053_v20  ;;  %v17131_v18 = vld [vmem:[%s25203_s24 + $0x3e4] ss:$16 sps:$4 sm:$0xff]   ;;  %v17134_v20 = vld [vmem:[%s25203_s24 + $0x3ec] ss:$16 sps:$4 sm:$0xff]  }
 0x1c4   : > { %3098 = vmatprep.subr.bf16.mxu1 %v17056_v22  ;;  %v17132_v22 = vld [vmem:[%s25203_s24 + $0x3e8] ss:$16 sps:$4 sm:$0xff]  }
 0x1c6   : > { %3013 = vmatpush1.bf16.msra.mxu0 %v17051_v23  ;;  %v17137_v23 = vld [vmem:[%s25203_s24 + $0x804] ss:$16 sps:$4 sm:$0xff]  }
 0x1c7   : > { %3099 = vmatpush1.bf16.msra.mxu1 %v17054_v24  ;;  %3014 = vmatprep.subr.bf16.mxu0 %v17059_v25  ;;  %v17140_v24 = vld [vmem:[%s25203_s24 + $0x80c] ss:$16 sps:$4 sm:$0xff]   ;;  %v17135_v25 = vld [vmem:[%s25203_s24 + $0x800] ss:$16 sps:$4 sm:$0xff]  }
 0x1c8   : > { %3100 = vmatprep.subr.bf16.mxu1 %v17062_v28  ;;  %v17143_v28 = vld [vmem:[%s25203_s24 + $0x824] ss:$16 sps:$4 sm:$0xff]  }
 0x1ca   : > { %3015 = vmatpush1.bf16.msra.mxu0 %v17057_v27  ;;  %v17138_v27 = vld [vmem:[%s25203_s24 + $0x808] ss:$16 sps:$4 sm:$0xff]  }
 0x1cb   : > { %3101 = vmatpush1.bf16.msra.mxu1 %v17060_v29  ;;  %3016 = vmatprep.subr.bf16.mxu0 %v17065_v30  ;;  %v17146_v29 = vld [vmem:[%s25203_s24 + $0x82c] ss:$16 sps:$4 sm:$0xff]   ;;  %v3271_v30 = vrot.slane %v19942_v17, 1  ;;  %v17147_v17 = vld [vmem:[%s25203_s24 + $0x840] ss:$16 sps:$4 sm:$0xff]  }
 0x1cc   : > { %3102 = vmatprep.subr.bf16.mxu1 %v17068_v32  ;;  %v17144_v32 = vld [vmem:[%s25203_s24 + $0x828] ss:$16 sps:$4 sm:$0xff]  }
 0x1ce   : > { %3017 = vmatpush1.bf16.msra.mxu0 %v17063_v31  ;;  %v17141_v31 = vld [vmem:[%s25203_s24 + $0x820] ss:$16 sps:$4 sm:$0xff]  }
 0x1cf   : > { %3103 = vmatpush1.bf16.msra.mxu1 %v17066_v33  ;;  %3018 = vmatprep.subr.bf16.mxu0 %v17071_v34  ;;  %v17149_v33 = vld [vmem:[%s25203_s24 + $0x844] ss:$16 sps:$4 sm:$0xff]   ;;  %v17152_v34 = vld [vmem:[%s25203_s24 + $0x84c] ss:$16 sps:$4 sm:$0xff]  }
 0x1d0   : > { %3104 = vmatprep.subr.bf16.mxu1 %v17074_v36  ;;  %v17155_v36 = vld [vmem:[%s25203_s24 + $0x864] ss:$16 sps:$4 sm:$0xff]  }
 0x1d2   : > { %3019 = vmatpush1.bf16.msra.mxu0 %v17069_v35  ;;  %v17150_v35 = vld [vmem:[%s25203_s24 + $0x848] ss:$16 sps:$4 sm:$0xff]  }
 0x1d3   : > { %3105 = vmatpush1.bf16.msra.mxu1 %v17072_v37  ;;  %3020 = vmatprep.subr.bf16.mxu0 %v17077_v38  ;;  %v17153_v37 = vld [vmem:[%s25203_s24 + $0x860] ss:$16 sps:$4 sm:$0xff]   ;;  %v17158_v38 = vld [vmem:[%s25203_s24 + $0x86c] ss:$16 sps:$4 sm:$0xff]  }
 0x1d4   : > { %3106 = vmatprep.subr.bf16.mxu1 %v17080_v40  ;;  %v17161_v40 = vld [vmem:[%s25203_s24 + $0x884] ss:$16 sps:$4 sm:$0xff]  }
 0x1d6   : > { %3021 = vmatpush1.bf16.msra.mxu0 %v17075_v39  ;;  %v17156_v39 = vld [vmem:[%s25203_s24 + $0x868] ss:$16 sps:$4 sm:$0xff]  }
 0x1d7   : > { %3107 = vmatpush1.bf16.msra.mxu1 %v17078_v41  ;;  %3022 = vmatprep.subr.bf16.mxu0 %v17083_v42  ;;  %v17159_v41 = vld [vmem:[%s25203_s24 + $0x880] ss:$16 sps:$4 sm:$0xff]   ;;  %v17164_v42 = vld [vmem:[%s25203_s24 + $0x88c] ss:$16 sps:$4 sm:$0xff]  }
 0x1d8   : > { %3108 = vmatprep.subr.bf16.mxu1 %v17086_v44  ;;  %v17167_v44 = vld [vmem:[%s25203_s24 + $0x8a4] ss:$16 sps:$4 sm:$0xff]  }
 0x1da   : > { %3023 = vmatpush1.bf16.msra.mxu0 %v17081_v43  ;;  %v17162_v43 = vld [vmem:[%s25203_s24 + $0x888] ss:$16 sps:$4 sm:$0xff]  }
 0x1db   : > { %3109 = vmatpush1.bf16.msra.mxu1 %v17084_v45  ;;  %3024 = vmatprep.subr.bf16.mxu0 %v17089_v46  ;;  %v17165_v45 = vld [vmem:[%s25203_s24 + $0x8a0] ss:$16 sps:$4 sm:$0xff]   ;;  %v17170_v46 = vld [vmem:[%s25203_s24 + $0x8ac] ss:$16 sps:$4 sm:$0xff]  }
 0x1dc   : > { %3110 = vmatprep.subr.bf16.mxu1 %v17092_v48  ;;  %v17173_v48 = vld [vmem:[%s25203_s24 + $0x8c4] ss:$16 sps:$4 sm:$0xff]  }
 0x1de   : > { %3025 = vmatpush1.bf16.msra.mxu0 %v17087_v47  ;;  %v17168_v47 = vld [vmem:[%s25203_s24 + $0x8a8] ss:$16 sps:$4 sm:$0xff]  }
 0x1df   : > { %3111 = vmatpush1.bf16.msra.mxu1 %v17090_v49  ;;  %3026 = vmatprep.subr.bf16.mxu0 %v17095_v50  ;;  %v17171_v49 = vld [vmem:[%s25203_s24 + $0x8c0] ss:$16 sps:$4 sm:$0xff]   ;;  %v17176_v50 = vld [vmem:[%s25203_s24 + $0x8cc] ss:$16 sps:$4 sm:$0xff]  }
 0x1e0   : > { %3112 = vmatprep.subr.bf16.mxu1 %v17098_v52  ;;  %v17179_v52 = vld [vmem:[%s25203_s24 + $0x8e4] ss:$16 sps:$4 sm:$0xff]  }
 0x1e2   : > { %3027 = vmatpush1.bf16.msra.mxu0 %v17093_v51  ;;  %v17174_v51 = vld [vmem:[%s25203_s24 + $0x8c8] ss:$16 sps:$4 sm:$0xff]  }
 0x1e3   : > { %3113 = vmatpush1.bf16.msra.mxu1 %v17096_v53  ;;  %3028 = vmatprep.subr.bf16.mxu0 %v17101_v54  ;;  %v17177_v53 = vld [vmem:[%s25203_s24 + $0x8e0] ss:$16 sps:$4 sm:$0xff]   ;;  %v17182_v54 = vld [vmem:[%s25203_s24 + $0x8ec] ss:$16 sps:$4 sm:$0xff]  }
 0x1e4   : > { %3114 = vmatprep.subr.bf16.mxu1 %v17104_v58  ;;  %v17185_v58 = vld [vmem:[%s25203_s24 + $0x904] ss:$16 sps:$4 sm:$0xff]  }
 0x1e6   : > { %3029 = vmatpush1.bf16.msra.mxu0 %v17099_v55  ;;  %v17180_v55 = vld [vmem:[%s25203_s24 + $0x8e8] ss:$16 sps:$4 sm:$0xff]  }
 0x1e7   : > { %3115 = vmatpush1.bf16.msra.mxu1 %v17102_v59  ;;  %3030 = vmatprep.subr.bf16.mxu0 %v17107_v60  ;;  %v17183_v59 = vld [vmem:[%s25203_s24 + $0x900] ss:$16 sps:$4 sm:$0xff]   ;;  %v17188_v60 = vld [vmem:[%s25203_s24 + $0x90c] ss:$16 sps:$4 sm:$0xff]  }
 0x1e8   : > { %3116 = vmatprep.subr.bf16.mxu1 %v17110_v2  ;;  %v17191_v2 = vld [vmem:[%s25203_s24 + $0x924] ss:$16 sps:$4 sm:$0xff]  }
 0x1ea   : > { %3031 = vmatpush1.bf16.msra.mxu0 %v17105_v63  ;;  %v17186_v63 = vld [vmem:[%s25203_s24 + $0x908] ss:$16 sps:$4 sm:$0xff]  }
 0x1eb   : > { %3117 = vmatpush1.bf16.msra.mxu1 %v17108_v3  ;;  %3032 = vmatprep.subr.bf16.mxu0 %v17113_v4  ;;  %v17189_v3 = vld [vmem:[%s25203_s24 + $0x920] ss:$16 sps:$4 sm:$0xff]   ;;  %v17194_v4 = vld [vmem:[%s25203_s24 + $0x92c] ss:$16 sps:$4 sm:$0xff]  }
 0x1ec   : > { %3118 = vmatprep.subr.bf16.mxu1 %v17116_v6  ;;  %v17197_v6 = vld [vmem:[%s25203_s24 + $0x944] ss:$16 sps:$4 sm:$0xff]  }
 0x1ee   : > { %3033 = vmatpush1.bf16.msra.mxu0 %v17111_v5  ;;  %v17192_v5 = vld [vmem:[%s25203_s24 + $0x928] ss:$16 sps:$4 sm:$0xff]  }
 0x1ef   : > { %3119 = vmatpush1.bf16.msra.mxu1 %v17114_v7  ;;  %3034 = vmatprep.subr.bf16.mxu0 %v17119_v8  ;;  %v17195_v7 = vld [vmem:[%s25203_s24 + $0x940] ss:$16 sps:$4 sm:$0xff]   ;;  %v17200_v8 = vld [vmem:[%s25203_s24 + $0x94c] ss:$16 sps:$4 sm:$0xff]  }
 0x1f0   : > { %3120 = vmatprep.subr.bf16.mxu1 %v17122_v10  ;;  %v17203_v10 = vld [vmem:[%s25203_s24 + $0x964] ss:$16 sps:$4 sm:$0xff]  }
 0x1f2   : > { %3035 = vmatpush1.bf16.msra.mxu0 %v17117_v9  ;;  %v17198_v9 = vld [vmem:[%s25203_s24 + $0x948] ss:$16 sps:$4 sm:$0xff]  }
 0x1f3   : > { %3121 = vmatpush1.bf16.msra.mxu1 %v17120_v11  ;;  %3036 = vmatprep.subr.bf16.mxu0 %v17125_v12  ;;  %v17201_v11 = vld [vmem:[%s25203_s24 + $0x960] ss:$16 sps:$4 sm:$0xff]   ;;  %v17206_v12 = vld [vmem:[%s25203_s24 + $0x96c] ss:$16 sps:$4 sm:$0xff]  }
 0x1f4   : > { %3122 = vmatprep.subr.bf16.mxu1 %v17128_v14  ;;  %v17209_v14 = vld [vmem:[%s25203_s24 + $0x984] ss:$16 sps:$4 sm:$0xff]  }
 0x1f6   : > { %3037 = vmatpush1.bf16.msra.mxu0 %v17123_v13  ;;  %v17204_v13 = vld [vmem:[%s25203_s24 + $0x968] ss:$16 sps:$4 sm:$0xff]  }
 0x1f7   : > { %3123 = vmatpush1.bf16.msra.mxu1 %v17126_v15  ;;  %3038 = vmatprep.subr.bf16.mxu0 %v17131_v18  ;;  %v17207_v15 = vld [vmem:[%s25203_s24 + $0x980] ss:$16 sps:$4 sm:$0xff]   ;;  %v17212_v18 = vld [vmem:[%s25203_s24 + $0x98c] ss:$16 sps:$4 sm:$0xff]  }
 0x1f8   : > { %3124 = vmatprep.subr.bf16.mxu1 %v17134_v20  ;;  %v17215_v20 = vld [vmem:[%s25203_s24 + $0x9a4] ss:$16 sps:$4 sm:$0xff]  }
 0x1fa   : > { %3039 = vmatpush1.bf16.msra.mxu0 %v17129_v19  ;;  %v17210_v19 = vld [vmem:[%s25203_s24 + $0x988] ss:$16 sps:$4 sm:$0xff]  }
 0x1fb   : > { %3125 = vmatpush1.bf16.msra.mxu1 %v17132_v22  ;;  %3918 = vmatprep.subr.bf16.mxu0 %v17137_v23  ;;  %v17213_v22 = vld [vmem:[%s25203_s24 + $0x9a0] ss:$16 sps:$4 sm:$0xff]   ;;  %v17218_v23 = vld [vmem:[%s25203_s24 + $0x9ac] ss:$16 sps:$4 sm:$0xff]  }
 0x1fc   : > { %4004 = vmatprep.subr.bf16.mxu1 %v17140_v24  ;;  %v17216_v24 = vld [vmem:[%s25203_s24 + $0x9a8] ss:$16 sps:$4 sm:$0xff]  }
 0x1fd   : > { %3041 = vmatmul.mubr.bf16.vlgmr.msra.gmra.mrb[4].mxu0 %v19998_v56 }
 0x1fe   : > { %3127 = vmatmul.mubr.bf16.vlgmr.msra.gmra.mrb[4].mxu1 %v19998_v56  ;;  %3919 = vmatpush1.bf16.msra.mxu0 %v17135_v25  ;;  %v17221_v25 = vld [vmem:[%s25203_s24 + $0x9c4] ss:$16 sps:$4 sm:$0xff]  }
 0x1ff   : > { %3950 = vmatprep.mubr.bf16.mxu0 %v3271_v30  ;;  %4005 = vmatpush1.bf16.msra.mxu1 %v17138_v27  ;;  %v17224_v27 = vld [vmem:[%s25203_s24 + $0x9cc] ss:$16 sps:$4 sm:$0xff]  }
 0x200   : > { %4036 = vmatprep.mubr.bf16.mxu1 %v3271_v30  ;;  %3920 = vmatprep.subr.bf16.mxu0 %v17143_v28  ;;  %v17219_v28 = vld [vmem:[%s25203_s24 + $0x9c0] ss:$16 sps:$4 sm:$0xff]   ;;  %v17227_v30 = vld [vmem:[%s25203_s24 + $0x9e4] ss:$16 sps:$4 sm:$0xff]  }
 0x201   : > { %4006 = vmatprep.subr.bf16.mxu1 %v17146_v29  ;;  %v17222_v29 = vld [vmem:[%s25203_s24 + $0x9c8] ss:$16 sps:$4 sm:$0xff]  }
 0x202   : > { %3921 = vmatpush1.bf16.msra.mxu0 %v17141_v31  ;;  %v17230_v31 = vld [vmem:[%s25203_s24 + $0x9ec] ss:$16 sps:$4 sm:$0xff]  }
 0x203   : > { %4007 = vmatpush1.bf16.msra.mxu1 %v17144_v32  ;;  %3922 = vmatprep.subr.bf16.mxu0 %v17149_v33  ;;  %v17225_v32 = vld [vmem:[%s25203_s24 + $0x9e0] ss:$16 sps:$4 sm:$0xff]   ;;  %v17228_v33 = vld [vmem:[%s25203_s24 + $0x9e8] ss:$16 sps:$4 sm:$0xff]  }
 0x204   : > { %4008 = vmatprep.subr.bf16.mxu1 %v17152_v34  ;;  %v17236_v34 = vld [vmem:[%s25203_s24 + $0xa0c] ss:$16 sps:$4 sm:$0xff]  }
 0x206   : > { %3923 = vmatpush1.bf16.msra.mxu0 %v17147_v17  ;;  %v17233_v17 = vld [vmem:[%s25203_s24 + $0xa04] ss:$16 sps:$4 sm:$0xff]  }
 0x207   : > { %4009 = vmatpush1.bf16.msra.mxu1 %v17150_v35  ;;  %3924 = vmatprep.subr.bf16.mxu0 %v17155_v36  ;;  %v17231_v35 = vld [vmem:[%s25203_s24 + $0xa00] ss:$16 sps:$4 sm:$0xff]   ;;  %v17234_v36 = vld [vmem:[%s25203_s24 + $0xa08] ss:$16 sps:$4 sm:$0xff]  }
 0x208   : > { %4010 = vmatprep.subr.bf16.mxu1 %v17158_v38  ;;  %v3270_v38 = vrot.slane %v19940_v16, 1  ;;  %v17245_v16 = vld [vmem:[%s25203_s24 + $0xa44] ss:$16 sps:$4 sm:$0xff]  }
 0x20a   : > { %3925 = vmatpush1.bf16.msra.mxu0 %v17153_v37  ;;  %v17239_v37 = vld [vmem:[%s25203_s24 + $0xa24] ss:$16 sps:$4 sm:$0xff]  }
 0x20b   : > { %4011 = vmatpush1.bf16.msra.mxu1 %v17156_v39  ;;  %3926 = vmatprep.subr.bf16.mxu0 %v17161_v40  ;;  %v17242_v39 = vld [vmem:[%s25203_s24 + $0xa2c] ss:$16 sps:$4 sm:$0xff]   ;;  %v17237_v40 = vld [vmem:[%s25203_s24 + $0xa20] ss:$16 sps:$4 sm:$0xff]  }
 0x20c   : > { %4012 = vmatprep.subr.bf16.mxu1 %v17164_v42  ;;  %v17240_v42 = vld [vmem:[%s25203_s24 + $0xa28] ss:$16 sps:$4 sm:$0xff]  }
 0x20e   : > { %3927 = vmatpush1.bf16.msra.mxu0 %v17159_v41  ;;  %v3273_v41 = vrot.slane %v20000_v57, 1  ;;  %v17243_v57 = vld [vmem:[%s25203_s24 + $0xa40] ss:$16 sps:$4 sm:$0xff]  }
 0x20f   : > { %4013 = vmatpush1.bf16.msra.mxu1 %v17162_v43  ;;  %3928 = vmatprep.subr.bf16.mxu0 %v17167_v44  ;;  %v17248_v43 = vld [vmem:[%s25203_s24 + $0xa4c] ss:$16 sps:$4 sm:$0xff]   ;;  %v17246_v44 = vld [vmem:[%s25203_s24 + $0xa48] ss:$16 sps:$4 sm:$0xff]  }
 0x210   : > { %4014 = vmatprep.subr.bf16.mxu1 %v17170_v46  ;;  %v17254_v46 = vld [vmem:[%s25203_s24 + $0xa6c] ss:$16 sps:$4 sm:$0xff]  }
 0x212   : > { %3929 = vmatpush1.bf16.msra.mxu0 %v17165_v45  ;;  %v17251_v45 = vld [vmem:[%s25203_s24 + $0xa64] ss:$16 sps:$4 sm:$0xff]  }
 0x213   : > { %4015 = vmatpush1.bf16.msra.mxu1 %v17168_v47  ;;  %3930 = vmatprep.subr.bf16.mxu0 %v17173_v48  ;;  %v17249_v47 = vld [vmem:[%s25203_s24 + $0xa60] ss:$16 sps:$4 sm:$0xff]   ;;  %v17252_v48 = vld [vmem:[%s25203_s24 + $0xa68] ss:$16 sps:$4 sm:$0xff]  }
 0x214   : > { %4016 = vmatprep.subr.bf16.mxu1 %v17176_v50  ;;  %v17260_v50 = vld [vmem:[%s25203_s24 + $0xa8c] ss:$16 sps:$4 sm:$0xff]  }
 0x216   : > { %3931 = vmatpush1.bf16.msra.mxu0 %v17171_v49  ;;  %v17257_v49 = vld [vmem:[%s25203_s24 + $0xa84] ss:$16 sps:$4 sm:$0xff]  }
 0x217   : > { %4017 = vmatpush1.bf16.msra.mxu1 %v17174_v51  ;;  %3932 = vmatprep.subr.bf16.mxu0 %v17179_v52  ;;  %v17255_v51 = vld [vmem:[%s25203_s24 + $0xa80] ss:$16 sps:$4 sm:$0xff]   ;;  %v17258_v52 = vld [vmem:[%s25203_s24 + $0xa88] ss:$16 sps:$4 sm:$0xff]  }
 0x218   : > { %4018 = vmatprep.subr.bf16.mxu1 %v17182_v54  ;;  %v17266_v54 = vld [vmem:[%s25203_s24 + $0xaac] ss:$16 sps:$4 sm:$0xff]  }
 0x21a   : > { %3933 = vmatpush1.bf16.msra.mxu0 %v17177_v53  ;;  %v17263_v53 = vld [vmem:[%s25203_s24 + $0xaa4] ss:$16 sps:$4 sm:$0xff]  }
 0x21b   : > { %4019 = vmatpush1.bf16.msra.mxu1 %v17180_v55  ;;  %3934 = vmatprep.subr.bf16.mxu0 %v17185_v58  ;;  %v17261_v55 = vld [vmem:[%s25203_s24 + $0xaa0] ss:$16 sps:$4 sm:$0xff]   ;;  %v17264_v58 = vld [vmem:[%s25203_s24 + $0xaa8] ss:$16 sps:$4 sm:$0xff]  }
 0x21c   : > { %4020 = vmatprep.subr.bf16.mxu1 %v17188_v60  ;;  %v17272_v60 = vld [vmem:[%s25203_s24 + $0xacc] ss:$16 sps:$4 sm:$0xff]  }
 0x21e   : > { %3935 = vmatpush1.bf16.msra.mxu0 %v17183_v59  ;;  %v17269_v59 = vld [vmem:[%s25203_s24 + $0xac4] ss:$16 sps:$4 sm:$0xff]  }
 0x21f   : > { %4021 = vmatpush1.bf16.msra.mxu1 %v17186_v63  ;;  %3936 = vmatprep.subr.bf16.mxu0 %v17191_v2  ;;  %v17267_v63 = vld [vmem:[%s25203_s24 + $0xac0] ss:$16 sps:$4 sm:$0xff]   ;;  %v17270_v2 = vld [vmem:[%s25203_s24 + $0xac8] ss:$16 sps:$4 sm:$0xff]  }
 0x220   : > { %4022 = vmatprep.subr.bf16.mxu1 %v17194_v4  ;;  %v17278_v4 = vld [vmem:[%s25203_s24 + $0xaec] ss:$16 sps:$4 sm:$0xff]  }
 0x222   : > { %3937 = vmatpush1.bf16.msra.mxu0 %v17189_v3  ;;  %v17275_v3 = vld [vmem:[%s25203_s24 + $0xae4] ss:$16 sps:$4 sm:$0xff]  }
 0x223   : > { %4023 = vmatpush1.bf16.msra.mxu1 %v17192_v5  ;;  %3938 = vmatprep.subr.bf16.mxu0 %v17197_v6  ;;  %v17273_v5 = vld [vmem:[%s25203_s24 + $0xae0] ss:$16 sps:$4 sm:$0xff]   ;;  %v17276_v6 = vld [vmem:[%s25203_s24 + $0xae8] ss:$16 sps:$4 sm:$0xff]  }
 0x224   : > { %4024 = vmatprep.subr.bf16.mxu1 %v17200_v8  ;;  %v17284_v8 = vld [vmem:[%s25203_s24 + $0xb0c] ss:$16 sps:$4 sm:$0xff]  }
 0x226   : > { %3939 = vmatpush1.bf16.msra.mxu0 %v17195_v7  ;;  %v17281_v7 = vld [vmem:[%s25203_s24 + $0xb04] ss:$16 sps:$4 sm:$0xff]  }
 0x227   : > { %4025 = vmatpush1.bf16.msra.mxu1 %v17198_v9  ;;  %3940 = vmatprep.subr.bf16.mxu0 %v17203_v10  ;;  %v17279_v9 = vld [vmem:[%s25203_s24 + $0xb00] ss:$16 sps:$4 sm:$0xff]   ;;  %v17282_v10 = vld [vmem:[%s25203_s24 + $0xb08] ss:$16 sps:$4 sm:$0xff]  }
 0x228   : > { %4026 = vmatprep.subr.bf16.mxu1 %v17206_v12  ;;  %v17290_v12 = vld [vmem:[%s25203_s24 + $0xb2c] ss:$16 sps:$4 sm:$0xff]  }
 0x22a   : > { %3941 = vmatpush1.bf16.msra.mxu0 %v17201_v11  ;;  %v17287_v11 = vld [vmem:[%s25203_s24 + $0xb24] ss:$16 sps:$4 sm:$0xff]  }
 0x22b   : > { %4027 = vmatpush1.bf16.msra.mxu1 %v17204_v13  ;;  %3942 = vmatprep.subr.bf16.mxu0 %v17209_v14  ;;  %v17285_v13 = vld [vmem:[%s25203_s24 + $0xb20] ss:$16 sps:$4 sm:$0xff]   ;;  %v17288_v14 = vld [vmem:[%s25203_s24 + $0xb28] ss:$16 sps:$4 sm:$0xff]  }
 0x22c   : > { %4028 = vmatprep.subr.bf16.mxu1 %v17212_v18  ;;  %v17296_v18 = vld [vmem:[%s25203_s24 + $0xb4c] ss:$16 sps:$4 sm:$0xff]  }
 0x22e   : > { %3943 = vmatpush1.bf16.msra.mxu0 %v17207_v15  ;;  %v17293_v15 = vld [vmem:[%s25203_s24 + $0xb44] ss:$16 sps:$4 sm:$0xff]  }
 0x22f   : > { %4029 = vmatpush1.bf16.msra.mxu1 %v17210_v19  ;;  %3944 = vmatprep.subr.bf16.mxu0 %v17215_v20  ;;  %v17291_v19 = vld [vmem:[%s25203_s24 + $0xb40] ss:$16 sps:$4 sm:$0xff]   ;;  %v17294_v20 = vld [vmem:[%s25203_s24 + $0xb48] ss:$16 sps:$4 sm:$0xff]  }
 0x230   : > { %4030 = vmatprep.subr.bf16.mxu1 %v17218_v23  ;;  %v17302_v23 = vld [vmem:[%s25203_s24 + $0xb6c] ss:$16 sps:$4 sm:$0xff]  }
 0x232   : > { %3945 = vmatpush1.bf16.msra.mxu0 %v17213_v22  ;;  %v17299_v22 = vld [vmem:[%s25203_s24 + $0xb64] ss:$16 sps:$4 sm:$0xff]  }
 0x233   : > { %4031 = vmatpush1.bf16.msra.mxu1 %v17216_v24  ;;  %3946 = vmatprep.subr.bf16.mxu0 %v17221_v25  ;;  %v17297_v24 = vld [vmem:[%s25203_s24 + $0xb60] ss:$16 sps:$4 sm:$0xff]   ;;  %v17300_v25 = vld [vmem:[%s25203_s24 + $0xb68] ss:$16 sps:$4 sm:$0xff]  }
 0x234   : > { %4032 = vmatprep.subr.bf16.mxu1 %v17224_v27  ;;  %v17305_v27 = vld [vmem:[%s25203_s24 + $0xb84] ss:$16 sps:$4 sm:$0xff]  }
 0x236   : > { %3947 = vmatpush1.bf16.msra.mxu0 %v17219_v28  ;;  %v17308_v28 = vld [vmem:[%s25203_s24 + $0xb8c] ss:$16 sps:$4 sm:$0xff]  }
 0x237   : > { %4033 = vmatpush1.bf16.msra.mxu1 %v17222_v29  ;;  %3948 = vmatprep.subr.bf16.mxu0 %v17227_v30  ;;  %v17303_v29 = vld [vmem:[%s25203_s24 + $0xb80] ss:$16 sps:$4 sm:$0xff]   ;;  %v17306_v30 = vld [vmem:[%s25203_s24 + $0xb88] ss:$16 sps:$4 sm:$0xff]  }
 0x238   : > { %4034 = vmatprep.subr.bf16.mxu1 %v17230_v31  ;;  %v17311_v31 = vld [vmem:[%s25203_s24 + $0xba4] ss:$16 sps:$4 sm:$0xff]  }
 0x23a   : > { %3949 = vmatpush1.bf16.msra.mxu0 %v17225_v32  ;;  %v17314_v32 = vld [vmem:[%s25203_s24 + $0xbac] ss:$16 sps:$4 sm:$0xff]  }
 0x23b   : > { %4035 = vmatpush1.bf16.msra.mxu1 %v17228_v33  ;;  %3961 = vmatprep.subr.bf16.mxu0 %v17233_v17  ;;  %v17309_v33 = vld [vmem:[%s25203_s24 + $0xba0] ss:$16 sps:$4 sm:$0xff]   ;;  %v17312_v17 = vld [vmem:[%s25203_s24 + $0xba8] ss:$16 sps:$4 sm:$0xff]  }
 0x23c   : > { %4047 = vmatprep.subr.bf16.mxu1 %v17236_v34  ;;  %v17317_v34 = vld [vmem:[%s25203_s24 + $0xbc4] ss:$16 sps:$4 sm:$0xff]  }
 0x23d   : > { %3951 = vmatmul.mubr.bf16.vlgmr.msra.gmra.mrb[4].mxu0 %v3270_v38 }
 0x23e   : > { %4037 = vmatmul.mubr.bf16.vlgmr.msra.gmra.mrb[4].mxu1 %v3270_v38  ;;  %3962 = vmatpush1.bf16.msra.mxu0 %v17231_v35  ;;  %v17320_v35 = vld [vmem:[%s25203_s24 + $0xbcc] ss:$16 sps:$4 sm:$0xff]   ;;  %v17323_v38 = vld [vmem:[%s25203_s24 + $0xbe4] ss:$16 sps:$4 sm:$0xff]  }
 0x23f   : > { %3993 = vmatprep.mubr.bf16.mxu0 %v3273_v41  ;;  %4048 = vmatpush1.bf16.msra.mxu1 %v17234_v36  ;;  %v17315_v36 = vld [vmem:[%s25203_s24 + $0xbc0] ss:$16 sps:$4 sm:$0xff]  }
 0x240   : > { %4079 = vmatprep.mubr.bf16.mxu1 %v3273_v41  ;;  %3963 = vmatprep.subr.bf16.mxu0 %v17239_v37  ;;  %v17318_v37 = vld [vmem:[%s25203_s24 + $0xbc8] ss:$16 sps:$4 sm:$0xff]  }
 0x241   : > { %4049 = vmatprep.subr.bf16.mxu1 %v17242_v39  ;;  %v17326_v39 = vld [vmem:[%s25203_s24 + $0xbec] ss:$16 sps:$4 sm:$0xff]   ;;  %v17324_v41 = vld [vmem:[%s25203_s24 + $0xbe8] ss:$16 sps:$4 sm:$0xff]  }
 0x242   : > { %3964 = vmatpush1.bf16.msra.mxu0 %v17237_v40  ;;  %v17321_v40 = vld [vmem:[%s25203_s24 + $0xbe0] ss:$16 sps:$4 sm:$0xff]  }
 0x243   : > { %4050 = vmatpush1.bf16.msra.mxu1 %v17240_v42  ;;  %3965 = vmatprep.subr.bf16.mxu0 %v17245_v16  ;;  %v17329_v42 = vld [vmem:[%s25205_s3 + $0x404] ss:$16 sps:$4 sm:$0xff]   ;;  %s25207_s3 = sld [smem:[#allocation16_spill]] }
 0x244   : > { %4051 = vmatprep.subr.bf16.mxu1 %v17248_v43  ;;  %v17332_v16 = vld [vmem:[%s25206_s1 + $0x604] ss:$16 sps:$4 sm:$0xff]   ;;  %v17327_v43 = vld [vmem:[%s25206_s1 + $0x400] ss:$16 sps:$4 sm:$0xff]  }
 0x246   : > { %3966 = vmatpush1.bf16.msra.mxu0 %v17243_v57  ;;  %v17330_v57 = vld [vmem:[%s25206_s1 + $0x600] ss:$16 sps:$4 sm:$0xff]  }
 0x247   : > { %4052 = vmatpush1.bf16.msra.mxu1 %v17246_v44  ;;  %3967 = vmatprep.subr.bf16.mxu0 %v17251_v45  ;;  %v17335_v44 = vld [vmem:[%s25206_s1 + $0x424] ss:$16 sps:$4 sm:$0xff]  }
 0x248   : > { %4053 = vmatprep.subr.bf16.mxu1 %v17254_v46  ;;  %v17338_v45 = vld [vmem:[%s25206_s1 + $0x624] ss:$16 sps:$4 sm:$0xff]   ;;  %v3272_v46 = vrot.slane %v19998_v56, 1 }
 0x249   : > { %v17344_v56 = vld [vmem:[%s25206_s1 + $0x644] ss:$16 sps:$4 sm:$0xff]  }
 0x24a   : > { %3968 = vmatpush1.bf16.msra.mxu0 %v17249_v47  ;;  %v17333_v47 = vld [vmem:[%s25206_s1 + $0x420] ss:$16 sps:$4 sm:$0xff]  }
 0x24b   : > { %4054 = vmatpush1.bf16.msra.mxu1 %v17252_v48  ;;  %3969 = vmatprep.subr.bf16.mxu0 %v17257_v49  ;;  %v17336_v48 = vld [vmem:[%s25206_s1 + $0x620] ss:$16 sps:$4 sm:$0xff]   ;;  %v17341_v49 = vld [vmem:[%s25206_s1 + $0x444] ss:$16 sps:$4 sm:$0xff]  }
 0x24c   : > { %4055 = vmatprep.subr.bf16.mxu1 %v17260_v50  ;;  %v17339_v50 = vld [vmem:[%s25206_s1 + $0x440] ss:$16 sps:$4 sm:$0xff]  }
 0x24e   : > { %3970 = vmatpush1.bf16.msra.mxu0 %v17255_v51  ;;  %v17342_v51 = vld [vmem:[%s25206_s1 + $0x640] ss:$16 sps:$4 sm:$0xff]  }
 0x24f   : > { %4056 = vmatpush1.bf16.msra.mxu1 %v17258_v52  ;;  %3971 = vmatprep.subr.bf16.mxu0 %v17263_v53  ;;  %v17347_v52 = vld [vmem:[%s25206_s1 + $0x464] ss:$16 sps:$4 sm:$0xff]  }
 0x250   : > { %4057 = vmatprep.subr.bf16.mxu1 %v17266_v54  ;;  %v17350_v53 = vld [vmem:[%s25206_s1 + $0x664] ss:$16 sps:$4 sm:$0xff]   ;;  %v17345_v54 = vld [vmem:[%s25206_s1 + $0x460] ss:$16 sps:$4 sm:$0xff]  }
 0x252   : > { %3972 = vmatpush1.bf16.msra.mxu0 %v17261_v55  ;;  %v17348_v55 = vld [vmem:[%s25206_s1 + $0x660] ss:$16 sps:$4 sm:$0xff]  }
 0x253   : > { %4058 = vmatpush1.bf16.msra.mxu1 %v17264_v58  ;;  %3973 = vmatprep.subr.bf16.mxu0 %v17269_v59  ;;  %v17353_v58 = vld [vmem:[%s25206_s1 + $0x484] ss:$16 sps:$4 sm:$0xff]  }
 0x254   : > { %4059 = vmatprep.subr.bf16.mxu1 %v17272_v60  ;;  %v17356_v59 = vld [vmem:[%s25206_s1 + $0x684] ss:$16 sps:$4 sm:$0xff]   ;;  %v17351_v60 = vld [vmem:[%s25206_s1 + $0x480] ss:$16 sps:$4 sm:$0xff]  }
 0x256   : > { %3974 = vmatpush1.bf16.msra.mxu0 %v17267_v63  ;;  %v17354_v63 = vld [vmem:[%s25206_s1 + $0x680] ss:$16 sps:$4 sm:$0xff]  }
 0x257   : > { %4060 = vmatpush1.bf16.msra.mxu1 %v17270_v2  ;;  %3975 = vmatprep.subr.bf16.mxu0 %v17275_v3  ;;  %v17359_v2 = vld [vmem:[%s25206_s1 + $0x4a4] ss:$16 sps:$4 sm:$0xff]  }
 0x258   : > { %4061 = vmatprep.subr.bf16.mxu1 %v17278_v4  ;;  %v17362_v3 = vld [vmem:[%s25206_s1 + $0x6a4] ss:$16 sps:$4 sm:$0xff]   ;;  %v17357_v4 = vld [vmem:[%s25206_s1 + $0x4a0] ss:$16 sps:$4 sm:$0xff]  }
 0x25a   : > { %3976 = vmatpush1.bf16.msra.mxu0 %v17273_v5  ;;  %v17360_v5 = vld [vmem:[%s25206_s1 + $0x6a0] ss:$16 sps:$4 sm:$0xff]  }
 0x25b   : > { %4062 = vmatpush1.bf16.msra.mxu1 %v17276_v6  ;;  %3977 = vmatprep.subr.bf16.mxu0 %v17281_v7  ;;  %v17365_v6 = vld [vmem:[%s25206_s1 + $0x4c4] ss:$16 sps:$4 sm:$0xff]  }
 0x25c   : > { %4063 = vmatprep.subr.bf16.mxu1 %v17284_v8  ;;  %v17368_v7 = vld [vmem:[%s25206_s1 + $0x6c4] ss:$16 sps:$4 sm:$0xff]   ;;  %v17363_v8 = vld [vmem:[%s25206_s1 + $0x4c0] ss:$16 sps:$4 sm:$0xff]  }
 0x25e   : > { %3978 = vmatpush1.bf16.msra.mxu0 %v17279_v9  ;;  %v17366_v9 = vld [vmem:[%s25206_s1 + $0x6c0] ss:$16 sps:$4 sm:$0xff]  }
 0x25f   : > { %4064 = vmatpush1.bf16.msra.mxu1 %v17282_v10  ;;  %3979 = vmatprep.subr.bf16.mxu0 %v17287_v11  ;;  %v17371_v10 = vld [vmem:[%s25206_s1 + $0x4e4] ss:$16 sps:$4 sm:$0xff]  }
 0x260   : > { %4065 = vmatprep.subr.bf16.mxu1 %v17290_v12  ;;  %v17374_v11 = vld [vmem:[%s25206_s1 + $0x6e4] ss:$16 sps:$4 sm:$0xff]   ;;  %v17369_v12 = vld [vmem:[%s25206_s1 + $0x4e0] ss:$16 sps:$4 sm:$0xff]  }
 0x262   : > { %3980 = vmatpush1.bf16.msra.mxu0 %v17285_v13  ;;  %v17372_v13 = vld [vmem:[%s25206_s1 + $0x6e0] ss:$16 sps:$4 sm:$0xff]  }
 0x263   : > { %4066 = vmatpush1.bf16.msra.mxu1 %v17288_v14  ;;  %3981 = vmatprep.subr.bf16.mxu0 %v17293_v15  ;;  %v17377_v14 = vld [vmem:[%s25206_s1 + $0x504] ss:$16 sps:$4 sm:$0xff]  }
 0x264   : > { %4067 = vmatprep.subr.bf16.mxu1 %v17296_v18  ;;  %v17380_v15 = vld [vmem:[%s25206_s1 + $0x704] ss:$16 sps:$4 sm:$0xff]   ;;  %v17375_v18 = vld [vmem:[%s25206_s1 + $0x500] ss:$16 sps:$4 sm:$0xff]  }
 0x266   : > { %3982 = vmatpush1.bf16.msra.mxu0 %v17291_v19  ;;  %v17378_v19 = vld [vmem:[%s25206_s1 + $0x700] ss:$16 sps:$4 sm:$0xff]  }
 0x267   : > { %4068 = vmatpush1.bf16.msra.mxu1 %v17294_v20  ;;  %3983 = vmatprep.subr.bf16.mxu0 %v17299_v22  ;;  %v17383_v20 = vld [vmem:[%s25206_s1 + $0x524] ss:$16 sps:$4 sm:$0xff]  }
 0x268   : > { %4069 = vmatprep.subr.bf16.mxu1 %v17302_v23  ;;  %v17386_v22 = vld [vmem:[%s25206_s1 + $0x724] ss:$16 sps:$4 sm:$0xff]   ;;  %v17381_v23 = vld [vmem:[%s25206_s1 + $0x520] ss:$16 sps:$4 sm:$0xff]  }
 0x26a   : > { %3984 = vmatpush1.bf16.msra.mxu0 %v17297_v24  ;;  %v17384_v24 = vld [vmem:[%s25206_s1 + $0x720] ss:$16 sps:$4 sm:$0xff]  }
 0x26b   : > { %4070 = vmatpush1.bf16.msra.mxu1 %v17300_v25  ;;  %3985 = vmatprep.subr.bf16.mxu0 %v17305_v27  ;;  %v17389_v25 = vld [vmem:[%s25206_s1 + $0x544] ss:$16 sps:$4 sm:$0xff]  }
 0x26c   : > { %4071 = vmatprep.subr.bf16.mxu1 %v17308_v28  ;;  %v17392_v27 = vld [vmem:[%s25206_s1 + $0x744] ss:$16 sps:$4 sm:$0xff]   ;;  %v17387_v28 = vld [vmem:[%s25206_s1 + $0x540] ss:$16 sps:$4 sm:$0xff]  }
 0x26e   : > { %3986 = vmatpush1.bf16.msra.mxu0 %v17303_v29  ;;  %v17390_v29 = vld [vmem:[%s25206_s1 + $0x740] ss:$16 sps:$4 sm:$0xff]  }
 0x26f   : > { %4072 = vmatpush1.bf16.msra.mxu1 %v17306_v30  ;;  %3987 = vmatprep.subr.bf16.mxu0 %v17311_v31  ;;  %v17395_v30 = vld [vmem:[%s25206_s1 + $0x564] ss:$16 sps:$4 sm:$0xff]  }
 0x270   : > { %4073 = vmatprep.subr.bf16.mxu1 %v17314_v32  ;;  %v17398_v31 = vld [vmem:[%s25206_s1 + $0x764] ss:$16 sps:$4 sm:$0xff]   ;;  %v17393_v32 = vld [vmem:[%s25206_s1 + $0x560] ss:$16 sps:$4 sm:$0xff]  }
 0x272   : > { %3988 = vmatpush1.bf16.msra.mxu0 %v17309_v33  ;;  %v17396_v33 = vld [vmem:[%s25206_s1 + $0x760] ss:$16 sps:$4 sm:$0xff]  }
 0x273   : > { %4074 = vmatpush1.bf16.msra.mxu1 %v17312_v17  ;;  %3989 = vmatprep.subr.bf16.mxu0 %v17317_v34  ;;  %v17401_v17 = vld [vmem:[%s25206_s1 + $0x584] ss:$16 sps:$4 sm:$0xff]  }
 0x274   : > { %4075 = vmatprep.subr.bf16.mxu1 %v17320_v35  ;;  %v17404_v34 = vld [vmem:[%s25206_s1 + $0x784] ss:$16 sps:$4 sm:$0xff]   ;;  %v17399_v35 = vld [vmem:[%s25206_s1 + $0x580] ss:$16 sps:$4 sm:$0xff]  }
 0x276   : > { %3990 = vmatpush1.bf16.msra.mxu0 %v17315_v36  ;;  %v17402_v36 = vld [vmem:[%s25206_s1 + $0x780] ss:$16 sps:$4 sm:$0xff]  }
 0x277   : > { %4076 = vmatpush1.bf16.msra.mxu1 %v17318_v37  ;;  %3991 = vmatprep.subr.bf16.mxu0 %v17323_v38  ;;  %v17407_v37 = vld [vmem:[%s25206_s1 + $0x5a4] ss:$16 sps:$4 sm:$0xff]  }
 0x278   : > { %4077 = vmatprep.subr.bf16.mxu1 %v17326_v39  ;;  %v17410_v38 = vld [vmem:[%s25206_s1 + $0x7a4] ss:$16 sps:$4 sm:$0xff]   ;;  %v17405_v39 = vld [vmem:[%s25206_s1 + $0x5a0] ss:$16 sps:$4 sm:$0xff]  }
 0x27a   : > { %3992 = vmatpush1.bf16.msra.mxu0 %v17321_v40  ;;  %v17408_v40 = vld [vmem:[%s25206_s1 + $0x7a0] ss:$16 sps:$4 sm:$0xff]  }
 0x27b   : > { %4078 = vmatpush1.bf16.msra.mxu1 %v17324_v41  ;;  %5049 = vmatprep.subr.bf16.mxu0 %v17329_v42  ;;  %v17413_v41 = vld [vmem:[%s25206_s1 + $0x5c4] ss:$16 sps:$4 sm:$0xff]  }
 0x27c   : > { %5090 = vmatprep.subr.bf16.mxu1 %v17332_v16  ;;  %v17416_v42 = vld [vmem:[%s25206_s1 + $0x7c4] ss:$16 sps:$4 sm:$0xff]   ;;  %v17411_v16 = vld [vmem:[%s25206_s1 + $0x5c0] ss:$16 sps:$4 sm:$0xff]  }
 0x27d   : > { %3994 = vmatmul.mubr.bf16.vlgmr.msra.gmra.mrb[4].mxu0 %v3272_v46 }
 0x27e   : > { %4080 = vmatmul.mubr.bf16.vlgmr.msra.gmra.mrb[4].mxu1 %v3272_v46  ;;  %5050 = vmatpush1.bf16.msra.mxu0 %v17327_v43  ;;  %v17414_v43 = vld [vmem:[%s25206_s1 + $0x7c0] ss:$16 sps:$4 sm:$0xff]  }
 0x27f   : > { %5091 = vmatpush1.bf16.msra.mxu1 %v17330_v57  ;;  %5051 = vmatprep.subr.bf16.mxu0 %v17335_v44  ;;  %v17419_v57 = vld [vmem:[%s25206_s1 + $0x5e4] ss:$16 sps:$4 sm:$0xff]   ;;  %v17420_v46 = vld [vmem:[%s25206_s1 + $0x7e0] ss:$16 sps:$4 sm:$0xff]  }
 0x280   : > { %5092 = vmatprep.subr.bf16.mxu1 %v17338_v45  ;;  %v17422_v44 = vld [vmem:[%s25206_s1 + $0x7e4] ss:$16 sps:$4 sm:$0xff]   ;;  %v17417_v45 = vld [vmem:[%s25206_s1 + $0x5e0] ss:$16 sps:$4 sm:$0xff]  }
 0x282   : > { %5052 = vmatpush1.bf16.msra.mxu0 %v17333_v47  ;;  %v17425_v47 = vld [vmem:[%s25206_s1 + $0x40c] ss:$16 sps:$4 sm:$0xff]  }
 0x283   : > { %5093 = vmatpush1.bf16.msra.mxu1 %v17336_v48  ;;  %5053 = vmatprep.subr.bf16.mxu0 %v17341_v49  ;;  %v17428_v48 = vld [vmem:[%s25206_s1 + $0x60c] ss:$16 sps:$4 sm:$0xff]   ;;  %v4098_v49 = vld [vmem:[%s25207_s3] sm:$0xf]  ;;  %s758_s3 = sand.u32 1, %s19369_s30  }
 0x284   : > { %5094 = vmatprep.subr.bf16.mxu1 %v17344_v56  ;;  %v4103_v56 = vrot.slane %v4098_v49, %v19933_v0  ;;  %s759_s8 = scalar_lea.vmem [#allocation3], %s758_s3 }
 0x286   : > { %5054 = vmatpush1.bf16.msra.mxu0 %v17339_v50  ;;  %v4111_v50 = vrot.slane %v4098_v49, %v19947_v21 }
 0x287   : > { %5095 = vmatpush1.bf16.msra.mxu1 %v17342_v51  ;;  %5055 = vmatprep.subr.bf16.mxu0 %v17347_v52  ;;  %v4107_v51 = vrot.slane %v4098_v49, %v19936_v1  ;;  %v4115_v52 = vrot.slane %v4098_v49, %v19957_v26  ;;  %v17456_v49 = vld [vmem:[%s25206_s1 + $0x6a8] ss:$16 sps:$4 sm:$0xff]  }
 0x288   : > { %5096 = vmatprep.subr.bf16.mxu1 %v17350_v53 }
 0x28a   : > { %5056 = vmatpush1.bf16.msra.mxu0 %v17345_v54 }
 0x28b   : > { %5097 = vmatpush1.bf16.msra.mxu1 %v17348_v55  ;;  %5057 = vmatprep.subr.bf16.mxu0 %v17353_v58 }
 0x28c   : > { %5098 = vmatprep.subr.bf16.mxu1 %v17356_v59 }
 0x28e   : > { %5058 = vmatpush1.bf16.msra.mxu0 %v17351_v60 }
 0x28f   : > { %5099 = vmatpush1.bf16.msra.mxu1 %v17354_v63  ;;  %5059 = vmatprep.subr.bf16.mxu0 %v17359_v2 }
 0x290   : > { %5100 = vmatprep.subr.bf16.mxu1 %v17362_v3 }
 0x292   : > { %5060 = vmatpush1.bf16.msra.mxu0 %v17357_v4 }
 0x293   : > { %5101 = vmatpush1.bf16.msra.mxu1 %v17360_v5  ;;  %5061 = vmatprep.subr.bf16.mxu0 %v17365_v6 }
 0x294   : > { %5102 = vmatprep.subr.bf16.mxu1 %v17368_v7 }
 0x296   : > { %5062 = vmatpush1.bf16.msra.mxu0 %v17363_v8 }
 0x297   : > { %5103 = vmatpush1.bf16.msra.mxu1 %v17366_v9  ;;  %5063 = vmatprep.subr.bf16.mxu0 %v17371_v10 }
 0x298   : > { %5104 = vmatprep.subr.bf16.mxu1 %v17374_v11 }
 0x29a   : > { %5064 = vmatpush1.bf16.msra.mxu0 %v17369_v12 }
 0x29b   : > { %5105 = vmatpush1.bf16.msra.mxu1 %v17372_v13  ;;  %5065 = vmatprep.subr.bf16.mxu0 %v17377_v14 }
 0x29c   : > { %5106 = vmatprep.subr.bf16.mxu1 %v17380_v15 }
 0x29e   : > { %5066 = vmatpush1.bf16.msra.mxu0 %v17375_v18 }
 0x29f   : > { %5107 = vmatpush1.bf16.msra.mxu1 %v17378_v19  ;;  %5067 = vmatprep.subr.bf16.mxu0 %v17383_v20 }
 0x2a0   : > { %5108 = vmatprep.subr.bf16.mxu1 %v17386_v22 }
 0x2a2   : > { %5068 = vmatpush1.bf16.msra.mxu0 %v17381_v23 }
 0x2a3   : > { %5109 = vmatpush1.bf16.msra.mxu1 %v17384_v24  ;;  %5069 = vmatprep.subr.bf16.mxu0 %v17389_v25 }
 0x2a4   : > { %5110 = vmatprep.subr.bf16.mxu1 %v17392_v27 }
 0x2a6   : > { %5070 = vmatpush1.bf16.msra.mxu0 %v17387_v28  ;;  %v17423_v28 = vld [vmem:[%s25206_s1 + $0x408] ss:$16 sps:$4 sm:$0xff]  }
 0x2a7   : > { %5111 = vmatpush1.bf16.msra.mxu1 %v17390_v29  ;;  %5071 = vmatprep.subr.bf16.mxu0 %v17395_v30  ;;  %v17426_v30 = vld [vmem:[%s25206_s1 + $0x608] ss:$16 sps:$4 sm:$0xff]  }
 0x2a8   : > { %5112 = vmatprep.subr.bf16.mxu1 %v17398_v31 }
 0x2aa   : > { %5072 = vmatpush1.bf16.msra.mxu0 %v17393_v32 }
 0x2ab   : > { %5113 = vmatpush1.bf16.msra.mxu1 %v17396_v33  ;;  %5073 = vmatprep.subr.bf16.mxu0 %v17401_v17  ;;  %v17431_v33 = vld [vmem:[%s25206_s1 + $0x42c] ss:$16 sps:$4 sm:$0xff]  }
 0x2ac   : > { %5114 = vmatprep.subr.bf16.mxu1 %v17404_v34  ;;  %v17434_v17 = vld [vmem:[%s25206_s1 + $0x62c] ss:$16 sps:$4 sm:$0xff]   ;;  %v17429_v34 = vld [vmem:[%s25206_s1 + $0x428] ss:$16 sps:$4 sm:$0xff]  }
 0x2ae   : > { %5074 = vmatpush1.bf16.msra.mxu0 %v17399_v35  ;;  %v17432_v35 = vld [vmem:[%s25206_s1 + $0x628] ss:$16 sps:$4 sm:$0xff]  }
 0x2af   : > { %5115 = vmatpush1.bf16.msra.mxu1 %v17402_v36  ;;  %5075 = vmatprep.subr.bf16.mxu0 %v17407_v37  ;;  %v17437_v36 = vld [vmem:[%s25206_s1 + $0x44c] ss:$16 sps:$4 sm:$0xff]  }
 0x2b0   : > { %5116 = vmatprep.subr.bf16.mxu1 %v17410_v38  ;;  %v17440_v37 = vld [vmem:[%s25206_s1 + $0x64c] ss:$16 sps:$4 sm:$0xff]   ;;  %v17435_v38 = vld [vmem:[%s25206_s1 + $0x448] ss:$16 sps:$4 sm:$0xff]  }
 0x2b2   : > { %5076 = vmatpush1.bf16.msra.mxu0 %v17405_v39  ;;  %v17438_v39 = vld [vmem:[%s25206_s1 + $0x648] ss:$16 sps:$4 sm:$0xff]  }
 0x2b3   : > { %5117 = vmatpush1.bf16.msra.mxu1 %v17408_v40  ;;  %5077 = vmatprep.subr.bf16.mxu0 %v17413_v41  ;;  %v17443_v40 = vld [vmem:[%s25206_s1 + $0x46c] ss:$16 sps:$4 sm:$0xff]  }
 0x2b4   : > { %5118 = vmatprep.subr.bf16.mxu1 %v17416_v42  ;;  %v17446_v41 = vld [vmem:[%s25206_s1 + $0x66c] ss:$16 sps:$4 sm:$0xff]   ;;  %v17441_v42 = vld [vmem:[%s25206_s1 + $0x468] ss:$16 sps:$4 sm:$0xff]  }
 0x2b6   : > { %5078 = vmatpush1.bf16.msra.mxu0 %v17411_v16  ;;  %v17444_v16 = vld [vmem:[%s25206_s1 + $0x668] ss:$16 sps:$4 sm:$0xff]  }
 0x2b7   : > { %5119 = vmatpush1.bf16.msra.mxu1 %v17414_v43  ;;  %5079 = vmatprep.subr.bf16.mxu0 %v17419_v57  ;;  %v17449_v43 = vld [vmem:[%s25206_s1 + $0x48c] ss:$16 sps:$4 sm:$0xff]  }
 0x2b8   : > { %5120 = vmatprep.subr.bf16.mxu1 %v17422_v44  ;;  %v17452_v57 = vld [vmem:[%s25206_s1 + $0x68c] ss:$16 sps:$4 sm:$0xff]   ;;  %v17447_v44 = vld [vmem:[%s25206_s1 + $0x488] ss:$16 sps:$4 sm:$0xff]  }
 0x2ba   : > { %5080 = vmatpush1.bf16.msra.mxu0 %v17417_v45  ;;  %v17450_v45 = vld [vmem:[%s25206_s1 + $0x688] ss:$16 sps:$4 sm:$0xff]  }
 0x2bb   : > { %5121 = vmatpush1.bf16.msra.mxu1 %v17420_v46  ;;  %5131 = vmatprep.subr.bf16.mxu0 %v17425_v47  ;;  %v17455_v46 = vld [vmem:[%s25206_s1 + $0x4ac] ss:$16 sps:$4 sm:$0xff]  }
 0x2bc   : > { %5172 = vmatprep.subr.bf16.mxu1 %v17428_v48  ;;  %v17458_v47 = vld [vmem:[%s25206_s1 + $0x6ac] ss:$16 sps:$4 sm:$0xff]   ;;  %v17453_v48 = vld [vmem:[%s25206_s1 + $0x4a8] ss:$16 sps:$4 sm:$0xff]  }
 0x350   : > { %v3995_v53 = vpop.f32.mrb[4].mxu0 }
 0x351   : > { %v4120_v54 = vadd.f32 %v4103_v56, %v3995_v53  ;;  %v4081_v55 = vpop.f32.mrb[4].mxu1  ;;  %v3997_v58 = vpop.f32.mrb[5].mxu0  ;;  %v17467_v53 = vld [vmem:[%s25206_s1 + $0x4ec] ss:$16 sps:$4 sm:$0xff]  }
 0x352   : > { %v4122_v59 = vadd.f32 %v4111_v50, %v4081_v55  ;;  %v4121_v60 = vadd.f32 %v4107_v51, %v3997_v58  ;;  %v4083_v63 = vpop.f32.mrb[5].mxu1  ;;  %v3999_v2 = vpop.f32.mrb[6].mxu0  ;;  %v17465_v55 = vld [vmem:[%s25206_s1 + $0x4e8] ss:$16 sps:$4 sm:$0xff]  }
 0x353   : > { %v4123_v3 = vadd.f32 %v4115_v52, %v4083_v63  ;;  %v4124_v4 = vadd.f32 %v4103_v56, %v3999_v2  ;;  %v4085_v5 = vpop.f32.mrb[6].mxu1  ;;  %v4001_v6 = vpop.f32.mrb[7].mxu0  ;;  %v4128_v10 = vmax.f32 %v4120_v54, 0.0  ;;  %v17461_v56 = vld [vmem:[%s25206_s1 + $0x4cc] ss:$16 sps:$4 sm:$0xff]  }
 0x354   : > { %v4126_v7 = vadd.f32 %v4111_v50, %v4085_v5  ;;  %v4125_v8 = vadd.f32 %v4107_v51, %v4001_v6  ;;  %v4087_v9 = vpop.f32.mrb[7].mxu1  ;;  %v4130_v13 = vmax.f32 %v4122_v59, 0.0  ;;  %v4129_v14 = vmax.f32 %v4121_v60, 0.0  ;;  %v17464_v50 = vld [vmem:[%s25206_s1 + $0x6cc] ss:$16 sps:$4 sm:$0xff]  }
 0x355   : > { %v4132_v11 = vmax.f32 %v4124_v4, 0.0  ;;  %v4127_v12 = vadd.f32 %v4115_v52, %v4087_v9  ;;  %v4131_v19 = vmax.f32 %v4123_v3, 0.0  ;;  %v17459_v51 = vld [vmem:[%s25206_s1 + $0x4c8] ss:$16 sps:$4 sm:$0xff]   ;;  %v17470_v54 = vld [vmem:[%s25206_s1 + $0x6ec] ss:$16 sps:$4 sm:$0xff]  }
 0x356   : > { %v4134_v15 = vmax.f32 %v4126_v7, 0.0  ;;  %v4133_v18 = vmax.f32 %v4125_v8, 0.0  ;;  %v17462_v52 = vld [vmem:[%s25206_s1 + $0x6c8] ss:$16 sps:$4 sm:$0xff]   ;;  %v17473_v59 = vld [vmem:[%s25206_s1 + $0x50c] ss:$16 sps:$4 sm:$0xff]  }
 0x357   : > { %v21135_v20 = vpack.c.bf16 %v4132_v11, %v4128_v10  ;;  %v4135_v22 = vmax.f32 %v4127_v12, 0.0  ;;  %v17468_v58 = vld [vmem:[%s25206_s1 + $0x6e8] ss:$16 sps:$4 sm:$0xff]   ;;  %v17476_v60 = vld [vmem:[%s25206_s1 + $0x70c] ss:$16 sps:$4 sm:$0xff]  }
 0x358   : > { %v21137_v23 = vpack.c.bf16 %v4134_v15, %v4130_v13  ;;  %v21139_v24 = vpack.c.bf16 %v4133_v18, %v4129_v14  ;;  %v17471_v63 = vld [vmem:[%s25206_s1 + $0x508] ss:$16 sps:$4 sm:$0xff]   ;;  %v17479_v3 = vld [vmem:[%s25206_s1 + $0x52c] ss:$16 sps:$4 sm:$0xff]  }
 0x359   : > { %v21141_v25 = vpack.c.bf16 %v4135_v22, %v4131_v19  ;;  %v4401_v31 = vrot.slane %v21135_v20, 1  ;;  %v17474_v2 = vld [vmem:[%s25206_s1 + $0x708] ss:$16 sps:$4 sm:$0xff]   ;;  %v17482_v4 = vld [vmem:[%s25206_s1 + $0x72c] ss:$16 sps:$4 sm:$0xff]  }
 0x35a   : > { %v4402_v27 = vrot.slane %v21139_v24, 1  ;;  %v4403_v32 = vrot.slane %v21137_v23, 1  ;;  %v17477_v5 = vld [vmem:[%s25206_s1 + $0x528] ss:$16 sps:$4 sm:$0xff]   ;;  %v17485_v7 = vld [vmem:[%s25206_s1 + $0x54c] ss:$16 sps:$4 sm:$0xff]  }
 0x35b   : > { %v4404_v29 = vrot.slane %v21141_v25, 1  ;;  %v17480_v6 = vld [vmem:[%s25206_s1 + $0x728] ss:$16 sps:$4 sm:$0xff]   ;;  %v17488_v8 = vld [vmem:[%s25206_s1 + $0x74c] ss:$16 sps:$4 sm:$0xff]  }
 0x35c   : > { %5081 = vmatprep.mubr.bf16.mxu0 %v4402_v27  ;;  %v17483_v9 = vld [vmem:[%s25206_s1 + $0x548] ss:$16 sps:$4 sm:$0xff]   ;;  %v17491_v11 = vld [vmem:[%s25206_s1 + $0x56c] ss:$16 sps:$4 sm:$0xff]  }
 0x35d   : > { %5122 = vmatprep.mubr.bf16.mxu1 %v4404_v29  ;;  %5082 = vmatmul.mubr.bf16.vlgmr.msra.gmra.mrb[8].mxu0 %v4401_v31  ;;  %v17486_v10 = vld [vmem:[%s25206_s1 + $0x748] ss:$16 sps:$4 sm:$0xff]   ;;  %v17494_v12 = vld [vmem:[%s25206_s1 + $0x76c] ss:$16 sps:$4 sm:$0xff]  }
 0x35e   : > { %5123 = vmatmul.mubr.bf16.vlgmr.msra.gmra.mrb[8].mxu1 %v4403_v32  ;;  %5132 = vmatpush1.bf16.msra.mxu0 %v17423_v28  ;;  %v17489_v13 = vld [vmem:[%s25206_s1 + $0x568] ss:$16 sps:$4 sm:$0xff]   ;;  %v17497_v15 = vld [vmem:[%s25206_s1 + $0x58c] ss:$16 sps:$4 sm:$0xff]  }
 0x35f   : > { %5173 = vmatpush1.bf16.msra.mxu1 %v17426_v30  ;;  %5163 = vmatprep.mubr.bf16.mxu0 %v4402_v27  ;;  %v17492_v14 = vld [vmem:[%s25206_s1 + $0x768] ss:$16 sps:$4 sm:$0xff]   ;;  %v17500_v18 = vld [vmem:[%s25206_s1 + $0x78c] ss:$16 sps:$4 sm:$0xff]  }
 0x360   : > { %5204 = vmatprep.mubr.bf16.mxu1 %v4404_v29  ;;  %5133 = vmatprep.subr.bf16.mxu0 %v17431_v33  ;;  %v17495_v19 = vld [vmem:[%s25206_s1 + $0x588] ss:$16 sps:$4 sm:$0xff]   ;;  %v17503_v27 = vld [vmem:[%s25206_s1 + $0x5ac] ss:$16 sps:$4 sm:$0xff]  }
 0x361   : > { %5174 = vmatprep.subr.bf16.mxu1 %v17434_v17  ;;  %v17498_v22 = vld [vmem:[%s25206_s1 + $0x788] ss:$16 sps:$4 sm:$0xff]   ;;  %v17506_v28 = vld [vmem:[%s25206_s1 + $0x7ac] ss:$16 sps:$4 sm:$0xff]  }
 0x362   : > { %5134 = vmatpush1.bf16.msra.mxu0 %v17429_v34  ;;  %v17501_v29 = vld [vmem:[%s25206_s1 + $0x5a8] ss:$16 sps:$4 sm:$0xff]   ;;  %v17509_v33 = vld [vmem:[%s25206_s1 + $0x5cc] ss:$16 sps:$4 sm:$0xff]  }
 0x363   : > { %5175 = vmatpush1.bf16.msra.mxu1 %v17432_v35  ;;  %5135 = vmatprep.subr.bf16.mxu0 %v17437_v36  ;;  %v17504_v30 = vld [vmem:[%s25206_s1 + $0x7a8] ss:$16 sps:$4 sm:$0xff]   ;;  %v17512_v17 = vld [vmem:[%s25206_s1 + $0x7cc] ss:$16 sps:$4 sm:$0xff]  }
 0x364   : > { %5176 = vmatprep.subr.bf16.mxu1 %v17440_v37  ;;  %v17507_v34 = vld [vmem:[%s25206_s1 + $0x5c8] ss:$16 sps:$4 sm:$0xff]   ;;  %v17515_v36 = vld [vmem:[%s25206_s1 + $0x5ec] ss:$16 sps:$4 sm:$0xff]  }
 0x365   : > { %v17510_v35 = vld [vmem:[%s25206_s1 + $0x7c8] ss:$16 sps:$4 sm:$0xff]   ;;  %v17518_v37 = vld [vmem:[%s25206_s1 + $0x7ec] ss:$16 sps:$4 sm:$0xff]  }
 0x366   : > { %5136 = vmatpush1.bf16.msra.mxu0 %v17435_v38  ;;  %v17513_v38 = vld [vmem:[%s25206_s1 + $0x5e8] ss:$16 sps:$4 sm:$0xff]  }
 0x367   : > { %5177 = vmatpush1.bf16.msra.mxu1 %v17438_v39  ;;  %5137 = vmatprep.subr.bf16.mxu0 %v17443_v40  ;;  %v17516_v39 = vld [vmem:[%s25206_s1 + $0x7e8] ss:$16 sps:$4 sm:$0xff]   ;;  %v17521_v40 = vld [vmem:[%s25206_s1 + $0x4] ss:$16 sps:$4 sm:$0xff]  }
 0x368   : > { %5178 = vmatprep.subr.bf16.mxu1 %v17446_v41  ;;  %v17524_v41 = vld [vmem:[%s25206_s1 + $0x204] ss:$16 sps:$4 sm:$0xff]  }
 0x36a   : > { %5138 = vmatpush1.bf16.msra.mxu0 %v17441_v42  ;;  %v17519_v42 = vld [vmem:[%s25206_s1] ss:$16 sps:$4 sm:$0xff]  }
 0x36b   : > { %5179 = vmatpush1.bf16.msra.mxu1 %v17444_v16  ;;  %5139 = vmatprep.subr.bf16.mxu0 %v17449_v43  ;;  %v17522_v16 = vld [vmem:[%s25206_s1 + $0x200] ss:$16 sps:$4 sm:$0xff]   ;;  %v17527_v43 = vld [vmem:[%s25206_s1 + $0x24] ss:$16 sps:$4 sm:$0xff]  }
 0x36c   : > { %5180 = vmatprep.subr.bf16.mxu1 %v17452_v57  ;;  %v17530_v57 = vld [vmem:[%s25206_s1 + $0x224] ss:$16 sps:$4 sm:$0xff]  }
 0x36e   : > { %5140 = vmatpush1.bf16.msra.mxu0 %v17447_v44  ;;  %v17525_v44 = vld [vmem:[%s25206_s1 + $0x20] ss:$16 sps:$4 sm:$0xff]  }
 0x36f   : > { %5181 = vmatpush1.bf16.msra.mxu1 %v17450_v45  ;;  %5141 = vmatprep.subr.bf16.mxu0 %v17455_v46  ;;  %v17528_v45 = vld [vmem:[%s25206_s1 + $0x220] ss:$16 sps:$4 sm:$0xff]  }
 0x370   : > { %5182 = vmatprep.subr.bf16.mxu1 %v17458_v47  ;;  %v17531_v46 = vld [vmem:[%s25206_s1 + $0x40] ss:$16 sps:$4 sm:$0xff]  }
 0x371   : > { %v17534_v47 = vld [vmem:[%s25206_s1 + $0x240] ss:$16 sps:$4 sm:$0xff]  }
 0x372   : > { %5142 = vmatpush1.bf16.msra.mxu0 %v17453_v48  ;;  %v17539_v48 = vld [vmem:[%s25206_s1 + $0x64] ss:$16 sps:$4 sm:$0xff]  }
 0x373   : > { %5183 = vmatpush1.bf16.msra.mxu1 %v17456_v49  ;;  %5143 = vmatprep.subr.bf16.mxu0 %v17461_v56  ;;  %v17542_v49 = vld [vmem:[%s25206_s1 + $0x264] ss:$16 sps:$4 sm:$0xff]   ;;  %v17537_v56 = vld [vmem:[%s25206_s1 + $0x60] ss:$16 sps:$4 sm:$0xff]  }
 0x374   : > { %5184 = vmatprep.subr.bf16.mxu1 %v17464_v50  ;;  %v17540_v50 = vld [vmem:[%s25206_s1 + $0x260] ss:$16 sps:$4 sm:$0xff]  }
 0x376   : > { %5144 = vmatpush1.bf16.msra.mxu0 %v17459_v51  ;;  %v17545_v51 = vld [vmem:[%s25206_s1 + $0x84] ss:$16 sps:$4 sm:$0xff]  }
 0x377   : > { %5185 = vmatpush1.bf16.msra.mxu1 %v17462_v52  ;;  %5145 = vmatprep.subr.bf16.mxu0 %v17467_v53  ;;  %v17548_v52 = vld [vmem:[%s25206_s1 + $0x284] ss:$16 sps:$4 sm:$0xff]   ;;  %v17543_v53 = vld [vmem:[%s25206_s1 + $0x80] ss:$16 sps:$4 sm:$0xff]  }
 0x378   : > { %5186 = vmatprep.subr.bf16.mxu1 %v17470_v54  ;;  %v17546_v54 = vld [vmem:[%s25206_s1 + $0x280] ss:$16 sps:$4 sm:$0xff]  }
 0x37a   : > { %5146 = vmatpush1.bf16.msra.mxu0 %v17465_v55  ;;  %v17551_v55 = vld [vmem:[%s25206_s1 + $0xa4] ss:$16 sps:$4 sm:$0xff]  }
 0x37b   : > { %5187 = vmatpush1.bf16.msra.mxu1 %v17468_v58  ;;  %5147 = vmatprep.subr.bf16.mxu0 %v17473_v59  ;;  %v17554_v58 = vld [vmem:[%s25206_s1 + $0x2a4] ss:$16 sps:$4 sm:$0xff]   ;;  %v17549_v59 = vld [vmem:[%s25206_s1 + $0xa0] ss:$16 sps:$4 sm:$0xff]  }
 0x37c   : > { %5188 = vmatprep.subr.bf16.mxu1 %v17476_v60  ;;  %v17552_v60 = vld [vmem:[%s25206_s1 + $0x2a0] ss:$16 sps:$4 sm:$0xff]  }
 0x37e   : > { %5148 = vmatpush1.bf16.msra.mxu0 %v17471_v63  ;;  %v17557_v63 = vld [vmem:[%s25206_s1 + $0xc4] ss:$16 sps:$4 sm:$0xff]  }
 0x37f   : > { %5189 = vmatpush1.bf16.msra.mxu1 %v17474_v2  ;;  %5149 = vmatprep.subr.bf16.mxu0 %v17479_v3  ;;  %v17560_v2 = vld [vmem:[%s25206_s1 + $0x2c4] ss:$16 sps:$4 sm:$0xff]   ;;  %v17555_v3 = vld [vmem:[%s25206_s1 + $0xc0] ss:$16 sps:$4 sm:$0xff]  }
 0x380   : > { %5190 = vmatprep.subr.bf16.mxu1 %v17482_v4  ;;  %v17558_v4 = vld [vmem:[%s25206_s1 + $0x2c0] ss:$16 sps:$4 sm:$0xff]  }
 0x382   : > { %5150 = vmatpush1.bf16.msra.mxu0 %v17477_v5  ;;  %v17563_v5 = vld [vmem:[%s25206_s1 + $0xe4] ss:$16 sps:$4 sm:$0xff]  }
 0x383   : > { %5191 = vmatpush1.bf16.msra.mxu1 %v17480_v6  ;;  %5151 = vmatprep.subr.bf16.mxu0 %v17485_v7  ;;  %v17566_v6 = vld [vmem:[%s25206_s1 + $0x2e4] ss:$16 sps:$4 sm:$0xff]   ;;  %v17561_v7 = vld [vmem:[%s25206_s1 + $0xe0] ss:$16 sps:$4 sm:$0xff]  }
 0x384   : > { %5192 = vmatprep.subr.bf16.mxu1 %v17488_v8  ;;  %v17564_v8 = vld [vmem:[%s25206_s1 + $0x2e0] ss:$16 sps:$4 sm:$0xff]  }
 0x386   : > { %5152 = vmatpush1.bf16.msra.mxu0 %v17483_v9  ;;  %v17569_v9 = vld [vmem:[%s25206_s1 + $0x104] ss:$16 sps:$4 sm:$0xff]  }
 0x387   : > { %5193 = vmatpush1.bf16.msra.mxu1 %v17486_v10  ;;  %5153 = vmatprep.subr.bf16.mxu0 %v17491_v11  ;;  %v17572_v10 = vld [vmem:[%s25206_s1 + $0x304] ss:$16 sps:$4 sm:$0xff]   ;;  %v17567_v11 = vld [vmem:[%s25206_s1 + $0x100] ss:$16 sps:$4 sm:$0xff]  }
 0x388   : > { %5194 = vmatprep.subr.bf16.mxu1 %v17494_v12  ;;  %v17570_v12 = vld [vmem:[%s25206_s1 + $0x300] ss:$16 sps:$4 sm:$0xff]  }
 0x38a   : > { %5154 = vmatpush1.bf16.msra.mxu0 %v17489_v13  ;;  %v17575_v13 = vld [vmem:[%s25206_s1 + $0x124] ss:$16 sps:$4 sm:$0xff]  }
 0x38b   : > { %5195 = vmatpush1.bf16.msra.mxu1 %v17492_v14  ;;  %5155 = vmatprep.subr.bf16.mxu0 %v17497_v15  ;;  %v17578_v14 = vld [vmem:[%s25206_s1 + $0x324] ss:$16 sps:$4 sm:$0xff]   ;;  %v17573_v15 = vld [vmem:[%s25206_s1 + $0x120] ss:$16 sps:$4 sm:$0xff]  }
 0x38c   : > { %5196 = vmatprep.subr.bf16.mxu1 %v17500_v18  ;;  %v17576_v18 = vld [vmem:[%s25206_s1 + $0x320] ss:$16 sps:$4 sm:$0xff]  }
 0x38e   : > { %5156 = vmatpush1.bf16.msra.mxu0 %v17495_v19  ;;  %v17581_v19 = vld [vmem:[%s25206_s1 + $0x144] ss:$16 sps:$4 sm:$0xff]  }
 0x38f   : > { %5197 = vmatpush1.bf16.msra.mxu1 %v17498_v22  ;;  %5157 = vmatprep.subr.bf16.mxu0 %v17503_v27  ;;  %v17584_v22 = vld [vmem:[%s25206_s1 + $0x344] ss:$16 sps:$4 sm:$0xff]   ;;  %v17579_v27 = vld [vmem:[%s25206_s1 + $0x140] ss:$16 sps:$4 sm:$0xff]  }
 0x390   : > { %5198 = vmatprep.subr.bf16.mxu1 %v17506_v28  ;;  %v17582_v28 = vld [vmem:[%s25206_s1 + $0x340] ss:$16 sps:$4 sm:$0xff]  }
 0x392   : > { %5158 = vmatpush1.bf16.msra.mxu0 %v17501_v29  ;;  %v17587_v29 = vld [vmem:[%s25206_s1 + $0x164] ss:$16 sps:$4 sm:$0xff]  }
 0x393   : > { %5199 = vmatpush1.bf16.msra.mxu1 %v17504_v30  ;;  %5159 = vmatprep.subr.bf16.mxu0 %v17509_v33  ;;  %v17590_v30 = vld [vmem:[%s25206_s1 + $0x364] ss:$16 sps:$4 sm:$0xff]   ;;  %v17585_v33 = vld [vmem:[%s25206_s1 + $0x160] ss:$16 sps:$4 sm:$0xff]  }
 0x394   : > { %5200 = vmatprep.subr.bf16.mxu1 %v17512_v17  ;;  %v17588_v17 = vld [vmem:[%s25206_s1 + $0x360] ss:$16 sps:$4 sm:$0xff]  }
 0x396   : > { %5160 = vmatpush1.bf16.msra.mxu0 %v17507_v34  ;;  %v17593_v34 = vld [vmem:[%s25206_s1 + $0x184] ss:$16 sps:$4 sm:$0xff]  }
 0x397   : > { %5201 = vmatpush1.bf16.msra.mxu1 %v17510_v35  ;;  %5161 = vmatprep.subr.bf16.mxu0 %v17515_v36  ;;  %v17596_v35 = vld [vmem:[%s25206_s1 + $0x384] ss:$16 sps:$4 sm:$0xff]   ;;  %v17591_v36 = vld [vmem:[%s25206_s1 + $0x180] ss:$16 sps:$4 sm:$0xff]  }
 0x398   : > { %5202 = vmatprep.subr.bf16.mxu1 %v17518_v37  ;;  %v17594_v37 = vld [vmem:[%s25206_s1 + $0x380] ss:$16 sps:$4 sm:$0xff]  }
 0x39a   : > { %5162 = vmatpush1.bf16.msra.mxu0 %v17513_v38  ;;  %v17599_v38 = vld [vmem:[%s25206_s1 + $0x1a4] ss:$16 sps:$4 sm:$0xff]  }
 0x39b   : > { %5203 = vmatpush1.bf16.msra.mxu1 %v17516_v39  ;;  %5853 = vmatprep.subr.bf16.mxu0 %v17521_v40  ;;  %v17602_v39 = vld [vmem:[%s25206_s1 + $0x3a4] ss:$16 sps:$4 sm:$0xff]   ;;  %v17597_v40 = vld [vmem:[%s25206_s1 + $0x1a0] ss:$16 sps:$4 sm:$0xff]  }
 0x39c   : > { %5894 = vmatprep.subr.bf16.mxu1 %v17524_v41  ;;  %v17600_v41 = vld [vmem:[%s25206_s1 + $0x3a0] ss:$16 sps:$4 sm:$0xff]  }
 0x39d   : > { %5164 = vmatmul.mubr.bf16.vlgmr.msra.gmra.mrb[12].mxu0 %v4401_v31  ;;  %v17533_v31 = vld [vmem:[%s25206_s1 + $0x44] ss:$16 sps:$4 sm:$0xff]  }
 0x39e   : > { %5205 = vmatmul.mubr.bf16.vlgmr.msra.gmra.mrb[12].mxu1 %v4403_v32  ;;  %5854 = vmatpush1.bf16.msra.mxu0 %v17519_v42  ;;  %v17536_v32 = vld [vmem:[%s25206_s1 + $0x244] ss:$16 sps:$4 sm:$0xff]  }
 0x39f   : > { %5885 = vmatprep.mubr.bf16.mxu0 %v21139_v24  ;;  %5895 = vmatpush1.bf16.msra.mxu1 %v17522_v16  ;;  %v17605_v42 = vld [vmem:[%s25206_s1 + $0x1c4] ss:$16 sps:$4 sm:$0xff]  }
 0x3a0   : > { %5926 = vmatprep.mubr.bf16.mxu1 %v21141_v25  ;;  %5855 = vmatprep.subr.bf16.mxu0 %v17527_v43  ;;  %v17608_v16 = vld [vmem:[%s25206_s1 + $0x3c4] ss:$16 sps:$4 sm:$0xff]   ;;  %v17603_v43 = vld [vmem:[%s25206_s1 + $0x1c0] ss:$16 sps:$4 sm:$0xff]  }
 0x3a1   : > { %5896 = vmatprep.subr.bf16.mxu1 %v17530_v57  ;;  %v17606_v57 = vld [vmem:[%s25206_s1 + $0x3c0] ss:$16 sps:$4 sm:$0xff]  }
 0x3a2   : > { %5856 = vmatpush1.bf16.msra.mxu0 %v17525_v44  ;;  %v17611_v44 = vld [vmem:[%s25206_s1 + $0x1e4] ss:$16 sps:$4 sm:$0xff]  }
 0x3a3   : > { %5897 = vmatpush1.bf16.msra.mxu1 %v17528_v45  ;;  %5857 = vmatprep.subr.bf16.mxu0 %v17533_v31  ;;  %v17614_v45 = vld [vmem:[%s25206_s1 + $0x3e4] ss:$16 sps:$4 sm:$0xff]   ;;  %v17609_v31 = vld [vmem:[%s25206_s1 + $0x1e0] ss:$16 sps:$4 sm:$0xff]  }
 0x3a4   : > { %5898 = vmatprep.subr.bf16.mxu1 %v17536_v32  ;;  %v17612_v32 = vld [vmem:[%s25206_s1 + $0x3e0] ss:$16 sps:$4 sm:$0xff]  }
 0x3a6   : > { %5858 = vmatpush1.bf16.msra.mxu0 %v17531_v46  ;;  %v17617_v46 = vld [vmem:[%s25206_s1 + $0xc] ss:$16 sps:$4 sm:$0xff]  }
 0x3a7   : > { %5899 = vmatpush1.bf16.msra.mxu1 %v17534_v47  ;;  %5859 = vmatprep.subr.bf16.mxu0 %v17539_v48  ;;  %v17620_v47 = vld [vmem:[%s25206_s1 + $0x20c] ss:$16 sps:$4 sm:$0xff]   ;;  %v17615_v48 = vld [vmem:[%s25206_s1 + $0x8] ss:$16 sps:$4 sm:$0xff]  }
 0x3a8   : > { %5900 = vmatprep.subr.bf16.mxu1 %v17542_v49  ;;  %v17618_v49 = vld [vmem:[%s25206_s1 + $0x208] ss:$16 sps:$4 sm:$0xff]  }
 0x3aa   : > { %5860 = vmatpush1.bf16.msra.mxu0 %v17537_v56  ;;  %v17623_v56 = vld [vmem:[%s25206_s1 + $0x2c] ss:$16 sps:$4 sm:$0xff]  }
 0x3ab   : > { %5901 = vmatpush1.bf16.msra.mxu1 %v17540_v50  ;;  %5861 = vmatprep.subr.bf16.mxu0 %v17545_v51  ;;  %v17626_v50 = vld [vmem:[%s25206_s1 + $0x22c] ss:$16 sps:$4 sm:$0xff]   ;;  %v17621_v51 = vld [vmem:[%s25206_s1 + $0x28] ss:$16 sps:$4 sm:$0xff]  }
 0x3ac   : > { %5902 = vmatprep.subr.bf16.mxu1 %v17548_v52  ;;  %v17624_v52 = vld [vmem:[%s25206_s1 + $0x228] ss:$16 sps:$4 sm:$0xff]  }
 0x3ae   : > { %5862 = vmatpush1.bf16.msra.mxu0 %v17543_v53  ;;  %v17629_v53 = vld [vmem:[%s25206_s1 + $0x4c] ss:$16 sps:$4 sm:$0xff]  }
 0x3af   : > { %5903 = vmatpush1.bf16.msra.mxu1 %v17546_v54  ;;  %5863 = vmatprep.subr.bf16.mxu0 %v17551_v55  ;;  %v17632_v54 = vld [vmem:[%s25206_s1 + $0x24c] ss:$16 sps:$4 sm:$0xff]   ;;  %v17630_v55 = vld [vmem:[%s25206_s1 + $0x248] ss:$16 sps:$4 sm:$0xff]  }
 0x3b0   : > { %5904 = vmatprep.subr.bf16.mxu1 %v17554_v58  ;;  %v17638_v58 = vld [vmem:[%s25206_s1 + $0x26c] ss:$16 sps:$4 sm:$0xff]  }
 0x3b2   : > { %5864 = vmatpush1.bf16.msra.mxu0 %v17549_v59  ;;  %v17633_v59 = vld [vmem:[%s25206_s1 + $0x68] ss:$16 sps:$4 sm:$0xff]  }
 0x3b3   : > { %5905 = vmatpush1.bf16.msra.mxu1 %v17552_v60  ;;  %5865 = vmatprep.subr.bf16.mxu0 %v17557_v63  ;;  %v17636_v60 = vld [vmem:[%s25206_s1 + $0x268] ss:$16 sps:$4 sm:$0xff]   ;;  %v17641_v63 = vld [vmem:[%s25206_s1 + $0x8c] ss:$16 sps:$4 sm:$0xff]  }
 0x3b4   : > { %5906 = vmatprep.subr.bf16.mxu1 %v17560_v2  ;;  %v17644_v2 = vld [vmem:[%s25206_s1 + $0x28c] ss:$16 sps:$4 sm:$0xff]  }
 0x3b6   : > { %5866 = vmatpush1.bf16.msra.mxu0 %v17555_v3  ;;  %v17639_v3 = vld [vmem:[%s25206_s1 + $0x88] ss:$16 sps:$4 sm:$0xff]  }
 0x3b7   : > { %5907 = vmatpush1.bf16.msra.mxu1 %v17558_v4  ;;  %5867 = vmatprep.subr.bf16.mxu0 %v17563_v5  ;;  %v17642_v4 = vld [vmem:[%s25206_s1 + $0x288] ss:$16 sps:$4 sm:$0xff]   ;;  %v17647_v5 = vld [vmem:[%s25206_s1 + $0xac] ss:$16 sps:$4 sm:$0xff]  }
 0x3b8   : > { %5908 = vmatprep.subr.bf16.mxu1 %v17566_v6  ;;  %v17650_v6 = vld [vmem:[%s25206_s1 + $0x2ac] ss:$16 sps:$4 sm:$0xff]  }
 0x3ba   : > { %5868 = vmatpush1.bf16.msra.mxu0 %v17561_v7  ;;  %v17645_v7 = vld [vmem:[%s25206_s1 + $0xa8] ss:$16 sps:$4 sm:$0xff]  }
 0x3bb   : > { %5909 = vmatpush1.bf16.msra.mxu1 %v17564_v8  ;;  %5869 = vmatprep.subr.bf16.mxu0 %v17569_v9  ;;  %v17648_v8 = vld [vmem:[%s25206_s1 + $0x2a8] ss:$16 sps:$4 sm:$0xff]   ;;  %v17653_v9 = vld [vmem:[%s25206_s1 + $0xcc] ss:$16 sps:$4 sm:$0xff]  }
 0x3bc   : > { %5910 = vmatprep.subr.bf16.mxu1 %v17572_v10  ;;  %v17656_v10 = vld [vmem:[%s25206_s1 + $0x2cc] ss:$16 sps:$4 sm:$0xff]  }
 0x3be   : > { %5870 = vmatpush1.bf16.msra.mxu0 %v17567_v11  ;;  %v17651_v11 = vld [vmem:[%s25206_s1 + $0xc8] ss:$16 sps:$4 sm:$0xff]  }
 0x3bf   : > { %5911 = vmatpush1.bf16.msra.mxu1 %v17570_v12  ;;  %5871 = vmatprep.subr.bf16.mxu0 %v17575_v13  ;;  %v17654_v12 = vld [vmem:[%s25206_s1 + $0x2c8] ss:$16 sps:$4 sm:$0xff]   ;;  %v17659_v13 = vld [vmem:[%s25206_s1 + $0xec] ss:$16 sps:$4 sm:$0xff]  }
 0x3c0   : > { %5912 = vmatprep.subr.bf16.mxu1 %v17578_v14  ;;  %v17662_v14 = vld [vmem:[%s25206_s1 + $0x2ec] ss:$16 sps:$4 sm:$0xff]  }
 0x3c2   : > { %5872 = vmatpush1.bf16.msra.mxu0 %v17573_v15  ;;  %v17657_v15 = vld [vmem:[%s25206_s1 + $0xe8] ss:$16 sps:$4 sm:$0xff]  }
 0x3c3   : > { %5913 = vmatpush1.bf16.msra.mxu1 %v17576_v18  ;;  %5873 = vmatprep.subr.bf16.mxu0 %v17581_v19  ;;  %v17660_v18 = vld [vmem:[%s25206_s1 + $0x2e8] ss:$16 sps:$4 sm:$0xff]   ;;  %v17665_v19 = vld [vmem:[%s25206_s1 + $0x10c] ss:$16 sps:$4 sm:$0xff]  }
 0x3c4   : > { %5914 = vmatprep.subr.bf16.mxu1 %v17584_v22  ;;  %v17668_v22 = vld [vmem:[%s25206_s1 + $0x30c] ss:$16 sps:$4 sm:$0xff]  }
 0x3c6   : > { %5874 = vmatpush1.bf16.msra.mxu0 %v17579_v27  ;;  %v17663_v27 = vld [vmem:[%s25206_s1 + $0x108] ss:$16 sps:$4 sm:$0xff]  }
 0x3c7   : > { %5915 = vmatpush1.bf16.msra.mxu1 %v17582_v28  ;;  %5875 = vmatprep.subr.bf16.mxu0 %v17587_v29  ;;  %v17666_v28 = vld [vmem:[%s25206_s1 + $0x308] ss:$16 sps:$4 sm:$0xff]   ;;  %v17671_v29 = vld [vmem:[%s25206_s1 + $0x12c] ss:$16 sps:$4 sm:$0xff]  }
 0x3c8   : > { %5916 = vmatprep.subr.bf16.mxu1 %v17590_v30  ;;  %v17674_v30 = vld [vmem:[%s25206_s1 + $0x32c] ss:$16 sps:$4 sm:$0xff]  }
 0x3ca   : > { %5876 = vmatpush1.bf16.msra.mxu0 %v17585_v33  ;;  %v17669_v33 = vld [vmem:[%s25206_s1 + $0x128] ss:$16 sps:$4 sm:$0xff]  }
 0x3cb   : > { %5917 = vmatpush1.bf16.msra.mxu1 %v17588_v17  ;;  %5877 = vmatprep.subr.bf16.mxu0 %v17593_v34  ;;  %v17672_v17 = vld [vmem:[%s25206_s1 + $0x328] ss:$16 sps:$4 sm:$0xff]   ;;  %v17677_v34 = vld [vmem:[%s25206_s1 + $0x14c] ss:$16 sps:$4 sm:$0xff]  }
 0x3cc   : > { %5918 = vmatprep.subr.bf16.mxu1 %v17596_v35  ;;  %v17680_v35 = vld [vmem:[%s25206_s1 + $0x34c] ss:$16 sps:$4 sm:$0xff]  }
 0x3ce   : > { %5878 = vmatpush1.bf16.msra.mxu0 %v17591_v36  ;;  %v17675_v36 = vld [vmem:[%s25206_s1 + $0x148] ss:$16 sps:$4 sm:$0xff]  }
 0x3cf   : > { %5919 = vmatpush1.bf16.msra.mxu1 %v17594_v37  ;;  %5879 = vmatprep.subr.bf16.mxu0 %v17599_v38  ;;  %v17678_v37 = vld [vmem:[%s25206_s1 + $0x348] ss:$16 sps:$4 sm:$0xff]   ;;  %v17683_v38 = vld [vmem:[%s25206_s1 + $0x16c] ss:$16 sps:$4 sm:$0xff]  }
 0x3d0   : > { %5920 = vmatprep.subr.bf16.mxu1 %v17602_v39  ;;  %v17686_v39 = vld [vmem:[%s25206_s1 + $0x36c] ss:$16 sps:$4 sm:$0xff]  }
 0x3d2   : > { %5880 = vmatpush1.bf16.msra.mxu0 %v17597_v40  ;;  %v17681_v40 = vld [vmem:[%s25206_s1 + $0x168] ss:$16 sps:$4 sm:$0xff]  }
 0x3d3   : > { %5921 = vmatpush1.bf16.msra.mxu1 %v17600_v41  ;;  %5881 = vmatprep.subr.bf16.mxu0 %v17605_v42  ;;  %v17684_v41 = vld [vmem:[%s25206_s1 + $0x368] ss:$16 sps:$4 sm:$0xff]   ;;  %v17689_v42 = vld [vmem:[%s25206_s1 + $0x18c] ss:$16 sps:$4 sm:$0xff]  }
 0x3d4   : > { %5922 = vmatprep.subr.bf16.mxu1 %v17608_v16  ;;  %v17692_v16 = vld [vmem:[%s25206_s1 + $0x38c] ss:$16 sps:$4 sm:$0xff]  }
 0x3d6   : > { %5882 = vmatpush1.bf16.msra.mxu0 %v17603_v43  ;;  %v17687_v43 = vld [vmem:[%s25206_s1 + $0x188] ss:$16 sps:$4 sm:$0xff]  }
 0x3d7   : > { %5923 = vmatpush1.bf16.msra.mxu1 %v17606_v57  ;;  %5883 = vmatprep.subr.bf16.mxu0 %v17611_v44  ;;  %v17690_v57 = vld [vmem:[%s25206_s1 + $0x388] ss:$16 sps:$4 sm:$0xff]   ;;  %v17695_v44 = vld [vmem:[%s25206_s1 + $0x1ac] ss:$16 sps:$4 sm:$0xff]  }
 0x3d8   : > { %5924 = vmatprep.subr.bf16.mxu1 %v17614_v45  ;;  %v17698_v45 = vld [vmem:[%s25206_s1 + $0x3ac] ss:$16 sps:$4 sm:$0xff]  }
 0x3da   : > { %5884 = vmatpush1.bf16.msra.mxu0 %v17609_v31  ;;  %v17693_v31 = vld [vmem:[%s25206_s1 + $0x1a8] ss:$16 sps:$4 sm:$0xff]  }
 0x3db   : > { %5925 = vmatpush1.bf16.msra.mxu1 %v17612_v32  ;;  %5935 = vmatprep.subr.bf16.mxu0 %v17617_v46  ;;  %v17696_v32 = vld [vmem:[%s25206_s1 + $0x3a8] ss:$16 sps:$4 sm:$0xff]   ;;  %v17701_v46 = vld [vmem:[%s25206_s1 + $0x1cc] ss:$16 sps:$4 sm:$0xff]  }
 0x3dc   : > { %5976 = vmatprep.subr.bf16.mxu1 %v17620_v47  ;;  %v17704_v47 = vld [vmem:[%s25206_s1 + $0x3cc] ss:$16 sps:$4 sm:$0xff]  }
 0x3dd   : > { %5886 = vmatmul.mubr.bf16.vlgmr.msra.gmra.mrb[16].mxu0 %v21135_v20 }
 0x3de   : > { %5927 = vmatmul.mubr.bf16.vlgmr.msra.gmra.mrb[16].mxu1 %v21137_v23  ;;  %5936 = vmatpush1.bf16.msra.mxu0 %v17615_v48  ;;  %v17699_v48 = vld [vmem:[%s25206_s1 + $0x1c8] ss:$16 sps:$4 sm:$0xff]  }
 0x3df   : > { %5967 = vmatprep.mubr.bf16.mxu0 %v21139_v24  ;;  %5977 = vmatpush1.bf16.msra.mxu1 %v17618_v49  ;;  %v17627_v24 = vld [vmem:[%s25206_s1 + $0x48] ss:$16 sps:$4 sm:$0xff]  }
 0x3e0   : > { %6008 = vmatprep.mubr.bf16.mxu1 %v21141_v25  ;;  %5937 = vmatprep.subr.bf16.mxu0 %v17623_v56  ;;  %v17635_v25 = vld [vmem:[%s25206_s1 + $0x6c] ss:$16 sps:$4 sm:$0xff]   ;;  %v17702_v49 = vld [vmem:[%s25206_s1 + $0x3c8] ss:$16 sps:$4 sm:$0xff]  }
 0x3e1   : > { %5978 = vmatprep.subr.bf16.mxu1 %v17626_v50  ;;  %v17707_v56 = vld [vmem:[%s25206_s1 + $0x1ec] ss:$16 sps:$4 sm:$0xff]  }
 0x3e2   : > { %5938 = vmatpush1.bf16.msra.mxu0 %v17621_v51  ;;  %v17710_v50 = vld [vmem:[%s25206_s1 + $0x3ec] ss:$16 sps:$4 sm:$0xff]   ;;  %v17705_v51 = vld [vmem:[%s25206_s1 + $0x1e8] ss:$16 sps:$4 sm:$0xff]  }
 0x3e3   : > { %5979 = vmatpush1.bf16.msra.mxu1 %v17624_v52  ;;  %5939 = vmatprep.subr.bf16.mxu0 %v17629_v53  ;;  %v17708_v52 = vld [vmem:[%s25206_s1 + $0x3e8] ss:$16 sps:$4 sm:$0xff]   ;;  %v17713_v53 = vld [vmem:[%s25208_s5 + $0x4] ss:$16 sps:$4 sm:$0xff]  }
 0x3e4   : > { %5980 = vmatprep.subr.bf16.mxu1 %v17632_v54  ;;  %v17716_v54 = vld [vmem:[%s25208_s5 + $0xc] ss:$16 sps:$4 sm:$0xff]  }
 0x3e6   : > { %5940 = vmatpush1.bf16.msra.mxu0 %v17627_v24  ;;  %v17711_v24 = vld [vmem:[%s25208_s5] ss:$16 sps:$4 sm:$0xff]  }
 0x3e7   : > { %5981 = vmatpush1.bf16.msra.mxu1 %v17630_v55  ;;  %5941 = vmatprep.subr.bf16.mxu0 %v17635_v25  ;;  %v17714_v55 = vld [vmem:[%s25208_s5 + $0x8] ss:$16 sps:$4 sm:$0xff]   ;;  %v17719_v25 = vld [vmem:[%s25208_s5 + $0x24] ss:$16 sps:$4 sm:$0xff]  }
 0x3e8   : > { %5982 = vmatprep.subr.bf16.mxu1 %v17638_v58  ;;  %v17722_v58 = vld [vmem:[%s25208_s5 + $0x2c] ss:$16 sps:$4 sm:$0xff]  }
 0x3ea   : > { %5942 = vmatpush1.bf16.msra.mxu0 %v17633_v59  ;;  %v17717_v59 = vld [vmem:[%s25208_s5 + $0x20] ss:$16 sps:$4 sm:$0xff]  }
 0x3eb   : > { %5983 = vmatpush1.bf16.msra.mxu1 %v17636_v60  ;;  %5943 = vmatprep.subr.bf16.mxu0 %v17641_v63  ;;  %v17720_v60 = vld [vmem:[%s25208_s5 + $0x28] ss:$16 sps:$4 sm:$0xff]   ;;  %v17725_v63 = vld [vmem:[%s25208_s5 + $0x44] ss:$16 sps:$4 sm:$0xff]  }
 0x3ec   : > { %5984 = vmatprep.subr.bf16.mxu1 %v17644_v2  ;;  %v17726_v2 = vld [vmem:[%s25208_s5 + $0x48] ss:$16 sps:$4 sm:$0xff]  }
 0x3ee   : > { %5944 = vmatpush1.bf16.msra.mxu0 %v17639_v3  ;;  %v17731_v3 = vld [vmem:[%s25208_s5 + $0x64] ss:$16 sps:$4 sm:$0xff]  }
 0x3ef   : > { %5985 = vmatpush1.bf16.msra.mxu1 %v17642_v4  ;;  %5945 = vmatprep.subr.bf16.mxu0 %v17647_v5  ;;  %v17734_v4 = vld [vmem:[%s25208_s5 + $0x6c] ss:$16 sps:$4 sm:$0xff]   ;;  %v17729_v5 = vld [vmem:[%s25208_s5 + $0x60] ss:$16 sps:$4 sm:$0xff]  }
 0x3f0   : > { %5986 = vmatprep.subr.bf16.mxu1 %v17650_v6  ;;  %v17732_v6 = vld [vmem:[%s25208_s5 + $0x68] ss:$16 sps:$4 sm:$0xff]  }
 0x3f2   : > { %5946 = vmatpush1.bf16.msra.mxu0 %v17645_v7  ;;  %v17737_v7 = vld [vmem:[%s25208_s5 + $0x84] ss:$16 sps:$4 sm:$0xff]  }
 0x3f3   : > { %5987 = vmatpush1.bf16.msra.mxu1 %v17648_v8  ;;  %5947 = vmatprep.subr.bf16.mxu0 %v17653_v9  ;;  %v17740_v8 = vld [vmem:[%s25208_s5 + $0x8c] ss:$16 sps:$4 sm:$0xff]   ;;  %v17735_v9 = vld [vmem:[%s25208_s5 + $0x80] ss:$16 sps:$4 sm:$0xff]  }
 0x3f4   : > { %5988 = vmatprep.subr.bf16.mxu1 %v17656_v10  ;;  %v17738_v10 = vld [vmem:[%s25208_s5 + $0x88] ss:$16 sps:$4 sm:$0xff]  }
 0x3f6   : > { %5948 = vmatpush1.bf16.msra.mxu0 %v17651_v11  ;;  %v17743_v11 = vld [vmem:[%s25208_s5 + $0xa4] ss:$16 sps:$4 sm:$0xff]  }
 0x3f7   : > { %5989 = vmatpush1.bf16.msra.mxu1 %v17654_v12  ;;  %5949 = vmatprep.subr.bf16.mxu0 %v17659_v13  ;;  %v17746_v12 = vld [vmem:[%s25208_s5 + $0xac] ss:$16 sps:$4 sm:$0xff]   ;;  %v17741_v13 = vld [vmem:[%s25208_s5 + $0xa0] ss:$16 sps:$4 sm:$0xff]  }
 0x3f8   : > { %5990 = vmatprep.subr.bf16.mxu1 %v17662_v14  ;;  %v17744_v14 = vld [vmem:[%s25208_s5 + $0xa8] ss:$16 sps:$4 sm:$0xff]  }
 0x3fa   : > { %5950 = vmatpush1.bf16.msra.mxu0 %v17657_v15  ;;  %v17749_v15 = vld [vmem:[%s25208_s5 + $0xc4] ss:$16 sps:$4 sm:$0xff]  }
 0x3fb   : > { %5991 = vmatpush1.bf16.msra.mxu1 %v17660_v18  ;;  %5951 = vmatprep.subr.bf16.mxu0 %v17665_v19  ;;  %v17752_v19 = vld [vmem:[%s25208_s5 + $0xcc] ss:$16 sps:$4 sm:$0xff]  }
 0x3fc   : > { %5992 = vmatprep.subr.bf16.mxu1 %v17668_v22 }
 0x3fe   : > { %5952 = vmatpush1.bf16.msra.mxu0 %v17663_v27 }
 0x3ff   : > { %5993 = vmatpush1.bf16.msra.mxu1 %v17666_v28  ;;  %5953 = vmatprep.subr.bf16.mxu0 %v17671_v29 }
 0x400   : > { %5994 = vmatprep.subr.bf16.mxu1 %v17674_v30 }
 0x402   : > { %5954 = vmatpush1.bf16.msra.mxu0 %v17669_v33  ;;  %v17747_v33 = vld [vmem:[%s25208_s5 + $0xc0] ss:$16 sps:$4 sm:$0xff]  }
 0x403   : > { %5995 = vmatpush1.bf16.msra.mxu1 %v17672_v17  ;;  %5955 = vmatprep.subr.bf16.mxu0 %v17677_v34 }
 0x404   : > { %5996 = vmatprep.subr.bf16.mxu1 %v17680_v35 }
 0x406   : > { %5956 = vmatpush1.bf16.msra.mxu0 %v17675_v36  ;;  %v17750_v36 = vld [vmem:[%s25208_s5 + $0xc8] ss:$16 sps:$4 sm:$0xff]  }
 0x407   : > { %5997 = vmatpush1.bf16.msra.mxu1 %v17678_v37  ;;  %5957 = vmatprep.subr.bf16.mxu0 %v17683_v38  ;;  %v17755_v37 = vld [vmem:[%s25208_s5 + $0xe4] ss:$16 sps:$4 sm:$0xff]  }
 0x408   : > { %5998 = vmatprep.subr.bf16.mxu1 %v17686_v39  ;;  %v17758_v39 = vld [vmem:[%s25208_s5 + $0xec] ss:$16 sps:$4 sm:$0xff]  }
 0x40a   : > { %5958 = vmatpush1.bf16.msra.mxu0 %v17681_v40  ;;  %v17753_v40 = vld [vmem:[%s25208_s5 + $0xe0] ss:$16 sps:$4 sm:$0xff]  }
 0x40b   : > { %5999 = vmatpush1.bf16.msra.mxu1 %v17684_v41  ;;  %5959 = vmatprep.subr.bf16.mxu0 %v17689_v42  ;;  %v17756_v41 = vld [vmem:[%s25208_s5 + $0xe8] ss:$16 sps:$4 sm:$0xff]   ;;  %v17761_v42 = vld [vmem:[%s25208_s5 + $0x104] ss:$16 sps:$4 sm:$0xff]  }
 0x40c   : > { %6000 = vmatprep.subr.bf16.mxu1 %v17692_v16  ;;  %v17764_v16 = vld [vmem:[%s25208_s5 + $0x10c] ss:$16 sps:$4 sm:$0xff]  }
 0x40e   : > { %5960 = vmatpush1.bf16.msra.mxu0 %v17687_v43  ;;  %v17759_v43 = vld [vmem:[%s25208_s5 + $0x100] ss:$16 sps:$4 sm:$0xff]  }
 0x40f   : > { %6001 = vmatpush1.bf16.msra.mxu1 %v17690_v57  ;;  %5961 = vmatprep.subr.bf16.mxu0 %v17695_v44  ;;  %v17762_v57 = vld [vmem:[%s25208_s5 + $0x108] ss:$16 sps:$4 sm:$0xff]   ;;  %v17767_v44 = vld [vmem:[%s25208_s5 + $0x124] ss:$16 sps:$4 sm:$0xff]  }
 0x410   : > { %6002 = vmatprep.subr.bf16.mxu1 %v17698_v45  ;;  %v17770_v45 = vld [vmem:[%s25208_s5 + $0x12c] ss:$16 sps:$4 sm:$0xff]  }
 0x412   : > { %5962 = vmatpush1.bf16.msra.mxu0 %v17693_v31  ;;  %v17765_v31 = vld [vmem:[%s25208_s5 + $0x120] ss:$16 sps:$4 sm:$0xff]  }
 0x413   : > { %6003 = vmatpush1.bf16.msra.mxu1 %v17696_v32  ;;  %5963 = vmatprep.subr.bf16.mxu0 %v17701_v46  ;;  %v17768_v32 = vld [vmem:[%s25208_s5 + $0x128] ss:$16 sps:$4 sm:$0xff]   ;;  %v17773_v46 = vld [vmem:[%s25208_s5 + $0x144] ss:$16 sps:$4 sm:$0xff]  }
 0x414   : > { %6004 = vmatprep.subr.bf16.mxu1 %v17704_v47  ;;  %v17776_v47 = vld [vmem:[%s25208_s5 + $0x14c] ss:$16 sps:$4 sm:$0xff]  }
 0x416   : > { %5964 = vmatpush1.bf16.msra.mxu0 %v17699_v48  ;;  %v17771_v48 = vld [vmem:[%s25208_s5 + $0x140] ss:$16 sps:$4 sm:$0xff]  }
 0x417   : > { %6005 = vmatpush1.bf16.msra.mxu1 %v17702_v49  ;;  %5965 = vmatprep.subr.bf16.mxu0 %v17707_v56  ;;  %v17774_v49 = vld [vmem:[%s25208_s5 + $0x148] ss:$16 sps:$4 sm:$0xff]   ;;  %v17779_v56 = vld [vmem:[%s25208_s5 + $0x164] ss:$16 sps:$4 sm:$0xff]  }
 0x418   : > { %6006 = vmatprep.subr.bf16.mxu1 %v17710_v50  ;;  %v17782_v50 = vld [vmem:[%s25208_s5 + $0x16c] ss:$16 sps:$4 sm:$0xff]  }
 0x41a   : > { %5966 = vmatpush1.bf16.msra.mxu0 %v17705_v51  ;;  %v17777_v51 = vld [vmem:[%s25208_s5 + $0x160] ss:$16 sps:$4 sm:$0xff]  }
 0x41b   : > { %6007 = vmatpush1.bf16.msra.mxu1 %v17708_v52  ;;  %6841 = vmatprep.subr.bf16.mxu0 %v17713_v53  ;;  %v17780_v52 = vld [vmem:[%s25208_s5 + $0x168] ss:$16 sps:$4 sm:$0xff]   ;;  %v17785_v53 = vld [vmem:[%s25208_s5 + $0x184] ss:$16 sps:$4 sm:$0xff]  }
 0x41c   : > { %6923 = vmatprep.subr.bf16.mxu1 %v17716_v54  ;;  %v17788_v54 = vld [vmem:[%s25208_s5 + $0x18c] ss:$16 sps:$4 sm:$0xff]  }
 0x41d   : > { %5968 = vmatmul.mubr.bf16.vlgmr.msra.gmra.mrb[20].mxu0 %v21135_v20  ;;  %v17728_v20 = vld [vmem:[%s25208_s5 + $0x4c] ss:$16 sps:$4 sm:$0xff]  }
 0x41e   : > { %6009 = vmatmul.mubr.bf16.vlgmr.msra.gmra.mrb[20].mxu1 %v21137_v23  ;;  %6842 = vmatpush1.bf16.msra.mxu0 %v17711_v24  ;;  %v17723_v23 = vld [vmem:[%s25208_s5 + $0x40] ss:$16 sps:$4 sm:$0xff]  }
 0x41f   : > { %6924 = vmatpush1.bf16.msra.mxu1 %v17714_v55  ;;  %6843 = vmatprep.subr.bf16.mxu0 %v17719_v25  ;;  %v17783_v24 = vld [vmem:[%s25208_s5 + $0x180] ss:$16 sps:$4 sm:$0xff]   ;;  %v17786_v55 = vld [vmem:[%s25208_s5 + $0x188] ss:$16 sps:$4 sm:$0xff]   ;;  %v17791_v25 = vld [vmem:[%s25208_s5 + $0x1a4] ss:$16 sps:$4 sm:$0xff]  }
 0x420   : > { %6925 = vmatprep.subr.bf16.mxu1 %v17722_v58  ;;  %v17794_v58 = vld [vmem:[%s25208_s5 + $0x1ac] ss:$16 sps:$4 sm:$0xff]  }
 0x422   : > { %6844 = vmatpush1.bf16.msra.mxu0 %v17717_v59  ;;  %v17789_v59 = vld [vmem:[%s25208_s5 + $0x1a0] ss:$16 sps:$4 sm:$0xff]  }
 0x423   : > { %6926 = vmatpush1.bf16.msra.mxu1 %v17720_v60  ;;  %6845 = vmatprep.subr.bf16.mxu0 %v17725_v63  ;;  %v17792_v60 = vld [vmem:[%s25208_s5 + $0x1a8] ss:$16 sps:$4 sm:$0xff]   ;;  %v17797_v63 = vld [vmem:[%s25208_s5 + $0x1c4] ss:$16 sps:$4 sm:$0xff]  }
 0x424   : > { %6927 = vmatprep.subr.bf16.mxu1 %v17728_v20  ;;  %v17800_v20 = vld [vmem:[%s25208_s5 + $0x1cc] ss:$16 sps:$4 sm:$0xff]  }
 0x426   : > { %6846 = vmatpush1.bf16.msra.mxu0 %v17723_v23  ;;  %v17795_v23 = vld [vmem:[%s25208_s5 + $0x1c0] ss:$16 sps:$4 sm:$0xff]  }
 0x427   : > { %6928 = vmatpush1.bf16.msra.mxu1 %v17726_v2  ;;  %6847 = vmatprep.subr.bf16.mxu0 %v17731_v3  ;;  %v17798_v2 = vld [vmem:[%s25208_s5 + $0x1c8] ss:$16 sps:$4 sm:$0xff]   ;;  %v17803_v3 = vld [vmem:[%s25208_s5 + $0x1e4] ss:$16 sps:$4 sm:$0xff]  }
 0x428   : > { %6929 = vmatprep.subr.bf16.mxu1 %v17734_v4  ;;  %v17806_v4 = vld [vmem:[%s25208_s5 + $0x1ec] ss:$16 sps:$4 sm:$0xff]  }
 0x42a   : > { %6848 = vmatpush1.bf16.msra.mxu0 %v17729_v5  ;;  %v17801_v5 = vld [vmem:[%s25208_s5 + $0x1e0] ss:$16 sps:$4 sm:$0xff]  }
 0x42b   : > { %6930 = vmatpush1.bf16.msra.mxu1 %v17732_v6  ;;  %6849 = vmatprep.subr.bf16.mxu0 %v17737_v7  ;;  %v17804_v6 = vld [vmem:[%s25208_s5 + $0x1e8] ss:$16 sps:$4 sm:$0xff]   ;;  %v17809_v7 = vld [vmem:[%s25208_s5 + $0x204] ss:$16 sps:$4 sm:$0xff]  }
 0x42c   : > { %6931 = vmatprep.subr.bf16.mxu1 %v17740_v8  ;;  %v17812_v8 = vld [vmem:[%s25208_s5 + $0x20c] ss:$16 sps:$4 sm:$0xff]  }
 0x42e   : > { %6850 = vmatpush1.bf16.msra.mxu0 %v17735_v9 }
 0x42f   : > { %6932 = vmatpush1.bf16.msra.mxu1 %v17738_v10  ;;  %6851 = vmatprep.subr.bf16.mxu0 %v17743_v11 }
 0x430   : > { %v5083_v18 = vpop.f32.mrb[8].mxu0  ;;  %6933 = vmatprep.subr.bf16.mxu1 %v17746_v12 }
 0x431   : > { %v5124_v22 = vpop.f32.mrb[8].mxu1  ;;  %v5085_v27 = vpop.f32.mrb[9].mxu0 }
 0x432   : > { %v21811_v28 = vadd.f32 %v5124_v22, %v5083_v18  ;;  %v5126_v29 = vpop.f32.mrb[9].mxu1  ;;  %v5087_v30 = vpop.f32.mrb[10].mxu0  ;;  %6852 = vmatpush1.bf16.msra.mxu0 %v17741_v13 }
 0x433   : > { %v21816_v17 = vadd.f32 %v5126_v29, %v5085_v27  ;;  %v5128_v34 = vpop.f32.mrb[10].mxu1  ;;  %v5088_v35 = vpop.f32.mrb[11].mxu0  ;;  %6934 = vmatpush1.bf16.msra.mxu1 %v17744_v14  ;;  %6853 = vmatprep.subr.bf16.mxu0 %v17749_v15  ;;  %v21942_v27 = vld [vmem:[%s25209_s2] sm:$0xf]  ;;  %s16470_s2 = sshll.u32 %s19535_s19, 4  ;;  %s19380_s19 = smov [#allocation3]  }
 0x434   : > { %v5129_v38 = vpop.f32.mrb[11].mxu1  ;;  %6935 = vmatprep.subr.bf16.mxu1 %v17752_v19  ;;  %v6022_v34 = vrot.slane %v21942_v27, %v19933_v0  ;;  %s25098_s9 = scalar_lea.hbm %s25214_s7, %s16470_s2 }
 0x435   : > { %v6026_v38 = vrot.slane %v21942_v27, %v19936_v1 }
 0x436   : > { %6854 = vmatpush1.bf16.msra.mxu0 %v17747_v33 }
 0x437   : > { %6936 = vmatpush1.bf16.msra.mxu1 %v17750_v36  ;;  %6855 = vmatprep.subr.bf16.mxu0 %v17755_v37 }
 0x438   : > { %6937 = vmatprep.subr.bf16.mxu1 %v17758_v39 }
 0x43a   : > { %6856 = vmatpush1.bf16.msra.mxu0 %v17753_v40 }
 0x43b   : > { %6938 = vmatpush1.bf16.msra.mxu1 %v17756_v41  ;;  %6857 = vmatprep.subr.bf16.mxu0 %v17761_v42 }
 0x43c   : > { %6939 = vmatprep.subr.bf16.mxu1 %v17764_v16 }
 0x43e   : > { %6858 = vmatpush1.bf16.msra.mxu0 %v17759_v43 }
 0x43f   : > { %6940 = vmatpush1.bf16.msra.mxu1 %v17762_v57  ;;  %6859 = vmatprep.subr.bf16.mxu0 %v17767_v44 }
 0x440   : > { %6941 = vmatprep.subr.bf16.mxu1 %v17770_v45 }
 0x442   : > { %6860 = vmatpush1.bf16.msra.mxu0 %v17765_v31 }
 0x443   : > { %6942 = vmatpush1.bf16.msra.mxu1 %v17768_v32  ;;  %6861 = vmatprep.subr.bf16.mxu0 %v17773_v46  ;;  %v17807_v32 = vld [vmem:[%s25208_s5 + $0x200] ss:$16 sps:$4 sm:$0xff]  }
 0x444   : > { %6943 = vmatprep.subr.bf16.mxu1 %v17776_v47  ;;  %v17815_v47 = vld [vmem:[%s25208_s5 + $0x224] ss:$16 sps:$4 sm:$0xff]  }
 0x446   : > { %6862 = vmatpush1.bf16.msra.mxu0 %v17771_v48  ;;  %v17818_v48 = vld [vmem:[%s25208_s5 + $0x22c] ss:$16 sps:$4 sm:$0xff]  }
 0x447   : > { %6944 = vmatpush1.bf16.msra.mxu1 %v17774_v49  ;;  %6863 = vmatprep.subr.bf16.mxu0 %v17779_v56  ;;  %v17813_v49 = vld [vmem:[%s25208_s5 + $0x220] ss:$16 sps:$4 sm:$0xff]   ;;  %v17816_v56 = vld [vmem:[%s25208_s5 + $0x228] ss:$16 sps:$4 sm:$0xff]  }
 0x448   : > { %6945 = vmatprep.subr.bf16.mxu1 %v17782_v50  ;;  %v17821_v50 = vld [vmem:[%s25208_s5 + $0x244] ss:$16 sps:$4 sm:$0xff]  }
 0x44a   : > { %6864 = vmatpush1.bf16.msra.mxu0 %v17777_v51  ;;  %v17824_v51 = vld [vmem:[%s25208_s5 + $0x24c] ss:$16 sps:$4 sm:$0xff]  }
 0x44b   : > { %6946 = vmatpush1.bf16.msra.mxu1 %v17780_v52  ;;  %6865 = vmatprep.subr.bf16.mxu0 %v17785_v53  ;;  %v17819_v52 = vld [vmem:[%s25208_s5 + $0x240] ss:$16 sps:$4 sm:$0xff]   ;;  %v17822_v53 = vld [vmem:[%s25208_s5 + $0x248] ss:$16 sps:$4 sm:$0xff]  }
 0x44c   : > { %6947 = vmatprep.subr.bf16.mxu1 %v17788_v54  ;;  %v17827_v54 = vld [vmem:[%s25208_s5 + $0x264] ss:$16 sps:$4 sm:$0xff]  }
 0x44e   : > { %6866 = vmatpush1.bf16.msra.mxu0 %v17783_v24  ;;  %v17830_v24 = vld [vmem:[%s25208_s5 + $0x26c] ss:$16 sps:$4 sm:$0xff]  }
 0x44f   : > { %6948 = vmatpush1.bf16.msra.mxu1 %v17786_v55  ;;  %6867 = vmatprep.subr.bf16.mxu0 %v17791_v25  ;;  %v17825_v55 = vld [vmem:[%s25208_s5 + $0x260] ss:$16 sps:$4 sm:$0xff]   ;;  %v17828_v25 = vld [vmem:[%s25208_s5 + $0x268] ss:$16 sps:$4 sm:$0xff]  }
 0x450   : > { %6949 = vmatprep.subr.bf16.mxu1 %v17794_v58  ;;  %v17833_v58 = vld [vmem:[%s25208_s5 + $0x284] ss:$16 sps:$4 sm:$0xff]  }
 0x452   : > { %6868 = vmatpush1.bf16.msra.mxu0 %v17789_v59  ;;  %v17836_v59 = vld [vmem:[%s25208_s5 + $0x28c] ss:$16 sps:$4 sm:$0xff]  }
 0x453   : > { %6950 = vmatpush1.bf16.msra.mxu1 %v17792_v60  ;;  %6869 = vmatprep.subr.bf16.mxu0 %v17797_v63  ;;  %v17831_v60 = vld [vmem:[%s25208_s5 + $0x280] ss:$16 sps:$4 sm:$0xff]   ;;  %v17834_v63 = vld [vmem:[%s25208_s5 + $0x288] ss:$16 sps:$4 sm:$0xff]  }
 0x454   : > { %6951 = vmatprep.subr.bf16.mxu1 %v17800_v20  ;;  %v17839_v20 = vld [vmem:[%s25208_s5 + $0x2a4] ss:$16 sps:$4 sm:$0xff]  }
 0x456   : > { %6870 = vmatpush1.bf16.msra.mxu0 %v17795_v23  ;;  %v17842_v23 = vld [vmem:[%s25208_s5 + $0x2ac] ss:$16 sps:$4 sm:$0xff]  }
 0x457   : > { %6952 = vmatpush1.bf16.msra.mxu1 %v17798_v2  ;;  %6871 = vmatprep.subr.bf16.mxu0 %v17803_v3  ;;  %v17837_v2 = vld [vmem:[%s25208_s5 + $0x2a0] ss:$16 sps:$4 sm:$0xff]   ;;  %v17840_v3 = vld [vmem:[%s25208_s5 + $0x2a8] ss:$16 sps:$4 sm:$0xff]  }
 0x458   : > { %6953 = vmatprep.subr.bf16.mxu1 %v17806_v4  ;;  %v17845_v4 = vld [vmem:[%s25208_s5 + $0x2c4] ss:$16 sps:$4 sm:$0xff]  }
 0x45a   : > { %6872 = vmatpush1.bf16.msra.mxu0 %v17801_v5  ;;  %v17848_v5 = vld [vmem:[%s25208_s5 + $0x2cc] ss:$16 sps:$4 sm:$0xff]  }
 0x45b   : > { %6954 = vmatpush1.bf16.msra.mxu1 %v17804_v6  ;;  %6882 = vmatprep.subr.bf16.mxu0 %v17809_v7  ;;  %v17843_v6 = vld [vmem:[%s25208_s5 + $0x2c0] ss:$16 sps:$4 sm:$0xff]   ;;  %v17846_v7 = vld [vmem:[%s25208_s5 + $0x2c8] ss:$16 sps:$4 sm:$0xff]  }
 0x45c   : > { %6964 = vmatprep.subr.bf16.mxu1 %v17812_v8  ;;  %v17851_v8 = vld [vmem:[%s25208_s5 + $0x2e4] ss:$16 sps:$4 sm:$0xff]  }
 0x470   : > { %v5165_v9 = vpop.f32.mrb[12].mxu0 }
 0x471   : > { %v5206_v10 = vpop.f32.mrb[12].mxu1  ;;  %v5167_v11 = vpop.f32.mrb[13].mxu0 }
 0x472   : > { %v21935_v12 = vadd.f32 %v5206_v10, %v5165_v9  ;;  %v5208_v13 = vpop.f32.mrb[13].mxu1  ;;  %v5169_v14 = vpop.f32.mrb[14].mxu0  ;;  %v17854_v9 = vld [vmem:[%s25208_s5 + $0x2ec] ss:$16 sps:$4 sm:$0xff]   ;;  %v17849_v10 = vld [vmem:[%s25208_s5 + $0x2e0] ss:$16 sps:$4 sm:$0xff]  }
 0x473   : > { %v21937_v15 = vadd.f32 %v5208_v13, %v5167_v11  ;;  %v5210_v18 = vpop.f32.mrb[14].mxu1  ;;  %v5170_v19 = vpop.f32.mrb[15].mxu0  ;;  %v17852_v11 = vld [vmem:[%s25208_s5 + $0x2e8] ss:$16 sps:$4 sm:$0xff]   ;;  %v17857_v13 = vld [vmem:[%s25208_s5 + $0x304] ss:$16 sps:$4 sm:$0xff]  }
 0x474   : > { %v5211_v22 = vpop.f32.mrb[15].mxu1  ;;  %v17860_v14 = vld [vmem:[%s25208_s5 + $0x30c] ss:$16 sps:$4 sm:$0xff]   ;;  %v17855_v18 = vld [vmem:[%s25208_s5 + $0x300] ss:$16 sps:$4 sm:$0xff]  }
 0x475   : > { %v17858_v19 = vld [vmem:[%s25208_s5 + $0x308] ss:$16 sps:$4 sm:$0xff]   ;;  %v17863_v22 = vld [vmem:[%s25208_s5 + $0x324] ss:$16 sps:$4 sm:$0xff]  }
 0x4b0   : > { %v5887_v29 = vpop.f32.mrb[16].mxu0 }
 0x4b1   : > { %v5888_v30 = vadd.f32 %v5887_v29, %v21811_v28  ;;  %v5928_v33 = vpop.f32.mrb[16].mxu1  ;;  %v5889_v35 = vpop.f32.mrb[17].mxu0  ;;  %v17866_v29 = vld [vmem:[%s25208_s5 + $0x32c] ss:$16 sps:$4 sm:$0xff]  }
 0x4b2   : > { %v5890_v36 = vadd.f32 %v5889_v35, %v21816_v17  ;;  %v5930_v37 = vpop.f32.mrb[17].mxu1  ;;  %v5891_v39 = vpop.f32.mrb[18].mxu0  ;;  %v17810_v17 = vld [vmem:[%s25208_s5 + $0x208] ss:$16 sps:$4 sm:$0xff]   ;;  %v17872_v35 = vld [vmem:[%s25208_s5 + $0x34c] ss:$16 sps:$4 sm:$0xff]  }
 0x4b3   : > { %v5929_v40 = vadd.f32 %v5928_v33, %v5888_v30  ;;  %v5932_v41 = vpop.f32.mrb[18].mxu1  ;;  %v5892_v42 = vpop.f32.mrb[19].mxu0  ;;  %v17861_v30 = vld [vmem:[%s25208_s5 + $0x320] ss:$16 sps:$4 sm:$0xff]   ;;  %v17864_v33 = vld [vmem:[%s25208_s5 + $0x328] ss:$16 sps:$4 sm:$0xff]  }
 0x4b4   : > { %v5931_v16 = vadd.f32 %v5930_v37, %v5890_v36  ;;  %v5933_v43 = vpop.f32.mrb[19].mxu1  ;;  %v17867_v36 = vld [vmem:[%s25208_s5 + $0x340] ss:$16 sps:$4 sm:$0xff]   ;;  %v17870_v37 = vld [vmem:[%s25208_s5 + $0x348] ss:$16 sps:$4 sm:$0xff]  }
 0x4b5   : > { %v6039_v57 = vadd.f32 %v6022_v34, %v5929_v40  ;;  %v17869_v34 = vld [vmem:[%s25208_s5 + $0x344] ss:$16 sps:$4 sm:$0xff]   ;;  %v17878_v39 = vld [vmem:[%s25208_s5 + $0x36c] ss:$16 sps:$4 sm:$0xff]   ;;  %v17873_v40 = vld [vmem:[%s25208_s5 + $0x360] ss:$16 sps:$4 sm:$0xff]  }
 0x4b6   : > { %v6040_v44 = vadd.f32 %v6026_v38, %v5931_v16  ;;  %v17875_v38 = vld [vmem:[%s25208_s5 + $0x364] ss:$16 sps:$4 sm:$0xff]   ;;  %v17876_v41 = vld [vmem:[%s25208_s5 + $0x368] ss:$16 sps:$4 sm:$0xff]   ;;  %v17884_v16 = vld [vmem:[%s25208_s5 + $0x38c] ss:$16 sps:$4 sm:$0xff]  }
 0x4b7   : > { %v6043_v28 = vmax.f32 %v6039_v57, 0.0  ;;  %v17881_v42 = vld [vmem:[%s25208_s5 + $0x384] ss:$16 sps:$4 sm:$0xff]   ;;  %v17879_v43 = vld [vmem:[%s25208_s5 + $0x380] ss:$16 sps:$4 sm:$0xff]  }
 0x4b8   : > { %v6044_v45 = vmax.f32 %v6040_v44, 0.0  ;;  %v17882_v57 = vld [vmem:[%s25208_s5 + $0x388] ss:$16 sps:$4 sm:$0xff]   ;;  %v17887_v44 = vld [vmem:[%s25208_s5 + $0x3a4] ss:$16 sps:$4 sm:$0xff]  }
 0x4b9   : > { %v6047_v46 = vpack.c.bf16 %v6043_v28, %v6043_v28  ;;  %v17890_v28 = vld [vmem:[%s25208_s5 + $0x3ac] ss:$16 sps:$4 sm:$0xff]  }
 0x4ba   : > { %v6048_v31 = vpack.c.bf16 %v6044_v45, %v6044_v45  ;;  %v17885_v45 = vld [vmem:[%s25208_s5 + $0x3a0] ss:$16 sps:$4 sm:$0xff]  }
 0x4bc   : > { %6873 = vmatprep.mubr.bf16.mxu0 %v6048_v31  ;;  %6955 = vmatprep.mubr.bf16.mxu1 %v6048_v31  ;;  %v17888_v31 = vld [vmem:[%s25208_s5 + $0x3a8] ss:$16 sps:$4 sm:$0xff]  }
 0x4bd   : > { %6874 = vmatmul.mubr.bf16.vlgmr.msra.gmra.mrb[24].mxu0 %v6047_v46  ;;  %6956 = vmatmul.mubr.bf16.vlgmr.msra.gmra.mrb[24].mxu1 %v6047_v46 }
 0x4be   : > { %6883 = vmatpush1.bf16.msra.mxu0 %v17807_v32  ;;  %6965 = vmatpush1.bf16.msra.mxu1 %v17810_v17  ;;  %v17893_v32 = vld [vmem:[%s25208_s5 + $0x3c4] ss:$16 sps:$4 sm:$0xff]   ;;  %v17896_v17 = vld [vmem:[%s25208_s5 + $0x3cc] ss:$16 sps:$4 sm:$0xff]  }
 0x4bf   : > { %6884 = vmatprep.subr.bf16.mxu0 %v17815_v47  ;;  %6966 = vmatprep.subr.bf16.mxu1 %v17818_v48 }
 0x4c2   : > { %6885 = vmatpush1.bf16.msra.mxu0 %v17813_v49  ;;  %6967 = vmatpush1.bf16.msra.mxu1 %v17816_v56  ;;  %v6030_v49 = vrot.slane %v21942_v27, %v19947_v21 }
 0x4c3   : > { %6886 = vmatprep.subr.bf16.mxu0 %v17821_v50  ;;  %6968 = vmatprep.subr.bf16.mxu1 %v17824_v51 }
 0x4c6   : > { %6887 = vmatpush1.bf16.msra.mxu0 %v17819_v52  ;;  %6969 = vmatpush1.bf16.msra.mxu1 %v17822_v53  ;;  %v6034_v52 = vrot.slane %v21942_v27, %v19957_v26  ;;  %v17902_v27 = vld [vmem:[%s25208_s5 + $0x3ec] ss:$16 sps:$4 sm:$0xff]  }
 0x4c7   : > { %6888 = vmatprep.subr.bf16.mxu0 %v17827_v54  ;;  %6970 = vmatprep.subr.bf16.mxu1 %v17830_v24  ;;  %v17891_v54 = vld [vmem:[%s25208_s5 + $0x3c0] ss:$16 sps:$4 sm:$0xff]  }
 0x4ca   : > { %6889 = vmatpush1.bf16.msra.mxu0 %v17825_v55  ;;  %6971 = vmatpush1.bf16.msra.mxu1 %v17828_v25 }
 0x4cb   : > { %6890 = vmatprep.subr.bf16.mxu0 %v17833_v58  ;;  %6972 = vmatprep.subr.bf16.mxu1 %v17836_v59 }
 0x4ce   : > { %6891 = vmatpush1.bf16.msra.mxu0 %v17831_v60  ;;  %6973 = vmatpush1.bf16.msra.mxu1 %v17834_v63 }
 0x4cf   : > { %6892 = vmatprep.subr.bf16.mxu0 %v17839_v20  ;;  %6974 = vmatprep.subr.bf16.mxu1 %v17842_v23  ;;  %v17897_v20 = vld [vmem:[%s25208_s5 + $0x3e0] ss:$16 sps:$4 sm:$0xff]   ;;  %v17900_v23 = vld [vmem:[%s25208_s5 + $0x3e8] ss:$16 sps:$4 sm:$0xff]  }
 0x4d2   : > { %6893 = vmatpush1.bf16.msra.mxu0 %v17837_v2  ;;  %6975 = vmatpush1.bf16.msra.mxu1 %v17840_v3  ;;  %v17905_v3 = vld [vmem:[%s25210_s6 + $0x4] ss:$16 sps:$4 sm:$0xff]   ;;  %s14322_s6 = sshll.u32 %s19582_s26, 2 }
 0x4d3   : > { %6894 = vmatprep.subr.bf16.mxu0 %v17845_v4  ;;  %6976 = vmatprep.subr.bf16.mxu1 %v17848_v5  ;;  %v17908_v4 = vld [vmem:[%s25211_s29 + $0xc] ss:$16 sps:$4 sm:$0xff]   ;;  %s774_s1 = scalar_lea.vmem %s25165_s25, %s14322_s6 }
 0x4d6   : > { %6895 = vmatpush1.bf16.msra.mxu0 %v17843_v6  ;;  %6977 = vmatpush1.bf16.msra.mxu1 %v17846_v7  ;;  %v17903_v7 = vld [vmem:[%s25211_s29] ss:$16 sps:$4 sm:$0xff]  }
 0x4d7   : > { %6896 = vmatprep.subr.bf16.mxu0 %v17851_v8  ;;  %6978 = vmatprep.subr.bf16.mxu1 %v17854_v9  ;;  %v17906_v8 = vld [vmem:[%s25211_s29 + $0x8] ss:$16 sps:$4 sm:$0xff]  }
 0x4da   : > { %6897 = vmatpush1.bf16.msra.mxu0 %v17849_v10  ;;  %6979 = vmatpush1.bf16.msra.mxu1 %v17852_v11  ;;  %v17911_v10 = vld [vmem:[%s25211_s29 + $0x24] ss:$16 sps:$4 sm:$0xff]   ;;  %v17914_v11 = vld [vmem:[%s25211_s29 + $0x2c] ss:$16 sps:$4 sm:$0xff]  }
 0x4db   : > { %6898 = vmatprep.subr.bf16.mxu0 %v17857_v13  ;;  %6980 = vmatprep.subr.bf16.mxu1 %v17860_v14  ;;  %v17909_v13 = vld [vmem:[%s25211_s29 + $0x20] ss:$16 sps:$4 sm:$0xff]   ;;  %v17912_v14 = vld [vmem:[%s25211_s29 + $0x28] ss:$16 sps:$4 sm:$0xff]  }
 0x4de   : > { %6899 = vmatpush1.bf16.msra.mxu0 %v17855_v18  ;;  %6981 = vmatpush1.bf16.msra.mxu1 %v17858_v19  ;;  %v17917_v18 = vld [vmem:[%s25211_s29 + $0x44] ss:$16 sps:$4 sm:$0xff]   ;;  %v17920_v19 = vld [vmem:[%s25211_s29 + $0x4c] ss:$16 sps:$4 sm:$0xff]  }
 0x4df   : > { %6900 = vmatprep.subr.bf16.mxu0 %v17863_v22  ;;  %6982 = vmatprep.subr.bf16.mxu1 %v17866_v29  ;;  %v17915_v22 = vld [vmem:[%s25211_s29 + $0x40] ss:$16 sps:$4 sm:$0xff]   ;;  %v17918_v29 = vld [vmem:[%s25211_s29 + $0x48] ss:$16 sps:$4 sm:$0xff]  }
 0x4e2   : > { %6901 = vmatpush1.bf16.msra.mxu0 %v17861_v30  ;;  %6983 = vmatpush1.bf16.msra.mxu1 %v17864_v33  ;;  %v17923_v30 = vld [vmem:[%s25211_s29 + $0x64] ss:$16 sps:$4 sm:$0xff]   ;;  %v17926_v33 = vld [vmem:[%s25211_s29 + $0x6c] ss:$16 sps:$4 sm:$0xff]  }
 0x4e3   : > { %6902 = vmatprep.subr.bf16.mxu0 %v17869_v34  ;;  %6984 = vmatprep.subr.bf16.mxu1 %v17872_v35  ;;  %v17921_v34 = vld [vmem:[%s25211_s29 + $0x60] ss:$16 sps:$4 sm:$0xff]   ;;  %v17924_v35 = vld [vmem:[%s25211_s29 + $0x68] ss:$16 sps:$4 sm:$0xff]  }
 0x4e6   : > { %6903 = vmatpush1.bf16.msra.mxu0 %v17867_v36  ;;  %6985 = vmatpush1.bf16.msra.mxu1 %v17870_v37  ;;  %v17929_v36 = vld [vmem:[%s25211_s29 + $0x84] ss:$16 sps:$4 sm:$0xff]   ;;  %v17932_v37 = vld [vmem:[%s25211_s29 + $0x8c] ss:$16 sps:$4 sm:$0xff]  }
 0x4e7   : > { %6904 = vmatprep.subr.bf16.mxu0 %v17875_v38  ;;  %6986 = vmatprep.subr.bf16.mxu1 %v17878_v39  ;;  %v17927_v38 = vld [vmem:[%s25211_s29 + $0x80] ss:$16 sps:$4 sm:$0xff]   ;;  %v17930_v39 = vld [vmem:[%s25211_s29 + $0x88] ss:$16 sps:$4 sm:$0xff]  }
 0x4ea   : > { %6905 = vmatpush1.bf16.msra.mxu0 %v17873_v40  ;;  %6987 = vmatpush1.bf16.msra.mxu1 %v17876_v41  ;;  %v17935_v40 = vld [vmem:[%s25211_s29 + $0xa4] ss:$16 sps:$4 sm:$0xff]   ;;  %v17938_v41 = vld [vmem:[%s25211_s29 + $0xac] ss:$16 sps:$4 sm:$0xff]  }
 0x4eb   : > { %6906 = vmatprep.subr.bf16.mxu0 %v17881_v42  ;;  %6988 = vmatprep.subr.bf16.mxu1 %v17884_v16  ;;  %v17933_v42 = vld [vmem:[%s25211_s29 + $0xa0] ss:$16 sps:$4 sm:$0xff]   ;;  %v17936_v16 = vld [vmem:[%s25211_s29 + $0xa8] ss:$16 sps:$4 sm:$0xff]  }
 0x4ee   : > { %6907 = vmatpush1.bf16.msra.mxu0 %v17879_v43  ;;  %6989 = vmatpush1.bf16.msra.mxu1 %v17882_v57  ;;  %v17941_v43 = vld [vmem:[%s25211_s29 + $0xc4] ss:$16 sps:$4 sm:$0xff]   ;;  %v17944_v57 = vld [vmem:[%s25211_s29 + $0xcc] ss:$16 sps:$4 sm:$0xff]  }
 0x4ef   : > { %6908 = vmatprep.subr.bf16.mxu0 %v17887_v44  ;;  %6990 = vmatprep.subr.bf16.mxu1 %v17890_v28  ;;  %v17939_v44 = vld [vmem:[%s25211_s29 + $0xc0] ss:$16 sps:$4 sm:$0xff]   ;;  %v17942_v28 = vld [vmem:[%s25211_s29 + $0xc8] ss:$16 sps:$4 sm:$0xff]  }
 0x4f0   : > { %v5969_v46 = vpop.f32.mrb[20].mxu0 }
 0x4f1   : > { %v5970_v47 = vadd.f32 %v5969_v46, %v21935_v12  ;;  %v6010_v48 = vpop.f32.mrb[20].mxu1  ;;  %v5971_v56 = vpop.f32.mrb[21].mxu0  ;;  %v17894_v12 = vld [vmem:[%s25208_s5 + $0x3c8] ss:$16 sps:$4 sm:$0xff]   ;;  %v17953_v46 = vld [vmem:[%s25211_s29 + $0x104] ss:$16 sps:$4 sm:$0xff]  }
 0x4f2   : > { %v5972_v50 = vadd.f32 %v5971_v56, %v21937_v15  ;;  %v6012_v51 = vpop.f32.mrb[21].mxu1  ;;  %v5973_v53 = vpop.f32.mrb[22].mxu0  ;;  %6909 = vmatpush1.bf16.msra.mxu0 %v17885_v45  ;;  %6991 = vmatpush1.bf16.msra.mxu1 %v17888_v31  ;;  %v17899_v15 = vld [vmem:[%s25208_s5 + $0x3e4] ss:$16 sps:$4 sm:$0xff]   ;;  %v17950_v31 = vld [vmem:[%s25211_s29 + $0xec] ss:$16 sps:$4 sm:$0xff]  }
 0x4f3   : > { %v6011_v24 = vadd.f32 %v6010_v48, %v5970_v47  ;;  %v6014_v55 = vpop.f32.mrb[22].mxu1  ;;  %v5974_v25 = vpop.f32.mrb[23].mxu0  ;;  %6910 = vmatprep.subr.bf16.mxu0 %v17893_v32  ;;  %6992 = vmatprep.subr.bf16.mxu1 %v17896_v17  ;;  %v17947_v45 = vld [vmem:[%s25211_s29 + $0xe4] ss:$16 sps:$4 sm:$0xff]   ;;  %v17945_v32 = vld [vmem:[%s25211_s29 + $0xe0] ss:$16 sps:$4 sm:$0xff]  }
 0x4f4   : > { %v6013_v58 = vadd.f32 %v6012_v51, %v5972_v50  ;;  %v6015_v59 = vpop.f32.mrb[23].mxu1  ;;  %v17948_v17 = vld [vmem:[%s25211_s29 + $0xe8] ss:$16 sps:$4 sm:$0xff]   ;;  %v17956_v47 = vld [vmem:[%s25211_s29 + $0x10c] ss:$16 sps:$4 sm:$0xff]   ;;  %s14218_s5 = scalar_lea.sflag [#allocation4], %s758_s3 }
 0x4f5   : > { %v6041_v60 = vadd.f32 %v6030_v49, %v6011_v24  ;;  %v17951_v48 = vld [vmem:[%s25211_s29 + $0x100] ss:$16 sps:$4 sm:$0xff]   ;;  %v17954_v49 = vld [vmem:[%s25211_s29 + $0x108] ss:$16 sps:$4 sm:$0xff]   ;;  %v17959_v56 = vld [vmem:[%s25211_s29 + $0x124] ss:$16 sps:$4 sm:$0xff]  }
 0x4f6   : > { %v6042_v63 = vadd.f32 %v6034_v52, %v6013_v58  ;;  %6911 = vmatpush1.bf16.msra.mxu0 %v17891_v54  ;;  %6993 = vmatpush1.bf16.msra.mxu1 %v17894_v12  ;;  %v17962_v50 = vld [vmem:[%s25211_s29 + $0x12c] ss:$16 sps:$4 sm:$0xff]   ;;  %v17957_v51 = vld [vmem:[%s25211_s29 + $0x120] ss:$16 sps:$4 sm:$0xff]   ;;  %v17960_v52 = vld [vmem:[%s25211_s29 + $0x128] ss:$16 sps:$4 sm:$0xff]  }
 0x4f7   : > { %v6045_v2 = vmax.f32 %v6041_v60, 0.0  ;;  %6912 = vmatprep.subr.bf16.mxu0 %v17899_v15  ;;  %6994 = vmatprep.subr.bf16.mxu1 %v17902_v27  ;;  %v17965_v53 = vld [vmem:[%s25211_s29 + $0x144] ss:$16 sps:$4 sm:$0xff]   ;;  %v17968_v54 = vld [vmem:[%s25211_s29 + $0x14c] ss:$16 sps:$4 sm:$0xff]  }
 0x4f8   : > { %v6046_v5 = vmax.f32 %v6042_v63, 0.0  ;;  %v17963_v12 = vld [vmem:[%s25211_s29 + $0x140] ss:$16 sps:$4 sm:$0xff]   ;;  %v17966_v24 = vld [vmem:[%s25211_s29 + $0x148] ss:$16 sps:$4 sm:$0xff]  }
 0x4f9   : > { %v6049_v9 = vpack.c.bf16 %v6045_v2, %v6045_v2  ;;  %v17971_v55 = vld [vmem:[%s25211_s29 + $0x164] ss:$16 sps:$4 sm:$0xff]   ;;  %v17974_v25 = vld [vmem:[%s25211_s29 + $0x16c] ss:$16 sps:$4 sm:$0xff]   ;;  %v17969_v15 = vld [vmem:[%s25211_s29 + $0x160] ss:$16 sps:$4 sm:$0xff]  }
 0x4fa   : > { %v6050_v6 = vpack.c.bf16 %v6046_v5, %v6046_v5  ;;  %6913 = vmatpush1.bf16.msra.mxu0 %v17897_v20  ;;  %6995 = vmatpush1.bf16.msra.mxu1 %v17900_v23  ;;  %v17972_v27 = vld [vmem:[%s25211_s29 + $0x168] ss:$16 sps:$4 sm:$0xff]   ;;  %v17977_v58 = vld [vmem:[%s25211_s29 + $0x184] ss:$16 sps:$4 sm:$0xff]   ;;  %v17980_v59 = vld [vmem:[%s25211_s29 + $0x18c] ss:$16 sps:$4 sm:$0xff]  }
 0x4fb   : > { %7803 = vmatprep.subr.bf16.mxu0 %v17905_v3  ;;  %7885 = vmatprep.subr.bf16.mxu1 %v17908_v4  ;;  %v17975_v60 = vld [vmem:[%s25211_s29 + $0x180] ss:$16 sps:$4 sm:$0xff]   ;;  %v17978_v63 = vld [vmem:[%s25211_s29 + $0x188] ss:$16 sps:$4 sm:$0xff]   ;;  %v17983_v20 = vld [vmem:[%s25211_s29 + $0x1a4] ss:$16 sps:$4 sm:$0xff]  }
 0x4fc   : > { %6914 = vmatprep.mubr.bf16.mxu0 %v6050_v6  ;;  %6996 = vmatprep.mubr.bf16.mxu1 %v6050_v6  ;;  %v17986_v23 = vld [vmem:[%s25211_s29 + $0x1ac] ss:$16 sps:$4 sm:$0xff]   ;;  %v17981_v2 = vld [vmem:[%s25211_s29 + $0x1a0] ss:$16 sps:$4 sm:$0xff]   ;;  %v17984_v3 = vld [vmem:[%s25211_s29 + $0x1a8] ss:$16 sps:$4 sm:$0xff]  }
 0x4fd   : > { %6915 = vmatmul.mubr.bf16.vlgmr.msra.gmra.mrb[24].mxu0 %v6049_v9  ;;  %6997 = vmatmul.mubr.bf16.vlgmr.msra.gmra.mrb[24].mxu1 %v6049_v9  ;;  %v17989_v4 = vld [vmem:[%s25211_s29 + $0x1c4] ss:$16 sps:$4 sm:$0xff]   ;;  %v17992_v5 = vld [vmem:[%s25211_s29 + $0x1cc] ss:$16 sps:$4 sm:$0xff]   ;;  %v17987_v6 = vld [vmem:[%s25211_s29 + $0x1c0] ss:$16 sps:$4 sm:$0xff]  }
 0x4fe   : > { %7804 = vmatpush1.bf16.msra.mxu0 %v17903_v7  ;;  %7886 = vmatpush1.bf16.msra.mxu1 %v17906_v8  ;;  %v17990_v7 = vld [vmem:[%s25211_s29 + $0x1c8] ss:$16 sps:$4 sm:$0xff]   ;;  %v17995_v8 = vld [vmem:[%s25211_s29 + $0x1e4] ss:$16 sps:$4 sm:$0xff]   ;;  %v17998_v9 = vld [vmem:[%s25211_s29 + $0x1ec] ss:$16 sps:$4 sm:$0xff]  }
 0x4ff   : > { %7805 = vmatprep.subr.bf16.mxu0 %v17911_v10  ;;  %7887 = vmatprep.subr.bf16.mxu1 %v17914_v11  ;;  %v17993_v10 = vld [vmem:[%s25211_s29 + $0x1e0] ss:$16 sps:$4 sm:$0xff]   ;;  %v17996_v11 = vld [vmem:[%s25211_s29 + $0x1e8] ss:$16 sps:$4 sm:$0xff]  }
 0x502   : > { %7806 = vmatpush1.bf16.msra.mxu0 %v17909_v13  ;;  %7888 = vmatpush1.bf16.msra.mxu1 %v17912_v14  ;;  %v18001_v13 = vld [vmem:[%s25211_s29 + $0x204] ss:$16 sps:$4 sm:$0xff]   ;;  %v18004_v14 = vld [vmem:[%s25211_s29 + $0x20c] ss:$16 sps:$4 sm:$0xff]  }
 0x503   : > { %7807 = vmatprep.subr.bf16.mxu0 %v17917_v18  ;;  %7889 = vmatprep.subr.bf16.mxu1 %v17920_v19  ;;  %v22343_v18 = vld [vmem:[%s25212_s27] sm:$0xf]  ;;  %s14234_s27 = sshll.u32 %s759_s8, 4  ;;  %s25100_s27 = int_to_ptr.vmem [resolvable:$true] %s14234_s27 }
 0x504   : > { %v6184_v19 = vrot.slane %v22343_v18, %v19933_v0  ;;  %s19315_s0 = scalar_lea.vmem %s25100_s27, 16 }
 0x505   : > { %p19316_p11 = scmp.ne.s32.totalorder %s25100_s27, %s19315_s0 }
 0x506   : > { %7808 = vmatpush1.bf16.msra.mxu0 %v17915_v22  ;;  %7890 = vmatpush1.bf16.msra.mxu1 %v17918_v29  ;;  %v6188_v22 = vrot.slane %v22343_v18, %v19936_v1  ;;  %v6196_v29 = vrot.slane %v22343_v18, %v19957_v26 }
 0x507   : > { %7809 = vmatprep.subr.bf16.mxu0 %v17923_v30  ;;  %7891 = vmatprep.subr.bf16.mxu1 %v17926_v33  ;;  %p19317_p12 = pnand %p19316_p11, %p19552_p5 }
 0x509   : > { %p19318_p13 = pneg %p19317_p12 }
 0x50a   : > { %7810 = vmatpush1.bf16.msra.mxu0 %v17921_v34  ;;  %7892 = vmatpush1.bf16.msra.mxu1 %v17924_v35 }
 0x50b   : > { %7811 = vmatprep.subr.bf16.mxu0 %v17929_v36  ;;  %7893 = vmatprep.subr.bf16.mxu1 %v17932_v37 }
 0x50e   : > { %7812 = vmatpush1.bf16.msra.mxu0 %v17927_v38  ;;  %7894 = vmatpush1.bf16.msra.mxu1 %v17930_v39 }
 0x50f   : > { %7813 = vmatprep.subr.bf16.mxu0 %v17935_v40  ;;  %7895 = vmatprep.subr.bf16.mxu1 %v17938_v41 }
 0x512   : > { %7814 = vmatpush1.bf16.msra.mxu0 %v17933_v42  ;;  %7896 = vmatpush1.bf16.msra.mxu1 %v17936_v16 }
 0x513   : > { %7815 = vmatprep.subr.bf16.mxu0 %v17941_v43  ;;  %7897 = vmatprep.subr.bf16.mxu1 %v17944_v57 }
 0x516   : > { %7816 = vmatpush1.bf16.msra.mxu0 %v17939_v44  ;;  %7898 = vmatpush1.bf16.msra.mxu1 %v17942_v28  ;;  %v17999_v28 = vld [vmem:[%s25211_s29 + $0x200] ss:$16 sps:$4 sm:$0xff]  }
 0x517   : > { %7817 = vmatprep.subr.bf16.mxu0 %v17947_v45  ;;  %7899 = vmatprep.subr.bf16.mxu1 %v17950_v31  ;;  %v18002_v45 = vld [vmem:[%s25211_s29 + $0x208] ss:$16 sps:$4 sm:$0xff]  }
 0x51a   : > { %7818 = vmatpush1.bf16.msra.mxu0 %v17945_v32  ;;  %7900 = vmatpush1.bf16.msra.mxu1 %v17948_v17  ;;  %v18007_v32 = vld [vmem:[%s25211_s29 + $0x224] ss:$16 sps:$4 sm:$0xff]   ;;  %v18010_v17 = vld [vmem:[%s25211_s29 + $0x22c] ss:$16 sps:$4 sm:$0xff]  }
 0x51b   : > { %7819 = vmatprep.subr.bf16.mxu0 %v17953_v46  ;;  %7901 = vmatprep.subr.bf16.mxu1 %v17956_v47  ;;  %v18005_v47 = vld [vmem:[%s25211_s29 + $0x220] ss:$16 sps:$4 sm:$0xff]  }
 0x51e   : > { %7820 = vmatpush1.bf16.msra.mxu0 %v17951_v48  ;;  %7902 = vmatpush1.bf16.msra.mxu1 %v17954_v49  ;;  %v18008_v48 = vld [vmem:[%s25211_s29 + $0x228] ss:$16 sps:$4 sm:$0xff]   ;;  %v18013_v49 = vld [vmem:[%s25211_s29 + $0x244] ss:$16 sps:$4 sm:$0xff]  }
 0x51f   : > { %7821 = vmatprep.subr.bf16.mxu0 %v17959_v56  ;;  %7903 = vmatprep.subr.bf16.mxu1 %v17962_v50  ;;  %v18016_v56 = vld [vmem:[%s25211_s29 + $0x24c] ss:$16 sps:$4 sm:$0xff]   ;;  %v18011_v50 = vld [vmem:[%s25211_s29 + $0x240] ss:$16 sps:$4 sm:$0xff]  }
 0x522   : > { %7822 = vmatpush1.bf16.msra.mxu0 %v17957_v51  ;;  %7904 = vmatpush1.bf16.msra.mxu1 %v17960_v52  ;;  %v18014_v51 = vld [vmem:[%s25211_s29 + $0x248] ss:$16 sps:$4 sm:$0xff]   ;;  %v18019_v52 = vld [vmem:[%s25211_s29 + $0x264] ss:$16 sps:$4 sm:$0xff]  }
 0x523   : > { %7823 = vmatprep.subr.bf16.mxu0 %v17965_v53  ;;  %7905 = vmatprep.subr.bf16.mxu1 %v17968_v54  ;;  %v18022_v53 = vld [vmem:[%s25211_s29 + $0x26c] ss:$16 sps:$4 sm:$0xff]   ;;  %v18017_v54 = vld [vmem:[%s25211_s29 + $0x260] ss:$16 sps:$4 sm:$0xff]  }
 0x526   : > { %7824 = vmatpush1.bf16.msra.mxu0 %v17963_v12  ;;  %7906 = vmatpush1.bf16.msra.mxu1 %v17966_v24  ;;  %v18020_v12 = vld [vmem:[%s25211_s29 + $0x268] ss:$16 sps:$4 sm:$0xff]   ;;  %v18025_v24 = vld [vmem:[%s25211_s29 + $0x284] ss:$16 sps:$4 sm:$0xff]  }
 0x527   : > { %7825 = vmatprep.subr.bf16.mxu0 %v17971_v55  ;;  %7907 = vmatprep.subr.bf16.mxu1 %v17974_v25  ;;  %v18028_v55 = vld [vmem:[%s25211_s29 + $0x28c] ss:$16 sps:$4 sm:$0xff]   ;;  %v18023_v25 = vld [vmem:[%s25211_s29 + $0x280] ss:$16 sps:$4 sm:$0xff]  }
 0x52a   : > { %7826 = vmatpush1.bf16.msra.mxu0 %v17969_v15  ;;  %7908 = vmatpush1.bf16.msra.mxu1 %v17972_v27  ;;  %v18026_v15 = vld [vmem:[%s25211_s29 + $0x288] ss:$16 sps:$4 sm:$0xff]   ;;  %v18031_v27 = vld [vmem:[%s25211_s29 + $0x2a4] ss:$16 sps:$4 sm:$0xff]  }
 0x52b   : > { %7827 = vmatprep.subr.bf16.mxu0 %v17977_v58  ;;  %7909 = vmatprep.subr.bf16.mxu1 %v17980_v59  ;;  %v18034_v58 = vld [vmem:[%s25211_s29 + $0x2ac] ss:$16 sps:$4 sm:$0xff]   ;;  %v18029_v59 = vld [vmem:[%s25211_s29 + $0x2a0] ss:$16 sps:$4 sm:$0xff]  }
 0x52e   : > { %7828 = vmatpush1.bf16.msra.mxu0 %v17975_v60  ;;  %7910 = vmatpush1.bf16.msra.mxu1 %v17978_v63  ;;  %v18032_v60 = vld [vmem:[%s25211_s29 + $0x2a8] ss:$16 sps:$4 sm:$0xff]   ;;  %v18037_v63 = vld [vmem:[%s25211_s29 + $0x2c4] ss:$16 sps:$4 sm:$0xff]  }
 0x52f   : > { %7829 = vmatprep.subr.bf16.mxu0 %v17983_v20  ;;  %7911 = vmatprep.subr.bf16.mxu1 %v17986_v23  ;;  %v18040_v20 = vld [vmem:[%s25211_s29 + $0x2cc] ss:$16 sps:$4 sm:$0xff]   ;;  %v18035_v23 = vld [vmem:[%s25211_s29 + $0x2c0] ss:$16 sps:$4 sm:$0xff]  }
 0x532   : > { %7830 = vmatpush1.bf16.msra.mxu0 %v17981_v2  ;;  %7912 = vmatpush1.bf16.msra.mxu1 %v17984_v3  ;;  %v18038_v2 = vld [vmem:[%s25211_s29 + $0x2c8] ss:$16 sps:$4 sm:$0xff]   ;;  %v18043_v3 = vld [vmem:[%s25211_s29 + $0x2e4] ss:$16 sps:$4 sm:$0xff]  }
 0x533   : > { %7831 = vmatprep.subr.bf16.mxu0 %v17989_v4  ;;  %7913 = vmatprep.subr.bf16.mxu1 %v17992_v5  ;;  %v18046_v4 = vld [vmem:[%s25211_s29 + $0x2ec] ss:$16 sps:$4 sm:$0xff]   ;;  %v18041_v5 = vld [vmem:[%s25211_s29 + $0x2e0] ss:$16 sps:$4 sm:$0xff]  }
 0x536   : > { %7832 = vmatpush1.bf16.msra.mxu0 %v17987_v6  ;;  %7914 = vmatpush1.bf16.msra.mxu1 %v17990_v7  ;;  %v18044_v6 = vld [vmem:[%s25211_s29 + $0x2e8] ss:$16 sps:$4 sm:$0xff]   ;;  %v18049_v7 = vld [vmem:[%s25211_s29 + $0x304] ss:$16 sps:$4 sm:$0xff]  }
 0x537   : > { %7833 = vmatprep.subr.bf16.mxu0 %v17995_v8  ;;  %7915 = vmatprep.subr.bf16.mxu1 %v17998_v9  ;;  %v18052_v8 = vld [vmem:[%s25211_s29 + $0x30c] ss:$16 sps:$4 sm:$0xff]   ;;  %v18047_v9 = vld [vmem:[%s25211_s29 + $0x300] ss:$16 sps:$4 sm:$0xff]  }
 0x53a   : > { %7834 = vmatpush1.bf16.msra.mxu0 %v17993_v10  ;;  %7916 = vmatpush1.bf16.msra.mxu1 %v17996_v11  ;;  %v18050_v10 = vld [vmem:[%s25211_s29 + $0x308] ss:$16 sps:$4 sm:$0xff]   ;;  %v18055_v11 = vld [vmem:[%s25211_s29 + $0x324] ss:$16 sps:$4 sm:$0xff]  }
 0x53b   : > { %7844 = vmatprep.subr.bf16.mxu0 %v18001_v13  ;;  %7926 = vmatprep.subr.bf16.mxu1 %v18004_v14  ;;  %v18058_v13 = vld [vmem:[%s25211_s29 + $0x32c] ss:$16 sps:$4 sm:$0xff]   ;;  %v18053_v14 = vld [vmem:[%s25211_s29 + $0x320] ss:$16 sps:$4 sm:$0xff]  }
 0x5d0   : > { %v6916_v30 = vpop.f32.mrb[24].mxu0  ;;  %v22351_v33 = vpop.f32.mrb[24].mxu1 }
 0x5d1   : > { %v16518_v34 = vadd.f32 %v6916_v30, %v6184_v19  ;;  %v6918_v35 = vpop.f32.mrb[25].mxu0  ;;  %v7000_v36 = vpop.f32.mrb[25].mxu1  ;;  %v18056_v19 = vld [vmem:[%s25211_s29 + $0x328] ss:$16 sps:$4 sm:$0xff]   ;;  %v18059_v30 = vld [vmem:[%s25211_s29 + $0x340] ss:$16 sps:$4 sm:$0xff]  }
 0x5d2   : > { %v16519_v37 = vadd.f32 %v6918_v35, %v6188_v22  ;;  %v16521_v38 = vadd.f32 %v7000_v36, %v6196_v29  ;;  %v6920_v39 = vpop.f32.mrb[26].mxu0  ;;  %v7002_v40 = vpop.f32.mrb[26].mxu1  ;;  %v18061_v22 = vld [vmem:[%s25211_s29 + $0x344] ss:$16 sps:$4 sm:$0xff]   ;;  %v18064_v29 = vld [vmem:[%s25211_s29 + $0x34c] ss:$16 sps:$4 sm:$0xff]  }
 0x5d3   : > { %v7005_v41 = vmax.f32 %v16518_v34, 0.0  ;;  %v6921_v42 = vpop.f32.mrb[27].mxu0  ;;  %v7003_v16 = vpop.f32.mrb[27].mxu1  ;;  %v18062_v34 = vld [vmem:[%s25211_s29 + $0x348] ss:$16 sps:$4 sm:$0xff]  }
 0x5d4   : > { %v7006_v43 = vmax.f32 %v16519_v37, 0.0  ;;  %v7008_v57 = vmax.f32 %v16521_v38, 0.0  ;;  %v18067_v35 = vld [vmem:[%s25211_s29 + $0x364] ss:$16 sps:$4 sm:$0xff]   ;;  %v18070_v36 = vld [vmem:[%s25211_s29 + $0x36c] ss:$16 sps:$4 sm:$0xff]  }
 0x5d5   : > { %v7009_v31 = vpack.c.bf16 %v7005_v41, %v7005_v41  ;;  %v18065_v37 = vld [vmem:[%s25211_s29 + $0x360] ss:$16 sps:$4 sm:$0xff]   ;;  %v18068_v38 = vld [vmem:[%s25211_s29 + $0x368] ss:$16 sps:$4 sm:$0xff]   ;;  %v18073_v39 = vld [vmem:[%s25211_s29 + $0x384] ss:$16 sps:$4 sm:$0xff]  }
 0x5d6   : > { %v7010_v44 = vpack.c.bf16 %v7006_v43, %v7006_v43  ;;  %v7012_v46 = vpack.c.bf16 %v7008_v57, %v7008_v57  ;;  %v18076_v40 = vld [vmem:[%s25211_s29 + $0x38c] ss:$16 sps:$4 sm:$0xff]   ;;  %v18071_v41 = vld [vmem:[%s25211_s29 + $0x380] ss:$16 sps:$4 sm:$0xff]   ;;  %v18074_v42 = vld [vmem:[%s25211_s29 + $0x388] ss:$16 sps:$4 sm:$0xff]  }
 0x5d7   : > { %v18079_v16 = vld [vmem:[%s25211_s29 + $0x3a4] ss:$16 sps:$4 sm:$0xff]   ;;  %v18082_v43 = vld [vmem:[%s25211_s29 + $0x3ac] ss:$16 sps:$4 sm:$0xff]   ;;  %v18077_v57 = vld [vmem:[%s25211_s29 + $0x3a0] ss:$16 sps:$4 sm:$0xff]  }
 0x5d8   : > { %7835 = vmatprep.mubr.bf16.mxu0 %v7010_v44  ;;  %7917 = vmatprep.mubr.bf16.mxu1 %v7010_v44  ;;  %v18080_v44 = vld [vmem:[%s25211_s29 + $0x3a8] ss:$16 sps:$4 sm:$0xff]  }
 0x5d9   : > { %7836 = vmatmul.mubr.bf16.vlgmr.msra.gmra.mrb[28].mxu0 %v7009_v31  ;;  %7918 = vmatmul.mubr.bf16.vlgmr.msra.gmra.mrb[28].mxu1 %v7009_v31  ;;  %v18088_v31 = vld [vmem:[%s25211_s29 + $0x3cc] ss:$16 sps:$4 sm:$0xff]  }
 0x5da   : > { %7845 = vmatpush1.bf16.msra.mxu0 %v17999_v28  ;;  %7927 = vmatpush1.bf16.msra.mxu1 %v18002_v45  ;;  %v6192_v28 = vrot.slane %v22343_v18, %v19947_v21  ;;  %v18085_v45 = vld [vmem:[%s25211_s29 + $0x3c4] ss:$16 sps:$4 sm:$0xff]   ;;  %v18086_v18 = vld [vmem:[%s25211_s29 + $0x3c8] ss:$16 sps:$4 sm:$0xff]  }
 0x5db   : > { %7876 = vmatprep.mubr.bf16.mxu0 %v7012_v46  ;;  %7958 = vmatprep.mubr.bf16.mxu1 %v7012_v46  ;;  %v18091_v46 = vld [vmem:[%s25211_s29 + $0x3e4] ss:$16 sps:$4 sm:$0xff]  }
 0x5dc   : > { %7846 = vmatprep.subr.bf16.mxu0 %v18007_v32  ;;  %7928 = vmatprep.subr.bf16.mxu1 %v18010_v17  ;;  %v18083_v32 = vld [vmem:[%s25211_s29 + $0x3c0] ss:$16 sps:$4 sm:$0xff]   ;;  %v16520_v17 = vadd.f32 %v22351_v33, %v6192_v28  ;;  %v18092_v33 = vld [vmem:[%s25211_s29 + $0x3e8] ss:$16 sps:$4 sm:$0xff]  }
 0x5dd   : > { %v18161_v28 = vld [vmem:[%s25151_s11 + $0x560] ss:$16 sps:$4 sm:$0xff]  }
 0x5de   : > { %7847 = vmatpush1.bf16.msra.mxu0 %v18005_v47  ;;  %7929 = vmatpush1.bf16.msra.mxu1 %v18008_v48  ;;  %v18094_v47 = vld [vmem:[%s25211_s29 + $0x3ec] ss:$16 sps:$4 sm:$0xff]   ;;  %v18089_v48 = vld [vmem:[%s25211_s29 + $0x3e0] ss:$16 sps:$4 sm:$0xff]  }
 0x5df   : > { %7848 = vmatprep.subr.bf16.mxu0 %v18013_v49  ;;  %7930 = vmatprep.subr.bf16.mxu1 %v18016_v56  ;;  %v7007_v49 = vmax.f32 %v16520_v17, 0.0  ;;  %v18097_v56 = vld [vmem:[%s25151_s11 + $0x404] ss:$16 sps:$4 sm:$0xff]   ;;  %v18170_v17 = vld [vmem:[%s25151_s11 + $0x780] ss:$16 sps:$4 sm:$0xff]  }
 0x5e2   : > { %7849 = vmatpush1.bf16.msra.mxu0 %v18011_v50  ;;  %7931 = vmatpush1.bf16.msra.mxu1 %v18014_v51  ;;  %v18100_v50 = vld [vmem:[%s25151_s11 + $0x604] ss:$16 sps:$4 sm:$0xff]   ;;  %v18095_v51 = vld [vmem:[%s25151_s11 + $0x400] ss:$16 sps:$4 sm:$0xff]  }
 0x5e3   : > { %7850 = vmatprep.subr.bf16.mxu0 %v18019_v52  ;;  %7932 = vmatprep.subr.bf16.mxu1 %v18022_v53  ;;  %v18098_v52 = vld [vmem:[%s25151_s11 + $0x600] ss:$16 sps:$4 sm:$0xff]   ;;  %v7011_v53 = vpack.c.bf16 %v7007_v49, %v7007_v49  ;;  %v18181_v49 = vld [vmem:[%s25151_s11 + $0x5c4] ss:$16 sps:$4 sm:$0xff]  }
 0x5e6   : > { %7851 = vmatpush1.bf16.msra.mxu0 %v18017_v54  ;;  %7933 = vmatpush1.bf16.msra.mxu1 %v18020_v12  ;;  %v18103_v54 = vld [vmem:[%s25151_s11 + $0x424] ss:$16 sps:$4 sm:$0xff]  }
 0x5e7   : > { %7852 = vmatprep.subr.bf16.mxu0 %v18025_v24  ;;  %7934 = vmatprep.subr.bf16.mxu1 %v18028_v55  ;;  %v18106_v12 = vld [vmem:[%s25151_s11 + $0x624] ss:$16 sps:$4 sm:$0xff]   ;;  %v18101_v24 = vld [vmem:[%s25151_s11 + $0x420] ss:$16 sps:$4 sm:$0xff]  }
 0x5e8   : > { %v18104_v55 = vld [vmem:[%s25151_s11 + $0x620] ss:$16 sps:$4 sm:$0xff]  }
 0x5ea   : > { %7853 = vmatpush1.bf16.msra.mxu0 %v18023_v25  ;;  %7935 = vmatpush1.bf16.msra.mxu1 %v18026_v15  ;;  %v18109_v25 = vld [vmem:[%s25151_s11 + $0x444] ss:$16 sps:$4 sm:$0xff]  }
 0x5eb   : > { %7854 = vmatprep.subr.bf16.mxu0 %v18031_v27  ;;  %7936 = vmatprep.subr.bf16.mxu1 %v18034_v58  ;;  %v18112_v15 = vld [vmem:[%s25151_s11 + $0x644] ss:$16 sps:$4 sm:$0xff]   ;;  %v18107_v27 = vld [vmem:[%s25151_s11 + $0x440] ss:$16 sps:$4 sm:$0xff]  }
 0x5ec   : > { %v18110_v58 = vld [vmem:[%s25151_s11 + $0x640] ss:$16 sps:$4 sm:$0xff]  }
 0x5ee   : > { %7855 = vmatpush1.bf16.msra.mxu0 %v18029_v59  ;;  %7937 = vmatpush1.bf16.msra.mxu1 %v18032_v60  ;;  %v18115_v59 = vld [vmem:[%s25151_s11 + $0x464] ss:$16 sps:$4 sm:$0xff]  }
 0x5ef   : > { %7856 = vmatprep.subr.bf16.mxu0 %v18037_v63  ;;  %7938 = vmatprep.subr.bf16.mxu1 %v18040_v20  ;;  %v18118_v60 = vld [vmem:[%s25151_s11 + $0x664] ss:$16 sps:$4 sm:$0xff]   ;;  %v18113_v63 = vld [vmem:[%s25151_s11 + $0x460] ss:$16 sps:$4 sm:$0xff]  }
 0x5f0   : > { %v18116_v20 = vld [vmem:[%s25151_s11 + $0x660] ss:$16 sps:$4 sm:$0xff]  }
 0x5f2   : > { %7857 = vmatpush1.bf16.msra.mxu0 %v18035_v23  ;;  %7939 = vmatpush1.bf16.msra.mxu1 %v18038_v2  ;;  %v18121_v23 = vld [vmem:[%s25151_s11 + $0x484] ss:$16 sps:$4 sm:$0xff]  }
 0x5f3   : > { %7858 = vmatprep.subr.bf16.mxu0 %v18043_v3  ;;  %7940 = vmatprep.subr.bf16.mxu1 %v18046_v4  ;;  %v18124_v2 = vld [vmem:[%s25151_s11 + $0x684] ss:$16 sps:$4 sm:$0xff]   ;;  %v18119_v3 = vld [vmem:[%s25151_s11 + $0x480] ss:$16 sps:$4 sm:$0xff]  }
 0x5f4   : > { %v18122_v4 = vld [vmem:[%s25151_s11 + $0x680] ss:$16 sps:$4 sm:$0xff]  }
 0x5f6   : > { %7859 = vmatpush1.bf16.msra.mxu0 %v18041_v5  ;;  %7941 = vmatpush1.bf16.msra.mxu1 %v18044_v6  ;;  %v18127_v5 = vld [vmem:[%s25151_s11 + $0x4a4] ss:$16 sps:$4 sm:$0xff]  }
 0x5f7   : > { %7860 = vmatprep.subr.bf16.mxu0 %v18049_v7  ;;  %7942 = vmatprep.subr.bf16.mxu1 %v18052_v8  ;;  %v18130_v6 = vld [vmem:[%s25151_s11 + $0x6a4] ss:$16 sps:$4 sm:$0xff]   ;;  %v18125_v7 = vld [vmem:[%s25151_s11 + $0x4a0] ss:$16 sps:$4 sm:$0xff]  }
 0x5f8   : > { %v18128_v8 = vld [vmem:[%s25151_s11 + $0x6a0] ss:$16 sps:$4 sm:$0xff]  }
 0x5fa   : > { %7861 = vmatpush1.bf16.msra.mxu0 %v18047_v9  ;;  %7943 = vmatpush1.bf16.msra.mxu1 %v18050_v10  ;;  %v18133_v9 = vld [vmem:[%s25151_s11 + $0x4c4] ss:$16 sps:$4 sm:$0xff]  }
 0x5fb   : > { %7862 = vmatprep.subr.bf16.mxu0 %v18055_v11  ;;  %7944 = vmatprep.subr.bf16.mxu1 %v18058_v13  ;;  %v18136_v10 = vld [vmem:[%s25151_s11 + $0x6c4] ss:$16 sps:$4 sm:$0xff]   ;;  %v18131_v11 = vld [vmem:[%s25151_s11 + $0x4c0] ss:$16 sps:$4 sm:$0xff]  }
 0x5fc   : > { %v18134_v13 = vld [vmem:[%s25151_s11 + $0x6c0] ss:$16 sps:$4 sm:$0xff]  }
 0x5fe   : > { %7863 = vmatpush1.bf16.msra.mxu0 %v18053_v14  ;;  %7945 = vmatpush1.bf16.msra.mxu1 %v18056_v19  ;;  %v18139_v14 = vld [vmem:[%s25151_s11 + $0x4e4] ss:$16 sps:$4 sm:$0xff]  }
 0x5ff   : > { %7864 = vmatprep.subr.bf16.mxu0 %v18061_v22  ;;  %7946 = vmatprep.subr.bf16.mxu1 %v18064_v29  ;;  %v18142_v19 = vld [vmem:[%s25151_s11 + $0x6e4] ss:$16 sps:$4 sm:$0xff]   ;;  %v18137_v22 = vld [vmem:[%s25151_s11 + $0x4e0] ss:$16 sps:$4 sm:$0xff]  }
 0x600   : > { %v18140_v29 = vld [vmem:[%s25151_s11 + $0x6e0] ss:$16 sps:$4 sm:$0xff]  }
 0x602   : > { %7865 = vmatpush1.bf16.msra.mxu0 %v18059_v30  ;;  %7947 = vmatpush1.bf16.msra.mxu1 %v18062_v34  ;;  %v18145_v30 = vld [vmem:[%s25151_s11 + $0x504] ss:$16 sps:$4 sm:$0xff]  }
 0x603   : > { %7866 = vmatprep.subr.bf16.mxu0 %v18067_v35  ;;  %7948 = vmatprep.subr.bf16.mxu1 %v18070_v36  ;;  %v18148_v34 = vld [vmem:[%s25151_s11 + $0x704] ss:$16 sps:$4 sm:$0xff]   ;;  %v18143_v35 = vld [vmem:[%s25151_s11 + $0x500] ss:$16 sps:$4 sm:$0xff]  }
 0x604   : > { %v18146_v36 = vld [vmem:[%s25151_s11 + $0x700] ss:$16 sps:$4 sm:$0xff]  }
 0x606   : > { %7867 = vmatpush1.bf16.msra.mxu0 %v18065_v37  ;;  %7949 = vmatpush1.bf16.msra.mxu1 %v18068_v38  ;;  %v18151_v37 = vld [vmem:[%s25151_s11 + $0x524] ss:$16 sps:$4 sm:$0xff]  }
 0x607   : > { %7868 = vmatprep.subr.bf16.mxu0 %v18073_v39  ;;  %7950 = vmatprep.subr.bf16.mxu1 %v18076_v40  ;;  %v18154_v38 = vld [vmem:[%s25151_s11 + $0x724] ss:$16 sps:$4 sm:$0xff]   ;;  %v18149_v39 = vld [vmem:[%s25151_s11 + $0x520] ss:$16 sps:$4 sm:$0xff]  }
 0x608   : > { %v18152_v40 = vld [vmem:[%s25151_s11 + $0x720] ss:$16 sps:$4 sm:$0xff]  }
 0x60a   : > { %7869 = vmatpush1.bf16.msra.mxu0 %v18071_v41  ;;  %7951 = vmatpush1.bf16.msra.mxu1 %v18074_v42  ;;  %v18157_v41 = vld [vmem:[%s25151_s11 + $0x544] ss:$16 sps:$4 sm:$0xff]  }
 0x60b   : > { %7870 = vmatprep.subr.bf16.mxu0 %v18079_v16  ;;  %7952 = vmatprep.subr.bf16.mxu1 %v18082_v43  ;;  %v18160_v42 = vld [vmem:[%s25151_s11 + $0x744] ss:$16 sps:$4 sm:$0xff]   ;;  %v18155_v16 = vld [vmem:[%s25151_s11 + $0x540] ss:$16 sps:$4 sm:$0xff]  }
 0x60c   : > { %v18158_v43 = vld [vmem:[%s25151_s11 + $0x740] ss:$16 sps:$4 sm:$0xff]  }
 0x60e   : > { %7871 = vmatpush1.bf16.msra.mxu0 %v18077_v57  ;;  %7953 = vmatpush1.bf16.msra.mxu1 %v18080_v44  ;;  %v18163_v57 = vld [vmem:[%s25151_s11 + $0x564] ss:$16 sps:$4 sm:$0xff]  }
 0x60f   : > { %7872 = vmatprep.subr.bf16.mxu0 %v18085_v45  ;;  %7954 = vmatprep.subr.bf16.mxu1 %v18088_v31  ;;  %v18166_v44 = vld [vmem:[%s25151_s11 + $0x764] ss:$16 sps:$4 sm:$0xff]   ;;  %v18164_v45 = vld [vmem:[%s25151_s11 + $0x760] ss:$16 sps:$4 sm:$0xff]  }
 0x610   : > { %v18169_v31 = vld [vmem:[%s25151_s11 + $0x584] ss:$16 sps:$4 sm:$0xff]  }
 0x612   : > { %7873 = vmatpush1.bf16.msra.mxu0 %v18083_v32  ;;  %7955 = vmatpush1.bf16.msra.mxu1 %v18086_v18  ;;  %v18172_v32 = vld [vmem:[%s25151_s11 + $0x784] ss:$16 sps:$4 sm:$0xff]   ;;  %v18167_v18 = vld [vmem:[%s25151_s11 + $0x580] ss:$16 sps:$4 sm:$0xff]  }
 0x613   : > { %7874 = vmatprep.subr.bf16.mxu0 %v18091_v46  ;;  %7956 = vmatprep.subr.bf16.mxu1 %v18094_v47  ;;  %v18175_v46 = vld [vmem:[%s25151_s11 + $0x5a4] ss:$16 sps:$4 sm:$0xff]  }
 0x614   : > { %v18178_v47 = vld [vmem:[%s25151_s11 + $0x7a4] ss:$16 sps:$4 sm:$0xff]  }
 0x616   : > { %7875 = vmatpush1.bf16.msra.mxu0 %v18089_v48  ;;  %7957 = vmatpush1.bf16.msra.mxu1 %v18092_v33  ;;  %v18173_v48 = vld [vmem:[%s25151_s11 + $0x5a0] ss:$16 sps:$4 sm:$0xff]  }
 0x617   : > { %8941 = vmatprep.subr.bf16.mxu0 %v18097_v56  ;;  %8982 = vmatprep.subr.bf16.mxu1 %v18100_v50  ;;  %v18176_v33 = vld [vmem:[%s25151_s11 + $0x7a0] ss:$16 sps:$4 sm:$0xff]  }
 0x618   : > { %v18179_v56 = vld [vmem:[%s25151_s11 + $0x5c0] ss:$16 sps:$4 sm:$0xff]  }
 0x619   : > { %7877 = vmatmul.mubr.bf16.vlgmr.msra.gmra.mrb[28].mxu0 %v7011_v53  ;;  %7959 = vmatmul.mubr.bf16.vlgmr.msra.gmra.mrb[28].mxu1 %v7011_v53  ;;  %v18182_v50 = vld [vmem:[%s25151_s11 + $0x7c0] ss:$16 sps:$4 sm:$0xff]   ;;  %v18190_v53 = vld [vmem:[%s25151_s11 + $0x7e4] ss:$16 sps:$4 sm:$0xff]  }
 0x61a   : > { %8942 = vmatpush1.bf16.msra.mxu0 %v18095_v51  ;;  %8983 = vmatpush1.bf16.msra.mxu1 %v18098_v52  ;;  %v18184_v51 = vld [vmem:[%s25151_s11 + $0x7c4] ss:$16 sps:$4 sm:$0xff]  }
 0x61b   : > { %8943 = vmatprep.subr.bf16.mxu0 %v18103_v54  ;;  %8984 = vmatprep.subr.bf16.mxu1 %v18106_v12  ;;  %v18187_v52 = vld [vmem:[%s25151_s11 + $0x5e4] ss:$16 sps:$4 sm:$0xff]   ;;  %v18185_v54 = vld [vmem:[%s25151_s11 + $0x5e0] ss:$16 sps:$4 sm:$0xff]  }
 0x61c   : > { %v18188_v12 = vld [vmem:[%s25151_s11 + $0x7e0] ss:$16 sps:$4 sm:$0xff]  }
 0x61e   : > { %8944 = vmatpush1.bf16.msra.mxu0 %v18101_v24  ;;  %8985 = vmatpush1.bf16.msra.mxu1 %v18104_v55  ;;  %v18193_v24 = vld [vmem:[%s25151_s11 + $0x40c] ss:$16 sps:$4 sm:$0xff]  }
 0x61f   : > { %8945 = vmatprep.subr.bf16.mxu0 %v18109_v25  ;;  %8986 = vmatprep.subr.bf16.mxu1 %v18112_v15  ;;  %v18196_v55 = vld [vmem:[%s25151_s11 + $0x60c] ss:$16 sps:$4 sm:$0xff]   ;;  %v7141_v25 = vld [vmem:[%s25213_s10] sm:$0xf] }
 0x620   : > { %v7146_v15 = vrot.slane %v7141_v25, %v19933_v0 }
 0x622   : > { %8946 = vmatpush1.bf16.msra.mxu0 %v18107_v27  ;;  %8987 = vmatpush1.bf16.msra.mxu1 %v18110_v58  ;;  %v7154_v27 = vrot.slane %v7141_v25, %v19947_v21  ;;  %v7150_v58 = vrot.slane %v7141_v25, %v19936_v1 }
 0x623   : > { %8947 = vmatprep.subr.bf16.mxu0 %v18115_v59  ;;  %8988 = vmatprep.subr.bf16.mxu1 %v18118_v60  ;;  %v7158_v59 = vrot.slane %v7141_v25, %v19957_v26 }
 0x626   : > { %8948 = vmatpush1.bf16.msra.mxu0 %v18113_v63  ;;  %8989 = vmatpush1.bf16.msra.mxu1 %v18116_v20 }
 0x627   : > { %8949 = vmatprep.subr.bf16.mxu0 %v18121_v23  ;;  %8990 = vmatprep.subr.bf16.mxu1 %v18124_v2 }
 0x62a   : > { %8950 = vmatpush1.bf16.msra.mxu0 %v18119_v3  ;;  %8991 = vmatpush1.bf16.msra.mxu1 %v18122_v4 }
 0x62b   : > { %8951 = vmatprep.subr.bf16.mxu0 %v18127_v5  ;;  %8992 = vmatprep.subr.bf16.mxu1 %v18130_v6 }
 0x62e   : > { %8952 = vmatpush1.bf16.msra.mxu0 %v18125_v7  ;;  %8993 = vmatpush1.bf16.msra.mxu1 %v18128_v8 }
 0x62f   : > { %8953 = vmatprep.subr.bf16.mxu0 %v18133_v9  ;;  %8994 = vmatprep.subr.bf16.mxu1 %v18136_v10 }
 0x632   : > { %8954 = vmatpush1.bf16.msra.mxu0 %v18131_v11  ;;  %8995 = vmatpush1.bf16.msra.mxu1 %v18134_v13 }
 0x633   : > { %8955 = vmatprep.subr.bf16.mxu0 %v18139_v14  ;;  %8996 = vmatprep.subr.bf16.mxu1 %v18142_v19 }
 0x636   : > { %8956 = vmatpush1.bf16.msra.mxu0 %v18137_v22  ;;  %8997 = vmatpush1.bf16.msra.mxu1 %v18140_v29 }
 0x637   : > { %8957 = vmatprep.subr.bf16.mxu0 %v18145_v30  ;;  %8998 = vmatprep.subr.bf16.mxu1 %v18148_v34 }
 0x63a   : > { %8958 = vmatpush1.bf16.msra.mxu0 %v18143_v35  ;;  %8999 = vmatpush1.bf16.msra.mxu1 %v18146_v36 }
 0x63b   : > { %8959 = vmatprep.subr.bf16.mxu0 %v18151_v37  ;;  %9000 = vmatprep.subr.bf16.mxu1 %v18154_v38 }
 0x63e   : > { %8960 = vmatpush1.bf16.msra.mxu0 %v18149_v39  ;;  %9001 = vmatpush1.bf16.msra.mxu1 %v18152_v40 }
 0x63f   : > { %8961 = vmatprep.subr.bf16.mxu0 %v18157_v41  ;;  %9002 = vmatprep.subr.bf16.mxu1 %v18160_v42 }
 0x642   : > { %8962 = vmatpush1.bf16.msra.mxu0 %v18155_v16  ;;  %9003 = vmatpush1.bf16.msra.mxu1 %v18158_v43 }
 0x643   : > { %8963 = vmatprep.subr.bf16.mxu0 %v18163_v57  ;;  %9004 = vmatprep.subr.bf16.mxu1 %v18166_v44 }
 0x646   : > { %8964 = vmatpush1.bf16.msra.mxu0 %v18161_v28  ;;  %9005 = vmatpush1.bf16.msra.mxu1 %v18164_v45 }
 0x647   : > { %8965 = vmatprep.subr.bf16.mxu0 %v18169_v31  ;;  %9006 = vmatprep.subr.bf16.mxu1 %v18172_v32 }
 0x64a   : > { %8966 = vmatpush1.bf16.msra.mxu0 %v18167_v18  ;;  %9007 = vmatpush1.bf16.msra.mxu1 %v18170_v17 }
 0x64b   : > { %8967 = vmatprep.subr.bf16.mxu0 %v18175_v46  ;;  %9008 = vmatprep.subr.bf16.mxu1 %v18178_v47 }
 0x64e   : > { %8968 = vmatpush1.bf16.msra.mxu0 %v18173_v48  ;;  %9009 = vmatpush1.bf16.msra.mxu1 %v18176_v33 }
 0x64f   : > { %8969 = vmatprep.subr.bf16.mxu0 %v18181_v49  ;;  %9010 = vmatprep.subr.bf16.mxu1 %v18184_v51 }
 0x652   : > { %8970 = vmatpush1.bf16.msra.mxu0 %v18179_v56  ;;  %9011 = vmatpush1.bf16.msra.mxu1 %v18182_v50 }
 0x653   : > { %8971 = vmatprep.subr.bf16.mxu0 %v18187_v52  ;;  %9012 = vmatprep.subr.bf16.mxu1 %v18190_v53 }
 0x656   : > { %8972 = vmatpush1.bf16.msra.mxu0 %v18185_v54  ;;  %9013 = vmatpush1.bf16.msra.mxu1 %v18188_v12 }
 0x657   : > { %9023 = vmatprep.subr.bf16.mxu0 %v18193_v24  ;;  %9064 = vmatprep.subr.bf16.mxu1 %v18196_v55 }
 0x6ec   : > { %v7878_v60 = vpop.f32.mrb[28].mxu0  ;;  %v7960_v63 = vpop.f32.mrb[28].mxu1 }
 0x6ed   : > { %v16522_v20 = vadd.f32 %v7878_v60, %v7146_v15  ;;  %v16524_v23 = vadd.f32 %v7960_v63, %v7154_v27  ;;  %v7880_v2 = vpop.f32.mrb[29].mxu0  ;;  %v7962_v3 = vpop.f32.mrb[29].mxu1 }
 0x6ee   : > { %v16523_v4 = vadd.f32 %v7880_v2, %v7150_v58  ;;  %v16525_v5 = vadd.f32 %v7962_v3, %v7158_v59  ;;  %v7882_v6 = vpop.f32.mrb[30].mxu0  ;;  %v7964_v7 = vpop.f32.mrb[30].mxu1 }
 0x6ef   : > { %v7967_v8 = vmax.f32 %v16522_v20, 0.0  ;;  %v7969_v9 = vmax.f32 %v16524_v23, 0.0  ;;  %v7883_v10 = vpop.f32.mrb[31].mxu0  ;;  %v7965_v11 = vpop.f32.mrb[31].mxu1 }
 0x6f0   : > { %v7968_v13 = vmax.f32 %v16523_v4, 0.0  ;;  %v7970_v14 = vmax.f32 %v16525_v5, 0.0 }
 0x6f1   : > { %v7971_v19 = vrot.slane %v7967_v8, 4  ;;  %v7983_v22 = vrot.slane %v7969_v9, 4 }
 0x6f2   : > { %v7977_v29 = vrot.slane %v7968_v13, 4  ;;  %v7989_v30 = vrot.slane %v7970_v14, 4 }
 0x6f3   : > { %v7972_v34 = vadd.f32 %v7971_v19, %v7967_v8  ;;  %v7984_v35 = vadd.f32 %v7983_v22, %v7969_v9 }
 0x6f4   : > { %v7978_v36 = vadd.f32 %v7977_v29, %v7968_v13  ;;  %v7990_v37 = vadd.f32 %v7989_v30, %v7970_v14 }
 0x6f5   : > { %v7973_v38 = vrot.slane %v7972_v34, 2  ;;  %v7985_v39 = vrot.slane %v7984_v35, 2 }
 0x6f6   : > { %v7979_v40 = vrot.slane %v7978_v36, 2  ;;  %v7991_v41 = vrot.slane %v7990_v37, 2 }
 0x6f7   : > { %v7974_v42 = vadd.f32 %v7973_v38, %v7972_v34  ;;  %v7986_v16 = vadd.f32 %v7985_v39, %v7984_v35  ;;  %v18191_v38 = vld [vmem:[%s25151_s11 + $0x408] ss:$16 sps:$4 sm:$0xff]  }
 0x6f8   : > { %v7980_v43 = vadd.f32 %v7979_v40, %v7978_v36  ;;  %v7992_v57 = vadd.f32 %v7991_v41, %v7990_v37  ;;  %v18194_v39 = vld [vmem:[%s25151_s11 + $0x608] ss:$16 sps:$4 sm:$0xff]  }
 0x6f9   : > { %v7975_v44 = vrot.slane %v7974_v42, 1  ;;  %v7987_v28 = vrot.slane %v7986_v16, 1 }
 0x6fa   : > { %v7981_v45 = vrot.slane %v7980_v43, 1  ;;  %v7993_v31 = vrot.slane %v7992_v57, 1 }
 0x6fb   : > { %v7976_v32 = vadd.f32 %v7975_v44, %v7974_v42  ;;  %v7988_v18 = vadd.f32 %v7987_v28, %v7986_v16  ;;  %v18199_v42 = vld [vmem:[%s25151_s11 + $0x42c] ss:$16 sps:$4 sm:$0xff]  }
 0x6fc   : > { %v7982_v17 = vadd.f32 %v7981_v45, %v7980_v43  ;;  %v7994_v46 = vadd.f32 %v7993_v31, %v7992_v57  ;;  %v18202_v16 = vld [vmem:[%s25151_s11 + $0x62c] ss:$16 sps:$4 sm:$0xff]   ;;  %v18197_v43 = vld [vmem:[%s25151_s11 + $0x428] ss:$16 sps:$4 sm:$0xff]  }
 0x6fd   : > { %v22747_v47 = vmul.f32 0.125, %v7976_v32  ;;  %v22749_v48 = vmul.f32 0.125, %v7988_v18  ;;  %v18200_v57 = vld [vmem:[%s25151_s11 + $0x628] ss:$16 sps:$4 sm:$0xff]   ;;  %v18205_v44 = vld [vmem:[%s25151_s11 + $0x44c] ss:$16 sps:$4 sm:$0xff]  }
 0x6fe   : > { %v22751_v33 = vmul.f32 0.125, %v7982_v17  ;;  %v22753_v49 = vmul.f32 0.125, %v7994_v46  ;;  %v18208_v28 = vld [vmem:[%s25151_s11 + $0x64c] ss:$16 sps:$4 sm:$0xff]   ;;  %v18203_v45 = vld [vmem:[%s25151_s11 + $0x448] ss:$16 sps:$4 sm:$0xff]  }
 0x6ff   : > { %v8000_v56 = vsub.f32 %v7967_v8, %v22747_v47  ;;  %v8002_v50 = vsub.f32 %v7969_v9, %v22749_v48  ;;  %v18206_v31 = vld [vmem:[%s25151_s11 + $0x648] ss:$16 sps:$4 sm:$0xff]   ;;  %v18211_v32 = vld [vmem:[%s25151_s11 + $0x46c] ss:$16 sps:$4 sm:$0xff]  }
 0x700   : > { %v8001_v51 = vsub.f32 %v7968_v13, %v22751_v33  ;;  %v8003_v52 = vsub.f32 %v7970_v14, %v22753_v49  ;;  %v18214_v18 = vld [vmem:[%s25151_s11 + $0x66c] ss:$16 sps:$4 sm:$0xff]   ;;  %v18209_v17 = vld [vmem:[%s25151_s11 + $0x468] ss:$16 sps:$4 sm:$0xff]  }
 0x701   : > { %v8004_v53 = vmul.f32 %v8000_v56, %v8000_v56  ;;  %v8006_v54 = vmul.f32 %v8002_v50, %v8002_v50  ;;  %v18212_v46 = vld [vmem:[%s25151_s11 + $0x668] ss:$16 sps:$4 sm:$0xff]   ;;  %v18217_v56 = vld [vmem:[%s25151_s11 + $0x48c] ss:$16 sps:$4 sm:$0xff]  }
 0x702   : > { %v8005_v12 = vmul.f32 %v8001_v51, %v8001_v51  ;;  %v8007_v24 = vmul.f32 %v8003_v52, %v8003_v52  ;;  %v18220_v50 = vld [vmem:[%s25151_s11 + $0x68c] ss:$16 sps:$4 sm:$0xff]   ;;  %v18215_v51 = vld [vmem:[%s25151_s11 + $0x488] ss:$16 sps:$4 sm:$0xff]  }
 0x703   : > { %v8008_v55 = vrot.slane %v8004_v53, 4  ;;  %v8020_v25 = vrot.slane %v8006_v54, 4  ;;  %v18218_v52 = vld [vmem:[%s25151_s11 + $0x688] ss:$16 sps:$4 sm:$0xff]  }
 0x704   : > { %v8014_v15 = vrot.slane %v8005_v12, 4  ;;  %v8026_v27 = vrot.slane %v8007_v24, 4 }
 0x705   : > { %v8009_v58 = vadd.f32 %v8008_v55, %v8004_v53  ;;  %v8021_v59 = vadd.f32 %v8020_v25, %v8006_v54  ;;  %v18223_v53 = vld [vmem:[%s25151_s11 + $0x4ac] ss:$16 sps:$4 sm:$0xff]  }
 0x706   : > { %v8015_v60 = vadd.f32 %v8014_v15, %v8005_v12  ;;  %v8027_v63 = vadd.f32 %v8026_v27, %v8007_v24  ;;  %v18226_v54 = vld [vmem:[%s25151_s11 + $0x6ac] ss:$16 sps:$4 sm:$0xff]   ;;  %v18221_v12 = vld [vmem:[%s25151_s11 + $0x4a8] ss:$16 sps:$4 sm:$0xff]  }
 0x707   : > { %v8010_v20 = vrot.slane %v8009_v58, 2  ;;  %v8022_v23 = vrot.slane %v8021_v59, 2  ;;  %v18224_v24 = vld [vmem:[%s25151_s11 + $0x6a8] ss:$16 sps:$4 sm:$0xff]   ;;  %v18229_v55 = vld [vmem:[%s25151_s11 + $0x4cc] ss:$16 sps:$4 sm:$0xff]  }
 0x708   : > { %v8016_v2 = vrot.slane %v8015_v60, 2  ;;  %v8028_v3 = vrot.slane %v8027_v63, 2  ;;  %v18232_v25 = vld [vmem:[%s25151_s11 + $0x6cc] ss:$16 sps:$4 sm:$0xff]   ;;  %v18227_v15 = vld [vmem:[%s25151_s11 + $0x4c8] ss:$16 sps:$4 sm:$0xff]  }
 0x709   : > { %v8011_v4 = vadd.f32 %v8010_v20, %v8009_v58  ;;  %v8023_v5 = vadd.f32 %v8022_v23, %v8021_v59  ;;  %v18230_v27 = vld [vmem:[%s25151_s11 + $0x6c8] ss:$16 sps:$4 sm:$0xff]   ;;  %v18235_v58 = vld [vmem:[%s25151_s11 + $0x4ec] ss:$16 sps:$4 sm:$0xff]  }
 0x70a   : > { %v8017_v6 = vadd.f32 %v8016_v2, %v8015_v60  ;;  %v8029_v7 = vadd.f32 %v8028_v3, %v8027_v63  ;;  %v18238_v59 = vld [vmem:[%s25151_s11 + $0x6ec] ss:$16 sps:$4 sm:$0xff]   ;;  %v18233_v60 = vld [vmem:[%s25151_s11 + $0x4e8] ss:$16 sps:$4 sm:$0xff]  }
 0x70b   : > { %v8012_v8 = vrot.slane %v8011_v4, 1  ;;  %v8024_v9 = vrot.slane %v8023_v5, 1  ;;  %v18236_v63 = vld [vmem:[%s25151_s11 + $0x6e8] ss:$16 sps:$4 sm:$0xff]   ;;  %v18241_v20 = vld [vmem:[%s25151_s11 + $0x50c] ss:$16 sps:$4 sm:$0xff]  }
 0x70c   : > { %v8018_v10 = vrot.slane %v8017_v6, 1  ;;  %v8030_v11 = vrot.slane %v8029_v7, 1  ;;  %v18244_v23 = vld [vmem:[%s25151_s11 + $0x70c] ss:$16 sps:$4 sm:$0xff]   ;;  %v18239_v2 = vld [vmem:[%s25151_s11 + $0x508] ss:$16 sps:$4 sm:$0xff]  }
 0x70d   : > { %v8013_v13 = vadd.f32 %v8012_v8, %v8011_v4  ;;  %v8025_v14 = vadd.f32 %v8024_v9, %v8023_v5  ;;  %v18242_v3 = vld [vmem:[%s25151_s11 + $0x708] ss:$16 sps:$4 sm:$0xff]   ;;  %v18247_v4 = vld [vmem:[%s25151_s11 + $0x52c] ss:$16 sps:$4 sm:$0xff]  }
 0x70e   : > { %v8019_v19 = vadd.f32 %v8018_v10, %v8017_v6  ;;  %v8031_v22 = vadd.f32 %v8030_v11, %v8029_v7  ;;  %v18250_v5 = vld [vmem:[%s25151_s11 + $0x72c] ss:$16 sps:$4 sm:$0xff]   ;;  %v18245_v6 = vld [vmem:[%s25151_s11 + $0x528] ss:$16 sps:$4 sm:$0xff]  }
 0x70f   : > { %v8033_v29 = vmul.f32 0.14285715, %v8013_v13  ;;  %v8035_v30 = vmul.f32 0.14285715, %v8025_v14  ;;  %v18248_v7 = vld [vmem:[%s25151_s11 + $0x728] ss:$16 sps:$4 sm:$0xff]  }
 0x710   : > { %v8034_v34 = vmul.f32 0.14285715, %v8019_v19  ;;  %v8036_v35 = vmul.f32 0.14285715, %v8031_v22  ;;  %v18253_v8 = vld [vmem:[%s25151_s11 + $0x54c] ss:$16 sps:$4 sm:$0xff]  }
 0x711   : > { %v22765_v40 = vpack.c.bf16 %v8033_v29, %v8033_v29  ;;  %v22767_v41 = vpack.c.bf16 %v8035_v30, %v8035_v30  ;;  %v18256_v9 = vld [vmem:[%s25151_s11 + $0x74c] ss:$16 sps:$4 sm:$0xff]   ;;  %v18251_v10 = vld [vmem:[%s25151_s11 + $0x548] ss:$16 sps:$4 sm:$0xff]  }
 0x712   : > { %v8170_v36 = vpack.c.bf16 %v8034_v34, %v8034_v34  ;;  %v8172_v37 = vpack.c.bf16 %v8036_v35, %v8036_v35  ;;  %v18254_v11 = vld [vmem:[%s25151_s11 + $0x748] ss:$16 sps:$4 sm:$0xff]   ;;  %v18259_v13 = vld [vmem:[%s25151_s11 + $0x56c] ss:$16 sps:$4 sm:$0xff]  }
 0x713   : > { %v18262_v14 = vld [vmem:[%s25151_s11 + $0x76c] ss:$16 sps:$4 sm:$0xff]   ;;  %v18257_v19 = vld [vmem:[%s25151_s11 + $0x568] ss:$16 sps:$4 sm:$0xff]  }
 0x714   : > { %8973 = vmatprep.mubr.bf16.mxu0 %v8170_v36  ;;  %9014 = vmatprep.mubr.bf16.mxu1 %v8172_v37  ;;  %v18260_v22 = vld [vmem:[%s25151_s11 + $0x768] ss:$16 sps:$4 sm:$0xff]   ;;  %v18265_v29 = vld [vmem:[%s25151_s11 + $0x58c] ss:$16 sps:$4 sm:$0xff]  }
 0x715   : > { %8974 = vmatmul.mubr.bf16.vlgmr.msra.gmra.mrb[32].mxu0 %v22765_v40  ;;  %9015 = vmatmul.mubr.bf16.vlgmr.msra.gmra.mrb[32].mxu1 %v22767_v41  ;;  %v18268_v30 = vld [vmem:[%s25151_s11 + $0x78c] ss:$16 sps:$4 sm:$0xff]   ;;  %v18263_v34 = vld [vmem:[%s25151_s11 + $0x588] ss:$16 sps:$4 sm:$0xff]  }
 0x716   : > { %9024 = vmatpush1.bf16.msra.mxu0 %v18191_v38  ;;  %9065 = vmatpush1.bf16.msra.mxu1 %v18194_v39  ;;  %v18266_v35 = vld [vmem:[%s25151_s11 + $0x788] ss:$16 sps:$4 sm:$0xff]  }
 0x717   : > { %9055 = vmatprep.mubr.bf16.mxu0 %v8170_v36  ;;  %9096 = vmatprep.mubr.bf16.mxu1 %v8172_v37  ;;  %v18271_v36 = vld [vmem:[%s25151_s11 + $0x5ac] ss:$16 sps:$4 sm:$0xff]   ;;  %v18269_v38 = vld [vmem:[%s25151_s11 + $0x5a8] ss:$16 sps:$4 sm:$0xff]  }
 0x718   : > { %9025 = vmatprep.subr.bf16.mxu0 %v18199_v42  ;;  %9066 = vmatprep.subr.bf16.mxu1 %v18202_v16  ;;  %v18274_v37 = vld [vmem:[%s25151_s11 + $0x7ac] ss:$16 sps:$4 sm:$0xff]   ;;  %v18272_v39 = vld [vmem:[%s25151_s11 + $0x7a8] ss:$16 sps:$4 sm:$0xff]  }
 0x719   : > { %v18277_v42 = vld [vmem:[%s25151_s11 + $0x5cc] ss:$16 sps:$4 sm:$0xff]  }
 0x71a   : > { %9026 = vmatpush1.bf16.msra.mxu0 %v18197_v43  ;;  %9067 = vmatpush1.bf16.msra.mxu1 %v18200_v57  ;;  %v18280_v16 = vld [vmem:[%s25151_s11 + $0x7cc] ss:$16 sps:$4 sm:$0xff]   ;;  %v18275_v43 = vld [vmem:[%s25151_s11 + $0x5c8] ss:$16 sps:$4 sm:$0xff]  }
 0x71b   : > { %9027 = vmatprep.subr.bf16.mxu0 %v18205_v44  ;;  %9068 = vmatprep.subr.bf16.mxu1 %v18208_v28  ;;  %v18278_v57 = vld [vmem:[%s25151_s11 + $0x7c8] ss:$16 sps:$4 sm:$0xff]   ;;  %v18283_v44 = vld [vmem:[%s25151_s11 + $0x5ec] ss:$16 sps:$4 sm:$0xff]  }
 0x71c   : > { %v18286_v28 = vld [vmem:[%s25151_s11 + $0x7ec] ss:$16 sps:$4 sm:$0xff]  }
 0x71e   : > { %9028 = vmatpush1.bf16.msra.mxu0 %v18203_v45  ;;  %9069 = vmatpush1.bf16.msra.mxu1 %v18206_v31  ;;  %v18281_v45 = vld [vmem:[%s25151_s11 + $0x5e8] ss:$16 sps:$4 sm:$0xff]  }
 0x71f   : > { %9029 = vmatprep.subr.bf16.mxu0 %v18211_v32  ;;  %9070 = vmatprep.subr.bf16.mxu1 %v18214_v18  ;;  %v18284_v31 = vld [vmem:[%s25151_s11 + $0x7e8] ss:$16 sps:$4 sm:$0xff]   ;;  %v18289_v32 = vld [vmem:[%s25151_s11 + $0x4] ss:$16 sps:$4 sm:$0xff]  }
 0x720   : > { %v18292_v18 = vld [vmem:[%s25151_s11 + $0x204] ss:$16 sps:$4 sm:$0xff]  }
 0x722   : > { %9030 = vmatpush1.bf16.msra.mxu0 %v18209_v17  ;;  %9071 = vmatpush1.bf16.msra.mxu1 %v18212_v46  ;;  %v18287_v17 = vld [vmem:[%s25151_s11] ss:$16 sps:$4 sm:$0xff]  }
 0x723   : > { %9031 = vmatprep.subr.bf16.mxu0 %v18217_v56  ;;  %9072 = vmatprep.subr.bf16.mxu1 %v18220_v50  ;;  %v18290_v46 = vld [vmem:[%s25151_s11 + $0x200] ss:$16 sps:$4 sm:$0xff]   ;;  %v22965_v56 = vpack.c.bf16 %v22751_v33, %v22751_v33  ;;  %v18295_v50 = vld [vmem:[%s25151_s11 + $0x24] ss:$16 sps:$4 sm:$0xff]  }
 0x724   : > { %v18293_v33 = vld [vmem:[%s25151_s11 + $0x20] ss:$16 sps:$4 sm:$0xff]  }
 0x726   : > { %9032 = vmatpush1.bf16.msra.mxu0 %v18215_v51  ;;  %9073 = vmatpush1.bf16.msra.mxu1 %v18218_v52  ;;  %v18298_v51 = vld [vmem:[%s25151_s11 + $0x224] ss:$16 sps:$4 sm:$0xff]   ;;  %v22977_v52 = vpack.c.bf16 %v22753_v49, %v22753_v49 }
 0x727   : > { %9033 = vmatprep.subr.bf16.mxu0 %v18223_v53  ;;  %9074 = vmatprep.subr.bf16.mxu1 %v18226_v54  ;;  %v18304_v49 = vld [vmem:[%s25151_s11 + $0x244] ss:$16 sps:$4 sm:$0xff]   ;;  %v18299_v53 = vld [vmem:[%s25151_s11 + $0x40] ss:$16 sps:$4 sm:$0xff]  }
 0x728   : > { %v18302_v54 = vld [vmem:[%s25151_s11 + $0x240] ss:$16 sps:$4 sm:$0xff]  }
 0x72a   : > { %9034 = vmatpush1.bf16.msra.mxu0 %v18221_v12  ;;  %9075 = vmatpush1.bf16.msra.mxu1 %v18224_v24  ;;  %v18307_v12 = vld [vmem:[%s25151_s11 + $0x64] ss:$16 sps:$4 sm:$0xff]  }
 0x72b   : > { %9035 = vmatprep.subr.bf16.mxu0 %v18229_v55  ;;  %9076 = vmatprep.subr.bf16.mxu1 %v18232_v25  ;;  %v18310_v24 = vld [vmem:[%s25151_s11 + $0x264] ss:$16 sps:$4 sm:$0xff]   ;;  %v18305_v55 = vld [vmem:[%s25151_s11 + $0x60] ss:$16 sps:$4 sm:$0xff]  }
 0x72c   : > { %v18308_v25 = vld [vmem:[%s25151_s11 + $0x260] ss:$16 sps:$4 sm:$0xff]  }
 0x72e   : > { %9036 = vmatpush1.bf16.msra.mxu0 %v18227_v15  ;;  %9077 = vmatpush1.bf16.msra.mxu1 %v18230_v27  ;;  %v18313_v15 = vld [vmem:[%s25151_s11 + $0x84] ss:$16 sps:$4 sm:$0xff]  }
 0x72f   : > { %9037 = vmatprep.subr.bf16.mxu0 %v18235_v58  ;;  %9078 = vmatprep.subr.bf16.mxu1 %v18238_v59  ;;  %v18316_v27 = vld [vmem:[%s25151_s11 + $0x284] ss:$16 sps:$4 sm:$0xff]   ;;  %v18311_v58 = vld [vmem:[%s25151_s11 + $0x80] ss:$16 sps:$4 sm:$0xff]  }
 0x730   : > { %v18314_v59 = vld [vmem:[%s25151_s11 + $0x280] ss:$16 sps:$4 sm:$0xff]  }
 0x732   : > { %9038 = vmatpush1.bf16.msra.mxu0 %v18233_v60  ;;  %9079 = vmatpush1.bf16.msra.mxu1 %v18236_v63  ;;  %v18319_v60 = vld [vmem:[%s25151_s11 + $0xa4] ss:$16 sps:$4 sm:$0xff]  }
 0x733   : > { %9039 = vmatprep.subr.bf16.mxu0 %v18241_v20  ;;  %9080 = vmatprep.subr.bf16.mxu1 %v18244_v23  ;;  %v18322_v63 = vld [vmem:[%s25151_s11 + $0x2a4] ss:$16 sps:$4 sm:$0xff]   ;;  %v18317_v20 = vld [vmem:[%s25151_s11 + $0xa0] ss:$16 sps:$4 sm:$0xff]  }
 0x734   : > { %v18320_v23 = vld [vmem:[%s25151_s11 + $0x2a0] ss:$16 sps:$4 sm:$0xff]  }
 0x736   : > { %9040 = vmatpush1.bf16.msra.mxu0 %v18239_v2  ;;  %9081 = vmatpush1.bf16.msra.mxu1 %v18242_v3  ;;  %v18325_v2 = vld [vmem:[%s25151_s11 + $0xc4] ss:$16 sps:$4 sm:$0xff]  }
 0x737   : > { %9041 = vmatprep.subr.bf16.mxu0 %v18247_v4  ;;  %9082 = vmatprep.subr.bf16.mxu1 %v18250_v5  ;;  %v18328_v3 = vld [vmem:[%s25151_s11 + $0x2c4] ss:$16 sps:$4 sm:$0xff]   ;;  %v18323_v4 = vld [vmem:[%s25151_s11 + $0xc0] ss:$16 sps:$4 sm:$0xff]  }
 0x738   : > { %v18326_v5 = vld [vmem:[%s25151_s11 + $0x2c0] ss:$16 sps:$4 sm:$0xff]  }
 0x73a   : > { %9042 = vmatpush1.bf16.msra.mxu0 %v18245_v6  ;;  %9083 = vmatpush1.bf16.msra.mxu1 %v18248_v7  ;;  %v18331_v6 = vld [vmem:[%s25151_s11 + $0xe4] ss:$16 sps:$4 sm:$0xff]  }
 0x73b   : > { %9043 = vmatprep.subr.bf16.mxu0 %v18253_v8  ;;  %9084 = vmatprep.subr.bf16.mxu1 %v18256_v9  ;;  %v18334_v7 = vld [vmem:[%s25151_s11 + $0x2e4] ss:$16 sps:$4 sm:$0xff]   ;;  %v18329_v8 = vld [vmem:[%s25151_s11 + $0xe0] ss:$16 sps:$4 sm:$0xff]  }
 0x73c   : > { %v18332_v9 = vld [vmem:[%s25151_s11 + $0x2e0] ss:$16 sps:$4 sm:$0xff]  }
 0x73e   : > { %9044 = vmatpush1.bf16.msra.mxu0 %v18251_v10  ;;  %9085 = vmatpush1.bf16.msra.mxu1 %v18254_v11  ;;  %v18337_v10 = vld [vmem:[%s25151_s11 + $0x104] ss:$16 sps:$4 sm:$0xff]  }
 0x73f   : > { %9045 = vmatprep.subr.bf16.mxu0 %v18259_v13  ;;  %9086 = vmatprep.subr.bf16.mxu1 %v18262_v14  ;;  %v18340_v11 = vld [vmem:[%s25151_s11 + $0x304] ss:$16 sps:$4 sm:$0xff]   ;;  %v18335_v13 = vld [vmem:[%s25151_s11 + $0x100] ss:$16 sps:$4 sm:$0xff]  }
 0x740   : > { %v18338_v14 = vld [vmem:[%s25151_s11 + $0x300] ss:$16 sps:$4 sm:$0xff]  }
 0x742   : > { %9046 = vmatpush1.bf16.msra.mxu0 %v18257_v19  ;;  %9087 = vmatpush1.bf16.msra.mxu1 %v18260_v22  ;;  %v18343_v19 = vld [vmem:[%s25151_s11 + $0x124] ss:$16 sps:$4 sm:$0xff]  }
 0x743   : > { %9047 = vmatprep.subr.bf16.mxu0 %v18265_v29  ;;  %9088 = vmatprep.subr.bf16.mxu1 %v18268_v30  ;;  %v18346_v22 = vld [vmem:[%s25151_s11 + $0x324] ss:$16 sps:$4 sm:$0xff]   ;;  %v18341_v29 = vld [vmem:[%s25151_s11 + $0x120] ss:$16 sps:$4 sm:$0xff]  }
 0x744   : > { %v18344_v30 = vld [vmem:[%s25151_s11 + $0x320] ss:$16 sps:$4 sm:$0xff]  }
 0x746   : > { %9048 = vmatpush1.bf16.msra.mxu0 %v18263_v34  ;;  %9089 = vmatpush1.bf16.msra.mxu1 %v18266_v35  ;;  %v18349_v34 = vld [vmem:[%s25151_s11 + $0x144] ss:$16 sps:$4 sm:$0xff]  }
 0x747   : > { %9049 = vmatprep.subr.bf16.mxu0 %v18271_v36  ;;  %9090 = vmatprep.subr.bf16.mxu1 %v18274_v37  ;;  %v18352_v35 = vld [vmem:[%s25151_s11 + $0x344] ss:$16 sps:$4 sm:$0xff]   ;;  %v18347_v36 = vld [vmem:[%s25151_s11 + $0x140] ss:$16 sps:$4 sm:$0xff]  }
 0x748   : > { %v18350_v37 = vld [vmem:[%s25151_s11 + $0x340] ss:$16 sps:$4 sm:$0xff]  }
 0x74a   : > { %9050 = vmatpush1.bf16.msra.mxu0 %v18269_v38  ;;  %9091 = vmatpush1.bf16.msra.mxu1 %v18272_v39  ;;  %v18355_v38 = vld [vmem:[%s25151_s11 + $0x164] ss:$16 sps:$4 sm:$0xff]  }
 0x74b   : > { %9051 = vmatprep.subr.bf16.mxu0 %v18277_v42  ;;  %9092 = vmatprep.subr.bf16.mxu1 %v18280_v16  ;;  %v18358_v39 = vld [vmem:[%s25151_s11 + $0x364] ss:$16 sps:$4 sm:$0xff]   ;;  %v18353_v42 = vld [vmem:[%s25151_s11 + $0x160] ss:$16 sps:$4 sm:$0xff]  }
 0x74c   : > { %v18356_v16 = vld [vmem:[%s25151_s11 + $0x360] ss:$16 sps:$4 sm:$0xff]  }
 0x74e   : > { %9052 = vmatpush1.bf16.msra.mxu0 %v18275_v43  ;;  %9093 = vmatpush1.bf16.msra.mxu1 %v18278_v57  ;;  %v18361_v43 = vld [vmem:[%s25151_s11 + $0x184] ss:$16 sps:$4 sm:$0xff]  }
 0x74f   : > { %9053 = vmatprep.subr.bf16.mxu0 %v18283_v44  ;;  %9094 = vmatprep.subr.bf16.mxu1 %v18286_v28  ;;  %v18364_v57 = vld [vmem:[%s25151_s11 + $0x384] ss:$16 sps:$4 sm:$0xff]   ;;  %v18359_v44 = vld [vmem:[%s25151_s11 + $0x180] ss:$16 sps:$4 sm:$0xff]  }
 0x750   : > { %v18362_v28 = vld [vmem:[%s25151_s11 + $0x380] ss:$16 sps:$4 sm:$0xff]  }
 0x752   : > { %9054 = vmatpush1.bf16.msra.mxu0 %v18281_v45  ;;  %9095 = vmatpush1.bf16.msra.mxu1 %v18284_v31  ;;  %v18367_v45 = vld [vmem:[%s25151_s11 + $0x1a4] ss:$16 sps:$4 sm:$0xff]  }
 0x753   : > { %9745 = vmatprep.subr.bf16.mxu0 %v18289_v32  ;;  %9786 = vmatprep.subr.bf16.mxu1 %v18292_v18  ;;  %v18370_v31 = vld [vmem:[%s25151_s11 + $0x3a4] ss:$16 sps:$4 sm:$0xff]   ;;  %v18365_v32 = vld [vmem:[%s25151_s11 + $0x1a0] ss:$16 sps:$4 sm:$0xff]  }
 0x754   : > { %v18368_v18 = vld [vmem:[%s25151_s11 + $0x3a0] ss:$16 sps:$4 sm:$0xff]  }
 0x755   : > { %9056 = vmatmul.mubr.bf16.vlgmr.msra.gmra.mrb[36].mxu0 %v22765_v40  ;;  %9097 = vmatmul.mubr.bf16.vlgmr.msra.gmra.mrb[36].mxu1 %v22767_v41  ;;  %v18296_v40 = vld [vmem:[%s25151_s11 + $0x220] ss:$16 sps:$4 sm:$0xff]   ;;  %v18301_v41 = vld [vmem:[%s25151_s11 + $0x44] ss:$16 sps:$4 sm:$0xff]  }
 0x756   : > { %9746 = vmatpush1.bf16.msra.mxu0 %v18287_v17  ;;  %9777 = vmatprep.mubr.bf16.mxu0 %v22965_v56  ;;  %v18373_v17 = vld [vmem:[%s25151_s11 + $0x1c4] ss:$16 sps:$4 sm:$0xff]  }
 0x757   : > { %9787 = vmatpush1.bf16.msra.mxu1 %v18290_v46  ;;  %9818 = vmatprep.mubr.bf16.mxu1 %v22977_v52  ;;  %v18376_v46 = vld [vmem:[%s25151_s11 + $0x3c4] ss:$16 sps:$4 sm:$0xff]  }
 0x758   : > { %9747 = vmatprep.subr.bf16.mxu0 %v18295_v50  ;;  %9788 = vmatprep.subr.bf16.mxu1 %v18298_v51  ;;  %v18371_v50 = vld [vmem:[%s25151_s11 + $0x1c0] ss:$16 sps:$4 sm:$0xff]  }
 0x759   : > { %v18374_v51 = vld [vmem:[%s25151_s11 + $0x3c0] ss:$16 sps:$4 sm:$0xff]  }
 0x75a   : > { %9748 = vmatpush1.bf16.msra.mxu0 %v18293_v33  ;;  %v18379_v33 = vld [vmem:[%s25151_s11 + $0x1e4] ss:$16 sps:$4 sm:$0xff]  }
 0x75b   : > { %9789 = vmatpush1.bf16.msra.mxu1 %v18296_v40  ;;  %9749 = vmatprep.subr.bf16.mxu0 %v18301_v41  ;;  %v18382_v40 = vld [vmem:[%s25151_s11 + $0x3e4] ss:$16 sps:$4 sm:$0xff]   ;;  %v18377_v41 = vld [vmem:[%s25151_s11 + $0x1e0] ss:$16 sps:$4 sm:$0xff]  }
 0x75c   : > { %9790 = vmatprep.subr.bf16.mxu1 %v18304_v49  ;;  %v18380_v49 = vld [vmem:[%s25151_s11 + $0x3e0] ss:$16 sps:$4 sm:$0xff]  }
 0x75e   : > { %9750 = vmatpush1.bf16.msra.mxu0 %v18299_v53  ;;  %v18385_v53 = vld [vmem:[%s25151_s11 + $0xc] ss:$16 sps:$4 sm:$0xff]  }
 0x75f   : > { %9791 = vmatpush1.bf16.msra.mxu1 %v18302_v54  ;;  %9751 = vmatprep.subr.bf16.mxu0 %v18307_v12  ;;  %v18388_v54 = vld [vmem:[%s25151_s11 + $0x20c] ss:$16 sps:$4 sm:$0xff]   ;;  %v18383_v12 = vld [vmem:[%s25151_s11 + $0x8] ss:$16 sps:$4 sm:$0xff]  }
 0x760   : > { %9792 = vmatprep.subr.bf16.mxu1 %v18310_v24  ;;  %v23166_v24 = vpack.c.bf16 %v22747_v47, %v22747_v47  ;;  %v18394_v47 = vld [vmem:[%s25151_s11 + $0x22c] ss:$16 sps:$4 sm:$0xff]  }
 0x762   : > { %9752 = vmatpush1.bf16.msra.mxu0 %v18305_v55  ;;  %v18386_v55 = vld [vmem:[%s25151_s11 + $0x208] ss:$16 sps:$4 sm:$0xff]  }
 0x763   : > { %9793 = vmatpush1.bf16.msra.mxu1 %v18308_v25  ;;  %9753 = vmatprep.subr.bf16.mxu0 %v18313_v15  ;;  %v23173_v25 = vpack.c.bf16 %v22749_v48, %v22749_v48  ;;  %v18391_v15 = vld [vmem:[%s25151_s11 + $0x2c] ss:$16 sps:$4 sm:$0xff]   ;;  %v18392_v48 = vld [vmem:[%s25151_s11 + $0x228] ss:$16 sps:$4 sm:$0xff]  }
 0x764   : > { %9794 = vmatprep.subr.bf16.mxu1 %v18316_v27  ;;  %v18389_v27 = vld [vmem:[%s25151_s11 + $0x28] ss:$16 sps:$4 sm:$0xff]  }
 0x766   : > { %9754 = vmatpush1.bf16.msra.mxu0 %v18311_v58  ;;  %v18397_v58 = vld [vmem:[%s25151_s11 + $0x4c] ss:$16 sps:$4 sm:$0xff]  }
 0x767   : > { %9795 = vmatpush1.bf16.msra.mxu1 %v18314_v59  ;;  %9755 = vmatprep.subr.bf16.mxu0 %v18319_v60  ;;  %v18400_v59 = vld [vmem:[%s25151_s11 + $0x24c] ss:$16 sps:$4 sm:$0xff]   ;;  %v18398_v60 = vld [vmem:[%s25151_s11 + $0x248] ss:$16 sps:$4 sm:$0xff]  }
 0x768   : > { %9796 = vmatprep.subr.bf16.mxu1 %v18322_v63  ;;  %v18406_v63 = vld [vmem:[%s25151_s11 + $0x26c] ss:$16 sps:$4 sm:$0xff]  }
 0x76a   : > { %9756 = vmatpush1.bf16.msra.mxu0 %v18317_v20  ;;  %v18401_v20 = vld [vmem:[%s25151_s11 + $0x68] ss:$16 sps:$4 sm:$0xff]  }
 0x76b   : > { %9797 = vmatpush1.bf16.msra.mxu1 %v18320_v23  ;;  %9757 = vmatprep.subr.bf16.mxu0 %v18325_v2  ;;  %v18404_v23 = vld [vmem:[%s25151_s11 + $0x268] ss:$16 sps:$4 sm:$0xff]   ;;  %v18409_v2 = vld [vmem:[%s25151_s11 + $0x8c] ss:$16 sps:$4 sm:$0xff]  }
 0x76c   : > { %9798 = vmatprep.subr.bf16.mxu1 %v18328_v3  ;;  %v18412_v3 = vld [vmem:[%s25151_s11 + $0x28c] ss:$16 sps:$4 sm:$0xff]  }
 0x76e   : > { %9758 = vmatpush1.bf16.msra.mxu0 %v18323_v4  ;;  %v18407_v4 = vld [vmem:[%s25151_s11 + $0x88] ss:$16 sps:$4 sm:$0xff]  }
 0x76f   : > { %9799 = vmatpush1.bf16.msra.mxu1 %v18326_v5  ;;  %9759 = vmatprep.subr.bf16.mxu0 %v18331_v6  ;;  %v18410_v5 = vld [vmem:[%s25151_s11 + $0x288] ss:$16 sps:$4 sm:$0xff]   ;;  %v18415_v6 = vld [vmem:[%s25151_s11 + $0xac] ss:$16 sps:$4 sm:$0xff]  }
 0x770   : > { %9800 = vmatprep.subr.bf16.mxu1 %v18334_v7  ;;  %v18418_v7 = vld [vmem:[%s25151_s11 + $0x2ac] ss:$16 sps:$4 sm:$0xff]  }
 0x772   : > { %9760 = vmatpush1.bf16.msra.mxu0 %v18329_v8  ;;  %v18413_v8 = vld [vmem:[%s25151_s11 + $0xa8] ss:$16 sps:$4 sm:$0xff]  }
 0x773   : > { %9801 = vmatpush1.bf16.msra.mxu1 %v18332_v9  ;;  %9761 = vmatprep.subr.bf16.mxu0 %v18337_v10  ;;  %v18416_v9 = vld [vmem:[%s25151_s11 + $0x2a8] ss:$16 sps:$4 sm:$0xff]   ;;  %v18421_v10 = vld [vmem:[%s25151_s11 + $0xcc] ss:$16 sps:$4 sm:$0xff]  }
 0x774   : > { %9802 = vmatprep.subr.bf16.mxu1 %v18340_v11  ;;  %v18424_v11 = vld [vmem:[%s25151_s11 + $0x2cc] ss:$16 sps:$4 sm:$0xff]  }
 0x776   : > { %9762 = vmatpush1.bf16.msra.mxu0 %v18335_v13  ;;  %v18419_v13 = vld [vmem:[%s25151_s11 + $0xc8] ss:$16 sps:$4 sm:$0xff]  }
 0x777   : > { %9803 = vmatpush1.bf16.msra.mxu1 %v18338_v14  ;;  %9763 = vmatprep.subr.bf16.mxu0 %v18343_v19  ;;  %v18422_v14 = vld [vmem:[%s25151_s11 + $0x2c8] ss:$16 sps:$4 sm:$0xff]   ;;  %v18427_v19 = vld [vmem:[%s25151_s11 + $0xec] ss:$16 sps:$4 sm:$0xff]  }
 0x778   : > { %9804 = vmatprep.subr.bf16.mxu1 %v18346_v22  ;;  %v18430_v22 = vld [vmem:[%s25151_s11 + $0x2ec] ss:$16 sps:$4 sm:$0xff]  }
 0x77a   : > { %9764 = vmatpush1.bf16.msra.mxu0 %v18341_v29  ;;  %v18425_v29 = vld [vmem:[%s25151_s11 + $0xe8] ss:$16 sps:$4 sm:$0xff]  }
 0x77b   : > { %9805 = vmatpush1.bf16.msra.mxu1 %v18344_v30  ;;  %9765 = vmatprep.subr.bf16.mxu0 %v18349_v34  ;;  %v18428_v30 = vld [vmem:[%s25151_s11 + $0x2e8] ss:$16 sps:$4 sm:$0xff]   ;;  %v18433_v34 = vld [vmem:[%s25151_s11 + $0x10c] ss:$16 sps:$4 sm:$0xff]  }
 0x77c   : > { %9806 = vmatprep.subr.bf16.mxu1 %v18352_v35  ;;  %v18436_v35 = vld [vmem:[%s25151_s11 + $0x30c] ss:$16 sps:$4 sm:$0xff]  }
 0x77e   : > { %9766 = vmatpush1.bf16.msra.mxu0 %v18347_v36  ;;  %v18431_v36 = vld [vmem:[%s25151_s11 + $0x108] ss:$16 sps:$4 sm:$0xff]  }
 0x77f   : > { %9807 = vmatpush1.bf16.msra.mxu1 %v18350_v37  ;;  %9767 = vmatprep.subr.bf16.mxu0 %v18355_v38  ;;  %v18434_v37 = vld [vmem:[%s25151_s11 + $0x308] ss:$16 sps:$4 sm:$0xff]   ;;  %v18439_v38 = vld [vmem:[%s25151_s11 + $0x12c] ss:$16 sps:$4 sm:$0xff]  }
 0x780   : > { %9808 = vmatprep.subr.bf16.mxu1 %v18358_v39  ;;  %v18442_v39 = vld [vmem:[%s25151_s11 + $0x32c] ss:$16 sps:$4 sm:$0xff]  }
 0x782   : > { %9768 = vmatpush1.bf16.msra.mxu0 %v18353_v42  ;;  %v18437_v42 = vld [vmem:[%s25151_s11 + $0x128] ss:$16 sps:$4 sm:$0xff]  }
 0x783   : > { %9809 = vmatpush1.bf16.msra.mxu1 %v18356_v16  ;;  %9769 = vmatprep.subr.bf16.mxu0 %v18361_v43  ;;  %v18440_v16 = vld [vmem:[%s25151_s11 + $0x328] ss:$16 sps:$4 sm:$0xff]   ;;  %v18445_v43 = vld [vmem:[%s25151_s11 + $0x14c] ss:$16 sps:$4 sm:$0xff]  }
 0x784   : > { %9810 = vmatprep.subr.bf16.mxu1 %v18364_v57  ;;  %v18448_v57 = vld [vmem:[%s25151_s11 + $0x34c] ss:$16 sps:$4 sm:$0xff]  }
 0x786   : > { %9770 = vmatpush1.bf16.msra.mxu0 %v18359_v44  ;;  %v18443_v44 = vld [vmem:[%s25151_s11 + $0x148] ss:$16 sps:$4 sm:$0xff]  }
 0x787   : > { %9811 = vmatpush1.bf16.msra.mxu1 %v18362_v28  ;;  %9771 = vmatprep.subr.bf16.mxu0 %v18367_v45  ;;  %v18446_v28 = vld [vmem:[%s25151_s11 + $0x348] ss:$16 sps:$4 sm:$0xff]   ;;  %v18451_v45 = vld [vmem:[%s25151_s11 + $0x16c] ss:$16 sps:$4 sm:$0xff]  }
 0x788   : > { %9812 = vmatprep.subr.bf16.mxu1 %v18370_v31  ;;  %v18454_v31 = vld [vmem:[%s25151_s11 + $0x36c] ss:$16 sps:$4 sm:$0xff]  }
 0x78a   : > { %9772 = vmatpush1.bf16.msra.mxu0 %v18365_v32  ;;  %v18449_v32 = vld [vmem:[%s25151_s11 + $0x168] ss:$16 sps:$4 sm:$0xff]  }
 0x78b   : > { %9813 = vmatpush1.bf16.msra.mxu1 %v18368_v18  ;;  %9773 = vmatprep.subr.bf16.mxu0 %v18373_v17  ;;  %v18452_v18 = vld [vmem:[%s25151_s11 + $0x368] ss:$16 sps:$4 sm:$0xff]   ;;  %v18457_v17 = vld [vmem:[%s25151_s11 + $0x18c] ss:$16 sps:$4 sm:$0xff]  }
 0x78c   : > { %9814 = vmatprep.subr.bf16.mxu1 %v18376_v46  ;;  %v18460_v46 = vld [vmem:[%s25151_s11 + $0x38c] ss:$16 sps:$4 sm:$0xff]  }
 0x78e   : > { %9774 = vmatpush1.bf16.msra.mxu0 %v18371_v50  ;;  %v18455_v50 = vld [vmem:[%s25151_s11 + $0x188] ss:$16 sps:$4 sm:$0xff]  }
 0x78f   : > { %9815 = vmatpush1.bf16.msra.mxu1 %v18374_v51  ;;  %9775 = vmatprep.subr.bf16.mxu0 %v18379_v33  ;;  %v18458_v51 = vld [vmem:[%s25151_s11 + $0x388] ss:$16 sps:$4 sm:$0xff]   ;;  %v18463_v33 = vld [vmem:[%s25151_s11 + $0x1ac] ss:$16 sps:$4 sm:$0xff]  }
 0x790   : > { %9816 = vmatprep.subr.bf16.mxu1 %v18382_v40  ;;  %v18466_v40 = vld [vmem:[%s25151_s11 + $0x3ac] ss:$16 sps:$4 sm:$0xff]  }
 0x792   : > { %9776 = vmatpush1.bf16.msra.mxu0 %v18377_v41  ;;  %v18461_v41 = vld [vmem:[%s25151_s11 + $0x1a8] ss:$16 sps:$4 sm:$0xff]  }
 0x793   : > { %9817 = vmatpush1.bf16.msra.mxu1 %v18380_v49  ;;  %9827 = vmatprep.subr.bf16.mxu0 %v18385_v53  ;;  %v18464_v49 = vld [vmem:[%s25151_s11 + $0x3a8] ss:$16 sps:$4 sm:$0xff]   ;;  %v18469_v53 = vld [vmem:[%s25151_s11 + $0x1cc] ss:$16 sps:$4 sm:$0xff]  }
 0x794   : > { %9868 = vmatprep.subr.bf16.mxu1 %v18388_v54  ;;  %v18472_v54 = vld [vmem:[%s25151_s11 + $0x3cc] ss:$16 sps:$4 sm:$0xff]  }
 0x795   : > { %9778 = vmatmul.mubr.bf16.vlgmr.msra.gmra.mrb[40].mxu0 %v23166_v24 }
 0x796   : > { %9819 = vmatmul.mubr.bf16.vlgmr.msra.gmra.mrb[40].mxu1 %v23173_v25  ;;  %9828 = vmatpush1.bf16.msra.mxu0 %v18383_v12  ;;  %v18467_v12 = vld [vmem:[%s25151_s11 + $0x1c8] ss:$16 sps:$4 sm:$0xff]  }
 0x797   : > { %9859 = vmatprep.mubr.bf16.mxu0 %v22965_v56  ;;  %9869 = vmatpush1.bf16.msra.mxu1 %v18386_v55  ;;  %v18395_v56 = vld [vmem:[%s25151_s11 + $0x48] ss:$16 sps:$4 sm:$0xff]  }
 0x798   : > { %9900 = vmatprep.mubr.bf16.mxu1 %v22977_v52  ;;  %9829 = vmatprep.subr.bf16.mxu0 %v18391_v15  ;;  %v18403_v52 = vld [vmem:[%s25151_s11 + $0x6c] ss:$16 sps:$4 sm:$0xff]   ;;  %v18470_v55 = vld [vmem:[%s25151_s11 + $0x3c8] ss:$16 sps:$4 sm:$0xff]  }
 0x799   : > { %9870 = vmatprep.subr.bf16.mxu1 %v18394_v47  ;;  %v18475_v15 = vld [vmem:[%s25151_s11 + $0x1ec] ss:$16 sps:$4 sm:$0xff]  }
 0x79a   : > { %9830 = vmatpush1.bf16.msra.mxu0 %v18389_v27  ;;  %v18478_v47 = vld [vmem:[%s25151_s11 + $0x3ec] ss:$16 sps:$4 sm:$0xff]   ;;  %v18473_v27 = vld [vmem:[%s25151_s11 + $0x1e8] ss:$16 sps:$4 sm:$0xff]  }
 0x79b   : > { %9871 = vmatpush1.bf16.msra.mxu1 %v18392_v48  ;;  %9831 = vmatprep.subr.bf16.mxu0 %v18397_v58  ;;  %v18476_v48 = vld [vmem:[%s25151_s11 + $0x3e8] ss:$16 sps:$4 sm:$0xff]   ;;  %v18481_v58 = vld [vmem:[%s25153_s13 + $0x4] ss:$16 sps:$4 sm:$0xff]  }
 0x79c   : > { %9872 = vmatprep.subr.bf16.mxu1 %v18400_v59  ;;  %v18484_v59 = vld [vmem:[%s25153_s13 + $0xc] ss:$16 sps:$4 sm:$0xff]  }
 0x79e   : > { %9832 = vmatpush1.bf16.msra.mxu0 %v18395_v56  ;;  %v18479_v56 = vld [vmem:[%s25153_s13] ss:$16 sps:$4 sm:$0xff]  }
 0x79f   : > { %9873 = vmatpush1.bf16.msra.mxu1 %v18398_v60  ;;  %9833 = vmatprep.subr.bf16.mxu0 %v18403_v52  ;;  %v18482_v60 = vld [vmem:[%s25153_s13 + $0x8] ss:$16 sps:$4 sm:$0xff]   ;;  %v18487_v52 = vld [vmem:[%s25153_s13 + $0x24] ss:$16 sps:$4 sm:$0xff]  }
 0x7a0   : > { %9874 = vmatprep.subr.bf16.mxu1 %v18406_v63  ;;  %v18490_v63 = vld [vmem:[%s25153_s13 + $0x2c] ss:$16 sps:$4 sm:$0xff]  }
 0x7a2   : > { %9834 = vmatpush1.bf16.msra.mxu0 %v18401_v20  ;;  %v18485_v20 = vld [vmem:[%s25153_s13 + $0x20] ss:$16 sps:$4 sm:$0xff]  }
 0x7a3   : > { %9875 = vmatpush1.bf16.msra.mxu1 %v18404_v23  ;;  %9835 = vmatprep.subr.bf16.mxu0 %v18409_v2  ;;  %v18488_v23 = vld [vmem:[%s25153_s13 + $0x28] ss:$16 sps:$4 sm:$0xff]   ;;  %v18493_v2 = vld [vmem:[%s25153_s13 + $0x44] ss:$16 sps:$4 sm:$0xff]  }
 0x7a4   : > { %9876 = vmatprep.subr.bf16.mxu1 %v18412_v3  ;;  %v18494_v3 = vld [vmem:[%s25153_s13 + $0x48] ss:$16 sps:$4 sm:$0xff]  }
 0x7a6   : > { %9836 = vmatpush1.bf16.msra.mxu0 %v18407_v4  ;;  %v18499_v4 = vld [vmem:[%s25153_s13 + $0x64] ss:$16 sps:$4 sm:$0xff]  }
 0x7a7   : > { %9877 = vmatpush1.bf16.msra.mxu1 %v18410_v5  ;;  %9837 = vmatprep.subr.bf16.mxu0 %v18415_v6  ;;  %v18502_v5 = vld [vmem:[%s25153_s13 + $0x6c] ss:$16 sps:$4 sm:$0xff]   ;;  %v18497_v6 = vld [vmem:[%s25153_s13 + $0x60] ss:$16 sps:$4 sm:$0xff]  }
 0x7a8   : > { %9878 = vmatprep.subr.bf16.mxu1 %v18418_v7  ;;  %v18500_v7 = vld [vmem:[%s25153_s13 + $0x68] ss:$16 sps:$4 sm:$0xff]  }
 0x7aa   : > { %9838 = vmatpush1.bf16.msra.mxu0 %v18413_v8  ;;  %v18505_v8 = vld [vmem:[%s25153_s13 + $0x84] ss:$16 sps:$4 sm:$0xff]  }
 0x7ab   : > { %9879 = vmatpush1.bf16.msra.mxu1 %v18416_v9  ;;  %9839 = vmatprep.subr.bf16.mxu0 %v18421_v10  ;;  %v18508_v9 = vld [vmem:[%s25153_s13 + $0x8c] ss:$16 sps:$4 sm:$0xff]   ;;  %v18503_v10 = vld [vmem:[%s25153_s13 + $0x80] ss:$16 sps:$4 sm:$0xff]  }
 0x7ac   : > { %9880 = vmatprep.subr.bf16.mxu1 %v18424_v11  ;;  %v18506_v11 = vld [vmem:[%s25153_s13 + $0x88] ss:$16 sps:$4 sm:$0xff]  }
 0x7ae   : > { %9840 = vmatpush1.bf16.msra.mxu0 %v18419_v13  ;;  %v18511_v13 = vld [vmem:[%s25153_s13 + $0xa4] ss:$16 sps:$4 sm:$0xff]  }
 0x7af   : > { %9881 = vmatpush1.bf16.msra.mxu1 %v18422_v14  ;;  %9841 = vmatprep.subr.bf16.mxu0 %v18427_v19  ;;  %v18514_v14 = vld [vmem:[%s25153_s13 + $0xac] ss:$16 sps:$4 sm:$0xff]   ;;  %v18509_v19 = vld [vmem:[%s25153_s13 + $0xa0] ss:$16 sps:$4 sm:$0xff]  }
 0x7b0   : > { %9882 = vmatprep.subr.bf16.mxu1 %v18430_v22  ;;  %v18512_v22 = vld [vmem:[%s25153_s13 + $0xa8] ss:$16 sps:$4 sm:$0xff]  }
 0x7b2   : > { %9842 = vmatpush1.bf16.msra.mxu0 %v18425_v29  ;;  %v18517_v29 = vld [vmem:[%s25153_s13 + $0xc4] ss:$16 sps:$4 sm:$0xff]  }
 0x7b3   : > { %9883 = vmatpush1.bf16.msra.mxu1 %v18428_v30  ;;  %9843 = vmatprep.subr.bf16.mxu0 %v18433_v34 }
 0x7b4   : > { %9884 = vmatprep.subr.bf16.mxu1 %v18436_v35  ;;  %v18520_v35 = vld [vmem:[%s25153_s13 + $0xcc] ss:$16 sps:$4 sm:$0xff]  }
 0x7b6   : > { %9844 = vmatpush1.bf16.msra.mxu0 %v18431_v36 }
 0x7b7   : > { %9885 = vmatpush1.bf16.msra.mxu1 %v18434_v37  ;;  %9845 = vmatprep.subr.bf16.mxu0 %v18439_v38 }
 0x7b8   : > { %9886 = vmatprep.subr.bf16.mxu1 %v18442_v39 }
 0x7ba   : > { %9846 = vmatpush1.bf16.msra.mxu0 %v18437_v42 }
 0x7bb   : > { %9887 = vmatpush1.bf16.msra.mxu1 %v18440_v16  ;;  %9847 = vmatprep.subr.bf16.mxu0 %v18445_v43  ;;  %v18515_v43 = vld [vmem:[%s25153_s13 + $0xc0] ss:$16 sps:$4 sm:$0xff]  }
 0x7bc   : > { %9888 = vmatprep.subr.bf16.mxu1 %v18448_v57 }
 0x7be   : > { %9848 = vmatpush1.bf16.msra.mxu0 %v18443_v44 }
 0x7bf   : > { %9889 = vmatpush1.bf16.msra.mxu1 %v18446_v28  ;;  %9849 = vmatprep.subr.bf16.mxu0 %v18451_v45  ;;  %v18518_v28 = vld [vmem:[%s25153_s13 + $0xc8] ss:$16 sps:$4 sm:$0xff]   ;;  %v18523_v45 = vld [vmem:[%s25153_s13 + $0xe4] ss:$16 sps:$4 sm:$0xff]  }
 0x7c0   : > { %9890 = vmatprep.subr.bf16.mxu1 %v18454_v31  ;;  %v18526_v31 = vld [vmem:[%s25153_s13 + $0xec] ss:$16 sps:$4 sm:$0xff]  }
 0x7c2   : > { %9850 = vmatpush1.bf16.msra.mxu0 %v18449_v32  ;;  %v18521_v32 = vld [vmem:[%s25153_s13 + $0xe0] ss:$16 sps:$4 sm:$0xff]  }
 0x7c3   : > { %9891 = vmatpush1.bf16.msra.mxu1 %v18452_v18  ;;  %9851 = vmatprep.subr.bf16.mxu0 %v18457_v17  ;;  %v18524_v18 = vld [vmem:[%s25153_s13 + $0xe8] ss:$16 sps:$4 sm:$0xff]   ;;  %v18529_v17 = vld [vmem:[%s25153_s13 + $0x104] ss:$16 sps:$4 sm:$0xff]  }
 0x7c4   : > { %9892 = vmatprep.subr.bf16.mxu1 %v18460_v46  ;;  %v18532_v46 = vld [vmem:[%s25153_s13 + $0x10c] ss:$16 sps:$4 sm:$0xff]  }
 0x7c6   : > { %9852 = vmatpush1.bf16.msra.mxu0 %v18455_v50  ;;  %v18527_v50 = vld [vmem:[%s25153_s13 + $0x100] ss:$16 sps:$4 sm:$0xff]  }
 0x7c7   : > { %9893 = vmatpush1.bf16.msra.mxu1 %v18458_v51  ;;  %9853 = vmatprep.subr.bf16.mxu0 %v18463_v33  ;;  %v18530_v51 = vld [vmem:[%s25153_s13 + $0x108] ss:$16 sps:$4 sm:$0xff]   ;;  %v18535_v33 = vld [vmem:[%s25153_s13 + $0x124] ss:$16 sps:$4 sm:$0xff]  }
 0x7c8   : > { %9894 = vmatprep.subr.bf16.mxu1 %v18466_v40  ;;  %v18538_v40 = vld [vmem:[%s25153_s13 + $0x12c] ss:$16 sps:$4 sm:$0xff]  }
 0x7ca   : > { %9854 = vmatpush1.bf16.msra.mxu0 %v18461_v41  ;;  %v18533_v41 = vld [vmem:[%s25153_s13 + $0x120] ss:$16 sps:$4 sm:$0xff]  }
 0x7cb   : > { %9895 = vmatpush1.bf16.msra.mxu1 %v18464_v49  ;;  %9855 = vmatprep.subr.bf16.mxu0 %v18469_v53  ;;  %v18536_v49 = vld [vmem:[%s25153_s13 + $0x128] ss:$16 sps:$4 sm:$0xff]   ;;  %v18541_v53 = vld [vmem:[%s25153_s13 + $0x144] ss:$16 sps:$4 sm:$0xff]  }
 0x7cc   : > { %9896 = vmatprep.subr.bf16.mxu1 %v18472_v54  ;;  %v18544_v54 = vld [vmem:[%s25153_s13 + $0x14c] ss:$16 sps:$4 sm:$0xff]  }
 0x7ce   : > { %9856 = vmatpush1.bf16.msra.mxu0 %v18467_v12  ;;  %v18539_v12 = vld [vmem:[%s25153_s13 + $0x140] ss:$16 sps:$4 sm:$0xff]  }
 0x7cf   : > { %9897 = vmatpush1.bf16.msra.mxu1 %v18470_v55  ;;  %9857 = vmatprep.subr.bf16.mxu0 %v18475_v15  ;;  %v18542_v55 = vld [vmem:[%s25153_s13 + $0x148] ss:$16 sps:$4 sm:$0xff]   ;;  %v18547_v15 = vld [vmem:[%s25153_s13 + $0x164] ss:$16 sps:$4 sm:$0xff]  }
 0x7d0   : > { %9898 = vmatprep.subr.bf16.mxu1 %v18478_v47  ;;  %v18550_v47 = vld [vmem:[%s25153_s13 + $0x16c] ss:$16 sps:$4 sm:$0xff]  }
 0x7d2   : > { %9858 = vmatpush1.bf16.msra.mxu0 %v18473_v27  ;;  %v18545_v27 = vld [vmem:[%s25153_s13 + $0x160] ss:$16 sps:$4 sm:$0xff]  }
 0x7d3   : > { %9899 = vmatpush1.bf16.msra.mxu1 %v18476_v48  ;;  %10729 = vmatprep.subr.bf16.mxu0 %v18481_v58  ;;  %v18548_v48 = vld [vmem:[%s25153_s13 + $0x168] ss:$16 sps:$4 sm:$0xff]   ;;  %v18553_v58 = vld [vmem:[%s25153_s13 + $0x184] ss:$16 sps:$4 sm:$0xff]  }
 0x7d4   : > { %10811 = vmatprep.subr.bf16.mxu1 %v18484_v59  ;;  %v18556_v59 = vld [vmem:[%s25153_s13 + $0x18c] ss:$16 sps:$4 sm:$0xff]  }
 0x7d5   : > { %9860 = vmatmul.mubr.bf16.vlgmr.msra.gmra.mrb[44].mxu0 %v23166_v24  ;;  %v18496_v24 = vld [vmem:[%s25153_s13 + $0x4c] ss:$16 sps:$4 sm:$0xff]  }
 0x7d6   : > { %9901 = vmatmul.mubr.bf16.vlgmr.msra.gmra.mrb[44].mxu1 %v23173_v25  ;;  %10730 = vmatpush1.bf16.msra.mxu0 %v18479_v56  ;;  %v18491_v25 = vld [vmem:[%s25153_s13 + $0x40] ss:$16 sps:$4 sm:$0xff]  }
 0x7d7   : > { %10812 = vmatpush1.bf16.msra.mxu1 %v18482_v60  ;;  %10731 = vmatprep.subr.bf16.mxu0 %v18487_v52  ;;  %v18551_v56 = vld [vmem:[%s25153_s13 + $0x180] ss:$16 sps:$4 sm:$0xff]   ;;  %v18554_v60 = vld [vmem:[%s25153_s13 + $0x188] ss:$16 sps:$4 sm:$0xff]   ;;  %v18559_v52 = vld [vmem:[%s25153_s13 + $0x1a4] ss:$16 sps:$4 sm:$0xff]  }
 0x7d8   : > { %10813 = vmatprep.subr.bf16.mxu1 %v18490_v63  ;;  %v18562_v63 = vld [vmem:[%s25153_s13 + $0x1ac] ss:$16 sps:$4 sm:$0xff]  }
 0x7da   : > { %10732 = vmatpush1.bf16.msra.mxu0 %v18485_v20  ;;  %v18557_v20 = vld [vmem:[%s25153_s13 + $0x1a0] ss:$16 sps:$4 sm:$0xff]  }
 0x7db   : > { %10814 = vmatpush1.bf16.msra.mxu1 %v18488_v23  ;;  %10733 = vmatprep.subr.bf16.mxu0 %v18493_v2  ;;  %v18560_v23 = vld [vmem:[%s25153_s13 + $0x1a8] ss:$16 sps:$4 sm:$0xff]   ;;  %v18565_v2 = vld [vmem:[%s25153_s13 + $0x1c4] ss:$16 sps:$4 sm:$0xff]  }
 0x7dc   : > { %10815 = vmatprep.subr.bf16.mxu1 %v18496_v24  ;;  %v18568_v24 = vld [vmem:[%s25153_s13 + $0x1cc] ss:$16 sps:$4 sm:$0xff]  }
 0x7de   : > { %10734 = vmatpush1.bf16.msra.mxu0 %v18491_v25  ;;  %v18563_v25 = vld [vmem:[%s25153_s13 + $0x1c0] ss:$16 sps:$4 sm:$0xff]  }
 0x7df   : > { %10816 = vmatpush1.bf16.msra.mxu1 %v18494_v3  ;;  %10735 = vmatprep.subr.bf16.mxu0 %v18499_v4  ;;  %v18566_v3 = vld [vmem:[%s25153_s13 + $0x1c8] ss:$16 sps:$4 sm:$0xff]   ;;  %v18571_v4 = vld [vmem:[%s25153_s13 + $0x1e4] ss:$16 sps:$4 sm:$0xff]  }
 0x7e0   : > { %10817 = vmatprep.subr.bf16.mxu1 %v18502_v5  ;;  %v18574_v5 = vld [vmem:[%s25153_s13 + $0x1ec] ss:$16 sps:$4 sm:$0xff]  }
 0x7e2   : > { %10736 = vmatpush1.bf16.msra.mxu0 %v18497_v6  ;;  %v18569_v6 = vld [vmem:[%s25153_s13 + $0x1e0] ss:$16 sps:$4 sm:$0xff]  }
 0x7e3   : > { %10818 = vmatpush1.bf16.msra.mxu1 %v18500_v7  ;;  %10737 = vmatprep.subr.bf16.mxu0 %v18505_v8  ;;  %v18572_v7 = vld [vmem:[%s25153_s13 + $0x1e8] ss:$16 sps:$4 sm:$0xff]   ;;  %v18577_v8 = vld [vmem:[%s25153_s13 + $0x204] ss:$16 sps:$4 sm:$0xff]  }
 0x7e4   : > { %10819 = vmatprep.subr.bf16.mxu1 %v18508_v9  ;;  %v18580_v9 = vld [vmem:[%s25153_s13 + $0x20c] ss:$16 sps:$4 sm:$0xff]  }
 0x7e6   : > { %10738 = vmatpush1.bf16.msra.mxu0 %v18503_v10 }
 0x7e7   : > { %10820 = vmatpush1.bf16.msra.mxu1 %v18506_v11  ;;  %10739 = vmatprep.subr.bf16.mxu0 %v18511_v13 }
 0x7e8   : > { %v8975_v30 = vpop.f32.mrb[32].mxu0  ;;  %v9016_v34 = vpop.f32.mrb[32].mxu1  ;;  %10821 = vmatprep.subr.bf16.mxu1 %v18514_v14 }
 0x7e9   : > { %v23439_v36 = vadd.f32 %v9016_v34, %v8975_v30  ;;  %v8977_v37 = vpop.f32.mrb[33].mxu0  ;;  %v9018_v38 = vpop.f32.mrb[33].mxu1 }
 0x7ea   : > { %v23441_v39 = vadd.f32 %v9018_v38, %v8977_v37  ;;  %v8979_v42 = vpop.f32.mrb[34].mxu0  ;;  %v9020_v16 = vpop.f32.mrb[34].mxu1  ;;  %10740 = vmatpush1.bf16.msra.mxu0 %v18509_v19  ;;  %v23570_v37 = vld [vmem:[%s25152_s12] sm:$0xf] }
 0x7eb   : > { %v8980_v57 = vpop.f32.mrb[35].mxu0  ;;  %v9021_v44 = vpop.f32.mrb[35].mxu1  ;;  %10822 = vmatpush1.bf16.msra.mxu1 %v18512_v22  ;;  %10741 = vmatprep.subr.bf16.mxu0 %v18517_v29 }
 0x7ec   : > { %10823 = vmatprep.subr.bf16.mxu1 %v18520_v35 }
 0x7ee   : > { %10742 = vmatpush1.bf16.msra.mxu0 %v18515_v43  ;;  %v9914_v43 = vrot.slane %v23570_v37, %v19933_v0 }
 0x7ef   : > { %10824 = vmatpush1.bf16.msra.mxu1 %v18518_v28  ;;  %10743 = vmatprep.subr.bf16.mxu0 %v18523_v45  ;;  %v9918_v45 = vrot.slane %v23570_v37, %v19936_v1 }
 0x7f0   : > { %10825 = vmatprep.subr.bf16.mxu1 %v18526_v31 }
 0x7f2   : > { %10744 = vmatpush1.bf16.msra.mxu0 %v18521_v32 }
 0x7f3   : > { %10826 = vmatpush1.bf16.msra.mxu1 %v18524_v18  ;;  %10745 = vmatprep.subr.bf16.mxu0 %v18529_v17 }
 0x7f4   : > { %10827 = vmatprep.subr.bf16.mxu1 %v18532_v46 }
 0x7f6   : > { %10746 = vmatpush1.bf16.msra.mxu0 %v18527_v50 }
 0x7f7   : > { %10828 = vmatpush1.bf16.msra.mxu1 %v18530_v51  ;;  %10747 = vmatprep.subr.bf16.mxu0 %v18535_v33 }
 0x7f8   : > { %10829 = vmatprep.subr.bf16.mxu1 %v18538_v40  ;;  %v18575_v40 = vld [vmem:[%s25153_s13 + $0x200] ss:$16 sps:$4 sm:$0xff]  }
 0x7fa   : > { %10748 = vmatpush1.bf16.msra.mxu0 %v18533_v41 }
 0x7fb   : > { %10830 = vmatpush1.bf16.msra.mxu1 %v18536_v49  ;;  %10749 = vmatprep.subr.bf16.mxu0 %v18541_v53  ;;  %v18583_v49 = vld [vmem:[%s25153_s13 + $0x224] ss:$16 sps:$4 sm:$0xff]   ;;  %v18586_v53 = vld [vmem:[%s25153_s13 + $0x22c] ss:$16 sps:$4 sm:$0xff]  }
 0x7fc   : > { %10831 = vmatprep.subr.bf16.mxu1 %v18544_v54  ;;  %v18581_v54 = vld [vmem:[%s25153_s13 + $0x220] ss:$16 sps:$4 sm:$0xff]  }
 0x7fe   : > { %10750 = vmatpush1.bf16.msra.mxu0 %v18539_v12  ;;  %v18584_v12 = vld [vmem:[%s25153_s13 + $0x228] ss:$16 sps:$4 sm:$0xff]  }
 0x7ff   : > { %10832 = vmatpush1.bf16.msra.mxu1 %v18542_v55  ;;  %10751 = vmatprep.subr.bf16.mxu0 %v18547_v15  ;;  %v18589_v55 = vld [vmem:[%s25153_s13 + $0x244] ss:$16 sps:$4 sm:$0xff]   ;;  %v18592_v15 = vld [vmem:[%s25153_s13 + $0x24c] ss:$16 sps:$4 sm:$0xff]  }
 0x800   : > { %10833 = vmatprep.subr.bf16.mxu1 %v18550_v47  ;;  %v18587_v47 = vld [vmem:[%s25153_s13 + $0x240] ss:$16 sps:$4 sm:$0xff]  }
 0x802   : > { %10752 = vmatpush1.bf16.msra.mxu0 %v18545_v27  ;;  %v18590_v27 = vld [vmem:[%s25153_s13 + $0x248] ss:$16 sps:$4 sm:$0xff]  }
 0x803   : > { %10834 = vmatpush1.bf16.msra.mxu1 %v18548_v48  ;;  %10753 = vmatprep.subr.bf16.mxu0 %v18553_v58  ;;  %v18595_v48 = vld [vmem:[%s25153_s13 + $0x264] ss:$16 sps:$4 sm:$0xff]   ;;  %v18598_v58 = vld [vmem:[%s25153_s13 + $0x26c] ss:$16 sps:$4 sm:$0xff]  }
 0x804   : > { %10835 = vmatprep.subr.bf16.mxu1 %v18556_v59  ;;  %v18593_v59 = vld [vmem:[%s25153_s13 + $0x260] ss:$16 sps:$4 sm:$0xff]  }
 0x806   : > { %10754 = vmatpush1.bf16.msra.mxu0 %v18551_v56  ;;  %v18596_v56 = vld [vmem:[%s25153_s13 + $0x268] ss:$16 sps:$4 sm:$0xff]  }
 0x807   : > { %10836 = vmatpush1.bf16.msra.mxu1 %v18554_v60  ;;  %10755 = vmatprep.subr.bf16.mxu0 %v18559_v52  ;;  %v18601_v60 = vld [vmem:[%s25153_s13 + $0x284] ss:$16 sps:$4 sm:$0xff]   ;;  %v18604_v52 = vld [vmem:[%s25153_s13 + $0x28c] ss:$16 sps:$4 sm:$0xff]  }
 0x808   : > { %10837 = vmatprep.subr.bf16.mxu1 %v18562_v63  ;;  %v18599_v63 = vld [vmem:[%s25153_s13 + $0x280] ss:$16 sps:$4 sm:$0xff]  }
 0x80a   : > { %10756 = vmatpush1.bf16.msra.mxu0 %v18557_v20  ;;  %v18602_v20 = vld [vmem:[%s25153_s13 + $0x288] ss:$16 sps:$4 sm:$0xff]  }
 0x80b   : > { %10838 = vmatpush1.bf16.msra.mxu1 %v18560_v23  ;;  %10757 = vmatprep.subr.bf16.mxu0 %v18565_v2  ;;  %v18607_v23 = vld [vmem:[%s25153_s13 + $0x2a4] ss:$16 sps:$4 sm:$0xff]   ;;  %v18610_v2 = vld [vmem:[%s25153_s13 + $0x2ac] ss:$16 sps:$4 sm:$0xff]  }
 0x80c   : > { %10839 = vmatprep.subr.bf16.mxu1 %v18568_v24  ;;  %v18605_v24 = vld [vmem:[%s25153_s13 + $0x2a0] ss:$16 sps:$4 sm:$0xff]  }
 0x80e   : > { %10758 = vmatpush1.bf16.msra.mxu0 %v18563_v25  ;;  %v18608_v25 = vld [vmem:[%s25153_s13 + $0x2a8] ss:$16 sps:$4 sm:$0xff]  }
 0x80f   : > { %10840 = vmatpush1.bf16.msra.mxu1 %v18566_v3  ;;  %10759 = vmatprep.subr.bf16.mxu0 %v18571_v4  ;;  %v18613_v3 = vld [vmem:[%s25153_s13 + $0x2c4] ss:$16 sps:$4 sm:$0xff]   ;;  %v18616_v4 = vld [vmem:[%s25153_s13 + $0x2cc] ss:$16 sps:$4 sm:$0xff]  }
 0x810   : > { %10841 = vmatprep.subr.bf16.mxu1 %v18574_v5  ;;  %v18611_v5 = vld [vmem:[%s25153_s13 + $0x2c0] ss:$16 sps:$4 sm:$0xff]  }
 0x812   : > { %10760 = vmatpush1.bf16.msra.mxu0 %v18569_v6  ;;  %v18614_v6 = vld [vmem:[%s25153_s13 + $0x2c8] ss:$16 sps:$4 sm:$0xff]  }
 0x813   : > { %10842 = vmatpush1.bf16.msra.mxu1 %v18572_v7  ;;  %10770 = vmatprep.subr.bf16.mxu0 %v18577_v8  ;;  %v18619_v7 = vld [vmem:[%s25153_s13 + $0x2e4] ss:$16 sps:$4 sm:$0xff]   ;;  %v18622_v8 = vld [vmem:[%s25153_s13 + $0x2ec] ss:$16 sps:$4 sm:$0xff]  }
 0x814   : > { %10852 = vmatprep.subr.bf16.mxu1 %v18580_v9  ;;  %v18617_v9 = vld [vmem:[%s25153_s13 + $0x2e0] ss:$16 sps:$4 sm:$0xff]  }
 0x828   : > { %v9057_v10 = vpop.f32.mrb[36].mxu0  ;;  %v9098_v11 = vpop.f32.mrb[36].mxu1 }
 0x829   : > { %v23563_v13 = vadd.f32 %v9098_v11, %v9057_v10  ;;  %v9059_v14 = vpop.f32.mrb[37].mxu0  ;;  %v9100_v19 = vpop.f32.mrb[37].mxu1  ;;  %v18620_v10 = vld [vmem:[%s25153_s13 + $0x2e8] ss:$16 sps:$4 sm:$0xff]   ;;  %v18625_v11 = vld [vmem:[%s25153_s13 + $0x304] ss:$16 sps:$4 sm:$0xff]  }
 0x82a   : > { %v23565_v22 = vadd.f32 %v9100_v19, %v9059_v14  ;;  %v9061_v29 = vpop.f32.mrb[38].mxu0  ;;  %v9102_v30 = vpop.f32.mrb[38].mxu1  ;;  %v18628_v14 = vld [vmem:[%s25153_s13 + $0x30c] ss:$16 sps:$4 sm:$0xff]   ;;  %v18623_v19 = vld [vmem:[%s25153_s13 + $0x300] ss:$16 sps:$4 sm:$0xff]  }
 0x82b   : > { %v9062_v34 = vpop.f32.mrb[39].mxu0  ;;  %v9103_v35 = vpop.f32.mrb[39].mxu1  ;;  %v18626_v29 = vld [vmem:[%s25153_s13 + $0x308] ss:$16 sps:$4 sm:$0xff]   ;;  %v18631_v30 = vld [vmem:[%s25153_s13 + $0x324] ss:$16 sps:$4 sm:$0xff]  }
 0x82c   : > { %v18634_v34 = vld [vmem:[%s25153_s13 + $0x32c] ss:$16 sps:$4 sm:$0xff]   ;;  %v18629_v35 = vld [vmem:[%s25153_s13 + $0x320] ss:$16 sps:$4 sm:$0xff]  }
 0x868   : > { %v9779_v38 = vpop.f32.mrb[40].mxu0 }
 0x869   : > { %v9780_v42 = vadd.f32 %v9779_v38, %v23439_v36  ;;  %v9820_v16 = vpop.f32.mrb[40].mxu1  ;;  %v9781_v57 = vpop.f32.mrb[41].mxu0  ;;  %v18632_v38 = vld [vmem:[%s25153_s13 + $0x328] ss:$16 sps:$4 sm:$0xff]  }
 0x86a   : > { %v9782_v44 = vadd.f32 %v9781_v57, %v23441_v39  ;;  %v9822_v28 = vpop.f32.mrb[41].mxu1  ;;  %v9783_v31 = vpop.f32.mrb[42].mxu0  ;;  %v18578_v39 = vld [vmem:[%s25153_s13 + $0x208] ss:$16 sps:$4 sm:$0xff]  }
 0x86b   : > { %v9821_v32 = vadd.f32 %v9820_v16, %v9780_v42  ;;  %v9824_v18 = vpop.f32.mrb[42].mxu1  ;;  %v9784_v17 = vpop.f32.mrb[43].mxu0  ;;  %v18637_v42 = vld [vmem:[%s25153_s13 + $0x344] ss:$16 sps:$4 sm:$0xff]   ;;  %v18640_v16 = vld [vmem:[%s25153_s13 + $0x34c] ss:$16 sps:$4 sm:$0xff]  }
 0x86c   : > { %v9823_v46 = vadd.f32 %v9822_v28, %v9782_v44  ;;  %v9825_v50 = vpop.f32.mrb[43].mxu1  ;;  %v18638_v57 = vld [vmem:[%s25153_s13 + $0x348] ss:$16 sps:$4 sm:$0xff]   ;;  %v18643_v44 = vld [vmem:[%s25153_s13 + $0x364] ss:$16 sps:$4 sm:$0xff]  }
 0x86d   : > { %v9931_v51 = vadd.f32 %v9914_v43, %v9821_v32  ;;  %v18635_v43 = vld [vmem:[%s25153_s13 + $0x340] ss:$16 sps:$4 sm:$0xff]   ;;  %v18646_v28 = vld [vmem:[%s25153_s13 + $0x36c] ss:$16 sps:$4 sm:$0xff]   ;;  %v18644_v31 = vld [vmem:[%s25153_s13 + $0x368] ss:$16 sps:$4 sm:$0xff]  }
 0x86e   : > { %v9932_v33 = vadd.f32 %v9918_v45, %v9823_v46  ;;  %v18641_v45 = vld [vmem:[%s25153_s13 + $0x360] ss:$16 sps:$4 sm:$0xff]   ;;  %v18649_v32 = vld [vmem:[%s25153_s13 + $0x384] ss:$16 sps:$4 sm:$0xff]   ;;  %v18652_v18 = vld [vmem:[%s25153_s13 + $0x38c] ss:$16 sps:$4 sm:$0xff]  }
 0x86f   : > { %v9935_v41 = vpack.c.bf16 %v9931_v51, %v9931_v51  ;;  %v18647_v17 = vld [vmem:[%s25153_s13 + $0x380] ss:$16 sps:$4 sm:$0xff]   ;;  %v18650_v46 = vld [vmem:[%s25153_s13 + $0x388] ss:$16 sps:$4 sm:$0xff]   ;;  %v18655_v50 = vld [vmem:[%s25153_s13 + $0x3a4] ss:$16 sps:$4 sm:$0xff]  }
 0x870   : > { %v9936_v36 = vpack.c.bf16 %v9932_v33, %v9932_v33  ;;  %v18658_v51 = vld [vmem:[%s25153_s13 + $0x3ac] ss:$16 sps:$4 sm:$0xff]   ;;  %v18653_v33 = vld [vmem:[%s25153_s13 + $0x3a0] ss:$16 sps:$4 sm:$0xff]  }
 0x872   : > { %10761 = vmatprep.mubr.bf16.mxu0 %v9936_v36  ;;  %10843 = vmatprep.mubr.bf16.mxu1 %v9936_v36  ;;  %v18656_v36 = vld [vmem:[%s25153_s13 + $0x3a8] ss:$16 sps:$4 sm:$0xff]  }
 0x873   : > { %10762 = vmatmul.mubr.bf16.vlgmr.msra.gmra.mrb[48].mxu0 %v9935_v41  ;;  %10844 = vmatmul.mubr.bf16.vlgmr.msra.gmra.mrb[48].mxu1 %v9935_v41 }
 0x874   : > { %10771 = vmatpush1.bf16.msra.mxu0 %v18575_v40  ;;  %10853 = vmatpush1.bf16.msra.mxu1 %v18578_v39  ;;  %v18661_v40 = vld [vmem:[%s25153_s13 + $0x3c4] ss:$16 sps:$4 sm:$0xff]   ;;  %v18664_v39 = vld [vmem:[%s25153_s13 + $0x3cc] ss:$16 sps:$4 sm:$0xff]  }
 0x875   : > { %10772 = vmatprep.subr.bf16.mxu0 %v18583_v49  ;;  %10854 = vmatprep.subr.bf16.mxu1 %v18586_v53  ;;  %v18659_v49 = vld [vmem:[%s25153_s13 + $0x3c0] ss:$16 sps:$4 sm:$0xff]   ;;  %v18662_v53 = vld [vmem:[%s25153_s13 + $0x3c8] ss:$16 sps:$4 sm:$0xff]  }
 0x878   : > { %10773 = vmatpush1.bf16.msra.mxu0 %v18581_v54  ;;  %10855 = vmatpush1.bf16.msra.mxu1 %v18584_v12 }
 0x879   : > { %10774 = vmatprep.subr.bf16.mxu0 %v18589_v55  ;;  %10856 = vmatprep.subr.bf16.mxu1 %v18592_v15  ;;  %v9922_v55 = vrot.slane %v23570_v37, %v19947_v21 }
 0x87c   : > { %10775 = vmatpush1.bf16.msra.mxu0 %v18587_v47  ;;  %10857 = vmatpush1.bf16.msra.mxu1 %v18590_v27  ;;  %v18667_v47 = vld [vmem:[%s25153_s13 + $0x3e4] ss:$16 sps:$4 sm:$0xff]   ;;  %v18670_v27 = vld [vmem:[%s25153_s13 + $0x3ec] ss:$16 sps:$4 sm:$0xff]  }
 0x87d   : > { %10776 = vmatprep.subr.bf16.mxu0 %v18595_v48  ;;  %10858 = vmatprep.subr.bf16.mxu1 %v18598_v58 }
 0x880   : > { %10777 = vmatpush1.bf16.msra.mxu0 %v18593_v59  ;;  %10859 = vmatpush1.bf16.msra.mxu1 %v18596_v56 }
 0x881   : > { %10778 = vmatprep.subr.bf16.mxu0 %v18601_v60  ;;  %10860 = vmatprep.subr.bf16.mxu1 %v18604_v52 }
 0x884   : > { %10779 = vmatpush1.bf16.msra.mxu0 %v18599_v63  ;;  %10861 = vmatpush1.bf16.msra.mxu1 %v18602_v20 }
 0x885   : > { %10780 = vmatprep.subr.bf16.mxu0 %v18607_v23  ;;  %10862 = vmatprep.subr.bf16.mxu1 %v18610_v2  ;;  %v18665_v23 = vld [vmem:[%s25153_s13 + $0x3e0] ss:$16 sps:$4 sm:$0xff]  }
 0x888   : > { %10781 = vmatpush1.bf16.msra.mxu0 %v18605_v24  ;;  %10863 = vmatpush1.bf16.msra.mxu1 %v18608_v25  ;;  %v18676_v24 = vld [vmem:[%s25155_s15 + $0xc] ss:$16 sps:$4 sm:$0xff]  }
 0x889   : > { %10782 = vmatprep.subr.bf16.mxu0 %v18613_v3  ;;  %10864 = vmatprep.subr.bf16.mxu1 %v18616_v4  ;;  %v18671_v4 = vld [vmem:[%s25155_s15] ss:$16 sps:$4 sm:$0xff]  }
 0x88c   : > { %10783 = vmatpush1.bf16.msra.mxu0 %v18611_v5  ;;  %10865 = vmatpush1.bf16.msra.mxu1 %v18614_v6  ;;  %v18674_v5 = vld [vmem:[%s25155_s15 + $0x8] ss:$16 sps:$4 sm:$0xff]  }
 0x88d   : > { %10784 = vmatprep.subr.bf16.mxu0 %v18619_v7  ;;  %10866 = vmatprep.subr.bf16.mxu1 %v18622_v8  ;;  %v18679_v7 = vld [vmem:[%s25155_s15 + $0x24] ss:$16 sps:$4 sm:$0xff]   ;;  %v18682_v8 = vld [vmem:[%s25155_s15 + $0x2c] ss:$16 sps:$4 sm:$0xff]  }
 0x890   : > { %10785 = vmatpush1.bf16.msra.mxu0 %v18617_v9  ;;  %10867 = vmatpush1.bf16.msra.mxu1 %v18620_v10  ;;  %v18677_v9 = vld [vmem:[%s25155_s15 + $0x20] ss:$16 sps:$4 sm:$0xff]   ;;  %v18680_v10 = vld [vmem:[%s25155_s15 + $0x28] ss:$16 sps:$4 sm:$0xff]  }
 0x891   : > { %10786 = vmatprep.subr.bf16.mxu0 %v18625_v11  ;;  %10868 = vmatprep.subr.bf16.mxu1 %v18628_v14  ;;  %v18685_v11 = vld [vmem:[%s25155_s15 + $0x44] ss:$16 sps:$4 sm:$0xff]   ;;  %v18688_v14 = vld [vmem:[%s25155_s15 + $0x4c] ss:$16 sps:$4 sm:$0xff]  }
 0x894   : > { %10787 = vmatpush1.bf16.msra.mxu0 %v18623_v19  ;;  %10869 = vmatpush1.bf16.msra.mxu1 %v18626_v29  ;;  %v18683_v19 = vld [vmem:[%s25155_s15 + $0x40] ss:$16 sps:$4 sm:$0xff]   ;;  %v18686_v29 = vld [vmem:[%s25155_s15 + $0x48] ss:$16 sps:$4 sm:$0xff]  }
 0x895   : > { %10788 = vmatprep.subr.bf16.mxu0 %v18631_v30  ;;  %10870 = vmatprep.subr.bf16.mxu1 %v18634_v34  ;;  %v18691_v30 = vld [vmem:[%s25155_s15 + $0x64] ss:$16 sps:$4 sm:$0xff]   ;;  %v18694_v34 = vld [vmem:[%s25155_s15 + $0x6c] ss:$16 sps:$4 sm:$0xff]  }
 0x898   : > { %10789 = vmatpush1.bf16.msra.mxu0 %v18629_v35  ;;  %10871 = vmatpush1.bf16.msra.mxu1 %v18632_v38  ;;  %v18689_v35 = vld [vmem:[%s25155_s15 + $0x60] ss:$16 sps:$4 sm:$0xff]   ;;  %v18692_v38 = vld [vmem:[%s25155_s15 + $0x68] ss:$16 sps:$4 sm:$0xff]  }
 0x899   : > { %10790 = vmatprep.subr.bf16.mxu0 %v18637_v42  ;;  %10872 = vmatprep.subr.bf16.mxu1 %v18640_v16  ;;  %v18697_v42 = vld [vmem:[%s25155_s15 + $0x84] ss:$16 sps:$4 sm:$0xff]   ;;  %v18700_v16 = vld [vmem:[%s25155_s15 + $0x8c] ss:$16 sps:$4 sm:$0xff]  }
 0x89c   : > { %10791 = vmatpush1.bf16.msra.mxu0 %v18635_v43  ;;  %10873 = vmatpush1.bf16.msra.mxu1 %v18638_v57  ;;  %v18695_v43 = vld [vmem:[%s25155_s15 + $0x80] ss:$16 sps:$4 sm:$0xff]   ;;  %v18698_v57 = vld [vmem:[%s25155_s15 + $0x88] ss:$16 sps:$4 sm:$0xff]  }
 0x89d   : > { %10792 = vmatprep.subr.bf16.mxu0 %v18643_v44  ;;  %10874 = vmatprep.subr.bf16.mxu1 %v18646_v28  ;;  %v18703_v44 = vld [vmem:[%s25155_s15 + $0xa4] ss:$16 sps:$4 sm:$0xff]   ;;  %v18706_v28 = vld [vmem:[%s25155_s15 + $0xac] ss:$16 sps:$4 sm:$0xff]  }
 0x8a0   : > { %10793 = vmatpush1.bf16.msra.mxu0 %v18641_v45  ;;  %10875 = vmatpush1.bf16.msra.mxu1 %v18644_v31  ;;  %v18701_v45 = vld [vmem:[%s25155_s15 + $0xa0] ss:$16 sps:$4 sm:$0xff]   ;;  %v18704_v31 = vld [vmem:[%s25155_s15 + $0xa8] ss:$16 sps:$4 sm:$0xff]  }
 0x8a1   : > { %10794 = vmatprep.subr.bf16.mxu0 %v18649_v32  ;;  %10876 = vmatprep.subr.bf16.mxu1 %v18652_v18  ;;  %v18709_v32 = vld [vmem:[%s25155_s15 + $0xc4] ss:$16 sps:$4 sm:$0xff]   ;;  %v18712_v18 = vld [vmem:[%s25155_s15 + $0xcc] ss:$16 sps:$4 sm:$0xff]  }
 0x8a4   : > { %10795 = vmatpush1.bf16.msra.mxu0 %v18647_v17  ;;  %10877 = vmatpush1.bf16.msra.mxu1 %v18650_v46  ;;  %v18707_v17 = vld [vmem:[%s25155_s15 + $0xc0] ss:$16 sps:$4 sm:$0xff]   ;;  %v18710_v46 = vld [vmem:[%s25155_s15 + $0xc8] ss:$16 sps:$4 sm:$0xff]  }
 0x8a5   : > { %10796 = vmatprep.subr.bf16.mxu0 %v18655_v50  ;;  %10878 = vmatprep.subr.bf16.mxu1 %v18658_v51  ;;  %v18715_v50 = vld [vmem:[%s25155_s15 + $0xe4] ss:$16 sps:$4 sm:$0xff]   ;;  %v18718_v51 = vld [vmem:[%s25155_s15 + $0xec] ss:$16 sps:$4 sm:$0xff]  }
 0x8a8   : > { %v9861_v41 = vpop.f32.mrb[44].mxu0  ;;  %10797 = vmatpush1.bf16.msra.mxu0 %v18653_v33  ;;  %10879 = vmatpush1.bf16.msra.mxu1 %v18656_v36  ;;  %v18713_v33 = vld [vmem:[%s25155_s15 + $0xe0] ss:$16 sps:$4 sm:$0xff]   ;;  %v18716_v36 = vld [vmem:[%s25155_s15 + $0xe8] ss:$16 sps:$4 sm:$0xff]  }
 0x8a9   : > { %v9862_v54 = vadd.f32 %v9861_v41, %v23563_v13  ;;  %v9902_v12 = vpop.f32.mrb[44].mxu1  ;;  %v9863_v15 = vpop.f32.mrb[45].mxu0  ;;  %10798 = vmatprep.subr.bf16.mxu0 %v18661_v40  ;;  %10880 = vmatprep.subr.bf16.mxu1 %v18664_v39  ;;  %v9926_v13 = vrot.slane %v23570_v37, %v19957_v26  ;;  %v18673_v37 = vld [vmem:[%s25155_s15 + $0x4] ss:$16 sps:$4 sm:$0xff]   ;;  %v18724_v39 = vld [vmem:[%s25155_s15 + $0x10c] ss:$16 sps:$4 sm:$0xff]  }
 0x8aa   : > { %v9864_v48 = vadd.f32 %v9863_v15, %v23565_v22  ;;  %v9904_v58 = vpop.f32.mrb[45].mxu1  ;;  %v9865_v59 = vpop.f32.mrb[46].mxu0  ;;  %v18668_v22 = vld [vmem:[%s25153_s13 + $0x3e8] ss:$16 sps:$4 sm:$0xff]   ;;  %v18721_v40 = vld [vmem:[%s25155_s15 + $0x104] ss:$16 sps:$4 sm:$0xff]  }
 0x8ab   : > { %v9903_v56 = vadd.f32 %v9902_v12, %v9862_v54  ;;  %v9906_v60 = vpop.f32.mrb[46].mxu1  ;;  %v9866_v52 = vpop.f32.mrb[47].mxu0  ;;  %v18719_v41 = vld [vmem:[%s25155_s15 + $0x100] ss:$16 sps:$4 sm:$0xff]   ;;  %v18730_v54 = vld [vmem:[%s25155_s15 + $0x12c] ss:$16 sps:$4 sm:$0xff]  }
 0x8ac   : > { %v9905_v63 = vadd.f32 %v9904_v58, %v9864_v48  ;;  %v9907_v20 = vpop.f32.mrb[47].mxu1  ;;  %10799 = vmatpush1.bf16.msra.mxu0 %v18659_v49  ;;  %10881 = vmatpush1.bf16.msra.mxu1 %v18662_v53  ;;  %v18722_v49 = vld [vmem:[%s25155_s15 + $0x108] ss:$16 sps:$4 sm:$0xff]   ;;  %v18727_v53 = vld [vmem:[%s25155_s15 + $0x124] ss:$16 sps:$4 sm:$0xff]  }
 0x8ad   : > { %v9933_v2 = vadd.f32 %v9922_v55, %v9903_v56  ;;  %10800 = vmatprep.subr.bf16.mxu0 %v18667_v47  ;;  %10882 = vmatprep.subr.bf16.mxu1 %v18670_v27  ;;  %v18725_v12 = vld [vmem:[%s25155_s15 + $0x120] ss:$16 sps:$4 sm:$0xff]   ;;  %v18728_v55 = vld [vmem:[%s25155_s15 + $0x128] ss:$16 sps:$4 sm:$0xff]   ;;  %v18733_v15 = vld [vmem:[%s25155_s15 + $0x144] ss:$16 sps:$4 sm:$0xff]  }
 0x8ae   : > { %v9934_v25 = vadd.f32 %v9926_v13, %v9905_v63  ;;  %v18736_v47 = vld [vmem:[%s25155_s15 + $0x14c] ss:$16 sps:$4 sm:$0xff]   ;;  %v18731_v27 = vld [vmem:[%s25155_s15 + $0x140] ss:$16 sps:$4 sm:$0xff]   ;;  %v18734_v48 = vld [vmem:[%s25155_s15 + $0x148] ss:$16 sps:$4 sm:$0xff]  }
 0x8af   : > { %v9937_v6 = vpack.c.bf16 %v9933_v2, %v9933_v2  ;;  %v18739_v58 = vld [vmem:[%s25155_s15 + $0x164] ss:$16 sps:$4 sm:$0xff]   ;;  %v18742_v13 = vld [vmem:[%s25155_s15 + $0x16c] ss:$16 sps:$4 sm:$0xff]   ;;  %v18737_v59 = vld [vmem:[%s25155_s15 + $0x160] ss:$16 sps:$4 sm:$0xff]  }
 0x8b0   : > { %v9938_v3 = vpack.c.bf16 %v9934_v25, %v9934_v25  ;;  %10801 = vmatpush1.bf16.msra.mxu0 %v18665_v23  ;;  %10883 = vmatpush1.bf16.msra.mxu1 %v18668_v22  ;;  %v18740_v56 = vld [vmem:[%s25155_s15 + $0x168] ss:$16 sps:$4 sm:$0xff]   ;;  %v18745_v60 = vld [vmem:[%s25155_s15 + $0x184] ss:$16 sps:$4 sm:$0xff]   ;;  %v18748_v52 = vld [vmem:[%s25155_s15 + $0x18c] ss:$16 sps:$4 sm:$0xff]  }
 0x8b1   : > { %11687 = vmatprep.subr.bf16.mxu0 %v18673_v37  ;;  %11769 = vmatprep.subr.bf16.mxu1 %v18676_v24  ;;  %v18743_v63 = vld [vmem:[%s25155_s15 + $0x180] ss:$16 sps:$4 sm:$0xff]   ;;  %v18746_v20 = vld [vmem:[%s25155_s15 + $0x188] ss:$16 sps:$4 sm:$0xff]   ;;  %v18751_v23 = vld [vmem:[%s25155_s15 + $0x1a4] ss:$16 sps:$4 sm:$0xff]  }
 0x8b2   : > { %10802 = vmatprep.mubr.bf16.mxu0 %v9938_v3  ;;  %10884 = vmatprep.mubr.bf16.mxu1 %v9938_v3  ;;  %v18754_v22 = vld [vmem:[%s25155_s15 + $0x1ac] ss:$16 sps:$4 sm:$0xff]   ;;  %v18749_v2 = vld [vmem:[%s25155_s15 + $0x1a0] ss:$16 sps:$4 sm:$0xff]   ;;  %v18752_v37 = vld [vmem:[%s25155_s15 + $0x1a8] ss:$16 sps:$4 sm:$0xff]  }
 0x8b3   : > { %10803 = vmatmul.mubr.bf16.vlgmr.msra.gmra.mrb[48].mxu0 %v9937_v6  ;;  %10885 = vmatmul.mubr.bf16.vlgmr.msra.gmra.mrb[48].mxu1 %v9937_v6  ;;  %v18757_v24 = vld [vmem:[%s25155_s15 + $0x1c4] ss:$16 sps:$4 sm:$0xff]   ;;  %v18760_v25 = vld [vmem:[%s25155_s15 + $0x1cc] ss:$16 sps:$4 sm:$0xff]   ;;  %v18755_v3 = vld [vmem:[%s25155_s15 + $0x1c0] ss:$16 sps:$4 sm:$0xff]  }
 0x8b4   : > { %11688 = vmatpush1.bf16.msra.mxu0 %v18671_v4  ;;  %11770 = vmatpush1.bf16.msra.mxu1 %v18674_v5  ;;  %v18758_v4 = vld [vmem:[%s25155_s15 + $0x1c8] ss:$16 sps:$4 sm:$0xff]   ;;  %v18763_v5 = vld [vmem:[%s25155_s15 + $0x1e4] ss:$16 sps:$4 sm:$0xff]   ;;  %v18766_v6 = vld [vmem:[%s25155_s15 + $0x1ec] ss:$16 sps:$4 sm:$0xff]  }
 0x8b5   : > { %11689 = vmatprep.subr.bf16.mxu0 %v18679_v7  ;;  %11771 = vmatprep.subr.bf16.mxu1 %v18682_v8  ;;  %v18761_v7 = vld [vmem:[%s25155_s15 + $0x1e0] ss:$16 sps:$4 sm:$0xff]   ;;  %v18764_v8 = vld [vmem:[%s25155_s15 + $0x1e8] ss:$16 sps:$4 sm:$0xff]  }
 0x8b8   : > { %11690 = vmatpush1.bf16.msra.mxu0 %v18677_v9  ;;  %11772 = vmatpush1.bf16.msra.mxu1 %v18680_v10  ;;  %v18769_v9 = vld [vmem:[%s25155_s15 + $0x204] ss:$16 sps:$4 sm:$0xff]   ;;  %v18772_v10 = vld [vmem:[%s25155_s15 + $0x20c] ss:$16 sps:$4 sm:$0xff]  }
 0x8b9   : > { %11691 = vmatprep.subr.bf16.mxu0 %v18685_v11  ;;  %11773 = vmatprep.subr.bf16.mxu1 %v18688_v14  ;;  %v10067_v11 = vld [vmem:[%s25154_s14] sm:$0xf]  ;;  %v19379_v14 = vmov 1966171168  }
 0x8bc   : > { %11692 = vmatpush1.bf16.msra.mxu0 %v18683_v19  ;;  %11774 = vmatpush1.bf16.msra.mxu1 %v18686_v29  ;;  %v14190_v19 = vunpack.c.l.s4 %v19379_v14  ;;  %v10712_v29 = vrot.slane %v10067_v11, %v19933_v0  ;;  %v18820_v14 = vld [vmem:[%s25155_s15 + $0x30c] ss:$16 sps:$4 sm:$0xff]  }
 0x8bd   : > { %11693 = vmatprep.subr.bf16.mxu0 %v18691_v30  ;;  %11775 = vmatprep.subr.bf16.mxu1 %v18694_v34  ;;  %v10720_v30 = vrot.slane %v10067_v11, %v19947_v21  ;;  %v10716_v34 = vrot.slane %v10067_v11, %v19936_v1 }
 0x8c0   : > { %11694 = vmatpush1.bf16.msra.mxu0 %v18689_v35  ;;  %11776 = vmatpush1.bf16.msra.mxu1 %v18692_v38  ;;  %v14191_v35 = vunpack.c.0.s8 %v14190_v19  ;;  %v10724_v38 = vrot.slane %v10067_v11, %v19957_v26  ;;  %v18817_v11 = vld [vmem:[%s25155_s15 + $0x304] ss:$16 sps:$4 sm:$0xff]   ;;  %v18815_v19 = vld [vmem:[%s25155_s15 + $0x300] ss:$16 sps:$4 sm:$0xff]  }
 0x8c1   : > { %11695 = vmatprep.subr.bf16.mxu0 %v18697_v42  ;;  %11777 = vmatprep.subr.bf16.mxu1 %v18700_v16 }
 0x8c4   : > { %11696 = vmatpush1.bf16.msra.mxu0 %v18695_v43  ;;  %11778 = vmatpush1.bf16.msra.mxu1 %v18698_v57 }
 0x8c5   : > { %11697 = vmatprep.subr.bf16.mxu0 %v18703_v44  ;;  %11779 = vmatprep.subr.bf16.mxu1 %v18706_v28 }
 0x8c8   : > { %11698 = vmatpush1.bf16.msra.mxu0 %v18701_v45  ;;  %11780 = vmatpush1.bf16.msra.mxu1 %v18704_v31  ;;  %v14194_v31 = vsub.s32 %v14191_v35, %v19927_v62  ;;  %v18821_v35 = vld [vmem:[%s25155_s15 + $0x320] ss:$16 sps:$4 sm:$0xff]  }
 0x8c9   : > { %11699 = vmatprep.subr.bf16.mxu0 %v18709_v32  ;;  %11781 = vmatprep.subr.bf16.mxu1 %v18712_v18 }
 0x8cc   : > { %11700 = vmatpush1.bf16.msra.mxu0 %v18707_v17  ;;  %11782 = vmatpush1.bf16.msra.mxu1 %v18710_v46 }
 0x8cd   : > { %11701 = vmatprep.subr.bf16.mxu0 %v18715_v50  ;;  %11783 = vmatprep.subr.bf16.mxu1 %v18718_v51 }
 0x8d0   : > { %11702 = vmatpush1.bf16.msra.mxu0 %v18713_v33  ;;  %11784 = vmatpush1.bf16.msra.mxu1 %v18716_v36 }
 0x8d1   : > { %11703 = vmatprep.subr.bf16.mxu0 %v18721_v40  ;;  %11785 = vmatprep.subr.bf16.mxu1 %v18724_v39  ;;  %v18767_v40 = vld [vmem:[%s25155_s15 + $0x200] ss:$16 sps:$4 sm:$0xff]   ;;  %v18770_v39 = vld [vmem:[%s25155_s15 + $0x208] ss:$16 sps:$4 sm:$0xff]  }
 0x8d4   : > { %11704 = vmatpush1.bf16.msra.mxu0 %v18719_v41  ;;  %11786 = vmatpush1.bf16.msra.mxu1 %v18722_v49 }
 0x8d5   : > { %11705 = vmatprep.subr.bf16.mxu0 %v18727_v53  ;;  %11787 = vmatprep.subr.bf16.mxu1 %v18730_v54  ;;  %v18775_v53 = vld [vmem:[%s25155_s15 + $0x224] ss:$16 sps:$4 sm:$0xff]   ;;  %v18778_v54 = vld [vmem:[%s25155_s15 + $0x22c] ss:$16 sps:$4 sm:$0xff]  }
 0x8d8   : > { %11706 = vmatpush1.bf16.msra.mxu0 %v18725_v12  ;;  %11788 = vmatpush1.bf16.msra.mxu1 %v18728_v55 }
 0x8d9   : > { %11707 = vmatprep.subr.bf16.mxu0 %v18733_v15  ;;  %11789 = vmatprep.subr.bf16.mxu1 %v18736_v47  ;;  %v18773_v15 = vld [vmem:[%s25155_s15 + $0x220] ss:$16 sps:$4 sm:$0xff]   ;;  %v18776_v47 = vld [vmem:[%s25155_s15 + $0x228] ss:$16 sps:$4 sm:$0xff]  }
 0x8dc   : > { %11708 = vmatpush1.bf16.msra.mxu0 %v18731_v27  ;;  %11790 = vmatpush1.bf16.msra.mxu1 %v18734_v48  ;;  %v18781_v27 = vld [vmem:[%s25155_s15 + $0x244] ss:$16 sps:$4 sm:$0xff]   ;;  %v18784_v48 = vld [vmem:[%s25155_s15 + $0x24c] ss:$16 sps:$4 sm:$0xff]  }
 0x8dd   : > { %11709 = vmatprep.subr.bf16.mxu0 %v18739_v58  ;;  %11791 = vmatprep.subr.bf16.mxu1 %v18742_v13  ;;  %v18782_v13 = vld [vmem:[%s25155_s15 + $0x248] ss:$16 sps:$4 sm:$0xff]  }
 0x8e0   : > { %11710 = vmatpush1.bf16.msra.mxu0 %v18737_v59  ;;  %11792 = vmatpush1.bf16.msra.mxu1 %v18740_v56  ;;  %v18787_v59 = vld [vmem:[%s25155_s15 + $0x264] ss:$16 sps:$4 sm:$0xff]   ;;  %v18790_v56 = vld [vmem:[%s25155_s15 + $0x26c] ss:$16 sps:$4 sm:$0xff]  }
 0x8e1   : > { %11711 = vmatprep.subr.bf16.mxu0 %v18745_v60  ;;  %11793 = vmatprep.subr.bf16.mxu1 %v18748_v52  ;;  %v18785_v60 = vld [vmem:[%s25155_s15 + $0x260] ss:$16 sps:$4 sm:$0xff]   ;;  %v18788_v52 = vld [vmem:[%s25155_s15 + $0x268] ss:$16 sps:$4 sm:$0xff]  }
 0x8e4   : > { %11712 = vmatpush1.bf16.msra.mxu0 %v18743_v63  ;;  %11794 = vmatpush1.bf16.msra.mxu1 %v18746_v20  ;;  %v18793_v63 = vld [vmem:[%s25155_s15 + $0x284] ss:$16 sps:$4 sm:$0xff]   ;;  %v18796_v20 = vld [vmem:[%s25155_s15 + $0x28c] ss:$16 sps:$4 sm:$0xff]  }
 0x8e5   : > { %11713 = vmatprep.subr.bf16.mxu0 %v18751_v23  ;;  %11795 = vmatprep.subr.bf16.mxu1 %v18754_v22  ;;  %v18791_v23 = vld [vmem:[%s25155_s15 + $0x280] ss:$16 sps:$4 sm:$0xff]   ;;  %v18794_v22 = vld [vmem:[%s25155_s15 + $0x288] ss:$16 sps:$4 sm:$0xff]  }
 0x8e8   : > { %11714 = vmatpush1.bf16.msra.mxu0 %v18749_v2  ;;  %11796 = vmatpush1.bf16.msra.mxu1 %v18752_v37  ;;  %v18799_v2 = vld [vmem:[%s25155_s15 + $0x2a4] ss:$16 sps:$4 sm:$0xff]   ;;  %v18802_v37 = vld [vmem:[%s25155_s15 + $0x2ac] ss:$16 sps:$4 sm:$0xff]  }
 0x8e9   : > { %11715 = vmatprep.subr.bf16.mxu0 %v18757_v24  ;;  %11797 = vmatprep.subr.bf16.mxu1 %v18760_v25  ;;  %v18797_v24 = vld [vmem:[%s25155_s15 + $0x2a0] ss:$16 sps:$4 sm:$0xff]   ;;  %v18800_v25 = vld [vmem:[%s25155_s15 + $0x2a8] ss:$16 sps:$4 sm:$0xff]  }
 0x8ec   : > { %11716 = vmatpush1.bf16.msra.mxu0 %v18755_v3  ;;  %11798 = vmatpush1.bf16.msra.mxu1 %v18758_v4  ;;  %v18805_v3 = vld [vmem:[%s25155_s15 + $0x2c4] ss:$16 sps:$4 sm:$0xff]   ;;  %v18808_v4 = vld [vmem:[%s25155_s15 + $0x2cc] ss:$16 sps:$4 sm:$0xff]  }
 0x8ed   : > { %11717 = vmatprep.subr.bf16.mxu0 %v18763_v5  ;;  %11799 = vmatprep.subr.bf16.mxu1 %v18766_v6  ;;  %v18803_v5 = vld [vmem:[%s25155_s15 + $0x2c0] ss:$16 sps:$4 sm:$0xff]   ;;  %v18806_v6 = vld [vmem:[%s25155_s15 + $0x2c8] ss:$16 sps:$4 sm:$0xff]  }
 0x8f0   : > { %11718 = vmatpush1.bf16.msra.mxu0 %v18761_v7  ;;  %11800 = vmatpush1.bf16.msra.mxu1 %v18764_v8  ;;  %v18811_v7 = vld [vmem:[%s25155_s15 + $0x2e4] ss:$16 sps:$4 sm:$0xff]   ;;  %v18814_v8 = vld [vmem:[%s25155_s15 + $0x2ec] ss:$16 sps:$4 sm:$0xff]  }
 0x8f1   : > { %11728 = vmatprep.subr.bf16.mxu0 %v18769_v9  ;;  %11810 = vmatprep.subr.bf16.mxu1 %v18772_v10  ;;  %v18809_v9 = vld [vmem:[%s25155_s15 + $0x2e0] ss:$16 sps:$4 sm:$0xff]   ;;  %v18812_v10 = vld [vmem:[%s25155_s15 + $0x2e8] ss:$16 sps:$4 sm:$0xff]  }
 0x986   : > { %v10804_v42 = vpop.f32.mrb[48].mxu0  ;;  %v10886_v16 = vpop.f32.mrb[48].mxu1 }
 0x987   : > { %v16526_v43 = vadd.f32 %v10804_v42, %v10712_v29  ;;  %v23975_v57 = vadd.f32 %v10886_v16, %v10720_v30  ;;  %v10806_v44 = vpop.f32.mrb[49].mxu0  ;;  %v10888_v28 = vpop.f32.mrb[49].mxu1  ;;  %v18818_v29 = vld [vmem:[%s25155_s15 + $0x308] ss:$16 sps:$4 sm:$0xff]   ;;  %v18823_v30 = vld [vmem:[%s25155_s15 + $0x324] ss:$16 sps:$4 sm:$0xff]  }
 0x988   : > { %v16527_v45 = vadd.f32 %v10806_v44, %v10716_v34  ;;  %v16529_v32 = vadd.f32 %v10888_v28, %v10724_v38  ;;  %v10808_v18 = vpop.f32.mrb[50].mxu0  ;;  %v10890_v17 = vpop.f32.mrb[50].mxu1  ;;  %v18826_v34 = vld [vmem:[%s25155_s15 + $0x32c] ss:$16 sps:$4 sm:$0xff]   ;;  %v18824_v38 = vld [vmem:[%s25155_s15 + $0x328] ss:$16 sps:$4 sm:$0xff]  }
 0x989   : > { %v10809_v46 = vpop.f32.mrb[51].mxu0  ;;  %v10891_v50 = vpop.f32.mrb[51].mxu1  ;;  %v10893_v41 = vpack.c.bf16 %v16526_v43, %v16526_v43  ;;  %v18829_v42 = vld [vmem:[%s25155_s15 + $0x344] ss:$16 sps:$4 sm:$0xff]   ;;  %v18832_v16 = vld [vmem:[%s25155_s15 + $0x34c] ss:$16 sps:$4 sm:$0xff]  }
 0x98a   : > { %v10894_v51 = vpack.c.bf16 %v16527_v45, %v16527_v45  ;;  %v14187_v33 = vcombine.low %v16526_v43, %v16527_v45  ;;  %v14188_v36 = vcombine.low %v23975_v57, %v16529_v32  ;;  %v10896_v12 = vpack.c.bf16 %v16529_v32, %v16529_v32  ;;  %v18827_v43 = vld [vmem:[%s25155_s15 + $0x340] ss:$16 sps:$4 sm:$0xff]   ;;  %v18830_v44 = vld [vmem:[%s25155_s15 + $0x348] ss:$16 sps:$4 sm:$0xff]   ;;  %v18835_v28 = vld [vmem:[%s25155_s15 + $0x364] ss:$16 sps:$4 sm:$0xff]  }
 0x98b   : > { %v18838_v45 = vld [vmem:[%s25155_s15 + $0x36c] ss:$16 sps:$4 sm:$0xff]   ;;  %v18836_v32 = vld [vmem:[%s25155_s15 + $0x368] ss:$16 sps:$4 sm:$0xff]   ;;  %v18841_v18 = vld [vmem:[%s25155_s15 + $0x384] ss:$16 sps:$4 sm:$0xff]  }
 0x98c   : > { %v14195_v62 = vrot.slane %v14187_v33, %v14194_v31  ;;  %v14202_v49 = vrot.slane %v14188_v36, %v14194_v31  ;;  %11719 = vmatprep.mubr.bf16.mxu0 %v10894_v51  ;;  %11801 = vmatprep.mubr.bf16.mxu1 %v10894_v51  ;;  %v18844_v17 = vld [vmem:[%s25155_s15 + $0x38c] ss:$16 sps:$4 sm:$0xff]   ;;  %v18839_v46 = vld [vmem:[%s25155_s15 + $0x380] ss:$16 sps:$4 sm:$0xff]   ;;  %v18842_v50 = vld [vmem:[%s25155_s15 + $0x388] ss:$16 sps:$4 sm:$0xff]  }
 0x98d   : > { %11720 = vmatmul.mubr.bf16.vlgmr.msra.gmra.mrb[52].mxu0 %v10893_v41  ;;  %11802 = vmatmul.mubr.bf16.vlgmr.msra.gmra.mrb[52].mxu1 %v10893_v41  ;;  %v18847_v51 = vld [vmem:[%s25155_s15 + $0x3a4] ss:$16 sps:$4 sm:$0xff]   ;;  %v18850_v33 = vld [vmem:[%s25155_s15 + $0x3ac] ss:$16 sps:$4 sm:$0xff]   ;;  %v18845_v36 = vld [vmem:[%s25155_s15 + $0x3a0] ss:$16 sps:$4 sm:$0xff]  }
 0x98e   : > { %v14203_v55 = vcombine.low %v14195_v62, %v14202_v49  ;;  %11729 = vmatpush1.bf16.msra.mxu0 %v18767_v40  ;;  %11811 = vmatpush1.bf16.msra.mxu1 %v18770_v39  ;;  %v18848_v40 = vld [vmem:[%s25155_s15 + $0x3a8] ss:$16 sps:$4 sm:$0xff]   ;;  %v18853_v39 = vld [vmem:[%s25155_s15 + $0x3c4] ss:$16 sps:$4 sm:$0xff]   ;;  %v18856_v41 = vld [vmem:[%s25155_s15 + $0x3cc] ss:$16 sps:$4 sm:$0xff]  }
 0x98f   : > { %11760 = vmatprep.mubr.bf16.mxu0 %v10896_v12  ;;  %11842 = vmatprep.mubr.bf16.mxu1 %v10896_v12  ;;  %v18851_v62 = vld [vmem:[%s25155_s15 + $0x3c0] ss:$16 sps:$4 sm:$0xff]   ;;  %v18854_v49 = vld [vmem:[%s25155_s15 + $0x3c8] ss:$16 sps:$4 sm:$0xff]  }
 0x990   : > { %v14210_v58 = vrot.slane %v14203_v55, %v14194_v31  ;;  %11730 = vmatprep.subr.bf16.mxu0 %v18775_v53  ;;  %11812 = vmatprep.subr.bf16.mxu1 %v18778_v54  ;;  %v18833_v31 = vld [vmem:[%s25155_s15 + $0x360] ss:$16 sps:$4 sm:$0xff]   ;;  %v18859_v53 = vld [vmem:[%s25155_s15 + $0x3e4] ss:$16 sps:$4 sm:$0xff]   ;;  %v18862_v54 = vld [vmem:[%s25155_s15 + $0x3ec] ss:$16 sps:$4 sm:$0xff]  }
 0x991   : > { %v18857_v12 = vld [vmem:[%s25155_s15 + $0x3e0] ss:$16 sps:$4 sm:$0xff]   ;;  %v18860_v55 = vld [vmem:[%s25155_s15 + $0x3e8] ss:$16 sps:$4 sm:$0xff]  }
 0x992   : > { %14216 = vst.msk [vmem:[%s774_s1] sm:$0xf] %vm14214_vm2, %v14210_v58  ;;  %11731 = vmatpush1.bf16.msra.mxu0 %v18773_v15  ;;  %11813 = vmatpush1.bf16.msra.mxu1 %v18776_v47  ;;  %v18865_v15 = vld [vmem:[%s25157_s17 + $0x4] ss:$16 sps:$4 sm:$0xff]   ;;  %v18868_v47 = vld [vmem:[%s25157_s17 + $0xc] ss:$16 sps:$4 sm:$0xff]   ;;  %v10895_v58 = vpack.c.bf16 %v23975_v57, %v23975_v57 }
 0x993   : > { %11732 = vmatprep.subr.bf16.mxu0 %v18781_v27  ;;  %11814 = vmatprep.subr.bf16.mxu1 %v18784_v48  ;;  %v18863_v27 = vld [vmem:[%s25157_s17] ss:$16 sps:$4 sm:$0xff]   ;;  %v18866_v48 = vld [vmem:[%s25157_s17 + $0x8] ss:$16 sps:$4 sm:$0xff]  }
 0x994   : > { %v18872_v57 = vld [vmem:[%s25157_s17 + $0x28] ss:$16 sps:$4 sm:$0xff]  }
 0x996   : > { %11733 = vmatpush1.bf16.msra.mxu0 %v18779_v61  ;;  %11815 = vmatpush1.bf16.msra.mxu1 %v18782_v13  ;;  %v18871_v61 = vld [vmem:[%s25157_s17 + $0x24] ss:$16 sps:$4 sm:$0xff]   ;;  %v18874_v13 = vld [vmem:[%s25157_s17 + $0x2c] ss:$16 sps:$4 sm:$0xff]  }
 0x997   : > { %11734 = vmatprep.subr.bf16.mxu0 %v18787_v59  ;;  %11816 = vmatprep.subr.bf16.mxu1 %v18790_v56  ;;  %v18869_v59 = vld [vmem:[%s25157_s17 + $0x20] ss:$16 sps:$4 sm:$0xff]   ;;  %v18877_v56 = vld [vmem:[%s25157_s17 + $0x44] ss:$16 sps:$4 sm:$0xff]  }
 0x99a   : > { %11735 = vmatpush1.bf16.msra.mxu0 %v18785_v60  ;;  %11817 = vmatpush1.bf16.msra.mxu1 %v18788_v52  ;;  %v18880_v60 = vld [vmem:[%s25157_s17 + $0x4c] ss:$16 sps:$4 sm:$0xff]   ;;  %v18875_v52 = vld [vmem:[%s25157_s17 + $0x40] ss:$16 sps:$4 sm:$0xff]  }
 0x99b   : > { %11736 = vmatprep.subr.bf16.mxu0 %v18793_v63  ;;  %11818 = vmatprep.subr.bf16.mxu1 %v18796_v20  ;;  %v18878_v63 = vld [vmem:[%s25157_s17 + $0x48] ss:$16 sps:$4 sm:$0xff]   ;;  %v18883_v20 = vld [vmem:[%s25157_s17 + $0x64] ss:$16 sps:$4 sm:$0xff]  }
 0x99e   : > { %11737 = vmatpush1.bf16.msra.mxu0 %v18791_v23  ;;  %11819 = vmatpush1.bf16.msra.mxu1 %v18794_v22  ;;  %v18886_v23 = vld [vmem:[%s25157_s17 + $0x6c] ss:$16 sps:$4 sm:$0xff]   ;;  %v18881_v22 = vld [vmem:[%s25157_s17 + $0x60] ss:$16 sps:$4 sm:$0xff]  }
 0x99f   : > { %11738 = vmatprep.subr.bf16.mxu0 %v18799_v2  ;;  %11820 = vmatprep.subr.bf16.mxu1 %v18802_v37  ;;  %v18884_v2 = vld [vmem:[%s25157_s17 + $0x68] ss:$16 sps:$4 sm:$0xff]   ;;  %v18889_v37 = vld [vmem:[%s25157_s17 + $0x84] ss:$16 sps:$4 sm:$0xff]  }
 0x9a2   : > { %11739 = vmatpush1.bf16.msra.mxu0 %v18797_v24  ;;  %11821 = vmatpush1.bf16.msra.mxu1 %v18800_v25  ;;  %v18892_v24 = vld [vmem:[%s25157_s17 + $0x8c] ss:$16 sps:$4 sm:$0xff]   ;;  %v18887_v25 = vld [vmem:[%s25157_s17 + $0x80] ss:$16 sps:$4 sm:$0xff]  }
 0x9a3   : > { %11740 = vmatprep.subr.bf16.mxu0 %v18805_v3  ;;  %11822 = vmatprep.subr.bf16.mxu1 %v18808_v4  ;;  %v18890_v3 = vld [vmem:[%s25157_s17 + $0x88] ss:$16 sps:$4 sm:$0xff]   ;;  %v18895_v4 = vld [vmem:[%s25157_s17 + $0xa4] ss:$16 sps:$4 sm:$0xff]  }
 0x9a6   : > { %11741 = vmatpush1.bf16.msra.mxu0 %v18803_v5  ;;  %11823 = vmatpush1.bf16.msra.mxu1 %v18806_v6  ;;  %v18898_v5 = vld [vmem:[%s25157_s17 + $0xac] ss:$16 sps:$4 sm:$0xff]   ;;  %v18893_v6 = vld [vmem:[%s25157_s17 + $0xa0] ss:$16 sps:$4 sm:$0xff]  }
 0x9a7   : > { %11742 = vmatprep.subr.bf16.mxu0 %v18811_v7  ;;  %11824 = vmatprep.subr.bf16.mxu1 %v18814_v8  ;;  %v18896_v7 = vld [vmem:[%s25157_s17 + $0xa8] ss:$16 sps:$4 sm:$0xff]   ;;  %v18901_v8 = vld [vmem:[%s25157_s17 + $0xc4] ss:$16 sps:$4 sm:$0xff]  }
 0x9aa   : > { %11743 = vmatpush1.bf16.msra.mxu0 %v18809_v9  ;;  %11825 = vmatpush1.bf16.msra.mxu1 %v18812_v10  ;;  %v18904_v9 = vld [vmem:[%s25157_s17 + $0xcc] ss:$16 sps:$4 sm:$0xff]   ;;  %v18899_v10 = vld [vmem:[%s25157_s17 + $0xc0] ss:$16 sps:$4 sm:$0xff]  }
 0x9ab   : > { %11744 = vmatprep.subr.bf16.mxu0 %v18817_v11  ;;  %11826 = vmatprep.subr.bf16.mxu1 %v18820_v14  ;;  %v18902_v11 = vld [vmem:[%s25157_s17 + $0xc8] ss:$16 sps:$4 sm:$0xff]   ;;  %v18907_v14 = vld [vmem:[%s25157_s17 + $0xe4] ss:$16 sps:$4 sm:$0xff]  }
 0x9ae   : > { %11745 = vmatpush1.bf16.msra.mxu0 %v18815_v19  ;;  %11827 = vmatpush1.bf16.msra.mxu1 %v18818_v29  ;;  %v18910_v19 = vld [vmem:[%s25157_s17 + $0xec] ss:$16 sps:$4 sm:$0xff]   ;;  %v18905_v29 = vld [vmem:[%s25157_s17 + $0xe0] ss:$16 sps:$4 sm:$0xff]  }
 0x9af   : > { %11746 = vmatprep.subr.bf16.mxu0 %v18823_v30  ;;  %11828 = vmatprep.subr.bf16.mxu1 %v18826_v34  ;;  %v18908_v30 = vld [vmem:[%s25157_s17 + $0xe8] ss:$16 sps:$4 sm:$0xff]   ;;  %v18913_v34 = vld [vmem:[%s25157_s17 + $0x104] ss:$16 sps:$4 sm:$0xff]  }
 0x9b2   : > { %11747 = vmatpush1.bf16.msra.mxu0 %v18821_v35  ;;  %11829 = vmatpush1.bf16.msra.mxu1 %v18824_v38  ;;  %v18916_v35 = vld [vmem:[%s25157_s17 + $0x10c] ss:$16 sps:$4 sm:$0xff]   ;;  %v18911_v38 = vld [vmem:[%s25157_s17 + $0x100] ss:$16 sps:$4 sm:$0xff]  }
 0x9b3   : > { %11748 = vmatprep.subr.bf16.mxu0 %v18829_v42  ;;  %11830 = vmatprep.subr.bf16.mxu1 %v18832_v16  ;;  %v18914_v42 = vld [vmem:[%s25157_s17 + $0x108] ss:$16 sps:$4 sm:$0xff]   ;;  %v18919_v16 = vld [vmem:[%s25157_s17 + $0x124] ss:$16 sps:$4 sm:$0xff]  }
 0x9b6   : > { %11749 = vmatpush1.bf16.msra.mxu0 %v18827_v43  ;;  %11831 = vmatpush1.bf16.msra.mxu1 %v18830_v44  ;;  %v18922_v43 = vld [vmem:[%s25157_s17 + $0x12c] ss:$16 sps:$4 sm:$0xff]   ;;  %v18917_v44 = vld [vmem:[%s25157_s17 + $0x120] ss:$16 sps:$4 sm:$0xff]  }
 0x9b7   : > { %11750 = vmatprep.subr.bf16.mxu0 %v18835_v28  ;;  %11832 = vmatprep.subr.bf16.mxu1 %v18838_v45  ;;  %v18920_v28 = vld [vmem:[%s25157_s17 + $0x128] ss:$16 sps:$4 sm:$0xff]   ;;  %v18925_v45 = vld [vmem:[%s25157_s17 + $0x144] ss:$16 sps:$4 sm:$0xff]  }
 0x9ba   : > { %11751 = vmatpush1.bf16.msra.mxu0 %v18833_v31  ;;  %11833 = vmatpush1.bf16.msra.mxu1 %v18836_v32  ;;  %v18928_v31 = vld [vmem:[%s25157_s17 + $0x14c] ss:$16 sps:$4 sm:$0xff]   ;;  %v18923_v32 = vld [vmem:[%s25157_s17 + $0x140] ss:$16 sps:$4 sm:$0xff]  }
 0x9bb   : > { %11752 = vmatprep.subr.bf16.mxu0 %v18841_v18  ;;  %11834 = vmatprep.subr.bf16.mxu1 %v18844_v17  ;;  %v18926_v18 = vld [vmem:[%s25157_s17 + $0x148] ss:$16 sps:$4 sm:$0xff]   ;;  %v18931_v17 = vld [vmem:[%s25157_s17 + $0x164] ss:$16 sps:$4 sm:$0xff]  }
 0x9be   : > { %11753 = vmatpush1.bf16.msra.mxu0 %v18839_v46  ;;  %11835 = vmatpush1.bf16.msra.mxu1 %v18842_v50  ;;  %v18934_v46 = vld [vmem:[%s25157_s17 + $0x16c] ss:$16 sps:$4 sm:$0xff]   ;;  %v18929_v50 = vld [vmem:[%s25157_s17 + $0x160] ss:$16 sps:$4 sm:$0xff]  }
 0x9bf   : > { %11754 = vmatprep.subr.bf16.mxu0 %v18847_v51  ;;  %11836 = vmatprep.subr.bf16.mxu1 %v18850_v33  ;;  %v18932_v51 = vld [vmem:[%s25157_s17 + $0x168] ss:$16 sps:$4 sm:$0xff]   ;;  %v18937_v33 = vld [vmem:[%s25157_s17 + $0x184] ss:$16 sps:$4 sm:$0xff]  }
 0x9c2   : > { %11755 = vmatpush1.bf16.msra.mxu0 %v18845_v36  ;;  %11837 = vmatpush1.bf16.msra.mxu1 %v18848_v40  ;;  %v18940_v36 = vld [vmem:[%s25157_s17 + $0x18c] ss:$16 sps:$4 sm:$0xff]   ;;  %v18935_v40 = vld [vmem:[%s25157_s17 + $0x180] ss:$16 sps:$4 sm:$0xff]  }
 0x9c3   : > { %11756 = vmatprep.subr.bf16.mxu0 %v18853_v39  ;;  %11838 = vmatprep.subr.bf16.mxu1 %v18856_v41  ;;  %v18938_v39 = vld [vmem:[%s25157_s17 + $0x188] ss:$16 sps:$4 sm:$0xff]   ;;  %v18943_v41 = vld [vmem:[%s25157_s17 + $0x1a4] ss:$16 sps:$4 sm:$0xff]  }
 0x9c6   : > { %11757 = vmatpush1.bf16.msra.mxu0 %v18851_v62  ;;  %11839 = vmatpush1.bf16.msra.mxu1 %v18854_v49  ;;  %v18946_v62 = vld [vmem:[%s25157_s17 + $0x1ac] ss:$16 sps:$4 sm:$0xff]   ;;  %v18941_v49 = vld [vmem:[%s25157_s17 + $0x1a0] ss:$16 sps:$4 sm:$0xff]  }
 0x9c7   : > { %11758 = vmatprep.subr.bf16.mxu0 %v18859_v53  ;;  %11840 = vmatprep.subr.bf16.mxu1 %v18862_v54  ;;  %v18944_v53 = vld [vmem:[%s25157_s17 + $0x1a8] ss:$16 sps:$4 sm:$0xff]   ;;  %v18949_v54 = vld [vmem:[%s25157_s17 + $0x1c4] ss:$16 sps:$4 sm:$0xff]  }
 0x9ca   : > { %11759 = vmatpush1.bf16.msra.mxu0 %v18857_v12  ;;  %11841 = vmatpush1.bf16.msra.mxu1 %v18860_v55  ;;  %v18952_v12 = vld [vmem:[%s25157_s17 + $0x1cc] ss:$16 sps:$4 sm:$0xff]   ;;  %v18947_v55 = vld [vmem:[%s25157_s17 + $0x1c0] ss:$16 sps:$4 sm:$0xff]  }
 0x9cb   : > { %12669 = vmatprep.subr.bf16.mxu0 %v18865_v15  ;;  %12751 = vmatprep.subr.bf16.mxu1 %v18868_v47  ;;  %v18950_v15 = vld [vmem:[%s25157_s17 + $0x1c8] ss:$16 sps:$4 sm:$0xff]   ;;  %v18955_v47 = vld [vmem:[%s25157_s17 + $0x1e4] ss:$16 sps:$4 sm:$0xff]  }
 0x9cd   : > { %11761 = vmatmul.mubr.bf16.vlgmr.msra.gmra.mrb[52].mxu0 %v10895_v58  ;;  %11843 = vmatmul.mubr.bf16.vlgmr.msra.gmra.mrb[52].mxu1 %v10895_v58  ;;  %v18956_v58 = vld [vmem:[%s25157_s17 + $0x1e8] ss:$16 sps:$4 sm:$0xff]  }
 0x9ce   : > { %12670 = vmatpush1.bf16.msra.mxu0 %v18863_v27  ;;  %12752 = vmatpush1.bf16.msra.mxu1 %v18866_v48  ;;  %v18958_v27 = vld [vmem:[%s25157_s17 + $0x1ec] ss:$16 sps:$4 sm:$0xff]   ;;  %v18953_v48 = vld [vmem:[%s25157_s17 + $0x1e0] ss:$16 sps:$4 sm:$0xff]  }
 0x9cf   : > { %12671 = vmatprep.subr.bf16.mxu0 %v18871_v61  ;;  %12753 = vmatprep.subr.bf16.mxu1 %v18874_v13  ;;  %v18961_v61 = vld [vmem:[%s25157_s17 + $0x204] ss:$16 sps:$4 sm:$0xff]   ;;  %v18964_v13 = vld [vmem:[%s25157_s17 + $0x20c] ss:$16 sps:$4 sm:$0xff]  }
 0x9d2   : > { %12672 = vmatpush1.bf16.msra.mxu0 %v18869_v59  ;;  %12754 = vmatpush1.bf16.msra.mxu1 %v18872_v57  ;;  %v12833_v59 = vld [vmem:[#allocation2] sm:$0x1] }
 0x9d3   : > { %12673 = vmatprep.subr.bf16.mxu0 %v18877_v56  ;;  %12755 = vmatprep.subr.bf16.mxu1 %v18880_v60  ;;  %16630 = vpush %v12833_v59  ;;  %v24373_v57 = vld [vmem:[%s25156_s16] sm:$0xf] }
 0x9d4   : > { %v11670_v56 = vrot.slane %v24373_v57, %v19933_v0  ;;  %v11674_v60 = vrot.slane %v24373_v57, %v19936_v1 }
 0x9d6   : > { %12674 = vmatpush1.bf16.msra.mxu0 %v18875_v52  ;;  %12756 = vmatpush1.bf16.msra.mxu1 %v18878_v63  ;;  %v11682_v52 = vrot.slane %v24373_v57, %v19957_v26 }
 0x9d7   : > { %12675 = vmatprep.subr.bf16.mxu0 %v18883_v20  ;;  %12757 = vmatprep.subr.bf16.mxu1 %v18886_v23 }
 0x9da   : > { %12676 = vmatpush1.bf16.msra.mxu0 %v18881_v22  ;;  %12758 = vmatpush1.bf16.msra.mxu1 %v18884_v2 }
 0x9db   : > { %12677 = vmatprep.subr.bf16.mxu0 %v18889_v37  ;;  %12759 = vmatprep.subr.bf16.mxu1 %v18892_v24 }
 0x9de   : > { %12678 = vmatpush1.bf16.msra.mxu0 %v18887_v25  ;;  %12760 = vmatpush1.bf16.msra.mxu1 %v18890_v3 }
 0x9df   : > { %12679 = vmatprep.subr.bf16.mxu0 %v18895_v4  ;;  %12761 = vmatprep.subr.bf16.mxu1 %v18898_v5 }
 0x9e2   : > { %12680 = vmatpush1.bf16.msra.mxu0 %v18893_v6  ;;  %12762 = vmatpush1.bf16.msra.mxu1 %v18896_v7 }
 0x9e3   : > { %12681 = vmatprep.subr.bf16.mxu0 %v18901_v8  ;;  %12763 = vmatprep.subr.bf16.mxu1 %v18904_v9 }
 0x9e6   : > { %12682 = vmatpush1.bf16.msra.mxu0 %v18899_v10  ;;  %12764 = vmatpush1.bf16.msra.mxu1 %v18902_v11 }
 0x9e7   : > { %12683 = vmatprep.subr.bf16.mxu0 %v18907_v14  ;;  %12765 = vmatprep.subr.bf16.mxu1 %v18910_v19 }
 0x9ea   : > { %12684 = vmatpush1.bf16.msra.mxu0 %v18905_v29  ;;  %12766 = vmatpush1.bf16.msra.mxu1 %v18908_v30 }
 0x9eb   : > { %12685 = vmatprep.subr.bf16.mxu0 %v18913_v34  ;;  %12767 = vmatprep.subr.bf16.mxu1 %v18916_v35 }
 0x9ee   : > { %12686 = vmatpush1.bf16.msra.mxu0 %v18911_v38  ;;  %12768 = vmatpush1.bf16.msra.mxu1 %v18914_v42  ;;  %v18959_v42 = vld [vmem:[%s25157_s17 + $0x200] ss:$16 sps:$4 sm:$0xff]  }
 0x9ef   : > { %12687 = vmatprep.subr.bf16.mxu0 %v18919_v16  ;;  %12769 = vmatprep.subr.bf16.mxu1 %v18922_v43  ;;  %v18962_v16 = vld [vmem:[%s25157_s17 + $0x208] ss:$16 sps:$4 sm:$0xff]  }
 0x9f2   : > { %12688 = vmatpush1.bf16.msra.mxu0 %v18917_v44  ;;  %12770 = vmatpush1.bf16.msra.mxu1 %v18920_v28  ;;  %v18967_v44 = vld [vmem:[%s25157_s17 + $0x224] ss:$16 sps:$4 sm:$0xff]   ;;  %v18970_v28 = vld [vmem:[%s25157_s17 + $0x22c] ss:$16 sps:$4 sm:$0xff]  }
 0x9f3   : > { %12689 = vmatprep.subr.bf16.mxu0 %v18925_v45  ;;  %12771 = vmatprep.subr.bf16.mxu1 %v18928_v31  ;;  %v18965_v31 = vld [vmem:[%s25157_s17 + $0x220] ss:$16 sps:$4 sm:$0xff]  }
 0x9f6   : > { %12690 = vmatpush1.bf16.msra.mxu0 %v18923_v32  ;;  %12772 = vmatpush1.bf16.msra.mxu1 %v18926_v18  ;;  %v18968_v32 = vld [vmem:[%s25157_s17 + $0x228] ss:$16 sps:$4 sm:$0xff]   ;;  %v18973_v18 = vld [vmem:[%s25157_s17 + $0x244] ss:$16 sps:$4 sm:$0xff]  }
 0x9f7   : > { %12691 = vmatprep.subr.bf16.mxu0 %v18931_v17  ;;  %12773 = vmatprep.subr.bf16.mxu1 %v18934_v46  ;;  %v18976_v17 = vld [vmem:[%s25157_s17 + $0x24c] ss:$16 sps:$4 sm:$0xff]   ;;  %v18971_v46 = vld [vmem:[%s25157_s17 + $0x240] ss:$16 sps:$4 sm:$0xff]  }
 0x9fa   : > { %12692 = vmatpush1.bf16.msra.mxu0 %v18929_v50  ;;  %12774 = vmatpush1.bf16.msra.mxu1 %v18932_v51  ;;  %v18974_v50 = vld [vmem:[%s25157_s17 + $0x248] ss:$16 sps:$4 sm:$0xff]   ;;  %v18979_v51 = vld [vmem:[%s25157_s17 + $0x264] ss:$16 sps:$4 sm:$0xff]  }
 0x9fb   : > { %12693 = vmatprep.subr.bf16.mxu0 %v18937_v33  ;;  %12775 = vmatprep.subr.bf16.mxu1 %v18940_v36  ;;  %v18982_v33 = vld [vmem:[%s25157_s17 + $0x26c] ss:$16 sps:$4 sm:$0xff]   ;;  %v18977_v36 = vld [vmem:[%s25157_s17 + $0x260] ss:$16 sps:$4 sm:$0xff]  }
 0x9fe   : > { %12694 = vmatpush1.bf16.msra.mxu0 %v18935_v40  ;;  %12776 = vmatpush1.bf16.msra.mxu1 %v18938_v39  ;;  %v18980_v40 = vld [vmem:[%s25157_s17 + $0x268] ss:$16 sps:$4 sm:$0xff]   ;;  %v18985_v39 = vld [vmem:[%s25157_s17 + $0x284] ss:$16 sps:$4 sm:$0xff]  }
 0x9ff   : > { %12695 = vmatprep.subr.bf16.mxu0 %v18943_v41  ;;  %12777 = vmatprep.subr.bf16.mxu1 %v18946_v62  ;;  %v18988_v41 = vld [vmem:[%s25157_s17 + $0x28c] ss:$16 sps:$4 sm:$0xff]   ;;  %v18983_v62 = vld [vmem:[%s25157_s17 + $0x280] ss:$16 sps:$4 sm:$0xff]  }
 0xa02   : > { %12696 = vmatpush1.bf16.msra.mxu0 %v18941_v49  ;;  %12778 = vmatpush1.bf16.msra.mxu1 %v18944_v53  ;;  %v18986_v49 = vld [vmem:[%s25157_s17 + $0x288] ss:$16 sps:$4 sm:$0xff]   ;;  %v18991_v53 = vld [vmem:[%s25157_s17 + $0x2a4] ss:$16 sps:$4 sm:$0xff]  }
 0xa03   : > { %12697 = vmatprep.subr.bf16.mxu0 %v18949_v54  ;;  %12779 = vmatprep.subr.bf16.mxu1 %v18952_v12  ;;  %v18994_v54 = vld [vmem:[%s25157_s17 + $0x2ac] ss:$16 sps:$4 sm:$0xff]   ;;  %v18989_v12 = vld [vmem:[%s25157_s17 + $0x2a0] ss:$16 sps:$4 sm:$0xff]  }
 0xa04   : > { %s16631_s1 = spop %16630 }
 0xa06   : > { %12698 = vmatpush1.bf16.msra.mxu0 %v18947_v55  ;;  %12780 = vmatpush1.bf16.msra.mxu1 %v18950_v15  ;;  %v18992_v55 = vld [vmem:[%s25157_s17 + $0x2a8] ss:$16 sps:$4 sm:$0xff]   ;;  %v18997_v15 = vld [vmem:[%s25157_s17 + $0x2c4] ss:$16 sps:$4 sm:$0xff]  }
 0xa07   : > { %12699 = vmatprep.subr.bf16.mxu0 %v18955_v47  ;;  %12781 = vmatprep.subr.bf16.mxu1 %v18958_v27  ;;  %v19000_v47 = vld [vmem:[%s25157_s17 + $0x2cc] ss:$16 sps:$4 sm:$0xff]   ;;  %v11678_v27 = vrot.slane %v24373_v57, %v19947_v21  ;;  %v19001_v57 = vld [vmem:[%s25157_s17 + $0x2e0] ss:$16 sps:$4 sm:$0xff]  }
 0xa0a   : > { %12700 = vmatpush1.bf16.msra.mxu0 %v18953_v48  ;;  %12782 = vmatpush1.bf16.msra.mxu1 %v18956_v58  ;;  %v18995_v48 = vld [vmem:[%s25157_s17 + $0x2c0] ss:$16 sps:$4 sm:$0xff]   ;;  %v18998_v58 = vld [vmem:[%s25157_s17 + $0x2c8] ss:$16 sps:$4 sm:$0xff]  }
 0xa0b   : > { %12710 = vmatprep.subr.bf16.mxu0 %v18961_v61  ;;  %12792 = vmatprep.subr.bf16.mxu1 %v18964_v13  ;;  %v19003_v61 = vld [vmem:[%s25157_s17 + $0x2e4] ss:$16 sps:$4 sm:$0xff]   ;;  %v19006_v13 = vld [vmem:[%s25157_s17 + $0x2ec] ss:$16 sps:$4 sm:$0xff]  }
 0xaa0   : > { %v11762_v63 = vpop.f32.mrb[52].mxu0  ;;  %v24381_v20 = vpop.f32.mrb[52].mxu1 }
 0xaa1   : > { %v16530_v23 = vadd.f32 %v11762_v63, %v11670_v56  ;;  %v11764_v22 = vpop.f32.mrb[53].mxu0  ;;  %v11846_v2 = vpop.f32.mrb[53].mxu1  ;;  %v16532_v59 = vadd.f32 %v24381_v20, %v11678_v27  ;;  %v19004_v56 = vld [vmem:[%s25157_s17 + $0x2e8] ss:$16 sps:$4 sm:$0xff]   ;;  %v19007_v20 = vld [vmem:[%s25157_s17 + $0x300] ss:$16 sps:$4 sm:$0xff]  }
 0xaa2   : > { %v16531_v37 = vadd.f32 %v11764_v22, %v11674_v60  ;;  %v16533_v24 = vadd.f32 %v11846_v2, %v11682_v52  ;;  %v11766_v25 = vpop.f32.mrb[54].mxu0  ;;  %v11848_v3 = vpop.f32.mrb[54].mxu1  ;;  %v19009_v60 = vld [vmem:[%s25157_s17 + $0x304] ss:$16 sps:$4 sm:$0xff]   ;;  %v19012_v52 = vld [vmem:[%s25157_s17 + $0x30c] ss:$16 sps:$4 sm:$0xff]  }
 0xaa3   : > { %v16173_v4 = vmul.f32 -1.442695, %v16530_v23  ;;  %v11767_v5 = vpop.f32.mrb[55].mxu0  ;;  %v11849_v6 = vpop.f32.mrb[55].mxu1  ;;  %v16175_v63 = vmul.f32 -1.442695, %v16532_v59 }
 0xaa4   : > { %v16174_v7 = vmul.f32 -1.442695, %v16531_v37  ;;  %v16176_v8 = vmul.f32 -1.442695, %v16533_v24  ;;  %v19010_v23 = vld [vmem:[%s25157_s17 + $0x308] ss:$16 sps:$4 sm:$0xff]  }
 0xaa5   : > { %19279 = vpow2.f32 %v16173_v4  ;;  %v19015_v22 = vld [vmem:[%s25157_s17 + $0x324] ss:$16 sps:$4 sm:$0xff]   ;;  %v19018_v2 = vld [vmem:[%s25157_s17 + $0x32c] ss:$16 sps:$4 sm:$0xff]   ;;  %v19013_v37 = vld [vmem:[%s25157_s17 + $0x320] ss:$16 sps:$4 sm:$0xff]  }
 0xaa6   : > { %19281 = vpow2.f32 %v16174_v7  ;;  %v19016_v24 = vld [vmem:[%s25157_s17 + $0x328] ss:$16 sps:$4 sm:$0xff]   ;;  %v19021_v25 = vld [vmem:[%s25157_s17 + $0x344] ss:$16 sps:$4 sm:$0xff]   ;;  %v19024_v3 = vld [vmem:[%s25157_s17 + $0x34c] ss:$16 sps:$4 sm:$0xff]  }
 0xaa7   : > { %19283 = vpow2.f32 %v16176_v8  ;;  %v19019_v4 = vld [vmem:[%s25157_s17 + $0x340] ss:$16 sps:$4 sm:$0xff]   ;;  %v19022_v5 = vld [vmem:[%s25157_s17 + $0x348] ss:$16 sps:$4 sm:$0xff]   ;;  %v19027_v6 = vld [vmem:[%s25157_s17 + $0x364] ss:$16 sps:$4 sm:$0xff]  }
 0xaa8   : > { %v19030_v7 = vld [vmem:[%s25157_s17 + $0x36c] ss:$16 sps:$4 sm:$0xff]   ;;  %v19025_v8 = vld [vmem:[%s25157_s17 + $0x360] ss:$16 sps:$4 sm:$0xff]   ;;  %v19075_v27 = vld [vmem:[%s25160_s20 + $0x64] ss:$16 sps:$4 sm:$0xff]  }
 0xaa9   : > { %v19084_v59 = vld [vmem:[%s25160_s20 + $0x8c] ss:$16 sps:$4 sm:$0xff]  }
 0xaaf   : > { %v19280_v9 = vpop.eup %19279 }
 0xab0   : > { %v11863_v10 = vadd.f32 1.0, %v19280_v9  ;;  %v19282_v11 = vpop.eup %19281  ;;  %v19028_v9 = vld [vmem:[%s25157_s17 + $0x368] ss:$16 sps:$4 sm:$0xff]  }
 0xab1   : > { %v19284_v14 = vpop.eup %19283  ;;  %v11864_v19 = vadd.f32 1.0, %v19282_v11  ;;  %v19033_v11 = vld [vmem:[%s25157_s17 + $0x384] ss:$16 sps:$4 sm:$0xff]  }
 0xab2   : > { %19285 = vrcp.f32 %v11863_v10  ;;  %v11866_v29 = vadd.f32 1.0, %v19284_v14  ;;  %v19036_v14 = vld [vmem:[%s25157_s17 + $0x38c] ss:$16 sps:$4 sm:$0xff]  }
 0xab3   : > { %19287 = vrcp.f32 %v11864_v19 }
 0xab4   : > { %19289 = vrcp.f32 %v11866_v29  ;;  %v19031_v29 = vld [vmem:[%s25157_s17 + $0x380] ss:$16 sps:$4 sm:$0xff]  }
 0xab5   : > { %19291 = vpow2.f32 %v16175_v63  ;;  %v19085_v63 = vld [vmem:[%s25160_s20 + $0xa0] ss:$16 sps:$4 sm:$0xff]  }
 0xabc   : > { %v24383_v30 = vpop.eup %19285 }
 0xabd   : > { %v24385_v34 = vpop.eup %19287  ;;  %v11875_v43 = vpack.c.bf16 %v24383_v30, %v24383_v30 }
 0xabe   : > { %v24387_v35 = vpop.eup %19289  ;;  %v11876_v38 = vpack.c.bf16 %v24385_v34, %v24385_v34 }
 0xabf   : > { %v11878_v45 = vpack.c.bf16 %v24387_v35, %v24387_v35  ;;  %v19292_v10 = vpop.eup %19291 }
 0xac0   : > { %12701 = vmatprep.mubr.bf16.mxu0 %v11876_v38  ;;  %12783 = vmatprep.mubr.bf16.mxu1 %v11876_v38  ;;  %v11865_v19 = vadd.f32 1.0, %v19292_v10  ;;  %v19034_v38 = vld [vmem:[%s25157_s17 + $0x388] ss:$16 sps:$4 sm:$0xff]   ;;  %v19114_v10 = vld [vmem:[%s25160_s20 + $0x12c] ss:$16 sps:$4 sm:$0xff]  }
 0xac1   : > { %12702 = vmatmul.mubr.bf16.vlgmr.msra.gmra.mrb[56].mxu0 %v11875_v43  ;;  %12784 = vmatmul.mubr.bf16.vlgmr.msra.gmra.mrb[56].mxu1 %v11875_v43  ;;  %v19037_v43 = vld [vmem:[%s25157_s17 + $0x3a0] ss:$16 sps:$4 sm:$0xff]  }
 0xac2   : > { %12711 = vmatpush1.bf16.msra.mxu0 %v18959_v42  ;;  %12793 = vmatpush1.bf16.msra.mxu1 %v18962_v16  ;;  %v19039_v42 = vld [vmem:[%s25157_s17 + $0x3a4] ss:$16 sps:$4 sm:$0xff]   ;;  %v19042_v16 = vld [vmem:[%s25157_s17 + $0x3ac] ss:$16 sps:$4 sm:$0xff]   ;;  %19293 = vrcp.f32 %v11865_v19 }
 0xac3   : > { %12742 = vmatprep.mubr.bf16.mxu0 %v11878_v45  ;;  %12824 = vmatprep.mubr.bf16.mxu1 %v11878_v45  ;;  %v19048_v45 = vld [vmem:[%s25157_s17 + $0x3cc] ss:$16 sps:$4 sm:$0xff]   ;;  %v19117_v19 = vld [vmem:[%s25160_s20 + $0x144] ss:$16 sps:$4 sm:$0xff]  }
 0xac4   : > { %12712 = vmatprep.subr.bf16.mxu0 %v18967_v44  ;;  %12794 = vmatprep.subr.bf16.mxu1 %v18970_v28  ;;  %v19040_v44 = vld [vmem:[%s25157_s17 + $0x3a8] ss:$16 sps:$4 sm:$0xff]   ;;  %v19045_v28 = vld [vmem:[%s25157_s17 + $0x3c4] ss:$16 sps:$4 sm:$0xff]  }
 0xac6   : > { %12713 = vmatpush1.bf16.msra.mxu0 %v18965_v31  ;;  %12795 = vmatpush1.bf16.msra.mxu1 %v18968_v32  ;;  %v19043_v31 = vld [vmem:[%s25157_s17 + $0x3c0] ss:$16 sps:$4 sm:$0xff]   ;;  %v19046_v32 = vld [vmem:[%s25157_s17 + $0x3c8] ss:$16 sps:$4 sm:$0xff]  }
 0xac7   : > { %12714 = vmatprep.subr.bf16.mxu0 %v18973_v18  ;;  %12796 = vmatprep.subr.bf16.mxu1 %v18976_v17  ;;  %v19051_v18 = vld [vmem:[%s25157_s17 + $0x3e4] ss:$16 sps:$4 sm:$0xff]   ;;  %v19054_v17 = vld [vmem:[%s25157_s17 + $0x3ec] ss:$16 sps:$4 sm:$0xff]  }
 0xaca   : > { %12715 = vmatpush1.bf16.msra.mxu0 %v18971_v46  ;;  %12797 = vmatpush1.bf16.msra.mxu1 %v18974_v50  ;;  %v19049_v46 = vld [vmem:[%s25157_s17 + $0x3e0] ss:$16 sps:$4 sm:$0xff]   ;;  %v19052_v50 = vld [vmem:[%s25157_s17 + $0x3e8] ss:$16 sps:$4 sm:$0xff]  }
 0xacb   : > { %12716 = vmatprep.subr.bf16.mxu0 %v18979_v51  ;;  %12798 = vmatprep.subr.bf16.mxu1 %v18982_v33  ;;  %v19057_v51 = vld [vmem:[%s25160_s20 + $0x4] ss:$16 sps:$4 sm:$0xff]   ;;  %v19060_v33 = vld [vmem:[%s25160_s20 + $0xc] ss:$16 sps:$4 sm:$0xff]  }
 0xace   : > { %12717 = vmatpush1.bf16.msra.mxu0 %v18977_v36  ;;  %12799 = vmatpush1.bf16.msra.mxu1 %v18980_v40  ;;  %v24590_v36 = vpop.eup %19293  ;;  %v19055_v40 = vld [vmem:[%s25160_s20] ss:$16 sps:$4 sm:$0xff]  }
 0xacf   : > { %12718 = vmatprep.subr.bf16.mxu0 %v18985_v39  ;;  %12800 = vmatprep.subr.bf16.mxu1 %v18988_v41  ;;  %v19058_v39 = vld [vmem:[%s25160_s20 + $0x8] ss:$16 sps:$4 sm:$0xff]   ;;  %v11877_v41 = vpack.c.bf16 %v24590_v36, %v24590_v36 }
 0xad2   : > { %12719 = vmatpush1.bf16.msra.mxu0 %v18983_v62  ;;  %12801 = vmatpush1.bf16.msra.mxu1 %v18986_v49  ;;  %v19063_v62 = vld [vmem:[%s25160_s20 + $0x24] ss:$16 sps:$4 sm:$0xff]   ;;  %v19066_v49 = vld [vmem:[%s25160_s20 + $0x2c] ss:$16 sps:$4 sm:$0xff]  }
 0xad3   : > { %12720 = vmatprep.subr.bf16.mxu0 %v18991_v53  ;;  %12802 = vmatprep.subr.bf16.mxu1 %v18994_v54  ;;  %v19061_v53 = vld [vmem:[%s25160_s20 + $0x20] ss:$16 sps:$4 sm:$0xff]   ;;  %v19064_v54 = vld [vmem:[%s25160_s20 + $0x28] ss:$16 sps:$4 sm:$0xff]  }
 0xad6   : > { %12721 = vmatpush1.bf16.msra.mxu0 %v18989_v12  ;;  %12803 = vmatpush1.bf16.msra.mxu1 %v18992_v55  ;;  %v19069_v12 = vld [vmem:[%s25160_s20 + $0x44] ss:$16 sps:$4 sm:$0xff]   ;;  %v19072_v55 = vld [vmem:[%s25160_s20 + $0x4c] ss:$16 sps:$4 sm:$0xff]  }
 0xad7   : > { %12722 = vmatprep.subr.bf16.mxu0 %v18997_v15  ;;  %12804 = vmatprep.subr.bf16.mxu1 %v19000_v47  ;;  %v19067_v15 = vld [vmem:[%s25160_s20 + $0x40] ss:$16 sps:$4 sm:$0xff]   ;;  %v19070_v47 = vld [vmem:[%s25160_s20 + $0x48] ss:$16 sps:$4 sm:$0xff]  }
 0xada   : > { %12723 = vmatpush1.bf16.msra.mxu0 %v18995_v48  ;;  %12805 = vmatpush1.bf16.msra.mxu1 %v18998_v58  ;;  %v19078_v48 = vld [vmem:[%s25160_s20 + $0x6c] ss:$16 sps:$4 sm:$0xff]   ;;  %v19073_v58 = vld [vmem:[%s25160_s20 + $0x60] ss:$16 sps:$4 sm:$0xff]  }
 0xadb   : > { %12724 = vmatprep.subr.bf16.mxu0 %v19003_v61  ;;  %12806 = vmatprep.subr.bf16.mxu1 %v19006_v13  ;;  %v19076_v61 = vld [vmem:[%s25160_s20 + $0x68] ss:$16 sps:$4 sm:$0xff]   ;;  %v19081_v13 = vld [vmem:[%s25160_s20 + $0x84] ss:$16 sps:$4 sm:$0xff]  }
 0xade   : > { %12725 = vmatpush1.bf16.msra.mxu0 %v19001_v57  ;;  %12807 = vmatpush1.bf16.msra.mxu1 %v19004_v56  ;;  %v19079_v57 = vld [vmem:[%s25160_s20 + $0x80] ss:$16 sps:$4 sm:$0xff]   ;;  %v19082_v56 = vld [vmem:[%s25160_s20 + $0x88] ss:$16 sps:$4 sm:$0xff]  }
 0xadf   : > { %12726 = vmatprep.subr.bf16.mxu0 %v19009_v60  ;;  %12808 = vmatprep.subr.bf16.mxu1 %v19012_v52  ;;  %v19087_v60 = vld [vmem:[%s25160_s20 + $0xa4] ss:$16 sps:$4 sm:$0xff]   ;;  %v19090_v52 = vld [vmem:[%s25160_s20 + $0xac] ss:$16 sps:$4 sm:$0xff]  }
 0xae2   : > { %12727 = vmatpush1.bf16.msra.mxu0 %v19007_v20  ;;  %12809 = vmatpush1.bf16.msra.mxu1 %v19010_v23  ;;  %v19088_v20 = vld [vmem:[%s25160_s20 + $0xa8] ss:$16 sps:$4 sm:$0xff]   ;;  %v19093_v23 = vld [vmem:[%s25160_s20 + $0xc4] ss:$16 sps:$4 sm:$0xff]  }
 0xae3   : > { %12728 = vmatprep.subr.bf16.mxu0 %v19015_v22  ;;  %12810 = vmatprep.subr.bf16.mxu1 %v19018_v2  ;;  %v19096_v22 = vld [vmem:[%s25160_s20 + $0xcc] ss:$16 sps:$4 sm:$0xff]   ;;  %v19091_v2 = vld [vmem:[%s25160_s20 + $0xc0] ss:$16 sps:$4 sm:$0xff]  }
 0xae6   : > { %12729 = vmatpush1.bf16.msra.mxu0 %v19013_v37  ;;  %12811 = vmatpush1.bf16.msra.mxu1 %v19016_v24  ;;  %v19094_v37 = vld [vmem:[%s25160_s20 + $0xc8] ss:$16 sps:$4 sm:$0xff]   ;;  %v19099_v24 = vld [vmem:[%s25160_s20 + $0xe4] ss:$16 sps:$4 sm:$0xff]  }
 0xae7   : > { %12730 = vmatprep.subr.bf16.mxu0 %v19021_v25  ;;  %12812 = vmatprep.subr.bf16.mxu1 %v19024_v3  ;;  %v19102_v25 = vld [vmem:[%s25160_s20 + $0xec] ss:$16 sps:$4 sm:$0xff]   ;;  %v19097_v3 = vld [vmem:[%s25160_s20 + $0xe0] ss:$16 sps:$4 sm:$0xff]  }
 0xaea   : > { %12731 = vmatpush1.bf16.msra.mxu0 %v19019_v4  ;;  %12813 = vmatpush1.bf16.msra.mxu1 %v19022_v5  ;;  %v19100_v4 = vld [vmem:[%s25160_s20 + $0xe8] ss:$16 sps:$4 sm:$0xff]   ;;  %v19105_v5 = vld [vmem:[%s25160_s20 + $0x104] ss:$16 sps:$4 sm:$0xff]  }
 0xaeb   : > { %12732 = vmatprep.subr.bf16.mxu0 %v19027_v6  ;;  %12814 = vmatprep.subr.bf16.mxu1 %v19030_v7  ;;  %v19108_v6 = vld [vmem:[%s25160_s20 + $0x10c] ss:$16 sps:$4 sm:$0xff]   ;;  %v19103_v7 = vld [vmem:[%s25160_s20 + $0x100] ss:$16 sps:$4 sm:$0xff]  }
 0xaee   : > { %12733 = vmatpush1.bf16.msra.mxu0 %v19025_v8  ;;  %12815 = vmatpush1.bf16.msra.mxu1 %v19028_v9  ;;  %v19106_v8 = vld [vmem:[%s25160_s20 + $0x108] ss:$16 sps:$4 sm:$0xff]   ;;  %v19111_v9 = vld [vmem:[%s25160_s20 + $0x124] ss:$16 sps:$4 sm:$0xff]  }
 0xaef   : > { %12734 = vmatprep.subr.bf16.mxu0 %v19033_v11  ;;  %12816 = vmatprep.subr.bf16.mxu1 %v19036_v14  ;;  %v19109_v11 = vld [vmem:[%s25160_s20 + $0x120] ss:$16 sps:$4 sm:$0xff]   ;;  %v19112_v14 = vld [vmem:[%s25160_s20 + $0x128] ss:$16 sps:$4 sm:$0xff]  }
 0xaf2   : > { %12735 = vmatpush1.bf16.msra.mxu0 %v19031_v29  ;;  %12817 = vmatpush1.bf16.msra.mxu1 %v19034_v38  ;;  %v19120_v29 = vld [vmem:[%s25160_s20 + $0x14c] ss:$16 sps:$4 sm:$0xff]   ;;  %v19115_v38 = vld [vmem:[%s25160_s20 + $0x140] ss:$16 sps:$4 sm:$0xff]  }
 0xaf3   : > { %12736 = vmatprep.subr.bf16.mxu0 %v19039_v42  ;;  %12818 = vmatprep.subr.bf16.mxu1 %v19042_v16  ;;  %v19118_v42 = vld [vmem:[%s25160_s20 + $0x148] ss:$16 sps:$4 sm:$0xff]   ;;  %v19123_v16 = vld [vmem:[%s25160_s20 + $0x164] ss:$16 sps:$4 sm:$0xff]  }
 0xaf6   : > { %12737 = vmatpush1.bf16.msra.mxu0 %v19037_v43  ;;  %12819 = vmatpush1.bf16.msra.mxu1 %v19040_v44  ;;  %v19126_v43 = vld [vmem:[%s25160_s20 + $0x16c] ss:$16 sps:$4 sm:$0xff]   ;;  %v19121_v44 = vld [vmem:[%s25160_s20 + $0x160] ss:$16 sps:$4 sm:$0xff]  }
 0xaf7   : > { %12738 = vmatprep.subr.bf16.mxu0 %v19045_v28  ;;  %12820 = vmatprep.subr.bf16.mxu1 %v19048_v45  ;;  %v19124_v28 = vld [vmem:[%s25160_s20 + $0x168] ss:$16 sps:$4 sm:$0xff]   ;;  %v19129_v45 = vld [vmem:[%s25160_s20 + $0x184] ss:$16 sps:$4 sm:$0xff]  }
 0xafa   : > { %12739 = vmatpush1.bf16.msra.mxu0 %v19043_v31  ;;  %12821 = vmatpush1.bf16.msra.mxu1 %v19046_v32  ;;  %v19132_v31 = vld [vmem:[%s25160_s20 + $0x18c] ss:$16 sps:$4 sm:$0xff]   ;;  %v19127_v32 = vld [vmem:[%s25160_s20 + $0x180] ss:$16 sps:$4 sm:$0xff]  }
 0xafb   : > { %12740 = vmatprep.subr.bf16.mxu0 %v19051_v18  ;;  %12822 = vmatprep.subr.bf16.mxu1 %v19054_v17  ;;  %v19130_v18 = vld [vmem:[%s25160_s20 + $0x188] ss:$16 sps:$4 sm:$0xff]   ;;  %v19135_v17 = vld [vmem:[%s25160_s20 + $0x1a4] ss:$16 sps:$4 sm:$0xff]  }
 0xafe   : > { %12741 = vmatpush1.bf16.msra.mxu0 %v19049_v46  ;;  %12823 = vmatpush1.bf16.msra.mxu1 %v19052_v50  ;;  %v19138_v46 = vld [vmem:[%s25160_s20 + $0x1ac] ss:$16 sps:$4 sm:$0xff]   ;;  %v19133_v50 = vld [vmem:[%s25160_s20 + $0x1a0] ss:$16 sps:$4 sm:$0xff]  }
 0xaff   : > { %13642 = vmatprep.subr.bf16.mxu0 %v19057_v51  ;;  %13724 = vmatprep.subr.bf16.mxu1 %v19060_v33  ;;  %v19136_v51 = vld [vmem:[%s25160_s20 + $0x1a8] ss:$16 sps:$4 sm:$0xff]   ;;  %v19141_v33 = vld [vmem:[%s25160_s20 + $0x1c4] ss:$16 sps:$4 sm:$0xff]  }
 0xb01   : > { %12743 = vmatmul.mubr.bf16.vlgmr.msra.gmra.mrb[56].mxu0 %v11877_v41  ;;  %12825 = vmatmul.mubr.bf16.vlgmr.msra.gmra.mrb[56].mxu1 %v11877_v41  ;;  %v19142_v41 = vld [vmem:[%s25160_s20 + $0x1c8] ss:$16 sps:$4 sm:$0xff]  }
 0xb02   : > { %13643 = vmatpush1.bf16.msra.mxu0 %v19055_v40  ;;  %13725 = vmatpush1.bf16.msra.mxu1 %v19058_v39  ;;  %v19144_v40 = vld [vmem:[%s25160_s20 + $0x1cc] ss:$16 sps:$4 sm:$0xff]   ;;  %v19139_v39 = vld [vmem:[%s25160_s20 + $0x1c0] ss:$16 sps:$4 sm:$0xff]  }
 0xb03   : > { %13644 = vmatprep.subr.bf16.mxu0 %v19063_v62  ;;  %13726 = vmatprep.subr.bf16.mxu1 %v19066_v49  ;;  %v19147_v62 = vld [vmem:[%s25160_s20 + $0x1e4] ss:$16 sps:$4 sm:$0xff]   ;;  %v19150_v49 = vld [vmem:[%s25160_s20 + $0x1ec] ss:$16 sps:$4 sm:$0xff]  }
 0xb06   : > { %13645 = vmatpush1.bf16.msra.mxu0 %v19061_v53  ;;  %13727 = vmatpush1.bf16.msra.mxu1 %v19064_v54  ;;  %v19145_v53 = vld [vmem:[%s25160_s20 + $0x1e0] ss:$16 sps:$4 sm:$0xff]   ;;  %v19148_v54 = vld [vmem:[%s25160_s20 + $0x1e8] ss:$16 sps:$4 sm:$0xff]  }
 0xb07   : > { %13646 = vmatprep.subr.bf16.mxu0 %v19069_v12  ;;  %13728 = vmatprep.subr.bf16.mxu1 %v19072_v55  ;;  %v19153_v12 = vld [vmem:[%s25160_s20 + $0x204] ss:$16 sps:$4 sm:$0xff]   ;;  %v19156_v55 = vld [vmem:[%s25160_s20 + $0x20c] ss:$16 sps:$4 sm:$0xff]  }
 0xb0a   : > { %13647 = vmatpush1.bf16.msra.mxu0 %v19067_v15  ;;  %13729 = vmatpush1.bf16.msra.mxu1 %v19070_v47  ;;  %v12007_v15 = vld [vmem:[%s25158_s18] sm:$0xf] }
 0xb0b   : > { %13648 = vmatprep.subr.bf16.mxu0 %v19075_v27  ;;  %13730 = vmatprep.subr.bf16.mxu1 %v19078_v48  ;;  %v12652_v47 = vrot.slane %v12007_v15, %v19933_v0  ;;  %v12660_v27 = vrot.slane %v12007_v15, %v19947_v21  ;;  %v12656_v48 = vrot.slane %v12007_v15, %v19936_v1 }
 0xb0e   : > { %13649 = vmatpush1.bf16.msra.mxu0 %v19073_v58  ;;  %13731 = vmatpush1.bf16.msra.mxu1 %v19076_v61  ;;  %v12664_v58 = vrot.slane %v12007_v15, %v19957_v26  ;;  %v19198_v15 = vld [vmem:[%s25160_s20 + $0x2ec] ss:$16 sps:$4 sm:$0xff]  }
 0xb0f   : > { %13650 = vmatprep.subr.bf16.mxu0 %v19081_v13  ;;  %13732 = vmatprep.subr.bf16.mxu1 %v19084_v59  ;;  %v12839_v59 = vstv %s16631_s1  ;;  %s19319_s1 = sshll.u32 %s19380_s19, 4  ;;  %s19320_s1 = int_to_ptr.vmem [resolvable:$false] %s19319_s1 }
 0xb10   : > { %s19321_s10 = scalar_lea.vmem %s19320_s1, 32  ;;  %p19322_p0 = scmp.lt.s32.totalorder %s25100_s27, %s19320_s1 }
 0xb11   : > { %p19323_p1 = scmp.lt.s32.totalorder %s19321_s10, %s19315_s0 }
 0xb12   : > { %13651 = vmatpush1.bf16.msra.mxu0 %v19079_v57  ;;  %13733 = vmatpush1.bf16.msra.mxu1 %v19082_v56 }
 0xb13   : > { %13652 = vmatprep.subr.bf16.mxu0 %v19087_v60  ;;  %13734 = vmatprep.subr.bf16.mxu1 %v19090_v52  ;;  %p19324_p2 = por %p19323_p1, %p19322_p0 }
 0xb15   : > { %p19325_p3 = pnand %p19324_p2, %p19318_p13 }
 0xb16   : > { %13653 = vmatpush1.bf16.msra.mxu0 %v19085_v63  ;;  %13735 = vmatpush1.bf16.msra.mxu1 %v19088_v20 }
 0xb17   : > { %13654 = vmatprep.subr.bf16.mxu0 %v19093_v23  ;;  %13736 = vmatprep.subr.bf16.mxu1 %v19096_v22 }
 0xb1a   : > { %13655 = vmatpush1.bf16.msra.mxu0 %v19091_v2  ;;  %13737 = vmatpush1.bf16.msra.mxu1 %v19094_v37 }
 0xb1b   : > { %13656 = vmatprep.subr.bf16.mxu0 %v19099_v24  ;;  %13738 = vmatprep.subr.bf16.mxu1 %v19102_v25 }
 0xb1e   : > { %13657 = vmatpush1.bf16.msra.mxu0 %v19097_v3  ;;  %13739 = vmatpush1.bf16.msra.mxu1 %v19100_v4 }
 0xb1f   : > { %13658 = vmatprep.subr.bf16.mxu0 %v19105_v5  ;;  %13740 = vmatprep.subr.bf16.mxu1 %v19108_v6 }
 0xb22   : > { %13659 = vmatpush1.bf16.msra.mxu0 %v19103_v7  ;;  %13741 = vmatpush1.bf16.msra.mxu1 %v19106_v8 }
 0xb23   : > { %13660 = vmatprep.subr.bf16.mxu0 %v19111_v9  ;;  %13742 = vmatprep.subr.bf16.mxu1 %v19114_v10  ;;  %v19151_v9 = vld [vmem:[%s25160_s20 + $0x200] ss:$16 sps:$4 sm:$0xff]   ;;  %v19154_v10 = vld [vmem:[%s25160_s20 + $0x208] ss:$16 sps:$4 sm:$0xff]  }
 0xb26   : > { %13661 = vmatpush1.bf16.msra.mxu0 %v19109_v11  ;;  %13743 = vmatpush1.bf16.msra.mxu1 %v19112_v14 }
 0xb27   : > { %13662 = vmatprep.subr.bf16.mxu0 %v19117_v19  ;;  %13744 = vmatprep.subr.bf16.mxu1 %v19120_v29  ;;  %v19159_v19 = vld [vmem:[%s25160_s20 + $0x224] ss:$16 sps:$4 sm:$0xff]   ;;  %v19162_v29 = vld [vmem:[%s25160_s20 + $0x22c] ss:$16 sps:$4 sm:$0xff]  }
 0xb2a   : > { %13663 = vmatpush1.bf16.msra.mxu0 %v19115_v38  ;;  %13745 = vmatpush1.bf16.msra.mxu1 %v19118_v42  ;;  %v19157_v42 = vld [vmem:[%s25160_s20 + $0x220] ss:$16 sps:$4 sm:$0xff]  }
 0xb2b   : > { %13664 = vmatprep.subr.bf16.mxu0 %v19123_v16  ;;  %13746 = vmatprep.subr.bf16.mxu1 %v19126_v43  ;;  %v19160_v16 = vld [vmem:[%s25160_s20 + $0x228] ss:$16 sps:$4 sm:$0xff]   ;;  %v19165_v43 = vld [vmem:[%s25160_s20 + $0x244] ss:$16 sps:$4 sm:$0xff]  }
 0xb2e   : > { %13665 = vmatpush1.bf16.msra.mxu0 %v19121_v44  ;;  %13747 = vmatpush1.bf16.msra.mxu1 %v19124_v28  ;;  %v19168_v44 = vld [vmem:[%s25160_s20 + $0x24c] ss:$16 sps:$4 sm:$0xff]   ;;  %v19163_v28 = vld [vmem:[%s25160_s20 + $0x240] ss:$16 sps:$4 sm:$0xff]  }
 0xb2f   : > { %13666 = vmatprep.subr.bf16.mxu0 %v19129_v45  ;;  %13748 = vmatprep.subr.bf16.mxu1 %v19132_v31  ;;  %v19166_v45 = vld [vmem:[%s25160_s20 + $0x248] ss:$16 sps:$4 sm:$0xff]   ;;  %v19171_v31 = vld [vmem:[%s25160_s20 + $0x264] ss:$16 sps:$4 sm:$0xff]  }
 0xb32   : > { %13667 = vmatpush1.bf16.msra.mxu0 %v19127_v32  ;;  %13749 = vmatpush1.bf16.msra.mxu1 %v19130_v18  ;;  %v19174_v32 = vld [vmem:[%s25160_s20 + $0x26c] ss:$16 sps:$4 sm:$0xff]   ;;  %v19169_v18 = vld [vmem:[%s25160_s20 + $0x260] ss:$16 sps:$4 sm:$0xff]  }
 0xb33   : > { %13668 = vmatprep.subr.bf16.mxu0 %v19135_v17  ;;  %13750 = vmatprep.subr.bf16.mxu1 %v19138_v46  ;;  %v19172_v17 = vld [vmem:[%s25160_s20 + $0x268] ss:$16 sps:$4 sm:$0xff]   ;;  %v19177_v46 = vld [vmem:[%s25160_s20 + $0x284] ss:$16 sps:$4 sm:$0xff]  }
 0xb36   : > { %13669 = vmatpush1.bf16.msra.mxu0 %v19133_v50  ;;  %13751 = vmatpush1.bf16.msra.mxu1 %v19136_v51  ;;  %v19180_v50 = vld [vmem:[%s25160_s20 + $0x28c] ss:$16 sps:$4 sm:$0xff]   ;;  %v19175_v51 = vld [vmem:[%s25160_s20 + $0x280] ss:$16 sps:$4 sm:$0xff]  }
 0xb37   : > { %13670 = vmatprep.subr.bf16.mxu0 %v19141_v33  ;;  %13752 = vmatprep.subr.bf16.mxu1 %v19144_v40  ;;  %v19178_v33 = vld [vmem:[%s25160_s20 + $0x288] ss:$16 sps:$4 sm:$0xff]   ;;  %v19183_v40 = vld [vmem:[%s25160_s20 + $0x2a4] ss:$16 sps:$4 sm:$0xff]  }
 0xb3a   : > { %13671 = vmatpush1.bf16.msra.mxu0 %v19139_v39  ;;  %13753 = vmatpush1.bf16.msra.mxu1 %v19142_v41  ;;  %v19186_v39 = vld [vmem:[%s25160_s20 + $0x2ac] ss:$16 sps:$4 sm:$0xff]   ;;  %v19181_v41 = vld [vmem:[%s25160_s20 + $0x2a0] ss:$16 sps:$4 sm:$0xff]  }
 0xb3b   : > { %13672 = vmatprep.subr.bf16.mxu0 %v19147_v62  ;;  %13754 = vmatprep.subr.bf16.mxu1 %v19150_v49  ;;  %v19184_v62 = vld [vmem:[%s25160_s20 + $0x2a8] ss:$16 sps:$4 sm:$0xff]   ;;  %v19189_v49 = vld [vmem:[%s25160_s20 + $0x2c4] ss:$16 sps:$4 sm:$0xff]  }
 0xb3e   : > { %13673 = vmatpush1.bf16.msra.mxu0 %v19145_v53  ;;  %13755 = vmatpush1.bf16.msra.mxu1 %v19148_v54  ;;  %v19192_v53 = vld [vmem:[%s25160_s20 + $0x2cc] ss:$16 sps:$4 sm:$0xff]   ;;  %v19187_v54 = vld [vmem:[%s25160_s20 + $0x2c0] ss:$16 sps:$4 sm:$0xff]  }
 0xb3f   : > { %13683 = vmatprep.subr.bf16.mxu0 %v19153_v12  ;;  %13765 = vmatprep.subr.bf16.mxu1 %v19156_v55  ;;  %v19190_v12 = vld [vmem:[%s25160_s20 + $0x2c8] ss:$16 sps:$4 sm:$0xff]   ;;  %v19195_v55 = vld [vmem:[%s25160_s20 + $0x2e4] ss:$16 sps:$4 sm:$0xff]  }
 0xbd4   : > { %v12744_v61 = vpop.f32.mrb[56].mxu0  ;;  %v12826_v13 = vpop.f32.mrb[56].mxu1 }
 0xbd5   : > { %v16534_v57 = vadd.f32 %v12744_v61, %v12652_v47  ;;  %v16536_v56 = vadd.f32 %v12826_v13, %v12660_v27  ;;  %v12746_v60 = vpop.f32.mrb[57].mxu0  ;;  %v12828_v52 = vpop.f32.mrb[57].mxu1  ;;  %v19193_v47 = vld [vmem:[%s25160_s20 + $0x2e0] ss:$16 sps:$4 sm:$0xff]   ;;  %v19196_v27 = vld [vmem:[%s25160_s20 + $0x2e8] ss:$16 sps:$4 sm:$0xff]  }
 0xbd6   : > { %v16535_v63 = vadd.f32 %v12746_v60, %v12656_v48  ;;  %v16537_v20 = vadd.f32 %v12828_v52, %v12664_v58  ;;  %v12748_v23 = vpop.f32.mrb[58].mxu0  ;;  %v12830_v22 = vpop.f32.mrb[58].mxu1  ;;  %v19201_v48 = vld [vmem:[%s25160_s20 + $0x304] ss:$16 sps:$4 sm:$0xff]   ;;  %v19204_v58 = vld [vmem:[%s25160_s20 + $0x30c] ss:$16 sps:$4 sm:$0xff]  }
 0xbd7   : > { %vm12835_vm3 = vcmp.ge.f32.partialorder %v16534_v57, 0.0  ;;  %vm12837_vm4 = vcmp.ge.f32.partialorder %v16536_v56, 0.0  ;;  %v12840_v2 = vmul.f32 %v16534_v57, %v12839_v59  ;;  %v12842_v37 = vmul.f32 %v16536_v56, %v12839_v59  ;;  %v12749_v24 = vpop.f32.mrb[59].mxu0  ;;  %v12831_v25 = vpop.f32.mrb[59].mxu1  ;;  %v19199_v61 = vld [vmem:[%s25160_s20 + $0x300] ss:$16 sps:$4 sm:$0xff]  }
 0xbd8   : > { %vm12836_vm5 = vcmp.ge.f32.partialorder %v16535_v63, 0.0  ;;  %vm12838_vm6 = vcmp.ge.f32.partialorder %v16537_v20, 0.0  ;;  %v12841_v3 = vmul.f32 %v16535_v63, %v12839_v59  ;;  %v12843_v4 = vmul.f32 %v16537_v20, %v12839_v59  ;;  %v19202_v13 = vld [vmem:[%s25160_s20 + $0x308] ss:$16 sps:$4 sm:$0xff]   ;;  %v19207_v59 = vld [vmem:[%s25160_s20 + $0x324] ss:$16 sps:$4 sm:$0xff]  }
 0xbd9   : > { %v12844_v5 = vsel %vm12835_vm3, %v16534_v57, %v12840_v2  ;;  %v24793_v6 = vsel %vm12837_vm4, %v16536_v56, %v12842_v37  ;;  %v19210_v57 = vld [vmem:[%s25160_s20 + $0x32c] ss:$16 sps:$4 sm:$0xff]   ;;  %v19205_v56 = vld [vmem:[%s25160_s20 + $0x320] ss:$16 sps:$4 sm:$0xff]   ;;  %v19208_v60 = vld [vmem:[%s25160_s20 + $0x328] ss:$16 sps:$4 sm:$0xff]  }
 0xbda   : > { %v12845_v7 = vsel %vm12836_vm5, %v16535_v63, %v12841_v3  ;;  %v12847_v11 = vsel %vm12838_vm6, %v16537_v20, %v12843_v4  ;;  %v12848_v14 = vpack.c.bf16 %v12844_v5, %v12844_v5  ;;  %v19213_v52 = vld [vmem:[%s25160_s20 + $0x344] ss:$16 sps:$4 sm:$0xff]   ;;  %v19216_v63 = vld [vmem:[%s25160_s20 + $0x34c] ss:$16 sps:$4 sm:$0xff]   ;;  %v19211_v20 = vld [vmem:[%s25160_s20 + $0x340] ss:$16 sps:$4 sm:$0xff]  }
 0xbdb   : > { %v12849_v8 = vpack.c.bf16 %v12845_v7, %v12845_v7  ;;  %v12851_v38 = vpack.c.bf16 %v12847_v11, %v12847_v11  ;;  %v19214_v23 = vld [vmem:[%s25160_s20 + $0x348] ss:$16 sps:$4 sm:$0xff]   ;;  %v19219_v22 = vld [vmem:[%s25160_s20 + $0x364] ss:$16 sps:$4 sm:$0xff]   ;;  %v19222_v2 = vld [vmem:[%s25160_s20 + $0x36c] ss:$16 sps:$4 sm:$0xff]  }
 0xbdc   : > { %v19217_v37 = vld [vmem:[%s25160_s20 + $0x360] ss:$16 sps:$4 sm:$0xff]   ;;  %v19220_v24 = vld [vmem:[%s25160_s20 + $0x368] ss:$16 sps:$4 sm:$0xff]   ;;  %v19225_v25 = vld [vmem:[%s25160_s20 + $0x384] ss:$16 sps:$4 sm:$0xff]  }
 0xbdd   : > { %13674 = vmatprep.mubr.bf16.mxu0 %v12849_v8  ;;  %13756 = vmatprep.mubr.bf16.mxu1 %v12849_v8  ;;  %v19228_v3 = vld [vmem:[%s25160_s20 + $0x38c] ss:$16 sps:$4 sm:$0xff]   ;;  %v19223_v4 = vld [vmem:[%s25160_s20 + $0x380] ss:$16 sps:$4 sm:$0xff]   ;;  %v19226_v5 = vld [vmem:[%s25160_s20 + $0x388] ss:$16 sps:$4 sm:$0xff]  }
 0xbde   : > { %13675 = vmatmul.mubr.bf16.vlgmr.msra.gmra.mrb[60].mxu0 %v12848_v14  ;;  %13757 = vmatmul.mubr.bf16.vlgmr.msra.gmra.mrb[60].mxu1 %v12848_v14  ;;  %v19231_v7 = vld [vmem:[%s25160_s20 + $0x3a4] ss:$16 sps:$4 sm:$0xff]   ;;  %v19234_v8 = vld [vmem:[%s25160_s20 + $0x3ac] ss:$16 sps:$4 sm:$0xff]  }
 0xbdf   : > { %13684 = vmatpush1.bf16.msra.mxu0 %v19151_v9  ;;  %13766 = vmatpush1.bf16.msra.mxu1 %v19154_v10  ;;  %v19229_v9 = vld [vmem:[%s25160_s20 + $0x3a0] ss:$16 sps:$4 sm:$0xff]   ;;  %v19232_v10 = vld [vmem:[%s25160_s20 + $0x3a8] ss:$16 sps:$4 sm:$0xff]   ;;  %v19237_v11 = vld [vmem:[%s25160_s20 + $0x3c4] ss:$16 sps:$4 sm:$0xff]  }
 0xbe0   : > { %13715 = vmatprep.mubr.bf16.mxu0 %v12851_v38  ;;  %13797 = vmatprep.mubr.bf16.mxu1 %v12851_v38  ;;  %v19240_v14 = vld [vmem:[%s25160_s20 + $0x3cc] ss:$16 sps:$4 sm:$0xff]   ;;  %v19243_v38 = vld [vmem:[%s25160_s20 + $0x3e4] ss:$16 sps:$4 sm:$0xff]  }
 0xbe1   : > { %13685 = vmatprep.subr.bf16.mxu0 %v19159_v19  ;;  %13767 = vmatprep.subr.bf16.mxu1 %v19162_v29  ;;  %v19235_v19 = vld [vmem:[%s25160_s20 + $0x3c0] ss:$16 sps:$4 sm:$0xff]   ;;  %v19238_v29 = vld [vmem:[%s25160_s20 + $0x3c8] ss:$16 sps:$4 sm:$0xff]  }
 0xbe3   : > { %13686 = vmatpush1.bf16.msra.mxu0 %v19157_v42  ;;  %13768 = vmatpush1.bf16.msra.mxu1 %v19160_v16  ;;  %v19246_v42 = vld [vmem:[%s25160_s20 + $0x3ec] ss:$16 sps:$4 sm:$0xff]   ;;  %v19241_v16 = vld [vmem:[%s25160_s20 + $0x3e0] ss:$16 sps:$4 sm:$0xff]  }
 0xbe4   : > { %13687 = vmatprep.subr.bf16.mxu0 %v19165_v43  ;;  %13769 = vmatprep.subr.bf16.mxu1 %v19168_v44  ;;  %v19244_v43 = vld [vmem:[%s25160_s20 + $0x3e8] ss:$16 sps:$4 sm:$0xff]   ;;  %v12850_v44 = vpack.c.bf16 %v24793_v6, %v24793_v6 }
 0xbe5   : > { %v19251_v6 = vld [vmem:[%s25162_s22 + $0x48] sm:$0xff]  }
 0xbe7   : > { %13688 = vmatpush1.bf16.msra.mxu0 %v19163_v28  ;;  %13770 = vmatpush1.bf16.msra.mxu1 %v19166_v45  ;;  %v19247_v28 = vld [vmem:[%s25162_s22 + $0x40] sm:$0xff]  }
 0xbe8   : > { %13689 = vmatprep.subr.bf16.mxu0 %v19171_v31  ;;  %13771 = vmatprep.subr.bf16.mxu1 %v19174_v32  ;;  %v19248_v45 = vld [vmem:[%s25162_s22 + $0xc0] sm:$0xff]  }
 0xbe9   : > { %v19249_v31 = vld [vmem:[%s25162_s22] sm:$0xff]  }
 0xbea   : > { %v19250_v32 = vld [vmem:[%s25162_s22 + $0x80] sm:$0xff]  }
 0xbeb   : > { %13690 = vmatpush1.bf16.msra.mxu0 %v19169_v18  ;;  %13772 = vmatpush1.bf16.msra.mxu1 %v19172_v17  ;;  %v19252_v18 = vld [vmem:[%s25162_s22 + $0xc8] sm:$0xff]  }
 0xbec   : > { %13691 = vmatprep.subr.bf16.mxu0 %v19177_v46  ;;  %13773 = vmatprep.subr.bf16.mxu1 %v19180_v50  ;;  %v19253_v17 = vld [vmem:[%s25162_s22 + $0x8] sm:$0xff]   ;;  %v19255_v50 = vld [vmem:[%s25162_s22 + $0x50] sm:$0xff]  }
 0xbed   : > { %v19254_v46 = vld [vmem:[%s25162_s22 + $0x88] sm:$0xff]  }
 0xbef   : > { %13692 = vmatpush1.bf16.msra.mxu0 %v19175_v51  ;;  %13774 = vmatpush1.bf16.msra.mxu1 %v19178_v33  ;;  %v19256_v51 = vld [vmem:[%s25162_s22 + $0xd0] sm:$0xff]  }
 0xbf0   : > { %13693 = vmatprep.subr.bf16.mxu0 %v19183_v40  ;;  %13775 = vmatprep.subr.bf16.mxu1 %v19186_v39  ;;  %v19257_v33 = vld [vmem:[%s25162_s22 + $0x10] sm:$0xff]   ;;  %v19259_v39 = vld [vmem:[%s25162_s22 + $0x58] sm:$0xff]  }
 0xbf1   : > { %v19258_v40 = vld [vmem:[%s25162_s22 + $0x90] sm:$0xff]  }
 0xbf3   : > { %13694 = vmatpush1.bf16.msra.mxu0 %v19181_v41  ;;  %13776 = vmatpush1.bf16.msra.mxu1 %v19184_v62  ;;  %v19260_v41 = vld [vmem:[%s25162_s22 + $0xd8] sm:$0xff]  }
 0xbf4   : > { %13695 = vmatprep.subr.bf16.mxu0 %v19189_v49  ;;  %13777 = vmatprep.subr.bf16.mxu1 %v19192_v53  ;;  %v19261_v62 = vld [vmem:[%s25162_s22 + $0x18] sm:$0xff]   ;;  %v19263_v53 = vld [vmem:[%s25162_s22 + $0x60] sm:$0xff]  }
 0xbf5   : > { %v19262_v49 = vld [vmem:[%s25162_s22 + $0x98] sm:$0xff]  }
 0xbf7   : > { %13696 = vmatpush1.bf16.msra.mxu0 %v19187_v54  ;;  %13778 = vmatpush1.bf16.msra.mxu1 %v19190_v12  ;;  %v19264_v54 = vld [vmem:[%s25162_s22 + $0xe0] sm:$0xff]  }
 0xbf8   : > { %13697 = vmatprep.subr.bf16.mxu0 %v19195_v55  ;;  %13779 = vmatprep.subr.bf16.mxu1 %v19198_v15  ;;  %v19265_v12 = vld [vmem:[%s25162_s22 + $0x20] sm:$0xff]   ;;  %v19267_v15 = vld [vmem:[%s25162_s22 + $0x68] sm:$0xff]  }
 0xbf9   : > { %v19266_v55 = vld [vmem:[%s25162_s22 + $0xa0] sm:$0xff]  }
 0xbfb   : > { %13698 = vmatpush1.bf16.msra.mxu0 %v19193_v47  ;;  %13780 = vmatpush1.bf16.msra.mxu1 %v19196_v27  ;;  %v19268_v47 = vld [vmem:[%s25162_s22 + $0xe8] sm:$0xff]  }
 0xbfc   : > { %13699 = vmatprep.subr.bf16.mxu0 %v19201_v48  ;;  %13781 = vmatprep.subr.bf16.mxu1 %v19204_v58  ;;  %v19269_v27 = vld [vmem:[%s25162_s22 + $0x28] sm:$0xff]   ;;  %v19271_v58 = vld [vmem:[%s25162_s22 + $0x70] sm:$0xff]  }
 0xbfd   : > { %v19270_v48 = vld [vmem:[%s25162_s22 + $0xa8] sm:$0xff]  }
 0xbff   : > { %13700 = vmatpush1.bf16.msra.mxu0 %v19199_v61  ;;  %13782 = vmatpush1.bf16.msra.mxu1 %v19202_v13  ;;  %v19272_v61 = vld [vmem:[%s25162_s22 + $0xf0] sm:$0xff]  }
 0xc00   : > { %13701 = vmatprep.subr.bf16.mxu0 %v19207_v59  ;;  %13783 = vmatprep.subr.bf16.mxu1 %v19210_v57  ;;  %v19273_v13 = vld [vmem:[%s25162_s22 + $0x30] sm:$0xff]   ;;  %v19275_v57 = vld [vmem:[%s25162_s22 + $0x78] sm:$0xff]  }
 0xc01   : > { %v19274_v59 = vld [vmem:[%s25162_s22 + $0xb0] sm:$0xff]  }
 0xc03   : > { %13702 = vmatpush1.bf16.msra.mxu0 %v19205_v56  ;;  %13784 = vmatpush1.bf16.msra.mxu1 %v19208_v60  ;;  %v19276_v56 = vld [vmem:[%s25162_s22 + $0xf8] sm:$0xff]  }
 0xc04   : > { %13703 = vmatprep.subr.bf16.mxu0 %v19213_v52  ;;  %13785 = vmatprep.subr.bf16.mxu1 %v19216_v63  ;;  %v19277_v60 = vld [vmem:[%s25162_s22 + $0x38] sm:$0xff]   ;;  %v12980_v63 = vld [vmem:[%s25161_s21] sm:$0xf] }
 0xc05   : > { %v19278_v52 = vld [vmem:[%s25162_s22 + $0xb8] sm:$0xff]  }
 0xc07   : > { %13704 = vmatpush1.bf16.msra.mxu0 %v19211_v20  ;;  %13786 = vmatpush1.bf16.msra.mxu1 %v19214_v23  ;;  %v13625_v20 = vrot.slane %v12980_v63, %v19933_v0  ;;  %v13633_v23 = vrot.slane %v12980_v63, %v19947_v21 }
 0xc08   : > { %13705 = vmatprep.subr.bf16.mxu0 %v19219_v22  ;;  %13787 = vmatprep.subr.bf16.mxu1 %v19222_v2  ;;  %v13629_v22 = vrot.slane %v12980_v63, %v19936_v1  ;;  %v13637_v2 = vrot.slane %v12980_v63, %v19957_v26 }
 0xc0b   : > { %13706 = vmatpush1.bf16.msra.mxu0 %v19217_v37  ;;  %13788 = vmatpush1.bf16.msra.mxu1 %v19220_v24 }
 0xc0c   : > { %13707 = vmatprep.subr.bf16.mxu0 %v19225_v25  ;;  %13789 = vmatprep.subr.bf16.mxu1 %v19228_v3 }
 0xc0f   : > { %13708 = vmatpush1.bf16.msra.mxu0 %v19223_v4  ;;  %13790 = vmatpush1.bf16.msra.mxu1 %v19226_v5 }
 0xc10   : > { %13709 = vmatprep.subr.bf16.mxu0 %v19231_v7  ;;  %13791 = vmatprep.subr.bf16.mxu1 %v19234_v8 }
 0xc13   : > { %13710 = vmatpush1.bf16.msra.mxu0 %v19229_v9  ;;  %13792 = vmatpush1.bf16.msra.mxu1 %v19232_v10 }
 0xc14   : > { %13711 = vmatprep.subr.bf16.mxu0 %v19237_v11  ;;  %13793 = vmatprep.subr.bf16.mxu1 %v19240_v14 }
 0xc17   : > { %13712 = vmatpush1.bf16.msra.mxu0 %v19235_v19  ;;  %13794 = vmatpush1.bf16.msra.mxu1 %v19238_v29 }
 0xc18   : > { %13713 = vmatprep.subr.bf16.mxu0 %v19243_v38  ;;  %13795 = vmatprep.subr.bf16.mxu1 %v19246_v42 }
 0xc1b   : > { %13714 = vmatpush1.bf16.msra.mxu0 %v19241_v16  ;;  %13796 = vmatpush1.bf16.msra.mxu1 %v19244_v43 }
 0xc1c   : > { %16474 = vmatprep.subr.bf16.mxu0 %v19247_v28  ;;  %16496 = vmatprep.subr.bf16.mxu1 %v19248_v45 }
 0xc1e   : > { %13716 = vmatmul.mubr.bf16.vlgmr.msra.gmra.mrb[60].mxu0 %v12850_v44  ;;  %13798 = vmatmul.mubr.bf16.vlgmr.msra.gmra.mrb[60].mxu1 %v12850_v44 }
 0xc1f   : > { %16475 = vmatpush3.bf16.msra.mxu0 %v19249_v31  ;;  %16497 = vmatpush3.bf16.msra.mxu1 %v19250_v32 }
 0xc20   : > { %16476 = vmatprep.subr.bf16.mxu0 %v19251_v6  ;;  %16498 = vmatprep.subr.bf16.mxu1 %v19252_v18 }
 0xc23   : > { %16477 = vmatpush3.bf16.msra.mxu0 %v19253_v17  ;;  %16499 = vmatpush3.bf16.msra.mxu1 %v19254_v46 }
 0xc24   : > { %16478 = vmatprep.subr.bf16.mxu0 %v19255_v50  ;;  %16500 = vmatprep.subr.bf16.mxu1 %v19256_v51 }
 0xc27   : > { %16479 = vmatpush3.bf16.msra.mxu0 %v19257_v33  ;;  %16501 = vmatpush3.bf16.msra.mxu1 %v19258_v40 }
 0xc28   : > { %16480 = vmatprep.subr.bf16.mxu0 %v19259_v39  ;;  %16502 = vmatprep.subr.bf16.mxu1 %v19260_v41 }
 0xc2b   : > { %16481 = vmatpush3.bf16.msra.mxu0 %v19261_v62  ;;  %16503 = vmatpush3.bf16.msra.mxu1 %v19262_v49 }
 0xc2c   : > { %16482 = vmatprep.subr.bf16.mxu0 %v19263_v53  ;;  %16504 = vmatprep.subr.bf16.mxu1 %v19264_v54 }
 0xc2f   : > { %16483 = vmatpush3.bf16.msra.mxu0 %v19265_v12  ;;  %16505 = vmatpush3.bf16.msra.mxu1 %v19266_v55 }
 0xc30   : > { %16484 = vmatprep.subr.bf16.mxu0 %v19267_v15  ;;  %16506 = vmatprep.subr.bf16.mxu1 %v19268_v47 }
 0xc33   : > { %16485 = vmatpush3.bf16.msra.mxu0 %v19269_v27  ;;  %16507 = vmatpush3.bf16.msra.mxu1 %v19270_v48 }
 0xc34   : > { %16486 = vmatprep.subr.bf16.mxu0 %v19271_v58  ;;  %16508 = vmatprep.subr.bf16.mxu1 %v19272_v61 }
 0xc37   : > { %16487 = vmatpush3.bf16.msra.mxu0 %v19273_v13  ;;  %16509 = vmatpush3.bf16.msra.mxu1 %v19274_v59 }
 0xc38   : > { %16488 = vmatprep.subr.bf16.mxu0 %v19275_v57  ;;  %16510 = vmatprep.subr.bf16.mxu1 %v19276_v56 }
 0xc3b   : > { %16489 = vmatpush3.bf16.msra.mxu0 %v19277_v60  ;;  %16511 = vmatpush3.bf16.msra.mxu1 %v19278_v52 }
 0xcf1   : > { %v13717_v37 = vpop.f32.mrb[60].mxu0  ;;  %v13799_v24 = vpop.f32.mrb[60].mxu1 }
 0xcf2   : > { %v16538_v25 = vadd.f32 %v13717_v37, %v13625_v20  ;;  %v16540_v3 = vadd.f32 %v13799_v24, %v13633_v23  ;;  %v13719_v4 = vpop.f32.mrb[61].mxu0  ;;  %v13801_v5 = vpop.f32.mrb[61].mxu1 }
 0xcf3   : > { %v16539_v7 = vadd.f32 %v13719_v4, %v13629_v22  ;;  %v16541_v8 = vadd.f32 %v13801_v5, %v13637_v2  ;;  %v13721_v9 = vpop.f32.mrb[62].mxu0  ;;  %v13803_v10 = vpop.f32.mrb[62].mxu1 }
 0xcf4   : > { %v16433_v11 = vmul.f32 -1.442695, %v16538_v25  ;;  %v16435_v14 = vmul.f32 -1.442695, %v16540_v3  ;;  %v13722_v19 = vpop.f32.mrb[63].mxu0  ;;  %v13804_v0 = vpop.f32.mrb[63].mxu1 }
 0xcf5   : > { %v16434_v29 = vmul.f32 -1.442695, %v16539_v7  ;;  %v16436_v21 = vmul.f32 -1.442695, %v16541_v8 }
 0xcf6   : > { %19295 = vpow2.f32 %v16433_v11 }
 0xcf7   : > { %19297 = vpow2.f32 %v16435_v14 }
 0xcf8   : > { %19299 = vpow2.f32 %v16434_v29 }
 0xcf9   : > { %19301 = vpow2.f32 %v16436_v21 }
 0xd00   : > { %v19296_v1 = vpop.eup %19295 }
 0xd01   : > { %v19298_v26 = vpop.eup %19297  ;;  %v13818_v38 = vadd.f32 1.0, %v19296_v1 }
 0xd02   : > { %v19300_v42 = vpop.eup %19299  ;;  %v13820_v16 = vadd.f32 1.0, %v19298_v26 }
 0xd03   : > { %v19302_v43 = vpop.eup %19301  ;;  %19303 = vrcp.f32 %v13818_v38  ;;  %v13819_v44 = vadd.f32 1.0, %v19300_v42 }
 0xd04   : > { %19305 = vrcp.f32 %v13820_v16  ;;  %v13821_v28 = vadd.f32 1.0, %v19302_v43 }
 0xd05   : > { %19307 = vrcp.f32 %v13819_v44 }
 0xd06   : > { %19309 = vrcp.f32 %v13821_v28 }
 0xd0d   : > { %v19304_v45 = vpop.eup %19303 }
 0xd0e   : > { %v19306_v31 = vpop.eup %19305  ;;  %v13830_v6 = vadd.f32 %v19304_v45, %v24383_v30  ;;  %v13902_v30 = vld [vmem:[%s25163_s23] sm:$0x1] }
 0xd0f   : > { %v19308_v32 = vpop.eup %19307  ;;  %v13832_v46 = vadd.f32 %v19306_v31, %v24590_v36 }
 0xd10   : > { %v19310_v18 = vpop.eup %19309  ;;  %v13831_v17 = vadd.f32 %v19308_v32, %v24385_v34  ;;  %v13834_v40 = vpack.c.bf16 %v13830_v6, %v13830_v6 }
 0xd11   : > { %v13833_v50 = vadd.f32 %v19310_v18, %v24387_v35  ;;  %v13836_v39 = vpack.c.bf16 %v13832_v46, %v13832_v46 }
 0xd12   : > { %v13835_v51 = vpack.c.bf16 %v13831_v17, %v13831_v17 }
 0xd13   : > { %v13837_v33 = vpack.c.bf16 %v13833_v50, %v13833_v50 }
 0xd14   : > { %14127 = vmatprep.mubr.bf16.mxu0 %v13835_v51 }
 0xd15   : > { %14167 = vmatprep.mubr.bf16.mxu1 %v13837_v33  ;;  %14128 = vmatmul.mubr.bf16.vlgmr.msra.gmra.mrb[64].mxu0 %v13834_v40 }
 0xd16   : > { %14168 = vmatmul.mubr.bf16.vlgmr.msra.gmra.mrb[64].mxu1 %v13836_v39 }
 0xde8   : > { %v16490_v41 = vpop.f32.mrb[64].mxu0 }
 0xde9   : > { %v16512_v62 = vpop.f32.mrb[64].mxu1  ;;  %v16491_v34 = vpop.f32.mrb[65].mxu0 }
 0xdea   : > { %v16492_v36 = vadd.f32 %v16491_v34, %v16490_v41  ;;  %v16513_v49 = vpop.f32.mrb[65].mxu1  ;;  %v16493_v35 = vpop.f32.mrb[66].mxu0 }
 0xdeb   : > { %v16514_v53 = vadd.f32 %v16513_v49, %v16512_v62  ;;  %v16515_v54 = vpop.f32.mrb[66].mxu1  ;;  %v16494_v12 = vpop.f32.mrb[67].mxu0 }
 0xdec   : > { %v14130_v55 = vadd.f32 %v16492_v36, %v13902_v30  ;;  %v16516_v15 = vpop.f32.mrb[67].mxu1 }
 0xdee   : > { %v14170_v47 = vadd.f32 %v16514_v53, %v14130_v55 }
 0xdf0   : > { %v16469_v27 = vmul.f32 -1.442695, %v14170_v47 }
 0xdf2   : > { %19311 = vpow2.f32 %v16469_v27 }
 0xdfc   : > { %v19312_v48 = vpop.eup %19311 }
 0xdfd   : > { %v14178_v58 = vadd.f32 1.0, %v19312_v48 }
 0xdff   : > { %19313 = vrcp.f32 %v14178_v58 }
 0xe09   : > { %v19314_v61 = vpop.eup %19313 }
 0xe0a   : > { %14182 = vst.msk [vmem:[%s759_s8] sm:$0x1] %vm14181_vm7, %v19314_v61 }
 0xe0b   : > { %19328 = shalt.err (!%p19325_p3)
}
 0xe0c   : > { %s19329_s3 = scalar_lea.hbm %s25098_s9, 16  ;;  %s19333_s6 = scalar_lea.hbm %s25215_s4, 32 }
 0xe0d   : > { %p19330_p4 = scmp.ne.s32.totalorder %s25098_s9, %s19329_s3  ;;  %p19334_p9 = scmp.lt.u32.totalorder %s25098_s9, %s25215_s4 }
 0xe0e   : > { %p19335_p10 = scmp.lt.u32.totalorder %s19333_s6, %s19329_s3  ;;  %p19337_p12 = scmp.lt.u32.totalorder %s19329_s3, %s25098_s9 }
 0xe0f   : > { %p19331_p7 = pnand %p19330_p4, %p19552_p5 }
 0xe10   : > { %p19336_p11 = por %p19335_p10, %p19334_p9 }
 0xe11   : > { %p19332_p8 = pneg %p19331_p7 }
 0xe12   : > { %p19338_p13 = por %p19337_p12, %p19336_p11 }
 0xe14   : > { %p19339_p0 = pnand %p19338_p13, %p19332_p8 }
 0xe16   : > { %19342 = shalt.err (!%p19339_p0)
}
 0xe17   : > { %16632 = dma.vmem_to_hbm [thread:$0]  (%p19552_p5), %s25100_s27, 16, %s25098_s9, %s14218_s5  }
 0xe18 PF: > { %s25216_s10 = sld [smem:[#allocation8_spill]]  ;;  %s25217_s0 = sld [smem:[#allocation6_spill]] }
 0xe1e   : > { %p16638_p1 = scmp.ge.s32.totalorder %s25216_s10, 2  ;;  %s14249_s1 = sand.u32 1, %s25217_s0  }
 0xe1f   : > { %s14250_s2 = scalar_lea.sflag [#allocation4], %s14249_s1 }
 0xe20   : > { %p16635_p2 = pnand %p16638_p1, %p19556_p6 }
 0xe22   : > { %19360 = dma.done.wait (!%p16635_p2), %s14250_s2, 16  }
 0xe23   : > { %19362 = vsyncadd (!%p16635_p2), %s14250_s2, 4294967280  ;;  %s25219_s3 = sld [smem:[#allocation9_spill]]  ;;  %s25220_s8 = sld [smem:[#allocation7_spill]] }
 0xe24   : > { %s25221_s7 = sld [smem:[#allocation10_spill]]  ;;  %s25222_s6 = smov %s19369_s30 }
 0xe29   : > { %p38_p3 = scmp.ge.s32.totalorder %s25219_s3, 4   ;;  %s25223_s30 = smov %s25220_s8 }
 0xe2b   :  { %40 = sbr.rel (!%p38_p3) target bundleno = 16 (0x10), region = 166 }
 0xe32   :  { %14261 = vsyncpa [#allocation4], 1 }
 0xe33   :  { %14263 = vsyncpa [#allocation4 + $0x1], 1 }

</bundles_post_ra>
